<compile_context>
chip_gen: v7x
topology: tpu7x:2x2x1
jax: 0.10.0
libtpu: 0.0.40
codegen_flags: <defaults>
</compile_context>

<pallas_src>
import numpy as np
import jax
import jax.numpy as jnp
from jax import lax
from jax.experimental import pallas as pl
from jax.experimental.pallas import tpu as pltpu

NEG_SLOPE = 0.2
BN_EPS = 1e-5
N_LAYERS = 6
FC_PAD = 128            # lane-dense padded width of the FC output (sliced in the wrapper)


# ---------------------------------------------------------------------------
# Single fused Pallas kernel: the whole model_f forward pass.
#   inputs : x, (S_1, M_1, aff_1), ..., (S_6, M_6, aff_6), W_fc, b_fc
#   output : (B, FC_PAD) f32   (column 0 is the FC1 result)
# ---------------------------------------------------------------------------
def _fused_forward_kernel(x_ref, *refs):
    o_ref = refs[-1]
    wfc_ref, bfc_ref = refs[-3], refs[-2]
    n_layers = (len(refs) - 3) // 3
    batch = x_ref.shape[0]

    # Per-image activations, row-major (rows = H, lanes = W*Cin), bf16.
    acts = [x_ref[b] for b in range(batch)]

    for l in range(n_layers):
        s_ref, m_ref, aff_ref = refs[3 * l], refs[3 * l + 1], refs[3 * l + 2]
        m = m_ref[...]                     # (4*W*Cin, OW*Cout) bf16, conv-as-GEMM matrix
        aff = aff_ref[...]                 # (2, OW*Cout) f32: row0 = scale, row1 = shift
        h = acts[0].shape[0]
        oh = h // 2
        use_mxu_gather = h >= 8
        if use_mxu_gather:
            # 0/1 row-selection matrices (exact row gather on the MXU, no stride-2 loads).
            s_taps = [s_ref[k] for k in range(4)]        # each (OH, H) bf16

        new_acts = []
        for a in acts:                                   # static python loop over batch
            taps = []
            for ky in range(4):
                if use_mxu_gather:
                    t = jnp.dot(s_taps[ky], a, preferred_element_type=jnp.float32)
                    t = t.astype(jnp.bfloat16)           # exact: one 1 per selector row
                else:
                    # tiny spatial dim (H < 8): gather rows with static slices instead
                    rows = [(2 * oy + ky - 1) % h for oy in range(oh)]
                    t = jnp.concatenate([a[r:r + 1, :] for r in rows], axis=0)
                taps.append(t)                           # (OH, W*Cin)
            # im2col patch matrix, built entirely in VMEM (lane concat, 128-aligned).
            p = jnp.concatenate(taps, axis=1)            # (OH, 4*W*Cin) bf16
            # conv-as-GEMM (f32 accumulation) + folded bias/eval-BN affine + LeakyReLU.
            y = jnp.dot(p, m, preferred_element_type=jnp.float32)   # (OH, OW*Cout)
            y = y * aff[0:1, :] + aff[1:2, :]
            y = jnp.where(y >= 0.0, y, NEG_SLOPE * y)
            new_acts.append(y.astype(jnp.bfloat16))
        acts = new_acts

    # Flatten (NHWC order) each image and apply the final FC (padded to 128 lanes).
    flat = jnp.concatenate(
        [jnp.concatenate([a[r:r + 1, :] for r in range(a.shape[0])], axis=1) for a in acts],
        axis=0)                                          # (B, 32*hidden*2*2) bf16
    out = jnp.dot(flat, wfc_ref[...], preferred_element_type=jnp.float32) + bfc_ref[...]
    o_ref[...] = out                                     # (B, FC_PAD) f32, lane-dense


# ---------------------------------------------------------------------------
# Wrapper: one pallas_call, whole-array VMEM blocks, no grid.
# ---------------------------------------------------------------------------
@jax.jit
def model_f_forward(image_nchw, params):
    b = image_nchw.shape[0]
    x = image_nchw[:, 0, :, :].astype(jnp.bfloat16)      # (B, H, W); Cin = 1
    flat_args = []
    for (s, m, aff) in params["convs"]:
        flat_args += [s, m, aff]
    flat_args += [params["fc_w"], params["fc_b"]]
    n_in = 1 + len(flat_args)
    out = pl.pallas_call(
        _fused_forward_kernel,
        out_shape=jax.ShapeDtypeStruct((b, FC_PAD), jnp.float32),
        in_specs=[pl.BlockSpec(memory_space=pltpu.MemorySpace.VMEM)] * n_in,
        out_specs=pl.BlockSpec(memory_space=pltpu.MemorySpace.VMEM),
        compiler_params=pltpu.CompilerParams(
            vmem_limit_bytes=32 * 1024 * 1024,           # ~3 MiB actually used; safe on v7x
        ),
    )(x, *flat_args)
    return out[:, :1]                                    # drop lane padding


# ---------------------------------------------------------------------------
# Parameter construction (in-script, deterministic) + kernel-side packing.
# ---------------------------------------------------------------------------
def init_raw_params(key, hidden):
    chans = [1, hidden, 2 * hidden, 4 * hidden, 8 * hidden, 16 * hidden, 32 * hidden]
    conv_w, conv_b = [], []
    for l in range(N_LAYERS):
        cin, cout = chans[l], chans[l + 1]
        key, kw, kb = jax.random.split(key, 3)
        fan_in = 16 * cin                                # Cin * 4 * 4
        std = (2.0 / fan_in) ** 0.5                      # kaiming_normal_ (gain sqrt(2))
        conv_w.append(std * jax.random.normal(kw, (4, 4, cin, cout), jnp.float32))  # HWIO
        bound = 1.0 / fan_in ** 0.5
        conv_b.append(jax.random.uniform(kb, (cout,), jnp.float32, -bound, bound))
    feat = 32 * hidden * 2 * 2
    key, kw, kb = jax.random.split(key, 3)
    fc_w = (2.0 / feat) ** 0.5 * jax.random.normal(kw, (feat, 1), jnp.float32)
    fc_b = jax.random.uniform(kb, (1,), jnp.float32, -1.0 / feat ** 0.5, 1.0 / feat ** 0.5)
    return {"conv_w": conv_w, "conv_b": conv_b, "fc_w": fc_w, "fc_b": fc_b}


def pack_params(raw, img_hw):
    """Expand each conv into (row-selectors S, conv-as-GEMM matrix M, per-channel affine).

    For a 4x4 / stride-2 / pad-1 circular conv on a row-major (H, W*Cin) activation:
      S[ky, oy, r]                 = 1  iff  r == (2*oy + ky - 1) mod H
      M[(ky, w, ci), (ox, co)]     = W[ky, kx, ci, co]  with  w == (2*ox + kx - 1) mod W
    Conv bias + eval-mode BatchNorm are folded into a per-(ox, co) scale/shift.
    """
    convs = []
    h = img_hw
    for l in range(N_LAYERS):
        w = np.asarray(raw["conv_w"][l], np.float32)     # (4, 4, Cin, Cout) HWIO
        bias = np.asarray(raw["conv_b"][l], np.float32)  # (Cout,)
        cin, cout = w.shape[2], w.shape[3]
        oh = ow = h // 2
        # Row-selection matrices (circular row taps for the 4 kernel rows).
        s = np.zeros((4, oh, h), np.float32)
        oy = np.arange(oh)
        for ky in range(4):
            s[ky, oy, (2 * oy + ky - 1) % h] = 1.0
        # Conv-as-GEMM matrix over the (W*Cin) lane dimension, circular in W.
        m = np.zeros((4, h, cin, ow, cout), np.float32)
        for ky in range(4):
            for kx in range(4):
                for ox in range(ow):
                    m[ky, (2 * ox + kx - 1) % h, :, ox, :] += w[ky, kx]
        m = m.reshape(4 * h * cin, ow * cout)
        # Fold conv bias + eval-mode BN (gamma=1, beta=0, mean=0, var=1) into scale/shift.
        if l == 0:                                       # forward() skips B1
            scale_co = np.ones((cout,), np.float32)
            shift_co = bias
        else:
            bn = 1.0 / np.sqrt(1.0 + BN_EPS)
            scale_co = np.full((cout,), bn, np.float32)
            shift_co = bias * bn
        aff = np.stack([np.tile(scale_co, ow), np.tile(shift_co, ow)], axis=0)  # (2, OW*Cout)
        convs.append((jnp.asarray(s, jnp.bfloat16),
                      jnp.asarray(m, jnp.bfloat16),
                      jnp.asarray(aff, jnp.float32)))
        h = oh
    # FC weights, padded to 128 output lanes (lane-dense final store).
    fc_w = np.asarray(raw["fc_w"], np.float32)           # (32*hidden*2*2, 1)
    fc_b = np.asarray(raw["fc_b"], np.float32)           # (1,)
    wfc = np.zeros((fc_w.shape[0], FC_PAD), np.float32)
    wfc[:, 0] = fc_w[:, 0]
    bfc = np.zeros((1, FC_PAD), np.float32)
    bfc[0, 0] = fc_b[0]
    return {"convs": convs,
            "fc_w": jnp.asarray(wfc, jnp.bfloat16),
            "fc_b": jnp.asarray(bfc, jnp.float32)}


# ---------------------------------------------------------------------------
# Pure-JAX reference (lax.conv, mirrors the intentional bf16 quantization points).
# ---------------------------------------------------------------------------
def reference_forward(image_nchw, raw):
    x = jnp.transpose(image_nchw, (0, 2, 3, 1)).astype(jnp.bfloat16).astype(jnp.float32)
    for l in range(N_LAYERS):
        w = raw["conv_w"][l].astype(jnp.bfloat16).astype(jnp.float32)
        xp = jnp.pad(x, ((0, 0), (1, 1), (1, 1), (0, 0)), mode="wrap")  # circular pad
        y = lax.conv_general_dilated(
            xp, w, window_strides=(2, 2), padding="VALID",
            dimension_numbers=("NHWC", "HWIO", "NHWC"),
            precision=lax.Precision.HIGHEST, preferred_element_type=jnp.float32,
        ) + raw["conv_b"][l]
        if l > 0:
            y = y * (1.0 / jnp.sqrt(1.0 + BN_EPS))        # eval-mode BN (gamma=1, beta=0)
        y = jnp.where(y >= 0.0, y, NEG_SLOPE * y)
        x = y.astype(jnp.bfloat16).astype(jnp.float32)
    flat = x.reshape(x.shape[0], -1)                      # NHWC flatten (matches kernel)
    wfc = raw["fc_w"].astype(jnp.bfloat16).astype(jnp.float32)
    return jnp.dot(flat, wfc, precision=lax.Precision.HIGHEST) + raw["fc_b"]


if __name__ == "__main__":
    HIDDEN = 4            # channel widths 4, 8, 16, 32, 64, 128
    B = 2
    H = W = 128           # 6 stride-2 convs: 128 -> 2, matching FC1 in_features = 32*hidden*2*2

    key = jax.random.PRNGKey(0)
    key, kimg = jax.random.split(key)
    image = jax.random.normal(kimg, (B, 1, H, W), dtype=jnp.float32)   # NCHW, like PyTorch

    raw = init_raw_params(key, HIDDEN)
    params = pack_params(raw, H)

    out = model_f_forward(image, params)
    out = jax.block_until_ready(out)
    assert out.shape == (B, 1)
    assert bool(jnp.all(jnp.isfinite(out)))

    ref = reference_forward(image, raw)
    assert jnp.allclose(out, ref, atol=3e-2, rtol=3e-2), (out, ref)

    print("KERNEL_OK")
</pallas_src>

<mosaic_0001>
module attributes {stable_mosaic.version = 11 : i64} {
  func.func @_fused_forward_kernel(%arg0: memref<2x128x128xbf16, #tpu.memory_space<vmem>>, %arg1: memref<4x64x128xbf16, #tpu.memory_space<vmem>>, %arg2: memref<512x256xbf16, #tpu.memory_space<vmem>>, %arg3: memref<2x256xf32, #tpu.memory_space<vmem>>, %arg4: memref<4x32x64xbf16, #tpu.memory_space<vmem>>, %arg5: memref<1024x256xbf16, #tpu.memory_space<vmem>>, %arg6: memref<2x256xf32, #tpu.memory_space<vmem>>, %arg7: memref<4x16x32xbf16, #tpu.memory_space<vmem>>, %arg8: memref<1024x256xbf16, #tpu.memory_space<vmem>>, %arg9: memref<2x256xf32, #tpu.memory_space<vmem>>, %arg10: memref<4x8x16xbf16, #tpu.memory_space<vmem>>, %arg11: memref<1024x256xbf16, #tpu.memory_space<vmem>>, %arg12: memref<2x256xf32, #tpu.memory_space<vmem>>, %arg13: memref<4x4x8xbf16, #tpu.memory_space<vmem>>, %arg14: memref<1024x256xbf16, #tpu.memory_space<vmem>>, %arg15: memref<2x256xf32, #tpu.memory_space<vmem>>, %arg16: memref<4x2x4xbf16, #tpu.memory_space<vmem>>, %arg17: memref<1024x256xbf16, #tpu.memory_space<vmem>>, %arg18: memref<2x256xf32, #tpu.memory_space<vmem>>, %arg19: memref<512x128xbf16, #tpu.memory_space<vmem>>, %arg20: memref<1x128xf32, #tpu.memory_space<vmem>>, %arg21: memref<2x128xf32, #tpu.memory_space<vmem>>) attributes {dimension_semantics = [], scalar_prefetch = 0 : i64, scratch_operands = 0 : i64, tpu.core_type = #tpu.core_type<tc>} {
    %c0 = arith.constant 0 : index
    %c0_0 = arith.constant 0 : index
    %c0_1 = arith.constant 0 : index
    %0 = vector.load %arg0[%c0, %c0_0, %c0_1] : memref<2x128x128xbf16, #tpu.memory_space<vmem>>, vector<1x128x128xbf16>
    %1 = vector.shape_cast %0 : vector<1x128x128xbf16> to vector<128x128xbf16>
    %c1 = arith.constant 1 : index
    %c0_2 = arith.constant 0 : index
    %c0_3 = arith.constant 0 : index
    %2 = vector.load %arg0[%c1, %c0_2, %c0_3] : memref<2x128x128xbf16, #tpu.memory_space<vmem>>, vector<1x128x128xbf16>
    %3 = vector.shape_cast %2 : vector<1x128x128xbf16> to vector<128x128xbf16>
    %c0_4 = arith.constant 0 : index
    %c0_5 = arith.constant 0 : index
    %4 = vector.load %arg2[%c0_4, %c0_5] : memref<512x256xbf16, #tpu.memory_space<vmem>>, vector<512x256xbf16>
    %c0_6 = arith.constant 0 : index
    %c0_7 = arith.constant 0 : index
    %5 = vector.load %arg3[%c0_6, %c0_7] : memref<2x256xf32, #tpu.memory_space<vmem>>, vector<2x256xf32>
    %c0_8 = arith.constant 0 : index
    %c0_9 = arith.constant 0 : index
    %c0_10 = arith.constant 0 : index
    %6 = vector.load %arg1[%c0_8, %c0_9, %c0_10] : memref<4x64x128xbf16, #tpu.memory_space<vmem>>, vector<1x64x128xbf16>
    %7 = vector.shape_cast %6 : vector<1x64x128xbf16> to vector<64x128xbf16>
    %c1_11 = arith.constant 1 : index
    %c0_12 = arith.constant 0 : index
    %c0_13 = arith.constant 0 : index
    %8 = vector.load %arg1[%c1_11, %c0_12, %c0_13] : memref<4x64x128xbf16, #tpu.memory_space<vmem>>, vector<1x64x128xbf16>
    %9 = vector.shape_cast %8 : vector<1x64x128xbf16> to vector<64x128xbf16>
    %c2 = arith.constant 2 : index
    %c0_14 = arith.constant 0 : index
    %c0_15 = arith.constant 0 : index
    %10 = vector.load %arg1[%c2, %c0_14, %c0_15] : memref<4x64x128xbf16, #tpu.memory_space<vmem>>, vector<1x64x128xbf16>
    %11 = vector.shape_cast %10 : vector<1x64x128xbf16> to vector<64x128xbf16>
    %c3 = arith.constant 3 : index
    %c0_16 = arith.constant 0 : index
    %c0_17 = arith.constant 0 : index
    %12 = vector.load %arg1[%c3, %c0_16, %c0_17] : memref<4x64x128xbf16, #tpu.memory_space<vmem>>, vector<1x64x128xbf16>
    %13 = vector.shape_cast %12 : vector<1x64x128xbf16> to vector<64x128xbf16>
    %cst = arith.constant dense<0.000000e+00> : vector<64x128xf32>
    %14 = tpu.matmul %7, %1, %cst {dimension_numbers = #tpu.dot_dimension_numbers<[1], [0], [0], [1], [0, 0, 1, 1], [], []>} : vector<64x128xbf16>, vector<128x128xbf16>, vector<64x128xf32> -> vector<64x128xf32>
    %15 = arith.truncf %14 : vector<64x128xf32> to vector<64x128xbf16>
    %cst_18 = arith.constant dense<0.000000e+00> : vector<64x128xf32>
    %16 = tpu.matmul %9, %1, %cst_18 {dimension_numbers = #tpu.dot_dimension_numbers<[1], [0], [0], [1], [0, 0, 1, 1], [], []>} : vector<64x128xbf16>, vector<128x128xbf16>, vector<64x128xf32> -> vector<64x128xf32>
    %17 = arith.truncf %16 : vector<64x128xf32> to vector<64x128xbf16>
    %cst_19 = arith.constant dense<0.000000e+00> : vector<64x128xf32>
    %18 = tpu.matmul %11, %1, %cst_19 {dimension_numbers = #tpu.dot_dimension_numbers<[1], [0], [0], [1], [0, 0, 1, 1], [], []>} : vector<64x128xbf16>, vector<128x128xbf16>, vector<64x128xf32> -> vector<64x128xf32>
    %19 = arith.truncf %18 : vector<64x128xf32> to vector<64x128xbf16>
    %cst_20 = arith.constant dense<0.000000e+00> : vector<64x128xf32>
    %20 = tpu.matmul %13, %1, %cst_20 {dimension_numbers = #tpu.dot_dimension_numbers<[1], [0], [0], [1], [0, 0, 1, 1], [], []>} : vector<64x128xbf16>, vector<128x128xbf16>, vector<64x128xf32> -> vector<64x128xf32>
    %21 = arith.truncf %20 : vector<64x128xf32> to vector<64x128xbf16>
    %22 = tpu.concatenate %15, %17, %19, %21 in 1 : vector<64x128xbf16>, vector<64x128xbf16>, vector<64x128xbf16>, vector<64x128xbf16> -> vector<64x512xbf16>
    %cst_21 = arith.constant dense<0.000000e+00> : vector<64x256xf32>
    %23 = tpu.matmul %22, %4, %cst_21 {dimension_numbers = #tpu.dot_dimension_numbers<[1], [0], [0], [1], [0, 0, 1, 1], [], []>} : vector<64x512xbf16>, vector<512x256xbf16>, vector<64x256xf32> -> vector<64x256xf32>
    %24 = vector.extract_strided_slice %5 {offsets = [0, 0], sizes = [1, 256], strides = [1, 1]} : vector<2x256xf32> to vector<1x256xf32>
    %25 = vector.broadcast %24 : vector<1x256xf32> to vector<64x256xf32>
    %26 = arith.mulf %23, %25 : vector<64x256xf32>
    %27 = vector.extract_strided_slice %5 {offsets = [1, 0], sizes = [1, 256], strides = [1, 1]} : vector<2x256xf32> to vector<1x256xf32>
    %28 = vector.broadcast %27 : vector<1x256xf32> to vector<64x256xf32>
    %29 = arith.addf %26, %28 : vector<64x256xf32>
    %cst_22 = arith.constant 0.000000e+00 : f32
    %30 = vector.broadcast %cst_22 : f32 to vector<64x256xf32>
    %31 = arith.cmpf oge, %29, %30 : vector<64x256xf32>
    %cst_23 = arith.constant 2.000000e-01 : f32
    %32 = vector.broadcast %cst_23 : f32 to vector<64x256xf32>
    %33 = arith.mulf %32, %29 : vector<64x256xf32>
    %34 = arith.select %31, %29, %33 : vector<64x256xi1>, vector<64x256xf32>
    %35 = arith.truncf %34 : vector<64x256xf32> to vector<64x256xbf16>
    %cst_24 = arith.constant dense<0.000000e+00> : vector<64x128xf32>
    %36 = tpu.matmul %7, %3, %cst_24 {dimension_numbers = #tpu.dot_dimension_numbers<[1], [0], [0], [1], [0, 0, 1, 1], [], []>} : vector<64x128xbf16>, vector<128x128xbf16>, vector<64x128xf32> -> vector<64x128xf32>
    %37 = arith.truncf %36 : vector<64x128xf32> to vector<64x128xbf16>
    %cst_25 = arith.constant dense<0.000000e+00> : vector<64x128xf32>
    %38 = tpu.matmul %9, %3, %cst_25 {dimension_numbers = #tpu.dot_dimension_numbers<[1], [0], [0], [1], [0, 0, 1, 1], [], []>} : vector<64x128xbf16>, vector<128x128xbf16>, vector<64x128xf32> -> vector<64x128xf32>
    %39 = arith.truncf %38 : vector<64x128xf32> to vector<64x128xbf16>
    %cst_26 = arith.constant dense<0.000000e+00> : vector<64x128xf32>
    %40 = tpu.matmul %11, %3, %cst_26 {dimension_numbers = #tpu.dot_dimension_numbers<[1], [0], [0], [1], [0, 0, 1, 1], [], []>} : vector<64x128xbf16>, vector<128x128xbf16>, vector<64x128xf32> -> vector<64x128xf32>
    %41 = arith.truncf %40 : vector<64x128xf32> to vector<64x128xbf16>
    %cst_27 = arith.constant dense<0.000000e+00> : vector<64x128xf32>
    %42 = tpu.matmul %13, %3, %cst_27 {dimension_numbers = #tpu.dot_dimension_numbers<[1], [0], [0], [1], [0, 0, 1, 1], [], []>} : vector<64x128xbf16>, vector<128x128xbf16>, vector<64x128xf32> -> vector<64x128xf32>
    %43 = arith.truncf %42 : vector<64x128xf32> to vector<64x128xbf16>
    %44 = tpu.concatenate %37, %39, %41, %43 in 1 : vector<64x128xbf16>, vector<64x128xbf16>, vector<64x128xbf16>, vector<64x128xbf16> -> vector<64x512xbf16>
    %cst_28 = arith.constant dense<0.000000e+00> : vector<64x256xf32>
    %45 = tpu.matmul %44, %4, %cst_28 {dimension_numbers = #tpu.dot_dimension_numbers<[1], [0], [0], [1], [0, 0, 1, 1], [], []>} : vector<64x512xbf16>, vector<512x256xbf16>, vector<64x256xf32> -> vector<64x256xf32>
    %46 = vector.extract_strided_slice %5 {offsets = [0, 0], sizes = [1, 256], strides = [1, 1]} : vector<2x256xf32> to vector<1x256xf32>
    %47 = vector.broadcast %46 : vector<1x256xf32> to vector<64x256xf32>
    %48 = arith.mulf %45, %47 : vector<64x256xf32>
    %49 = vector.extract_strided_slice %5 {offsets = [1, 0], sizes = [1, 256], strides = [1, 1]} : vector<2x256xf32> to vector<1x256xf32>
    %50 = vector.broadcast %49 : vector<1x256xf32> to vector<64x256xf32>
    %51 = arith.addf %48, %50 : vector<64x256xf32>
    %cst_29 = arith.constant 0.000000e+00 : f32
    %52 = vector.broadcast %cst_29 : f32 to vector<64x256xf32>
    %53 = arith.cmpf oge, %51, %52 : vector<64x256xf32>
    %cst_30 = arith.constant 2.000000e-01 : f32
    %54 = vector.broadcast %cst_30 : f32 to vector<64x256xf32>
    %55 = arith.mulf %54, %51 : vector<64x256xf32>
    %56 = arith.select %53, %51, %55 : vector<64x256xi1>, vector<64x256xf32>
    %57 = arith.truncf %56 : vector<64x256xf32> to vector<64x256xbf16>
    %c0_31 = arith.constant 0 : index
    %c0_32 = arith.constant 0 : index
    %58 = vector.load %arg5[%c0_31, %c0_32] : memref<1024x256xbf16, #tpu.memory_space<vmem>>, vector<1024x256xbf16>
    %c0_33 = arith.constant 0 : index
    %c0_34 = arith.constant 0 : index
    %59 = vector.load %arg6[%c0_33, %c0_34] : memref<2x256xf32, #tpu.memory_space<vmem>>, vector<2x256xf32>
    %c0_35 = arith.constant 0 : index
    %c0_36 = arith.constant 0 : index
    %c0_37 = arith.constant 0 : index
    %60 = vector.load %arg4[%c0_35, %c0_36, %c0_37] : memref<4x32x64xbf16, #tpu.memory_space<vmem>>, vector<1x32x64xbf16>
    %61 = vector.shape_cast %60 : vector<1x32x64xbf16> to vector<32x64xbf16>
    %c1_38 = arith.constant 1 : index
    %c0_39 = arith.constant 0 : index
    %c0_40 = arith.constant 0 : index
    %62 = vector.load %arg4[%c1_38, %c0_39, %c0_40] : memref<4x32x64xbf16, #tpu.memory_space<vmem>>, vector<1x32x64xbf16>
    %63 = vector.shape_cast %62 : vector<1x32x64xbf16> to vector<32x64xbf16>
    %c2_41 = arith.constant 2 : index
    %c0_42 = arith.constant 0 : index
    %c0_43 = arith.constant 0 : index
    %64 = vector.load %arg4[%c2_41, %c0_42, %c0_43] : memref<4x32x64xbf16, #tpu.memory_space<vmem>>, vector<1x32x64xbf16>
    %65 = vector.shape_cast %64 : vector<1x32x64xbf16> to vector<32x64xbf16>
    %c3_44 = arith.constant 3 : index
    %c0_45 = arith.constant 0 : index
    %c0_46 = arith.constant 0 : index
    %66 = vector.load %arg4[%c3_44, %c0_45, %c0_46] : memref<4x32x64xbf16, #tpu.memory_space<vmem>>, vector<1x32x64xbf16>
    %67 = vector.shape_cast %66 : vector<1x32x64xbf16> to vector<32x64xbf16>
    %cst_47 = arith.constant dense<0.000000e+00> : vector<32x256xf32>
    %68 = tpu.matmul %61, %35, %cst_47 {dimension_numbers = #tpu.dot_dimension_numbers<[1], [0], [0], [1], [0, 0, 1, 1], [], []>} : vector<32x64xbf16>, vector<64x256xbf16>, vector<32x256xf32> -> vector<32x256xf32>
    %69 = arith.truncf %68 : vector<32x256xf32> to vector<32x256xbf16>
    %cst_48 = arith.constant dense<0.000000e+00> : vector<32x256xf32>
    %70 = tpu.matmul %63, %35, %cst_48 {dimension_numbers = #tpu.dot_dimension_numbers<[1], [0], [0], [1], [0, 0, 1, 1], [], []>} : vector<32x64xbf16>, vector<64x256xbf16>, vector<32x256xf32> -> vector<32x256xf32>
    %71 = arith.truncf %70 : vector<32x256xf32> to vector<32x256xbf16>
    %cst_49 = arith.constant dense<0.000000e+00> : vector<32x256xf32>
    %72 = tpu.matmul %65, %35, %cst_49 {dimension_numbers = #tpu.dot_dimension_numbers<[1], [0], [0], [1], [0, 0, 1, 1], [], []>} : vector<32x64xbf16>, vector<64x256xbf16>, vector<32x256xf32> -> vector<32x256xf32>
    %73 = arith.truncf %72 : vector<32x256xf32> to vector<32x256xbf16>
    %cst_50 = arith.constant dense<0.000000e+00> : vector<32x256xf32>
    %74 = tpu.matmul %67, %35, %cst_50 {dimension_numbers = #tpu.dot_dimension_numbers<[1], [0], [0], [1], [0, 0, 1, 1], [], []>} : vector<32x64xbf16>, vector<64x256xbf16>, vector<32x256xf32> -> vector<32x256xf32>
    %75 = arith.truncf %74 : vector<32x256xf32> to vector<32x256xbf16>
    %76 = tpu.concatenate %69, %71, %73, %75 in 1 : vector<32x256xbf16>, vector<32x256xbf16>, vector<32x256xbf16>, vector<32x256xbf16> -> vector<32x1024xbf16>
    %cst_51 = arith.constant dense<0.000000e+00> : vector<32x256xf32>
    %77 = tpu.matmul %76, %58, %cst_51 {dimension_numbers = #tpu.dot_dimension_numbers<[1], [0], [0], [1], [0, 0, 1, 1], [], []>} : vector<32x1024xbf16>, vector<1024x256xbf16>, vector<32x256xf32> -> vector<32x256xf32>
    %78 = vector.extract_strided_slice %59 {offsets = [0, 0], sizes = [1, 256], strides = [1, 1]} : vector<2x256xf32> to vector<1x256xf32>
    %79 = vector.broadcast %78 : vector<1x256xf32> to vector<32x256xf32>
    %80 = arith.mulf %77, %79 : vector<32x256xf32>
    %81 = vector.extract_strided_slice %59 {offsets = [1, 0], sizes = [1, 256], strides = [1, 1]} : vector<2x256xf32> to vector<1x256xf32>
    %82 = vector.broadcast %81 : vector<1x256xf32> to vector<32x256xf32>
    %83 = arith.addf %80, %82 : vector<32x256xf32>
    %cst_52 = arith.constant 0.000000e+00 : f32
    %84 = vector.broadcast %cst_52 : f32 to vector<32x256xf32>
    %85 = arith.cmpf oge, %83, %84 : vector<32x256xf32>
    %cst_53 = arith.constant 2.000000e-01 : f32
    %86 = vector.broadcast %cst_53 : f32 to vector<32x256xf32>
    %87 = arith.mulf %86, %83 : vector<32x256xf32>
    %88 = arith.select %85, %83, %87 : vector<32x256xi1>, vector<32x256xf32>
    %89 = arith.truncf %88 : vector<32x256xf32> to vector<32x256xbf16>
    %cst_54 = arith.constant dense<0.000000e+00> : vector<32x256xf32>
    %90 = tpu.matmul %61, %57, %cst_54 {dimension_numbers = #tpu.dot_dimension_numbers<[1], [0], [0], [1], [0, 0, 1, 1], [], []>} : vector<32x64xbf16>, vector<64x256xbf16>, vector<32x256xf32> -> vector<32x256xf32>
    %91 = arith.truncf %90 : vector<32x256xf32> to vector<32x256xbf16>
    %cst_55 = arith.constant dense<0.000000e+00> : vector<32x256xf32>
    %92 = tpu.matmul %63, %57, %cst_55 {dimension_numbers = #tpu.dot_dimension_numbers<[1], [0], [0], [1], [0, 0, 1, 1], [], []>} : vector<32x64xbf16>, vector<64x256xbf16>, vector<32x256xf32> -> vector<32x256xf32>
    %93 = arith.truncf %92 : vector<32x256xf32> to vector<32x256xbf16>
    %cst_56 = arith.constant dense<0.000000e+00> : vector<32x256xf32>
    %94 = tpu.matmul %65, %57, %cst_56 {dimension_numbers = #tpu.dot_dimension_numbers<[1], [0], [0], [1], [0, 0, 1, 1], [], []>} : vector<32x64xbf16>, vector<64x256xbf16>, vector<32x256xf32> -> vector<32x256xf32>
    %95 = arith.truncf %94 : vector<32x256xf32> to vector<32x256xbf16>
    %cst_57 = arith.constant dense<0.000000e+00> : vector<32x256xf32>
    %96 = tpu.matmul %67, %57, %cst_57 {dimension_numbers = #tpu.dot_dimension_numbers<[1], [0], [0], [1], [0, 0, 1, 1], [], []>} : vector<32x64xbf16>, vector<64x256xbf16>, vector<32x256xf32> -> vector<32x256xf32>
    %97 = arith.truncf %96 : vector<32x256xf32> to vector<32x256xbf16>
    %98 = tpu.concatenate %91, %93, %95, %97 in 1 : vector<32x256xbf16>, vector<32x256xbf16>, vector<32x256xbf16>, vector<32x256xbf16> -> vector<32x1024xbf16>
    %cst_58 = arith.constant dense<0.000000e+00> : vector<32x256xf32>
    %99 = tpu.matmul %98, %58, %cst_58 {dimension_numbers = #tpu.dot_dimension_numbers<[1], [0], [0], [1], [0, 0, 1, 1], [], []>} : vector<32x1024xbf16>, vector<1024x256xbf16>, vector<32x256xf32> -> vector<32x256xf32>
    %100 = vector.extract_strided_slice %59 {offsets = [0, 0], sizes = [1, 256], strides = [1, 1]} : vector<2x256xf32> to vector<1x256xf32>
    %101 = vector.broadcast %100 : vector<1x256xf32> to vector<32x256xf32>
    %102 = arith.mulf %99, %101 : vector<32x256xf32>
    %103 = vector.extract_strided_slice %59 {offsets = [1, 0], sizes = [1, 256], strides = [1, 1]} : vector<2x256xf32> to vector<1x256xf32>
    %104 = vector.broadcast %103 : vector<1x256xf32> to vector<32x256xf32>
    %105 = arith.addf %102, %104 : vector<32x256xf32>
    %cst_59 = arith.constant 0.000000e+00 : f32
    %106 = vector.broadcast %cst_59 : f32 to vector<32x256xf32>
    %107 = arith.cmpf oge, %105, %106 : vector<32x256xf32>
    %cst_60 = arith.constant 2.000000e-01 : f32
    %108 = vector.broadcast %cst_60 : f32 to vector<32x256xf32>
    %109 = arith.mulf %108, %105 : vector<32x256xf32>
    %110 = arith.select %107, %105, %109 : vector<32x256xi1>, vector<32x256xf32>
    %111 = arith.truncf %110 : vector<32x256xf32> to vector<32x256xbf16>
    %c0_61 = arith.constant 0 : index
    %c0_62 = arith.constant 0 : index
    %112 = vector.load %arg8[%c0_61, %c0_62] : memref<1024x256xbf16, #tpu.memory_space<vmem>>, vector<1024x256xbf16>
    %c0_63 = arith.constant 0 : index
    %c0_64 = arith.constant 0 : index
    %113 = vector.load %arg9[%c0_63, %c0_64] : memref<2x256xf32, #tpu.memory_space<vmem>>, vector<2x256xf32>
    %c0_65 = arith.constant 0 : index
    %c0_66 = arith.constant 0 : index
    %c0_67 = arith.constant 0 : index
    %114 = vector.load %arg7[%c0_65, %c0_66, %c0_67] : memref<4x16x32xbf16, #tpu.memory_space<vmem>>, vector<1x16x32xbf16>
    %115 = vector.shape_cast %114 : vector<1x16x32xbf16> to vector<16x32xbf16>
    %c1_68 = arith.constant 1 : index
    %c0_69 = arith.constant 0 : index
    %c0_70 = arith.constant 0 : index
    %116 = vector.load %arg7[%c1_68, %c0_69, %c0_70] : memref<4x16x32xbf16, #tpu.memory_space<vmem>>, vector<1x16x32xbf16>
    %117 = vector.shape_cast %116 : vector<1x16x32xbf16> to vector<16x32xbf16>
    %c2_71 = arith.constant 2 : index
    %c0_72 = arith.constant 0 : index
    %c0_73 = arith.constant 0 : index
    %118 = vector.load %arg7[%c2_71, %c0_72, %c0_73] : memref<4x16x32xbf16, #tpu.memory_space<vmem>>, vector<1x16x32xbf16>
    %119 = vector.shape_cast %118 : vector<1x16x32xbf16> to vector<16x32xbf16>
    %c3_74 = arith.constant 3 : index
    %c0_75 = arith.constant 0 : index
    %c0_76 = arith.constant 0 : index
    %120 = vector.load %arg7[%c3_74, %c0_75, %c0_76] : memref<4x16x32xbf16, #tpu.memory_space<vmem>>, vector<1x16x32xbf16>
    %121 = vector.shape_cast %120 : vector<1x16x32xbf16> to vector<16x32xbf16>
    %cst_77 = arith.constant dense<0.000000e+00> : vector<16x256xf32>
    %122 = tpu.matmul %115, %89, %cst_77 {dimension_numbers = #tpu.dot_dimension_numbers<[1], [0], [0], [1], [0, 0, 1, 1], [], []>} : vector<16x32xbf16>, vector<32x256xbf16>, vector<16x256xf32> -> vector<16x256xf32>
    %123 = arith.truncf %122 : vector<16x256xf32> to vector<16x256xbf16>
    %cst_78 = arith.constant dense<0.000000e+00> : vector<16x256xf32>
    %124 = tpu.matmul %117, %89, %cst_78 {dimension_numbers = #tpu.dot_dimension_numbers<[1], [0], [0], [1], [0, 0, 1, 1], [], []>} : vector<16x32xbf16>, vector<32x256xbf16>, vector<16x256xf32> -> vector<16x256xf32>
    %125 = arith.truncf %124 : vector<16x256xf32> to vector<16x256xbf16>
    %cst_79 = arith.constant dense<0.000000e+00> : vector<16x256xf32>
    %126 = tpu.matmul %119, %89, %cst_79 {dimension_numbers = #tpu.dot_dimension_numbers<[1], [0], [0], [1], [0, 0, 1, 1], [], []>} : vector<16x32xbf16>, vector<32x256xbf16>, vector<16x256xf32> -> vector<16x256xf32>
    %127 = arith.truncf %126 : vector<16x256xf32> to vector<16x256xbf16>
    %cst_80 = arith.constant dense<0.000000e+00> : vector<16x256xf32>
    %128 = tpu.matmul %121, %89, %cst_80 {dimension_numbers = #tpu.dot_dimension_numbers<[1], [0], [0], [1], [0, 0, 1, 1], [], []>} : vector<16x32xbf16>, vector<32x256xbf16>, vector<16x256xf32> -> vector<16x256xf32>
    %129 = arith.truncf %128 : vector<16x256xf32> to vector<16x256xbf16>
    %130 = tpu.concatenate %123, %125, %127, %129 in 1 : vector<16x256xbf16>, vector<16x256xbf16>, vector<16x256xbf16>, vector<16x256xbf16> -> vector<16x1024xbf16>
    %cst_81 = arith.constant dense<0.000000e+00> : vector<16x256xf32>
    %131 = tpu.matmul %130, %112, %cst_81 {dimension_numbers = #tpu.dot_dimension_numbers<[1], [0], [0], [1], [0, 0, 1, 1], [], []>} : vector<16x1024xbf16>, vector<1024x256xbf16>, vector<16x256xf32> -> vector<16x256xf32>
    %132 = vector.extract_strided_slice %113 {offsets = [0, 0], sizes = [1, 256], strides = [1, 1]} : vector<2x256xf32> to vector<1x256xf32>
    %133 = vector.broadcast %132 : vector<1x256xf32> to vector<16x256xf32>
    %134 = arith.mulf %131, %133 : vector<16x256xf32>
    %135 = vector.extract_strided_slice %113 {offsets = [1, 0], sizes = [1, 256], strides = [1, 1]} : vector<2x256xf32> to vector<1x256xf32>
    %136 = vector.broadcast %135 : vector<1x256xf32> to vector<16x256xf32>
    %137 = arith.addf %134, %136 : vector<16x256xf32>
    %cst_82 = arith.constant 0.000000e+00 : f32
    %138 = vector.broadcast %cst_82 : f32 to vector<16x256xf32>
    %139 = arith.cmpf oge, %137, %138 : vector<16x256xf32>
    %cst_83 = arith.constant 2.000000e-01 : f32
    %140 = vector.broadcast %cst_83 : f32 to vector<16x256xf32>
    %141 = arith.mulf %140, %137 : vector<16x256xf32>
    %142 = arith.select %139, %137, %141 : vector<16x256xi1>, vector<16x256xf32>
    %143 = arith.truncf %142 : vector<16x256xf32> to vector<16x256xbf16>
    %cst_84 = arith.constant dense<0.000000e+00> : vector<16x256xf32>
    %144 = tpu.matmul %115, %111, %cst_84 {dimension_numbers = #tpu.dot_dimension_numbers<[1], [0], [0], [1], [0, 0, 1, 1], [], []>} : vector<16x32xbf16>, vector<32x256xbf16>, vector<16x256xf32> -> vector<16x256xf32>
    %145 = arith.truncf %144 : vector<16x256xf32> to vector<16x256xbf16>
    %cst_85 = arith.constant dense<0.000000e+00> : vector<16x256xf32>
    %146 = tpu.matmul %117, %111, %cst_85 {dimension_numbers = #tpu.dot_dimension_numbers<[1], [0], [0], [1], [0, 0, 1, 1], [], []>} : vector<16x32xbf16>, vector<32x256xbf16>, vector<16x256xf32> -> vector<16x256xf32>
    %147 = arith.truncf %146 : vector<16x256xf32> to vector<16x256xbf16>
    %cst_86 = arith.constant dense<0.000000e+00> : vector<16x256xf32>
    %148 = tpu.matmul %119, %111, %cst_86 {dimension_numbers = #tpu.dot_dimension_numbers<[1], [0], [0], [1], [0, 0, 1, 1], [], []>} : vector<16x32xbf16>, vector<32x256xbf16>, vector<16x256xf32> -> vector<16x256xf32>
    %149 = arith.truncf %148 : vector<16x256xf32> to vector<16x256xbf16>
    %cst_87 = arith.constant dense<0.000000e+00> : vector<16x256xf32>
    %150 = tpu.matmul %121, %111, %cst_87 {dimension_numbers = #tpu.dot_dimension_numbers<[1], [0], [0], [1], [0, 0, 1, 1], [], []>} : vector<16x32xbf16>, vector<32x256xbf16>, vector<16x256xf32> -> vector<16x256xf32>
    %151 = arith.truncf %150 : vector<16x256xf32> to vector<16x256xbf16>
    %152 = tpu.concatenate %145, %147, %149, %151 in 1 : vector<16x256xbf16>, vector<16x256xbf16>, vector<16x256xbf16>, vector<16x256xbf16> -> vector<16x1024xbf16>
    %cst_88 = arith.constant dense<0.000000e+00> : vector<16x256xf32>
    %153 = tpu.matmul %152, %112, %cst_88 {dimension_numbers = #tpu.dot_dimension_numbers<[1], [0], [0], [1], [0, 0, 1, 1], [], []>} : vector<16x1024xbf16>, vector<1024x256xbf16>, vector<16x256xf32> -> vector<16x256xf32>
    %154 = vector.extract_strided_slice %113 {offsets = [0, 0], sizes = [1, 256], strides = [1, 1]} : vector<2x256xf32> to vector<1x256xf32>
    %155 = vector.broadcast %154 : vector<1x256xf32> to vector<16x256xf32>
    %156 = arith.mulf %153, %155 : vector<16x256xf32>
    %157 = vector.extract_strided_slice %113 {offsets = [1, 0], sizes = [1, 256], strides = [1, 1]} : vector<2x256xf32> to vector<1x256xf32>
    %158 = vector.broadcast %157 : vector<1x256xf32> to vector<16x256xf32>
    %159 = arith.addf %156, %158 : vector<16x256xf32>
    %cst_89 = arith.constant 0.000000e+00 : f32
    %160 = vector.broadcast %cst_89 : f32 to vector<16x256xf32>
    %161 = arith.cmpf oge, %159, %160 : vector<16x256xf32>
    %cst_90 = arith.constant 2.000000e-01 : f32
    %162 = vector.broadcast %cst_90 : f32 to vector<16x256xf32>
    %163 = arith.mulf %162, %159 : vector<16x256xf32>
    %164 = arith.select %161, %159, %163 : vector<16x256xi1>, vector<16x256xf32>
    %165 = arith.truncf %164 : vector<16x256xf32> to vector<16x256xbf16>
    %c0_91 = arith.constant 0 : index
    %c0_92 = arith.constant 0 : index
    %166 = vector.load %arg11[%c0_91, %c0_92] : memref<1024x256xbf16, #tpu.memory_space<vmem>>, vector<1024x256xbf16>
    %c0_93 = arith.constant 0 : index
    %c0_94 = arith.constant 0 : index
    %167 = vector.load %arg12[%c0_93, %c0_94] : memref<2x256xf32, #tpu.memory_space<vmem>>, vector<2x256xf32>
    %c0_95 = arith.constant 0 : index
    %c0_96 = arith.constant 0 : index
    %c0_97 = arith.constant 0 : index
    %168 = vector.load %arg10[%c0_95, %c0_96, %c0_97] : memref<4x8x16xbf16, #tpu.memory_space<vmem>>, vector<1x8x16xbf16>
    %169 = vector.shape_cast %168 : vector<1x8x16xbf16> to vector<8x16xbf16>
    %c1_98 = arith.constant 1 : index
    %c0_99 = arith.constant 0 : index
    %c0_100 = arith.constant 0 : index
    %170 = vector.load %arg10[%c1_98, %c0_99, %c0_100] : memref<4x8x16xbf16, #tpu.memory_space<vmem>>, vector<1x8x16xbf16>
    %171 = vector.shape_cast %170 : vector<1x8x16xbf16> to vector<8x16xbf16>
    %c2_101 = arith.constant 2 : index
    %c0_102 = arith.constant 0 : index
    %c0_103 = arith.constant 0 : index
    %172 = vector.load %arg10[%c2_101, %c0_102, %c0_103] : memref<4x8x16xbf16, #tpu.memory_space<vmem>>, vector<1x8x16xbf16>
    %173 = vector.shape_cast %172 : vector<1x8x16xbf16> to vector<8x16xbf16>
    %c3_104 = arith.constant 3 : index
    %c0_105 = arith.constant 0 : index
    %c0_106 = arith.constant 0 : index
    %174 = vector.load %arg10[%c3_104, %c0_105, %c0_106] : memref<4x8x16xbf16, #tpu.memory_space<vmem>>, vector<1x8x16xbf16>
    %175 = vector.shape_cast %174 : vector<1x8x16xbf16> to vector<8x16xbf16>
    %cst_107 = arith.constant dense<0.000000e+00> : vector<8x256xf32>
    %176 = tpu.matmul %169, %143, %cst_107 {dimension_numbers = #tpu.dot_dimension_numbers<[1], [0], [0], [1], [0, 0, 1, 1], [], []>} : vector<8x16xbf16>, vector<16x256xbf16>, vector<8x256xf32> -> vector<8x256xf32>
    %177 = arith.truncf %176 : vector<8x256xf32> to vector<8x256xbf16>
    %cst_108 = arith.constant dense<0.000000e+00> : vector<8x256xf32>
    %178 = tpu.matmul %171, %143, %cst_108 {dimension_numbers = #tpu.dot_dimension_numbers<[1], [0], [0], [1], [0, 0, 1, 1], [], []>} : vector<8x16xbf16>, vector<16x256xbf16>, vector<8x256xf32> -> vector<8x256xf32>
    %179 = arith.truncf %178 : vector<8x256xf32> to vector<8x256xbf16>
    %cst_109 = arith.constant dense<0.000000e+00> : vector<8x256xf32>
    %180 = tpu.matmul %173, %143, %cst_109 {dimension_numbers = #tpu.dot_dimension_numbers<[1], [0], [0], [1], [0, 0, 1, 1], [], []>} : vector<8x16xbf16>, vector<16x256xbf16>, vector<8x256xf32> -> vector<8x256xf32>
    %181 = arith.truncf %180 : vector<8x256xf32> to vector<8x256xbf16>
    %cst_110 = arith.constant dense<0.000000e+00> : vector<8x256xf32>
    %182 = tpu.matmul %175, %143, %cst_110 {dimension_numbers = #tpu.dot_dimension_numbers<[1], [0], [0], [1], [0, 0, 1, 1], [], []>} : vector<8x16xbf16>, vector<16x256xbf16>, vector<8x256xf32> -> vector<8x256xf32>
    %183 = arith.truncf %182 : vector<8x256xf32> to vector<8x256xbf16>
    %184 = tpu.concatenate %177, %179, %181, %183 in 1 : vector<8x256xbf16>, vector<8x256xbf16>, vector<8x256xbf16>, vector<8x256xbf16> -> vector<8x1024xbf16>
    %cst_111 = arith.constant dense<0.000000e+00> : vector<8x256xf32>
    %185 = tpu.matmul %184, %166, %cst_111 {dimension_numbers = #tpu.dot_dimension_numbers<[1], [0], [0], [1], [0, 0, 1, 1], [], []>} : vector<8x1024xbf16>, vector<1024x256xbf16>, vector<8x256xf32> -> vector<8x256xf32>
    %186 = vector.extract_strided_slice %167 {offsets = [0, 0], sizes = [1, 256], strides = [1, 1]} : vector<2x256xf32> to vector<1x256xf32>
    %187 = vector.broadcast %186 : vector<1x256xf32> to vector<8x256xf32>
    %188 = arith.mulf %185, %187 : vector<8x256xf32>
    %189 = vector.extract_strided_slice %167 {offsets = [1, 0], sizes = [1, 256], strides = [1, 1]} : vector<2x256xf32> to vector<1x256xf32>
    %190 = vector.broadcast %189 : vector<1x256xf32> to vector<8x256xf32>
    %191 = arith.addf %188, %190 : vector<8x256xf32>
    %cst_112 = arith.constant 0.000000e+00 : f32
    %192 = vector.broadcast %cst_112 : f32 to vector<8x256xf32>
    %193 = arith.cmpf oge, %191, %192 : vector<8x256xf32>
    %cst_113 = arith.constant 2.000000e-01 : f32
    %194 = vector.broadcast %cst_113 : f32 to vector<8x256xf32>
    %195 = arith.mulf %194, %191 : vector<8x256xf32>
    %196 = arith.select %193, %191, %195 : vector<8x256xi1>, vector<8x256xf32>
    %197 = arith.truncf %196 : vector<8x256xf32> to vector<8x256xbf16>
    %cst_114 = arith.constant dense<0.000000e+00> : vector<8x256xf32>
    %198 = tpu.matmul %169, %165, %cst_114 {dimension_numbers = #tpu.dot_dimension_numbers<[1], [0], [0], [1], [0, 0, 1, 1], [], []>} : vector<8x16xbf16>, vector<16x256xbf16>, vector<8x256xf32> -> vector<8x256xf32>
    %199 = arith.truncf %198 : vector<8x256xf32> to vector<8x256xbf16>
    %cst_115 = arith.constant dense<0.000000e+00> : vector<8x256xf32>
    %200 = tpu.matmul %171, %165, %cst_115 {dimension_numbers = #tpu.dot_dimension_numbers<[1], [0], [0], [1], [0, 0, 1, 1], [], []>} : vector<8x16xbf16>, vector<16x256xbf16>, vector<8x256xf32> -> vector<8x256xf32>
    %201 = arith.truncf %200 : vector<8x256xf32> to vector<8x256xbf16>
    %cst_116 = arith.constant dense<0.000000e+00> : vector<8x256xf32>
    %202 = tpu.matmul %173, %165, %cst_116 {dimension_numbers = #tpu.dot_dimension_numbers<[1], [0], [0], [1], [0, 0, 1, 1], [], []>} : vector<8x16xbf16>, vector<16x256xbf16>, vector<8x256xf32> -> vector<8x256xf32>
    %203 = arith.truncf %202 : vector<8x256xf32> to vector<8x256xbf16>
    %cst_117 = arith.constant dense<0.000000e+00> : vector<8x256xf32>
    %204 = tpu.matmul %175, %165, %cst_117 {dimension_numbers = #tpu.dot_dimension_numbers<[1], [0], [0], [1], [0, 0, 1, 1], [], []>} : vector<8x16xbf16>, vector<16x256xbf16>, vector<8x256xf32> -> vector<8x256xf32>
    %205 = arith.truncf %204 : vector<8x256xf32> to vector<8x256xbf16>
    %206 = tpu.concatenate %199, %201, %203, %205 in 1 : vector<8x256xbf16>, vector<8x256xbf16>, vector<8x256xbf16>, vector<8x256xbf16> -> vector<8x1024xbf16>
    %cst_118 = arith.constant dense<0.000000e+00> : vector<8x256xf32>
    %207 = tpu.matmul %206, %166, %cst_118 {dimension_numbers = #tpu.dot_dimension_numbers<[1], [0], [0], [1], [0, 0, 1, 1], [], []>} : vector<8x1024xbf16>, vector<1024x256xbf16>, vector<8x256xf32> -> vector<8x256xf32>
    %208 = vector.extract_strided_slice %167 {offsets = [0, 0], sizes = [1, 256], strides = [1, 1]} : vector<2x256xf32> to vector<1x256xf32>
    %209 = vector.broadcast %208 : vector<1x256xf32> to vector<8x256xf32>
    %210 = arith.mulf %207, %209 : vector<8x256xf32>
    %211 = vector.extract_strided_slice %167 {offsets = [1, 0], sizes = [1, 256], strides = [1, 1]} : vector<2x256xf32> to vector<1x256xf32>
    %212 = vector.broadcast %211 : vector<1x256xf32> to vector<8x256xf32>
    %213 = arith.addf %210, %212 : vector<8x256xf32>
    %cst_119 = arith.constant 0.000000e+00 : f32
    %214 = vector.broadcast %cst_119 : f32 to vector<8x256xf32>
    %215 = arith.cmpf oge, %213, %214 : vector<8x256xf32>
    %cst_120 = arith.constant 2.000000e-01 : f32
    %216 = vector.broadcast %cst_120 : f32 to vector<8x256xf32>
    %217 = arith.mulf %216, %213 : vector<8x256xf32>
    %218 = arith.select %215, %213, %217 : vector<8x256xi1>, vector<8x256xf32>
    %219 = arith.truncf %218 : vector<8x256xf32> to vector<8x256xbf16>
    %c0_121 = arith.constant 0 : index
    %c0_122 = arith.constant 0 : index
    %220 = vector.load %arg14[%c0_121, %c0_122] : memref<1024x256xbf16, #tpu.memory_space<vmem>>, vector<1024x256xbf16>
    %c0_123 = arith.constant 0 : index
    %c0_124 = arith.constant 0 : index
    %221 = vector.load %arg15[%c0_123, %c0_124] : memref<2x256xf32, #tpu.memory_space<vmem>>, vector<2x256xf32>
    %c0_125 = arith.constant 0 : index
    %c0_126 = arith.constant 0 : index
    %c0_127 = arith.constant 0 : index
    %222 = vector.load %arg13[%c0_125, %c0_126, %c0_127] : memref<4x4x8xbf16, #tpu.memory_space<vmem>>, vector<1x4x8xbf16>
    %223 = vector.shape_cast %222 : vector<1x4x8xbf16> to vector<4x8xbf16>
    %c1_128 = arith.constant 1 : index
    %c0_129 = arith.constant 0 : index
    %c0_130 = arith.constant 0 : index
    %224 = vector.load %arg13[%c1_128, %c0_129, %c0_130] : memref<4x4x8xbf16, #tpu.memory_space<vmem>>, vector<1x4x8xbf16>
    %225 = vector.shape_cast %224 : vector<1x4x8xbf16> to vector<4x8xbf16>
    %c2_131 = arith.constant 2 : index
    %c0_132 = arith.constant 0 : index
    %c0_133 = arith.constant 0 : index
    %226 = vector.load %arg13[%c2_131, %c0_132, %c0_133] : memref<4x4x8xbf16, #tpu.memory_space<vmem>>, vector<1x4x8xbf16>
    %227 = vector.shape_cast %226 : vector<1x4x8xbf16> to vector<4x8xbf16>
    %c3_134 = arith.constant 3 : index
    %c0_135 = arith.constant 0 : index
    %c0_136 = arith.constant 0 : index
    %228 = vector.load %arg13[%c3_134, %c0_135, %c0_136] : memref<4x4x8xbf16, #tpu.memory_space<vmem>>, vector<1x4x8xbf16>
    %229 = vector.shape_cast %228 : vector<1x4x8xbf16> to vector<4x8xbf16>
    %cst_137 = arith.constant dense<0.000000e+00> : vector<4x256xf32>
    %230 = tpu.matmul %223, %197, %cst_137 {dimension_numbers = #tpu.dot_dimension_numbers<[1], [0], [0], [1], [0, 0, 1, 1], [], []>} : vector<4x8xbf16>, vector<8x256xbf16>, vector<4x256xf32> -> vector<4x256xf32>
    %231 = arith.truncf %230 : vector<4x256xf32> to vector<4x256xbf16>
    %cst_138 = arith.constant dense<0.000000e+00> : vector<4x256xf32>
    %232 = tpu.matmul %225, %197, %cst_138 {dimension_numbers = #tpu.dot_dimension_numbers<[1], [0], [0], [1], [0, 0, 1, 1], [], []>} : vector<4x8xbf16>, vector<8x256xbf16>, vector<4x256xf32> -> vector<4x256xf32>
    %233 = arith.truncf %232 : vector<4x256xf32> to vector<4x256xbf16>
    %cst_139 = arith.constant dense<0.000000e+00> : vector<4x256xf32>
    %234 = tpu.matmul %227, %197, %cst_139 {dimension_numbers = #tpu.dot_dimension_numbers<[1], [0], [0], [1], [0, 0, 1, 1], [], []>} : vector<4x8xbf16>, vector<8x256xbf16>, vector<4x256xf32> -> vector<4x256xf32>
    %235 = arith.truncf %234 : vector<4x256xf32> to vector<4x256xbf16>
    %cst_140 = arith.constant dense<0.000000e+00> : vector<4x256xf32>
    %236 = tpu.matmul %229, %197, %cst_140 {dimension_numbers = #tpu.dot_dimension_numbers<[1], [0], [0], [1], [0, 0, 1, 1], [], []>} : vector<4x8xbf16>, vector<8x256xbf16>, vector<4x256xf32> -> vector<4x256xf32>
    %237 = arith.truncf %236 : vector<4x256xf32> to vector<4x256xbf16>
    %238 = tpu.concatenate %231, %233, %235, %237 in 1 : vector<4x256xbf16>, vector<4x256xbf16>, vector<4x256xbf16>, vector<4x256xbf16> -> vector<4x1024xbf16>
    %cst_141 = arith.constant dense<0.000000e+00> : vector<4x256xf32>
    %239 = tpu.matmul %238, %220, %cst_141 {dimension_numbers = #tpu.dot_dimension_numbers<[1], [0], [0], [1], [0, 0, 1, 1], [], []>} : vector<4x1024xbf16>, vector<1024x256xbf16>, vector<4x256xf32> -> vector<4x256xf32>
    %240 = vector.extract_strided_slice %221 {offsets = [0, 0], sizes = [1, 256], strides = [1, 1]} : vector<2x256xf32> to vector<1x256xf32>
    %241 = vector.broadcast %240 : vector<1x256xf32> to vector<4x256xf32>
    %242 = arith.mulf %239, %241 : vector<4x256xf32>
    %243 = vector.extract_strided_slice %221 {offsets = [1, 0], sizes = [1, 256], strides = [1, 1]} : vector<2x256xf32> to vector<1x256xf32>
    %244 = vector.broadcast %243 : vector<1x256xf32> to vector<4x256xf32>
    %245 = arith.addf %242, %244 : vector<4x256xf32>
    %cst_142 = arith.constant 0.000000e+00 : f32
    %246 = vector.broadcast %cst_142 : f32 to vector<4x256xf32>
    %247 = arith.cmpf oge, %245, %246 : vector<4x256xf32>
    %cst_143 = arith.constant 2.000000e-01 : f32
    %248 = vector.broadcast %cst_143 : f32 to vector<4x256xf32>
    %249 = arith.mulf %248, %245 : vector<4x256xf32>
    %250 = arith.select %247, %245, %249 : vector<4x256xi1>, vector<4x256xf32>
    %251 = arith.truncf %250 : vector<4x256xf32> to vector<4x256xbf16>
    %cst_144 = arith.constant dense<0.000000e+00> : vector<4x256xf32>
    %252 = tpu.matmul %223, %219, %cst_144 {dimension_numbers = #tpu.dot_dimension_numbers<[1], [0], [0], [1], [0, 0, 1, 1], [], []>} : vector<4x8xbf16>, vector<8x256xbf16>, vector<4x256xf32> -> vector<4x256xf32>
    %253 = arith.truncf %252 : vector<4x256xf32> to vector<4x256xbf16>
    %cst_145 = arith.constant dense<0.000000e+00> : vector<4x256xf32>
    %254 = tpu.matmul %225, %219, %cst_145 {dimension_numbers = #tpu.dot_dimension_numbers<[1], [0], [0], [1], [0, 0, 1, 1], [], []>} : vector<4x8xbf16>, vector<8x256xbf16>, vector<4x256xf32> -> vector<4x256xf32>
    %255 = arith.truncf %254 : vector<4x256xf32> to vector<4x256xbf16>
    %cst_146 = arith.constant dense<0.000000e+00> : vector<4x256xf32>
    %256 = tpu.matmul %227, %219, %cst_146 {dimension_numbers = #tpu.dot_dimension_numbers<[1], [0], [0], [1], [0, 0, 1, 1], [], []>} : vector<4x8xbf16>, vector<8x256xbf16>, vector<4x256xf32> -> vector<4x256xf32>
    %257 = arith.truncf %256 : vector<4x256xf32> to vector<4x256xbf16>
    %cst_147 = arith.constant dense<0.000000e+00> : vector<4x256xf32>
    %258 = tpu.matmul %229, %219, %cst_147 {dimension_numbers = #tpu.dot_dimension_numbers<[1], [0], [0], [1], [0, 0, 1, 1], [], []>} : vector<4x8xbf16>, vector<8x256xbf16>, vector<4x256xf32> -> vector<4x256xf32>
    %259 = arith.truncf %258 : vector<4x256xf32> to vector<4x256xbf16>
    %260 = tpu.concatenate %253, %255, %257, %259 in 1 : vector<4x256xbf16>, vector<4x256xbf16>, vector<4x256xbf16>, vector<4x256xbf16> -> vector<4x1024xbf16>
    %cst_148 = arith.constant dense<0.000000e+00> : vector<4x256xf32>
    %261 = tpu.matmul %260, %220, %cst_148 {dimension_numbers = #tpu.dot_dimension_numbers<[1], [0], [0], [1], [0, 0, 1, 1], [], []>} : vector<4x1024xbf16>, vector<1024x256xbf16>, vector<4x256xf32> -> vector<4x256xf32>
    %262 = vector.extract_strided_slice %221 {offsets = [0, 0], sizes = [1, 256], strides = [1, 1]} : vector<2x256xf32> to vector<1x256xf32>
    %263 = vector.broadcast %262 : vector<1x256xf32> to vector<4x256xf32>
    %264 = arith.mulf %261, %263 : vector<4x256xf32>
    %265 = vector.extract_strided_slice %221 {offsets = [1, 0], sizes = [1, 256], strides = [1, 1]} : vector<2x256xf32> to vector<1x256xf32>
    %266 = vector.broadcast %265 : vector<1x256xf32> to vector<4x256xf32>
    %267 = arith.addf %264, %266 : vector<4x256xf32>
    %cst_149 = arith.constant 0.000000e+00 : f32
    %268 = vector.broadcast %cst_149 : f32 to vector<4x256xf32>
    %269 = arith.cmpf oge, %267, %268 : vector<4x256xf32>
    %cst_150 = arith.constant 2.000000e-01 : f32
    %270 = vector.broadcast %cst_150 : f32 to vector<4x256xf32>
    %271 = arith.mulf %270, %267 : vector<4x256xf32>
    %272 = arith.select %269, %267, %271 : vector<4x256xi1>, vector<4x256xf32>
    %273 = arith.truncf %272 : vector<4x256xf32> to vector<4x256xbf16>
    %c0_151 = arith.constant 0 : index
    %c0_152 = arith.constant 0 : index
    %274 = vector.load %arg17[%c0_151, %c0_152] : memref<1024x256xbf16, #tpu.memory_space<vmem>>, vector<1024x256xbf16>
    %c0_153 = arith.constant 0 : index
    %c0_154 = arith.constant 0 : index
    %275 = vector.load %arg18[%c0_153, %c0_154] : memref<2x256xf32, #tpu.memory_space<vmem>>, vector<2x256xf32>
    %276 = vector.extract_strided_slice %251 {offsets = [3, 0], sizes = [1, 256], strides = [1, 1]} : vector<4x256xbf16> to vector<1x256xbf16>
    %277 = vector.extract_strided_slice %251 {offsets = [1, 0], sizes = [1, 256], strides = [1, 1]} : vector<4x256xbf16> to vector<1x256xbf16>
    %278 = tpu.concatenate %276, %277 in 0 : vector<1x256xbf16>, vector<1x256xbf16> -> vector<2x256xbf16>
    %279 = vector.extract_strided_slice %251 {offsets = [0, 0], sizes = [1, 256], strides = [1, 1]} : vector<4x256xbf16> to vector<1x256xbf16>
    %280 = vector.extract_strided_slice %251 {offsets = [2, 0], sizes = [1, 256], strides = [1, 1]} : vector<4x256xbf16> to vector<1x256xbf16>
    %281 = tpu.concatenate %279, %280 in 0 : vector<1x256xbf16>, vector<1x256xbf16> -> vector<2x256xbf16>
    %282 = vector.extract_strided_slice %251 {offsets = [1, 0], sizes = [1, 256], strides = [1, 1]} : vector<4x256xbf16> to vector<1x256xbf16>
    %283 = vector.extract_strided_slice %251 {offsets = [3, 0], sizes = [1, 256], strides = [1, 1]} : vector<4x256xbf16> to vector<1x256xbf16>
    %284 = tpu.concatenate %282, %283 in 0 : vector<1x256xbf16>, vector<1x256xbf16> -> vector<2x256xbf16>
    %285 = vector.extract_strided_slice %251 {offsets = [2, 0], sizes = [1, 256], strides = [1, 1]} : vector<4x256xbf16> to vector<1x256xbf16>
    %286 = vector.extract_strided_slice %251 {offsets = [0, 0], sizes = [1, 256], strides = [1, 1]} : vector<4x256xbf16> to vector<1x256xbf16>
    %287 = tpu.concatenate %285, %286 in 0 : vector<1x256xbf16>, vector<1x256xbf16> -> vector<2x256xbf16>
    %288 = tpu.concatenate %278, %281, %284, %287 in 1 : vector<2x256xbf16>, vector<2x256xbf16>, vector<2x256xbf16>, vector<2x256xbf16> -> vector<2x1024xbf16>
    %cst_155 = arith.constant dense<0.000000e+00> : vector<2x256xf32>
    %289 = tpu.matmul %288, %274, %cst_155 {dimension_numbers = #tpu.dot_dimension_numbers<[1], [0], [0], [1], [0, 0, 1, 1], [], []>} : vector<2x1024xbf16>, vector<1024x256xbf16>, vector<2x256xf32> -> vector<2x256xf32>
    %290 = vector.extract_strided_slice %275 {offsets = [0, 0], sizes = [1, 256], strides = [1, 1]} : vector<2x256xf32> to vector<1x256xf32>
    %291 = vector.broadcast %290 : vector<1x256xf32> to vector<2x256xf32>
    %292 = arith.mulf %289, %291 : vector<2x256xf32>
    %293 = vector.extract_strided_slice %275 {offsets = [1, 0], sizes = [1, 256], strides = [1, 1]} : vector<2x256xf32> to vector<1x256xf32>
    %294 = vector.broadcast %293 : vector<1x256xf32> to vector<2x256xf32>
    %295 = arith.addf %292, %294 : vector<2x256xf32>
    %cst_156 = arith.constant 0.000000e+00 : f32
    %296 = vector.broadcast %cst_156 : f32 to vector<2x256xf32>
    %297 = arith.cmpf oge, %295, %296 : vector<2x256xf32>
    %cst_157 = arith.constant 2.000000e-01 : f32
    %298 = vector.broadcast %cst_157 : f32 to vector<2x256xf32>
    %299 = arith.mulf %298, %295 : vector<2x256xf32>
    %300 = arith.select %297, %295, %299 : vector<2x256xi1>, vector<2x256xf32>
    %301 = arith.truncf %300 : vector<2x256xf32> to vector<2x256xbf16>
    %302 = vector.extract_strided_slice %273 {offsets = [3, 0], sizes = [1, 256], strides = [1, 1]} : vector<4x256xbf16> to vector<1x256xbf16>
    %303 = vector.extract_strided_slice %273 {offsets = [1, 0], sizes = [1, 256], strides = [1, 1]} : vector<4x256xbf16> to vector<1x256xbf16>
    %304 = tpu.concatenate %302, %303 in 0 : vector<1x256xbf16>, vector<1x256xbf16> -> vector<2x256xbf16>
    %305 = vector.extract_strided_slice %273 {offsets = [0, 0], sizes = [1, 256], strides = [1, 1]} : vector<4x256xbf16> to vector<1x256xbf16>
    %306 = vector.extract_strided_slice %273 {offsets = [2, 0], sizes = [1, 256], strides = [1, 1]} : vector<4x256xbf16> to vector<1x256xbf16>
    %307 = tpu.concatenate %305, %306 in 0 : vector<1x256xbf16>, vector<1x256xbf16> -> vector<2x256xbf16>
    %308 = vector.extract_strided_slice %273 {offsets = [1, 0], sizes = [1, 256], strides = [1, 1]} : vector<4x256xbf16> to vector<1x256xbf16>
    %309 = vector.extract_strided_slice %273 {offsets = [3, 0], sizes = [1, 256], strides = [1, 1]} : vector<4x256xbf16> to vector<1x256xbf16>
    %310 = tpu.concatenate %308, %309 in 0 : vector<1x256xbf16>, vector<1x256xbf16> -> vector<2x256xbf16>
    %311 = vector.extract_strided_slice %273 {offsets = [2, 0], sizes = [1, 256], strides = [1, 1]} : vector<4x256xbf16> to vector<1x256xbf16>
    %312 = vector.extract_strided_slice %273 {offsets = [0, 0], sizes = [1, 256], strides = [1, 1]} : vector<4x256xbf16> to vector<1x256xbf16>
    %313 = tpu.concatenate %311, %312 in 0 : vector<1x256xbf16>, vector<1x256xbf16> -> vector<2x256xbf16>
    %314 = tpu.concatenate %304, %307, %310, %313 in 1 : vector<2x256xbf16>, vector<2x256xbf16>, vector<2x256xbf16>, vector<2x256xbf16> -> vector<2x1024xbf16>
    %cst_158 = arith.constant dense<0.000000e+00> : vector<2x256xf32>
    %315 = tpu.matmul %314, %274, %cst_158 {dimension_numbers = #tpu.dot_dimension_numbers<[1], [0], [0], [1], [0, 0, 1, 1], [], []>} : vector<2x1024xbf16>, vector<1024x256xbf16>, vector<2x256xf32> -> vector<2x256xf32>
    %316 = vector.extract_strided_slice %275 {offsets = [0, 0], sizes = [1, 256], strides = [1, 1]} : vector<2x256xf32> to vector<1x256xf32>
    %317 = vector.broadcast %316 : vector<1x256xf32> to vector<2x256xf32>
    %318 = arith.mulf %315, %317 : vector<2x256xf32>
    %319 = vector.extract_strided_slice %275 {offsets = [1, 0], sizes = [1, 256], strides = [1, 1]} : vector<2x256xf32> to vector<1x256xf32>
    %320 = vector.broadcast %319 : vector<1x256xf32> to vector<2x256xf32>
    %321 = arith.addf %318, %320 : vector<2x256xf32>
    %cst_159 = arith.constant 0.000000e+00 : f32
    %322 = vector.broadcast %cst_159 : f32 to vector<2x256xf32>
    %323 = arith.cmpf oge, %321, %322 : vector<2x256xf32>
    %cst_160 = arith.constant 2.000000e-01 : f32
    %324 = vector.broadcast %cst_160 : f32 to vector<2x256xf32>
    %325 = arith.mulf %324, %321 : vector<2x256xf32>
    %326 = arith.select %323, %321, %325 : vector<2x256xi1>, vector<2x256xf32>
    %327 = arith.truncf %326 : vector<2x256xf32> to vector<2x256xbf16>
    %328 = vector.extract_strided_slice %301 {offsets = [0, 0], sizes = [1, 256], strides = [1, 1]} : vector<2x256xbf16> to vector<1x256xbf16>
    %329 = vector.extract_strided_slice %301 {offsets = [1, 0], sizes = [1, 256], strides = [1, 1]} : vector<2x256xbf16> to vector<1x256xbf16>
    %330 = tpu.concatenate %328, %329 in 1 : vector<1x256xbf16>, vector<1x256xbf16> -> vector<1x512xbf16>
    %331 = vector.extract_strided_slice %327 {offsets = [0, 0], sizes = [1, 256], strides = [1, 1]} : vector<2x256xbf16> to vector<1x256xbf16>
    %332 = vector.extract_strided_slice %327 {offsets = [1, 0], sizes = [1, 256], strides = [1, 1]} : vector<2x256xbf16> to vector<1x256xbf16>
    %333 = tpu.concatenate %331, %332 in 1 : vector<1x256xbf16>, vector<1x256xbf16> -> vector<1x512xbf16>
    %334 = tpu.concatenate %330, %333 in 0 : vector<1x512xbf16>, vector<1x512xbf16> -> vector<2x512xbf16>
    %c0_161 = arith.constant 0 : index
    %c0_162 = arith.constant 0 : index
    %335 = vector.load %arg19[%c0_161, %c0_162] : memref<512x128xbf16, #tpu.memory_space<vmem>>, vector<512x128xbf16>
    %cst_163 = arith.constant dense<0.000000e+00> : vector<2x128xf32>
    %336 = tpu.matmul %334, %335, %cst_163 {dimension_numbers = #tpu.dot_dimension_numbers<[1], [0], [0], [1], [0, 0, 1, 1], [], []>} : vector<2x512xbf16>, vector<512x128xbf16>, vector<2x128xf32> -> vector<2x128xf32>
    %c0_164 = arith.constant 0 : index
    %c0_165 = arith.constant 0 : index
    %337 = vector.load %arg20[%c0_164, %c0_165] : memref<1x128xf32, #tpu.memory_space<vmem>>, vector<1x128xf32>
    %338 = vector.broadcast %337 : vector<1x128xf32> to vector<2x128xf32>
    %339 = arith.addf %336, %338 : vector<2x128xf32>
    %c0_166 = arith.constant 0 : index
    %c0_167 = arith.constant 0 : index
    %340 = vector.load %arg21[%c0_166, %c0_167] : memref<2x128xf32, #tpu.memory_space<vmem>>, vector<2x128xf32>
    tpu.vector_store %arg21[%c0_166, %c0_167], %339 {strides = array<i32>} : memref<2x128xf32, #tpu.memory_space<vmem>>, vector<2x128xf32>,
    return
  }
}

</mosaic_0001>

<bundles_post_ra>
// kernel: model_f_forward.1
= control target key start
LH: loop header
LB: loop body
LE: loop exit
PB: predicated region body
PF: predicated region fallthrough
CT: control target
= control target key end

     0   :  { %s17510_s0 = inlined_call_operand.vmem [shape: bf16[2,128,128], index: 0, kind: input, shape index: {}]   ;;  %s17511_s1 = inlined_call_operand.vmem [shape: bf16[4,64,128], index: 1, kind: input, shape index: {}]   ;;  %s17512_s2 = inlined_call_operand.hbm [shape: bf16[512,256], index: 2, kind: input, shape index: {}]   ;;  %s17513_s3 = inlined_call_operand.hbm [shape: f32[2,256], index: 3, kind: input, shape index: {}]   ;;  %s17514_s4 = inlined_call_operand.vmem [shape: bf16[4,32,64], index: 4, kind: input, shape index: {}]   ;;  %s17515_s5 = inlined_call_operand.hbm [shape: bf16[1024,256], index: 5, kind: input, shape index: {}]   ;;  %s17516_s6 = inlined_call_operand.hbm [shape: f32[2,256], index: 6, kind: input, shape index: {}]   ;;  %s17517_s7 = inlined_call_operand.hbm [shape: bf16[4,16,32], index: 7, kind: input, shape index: {}]   ;;  %s17518_s8 = inlined_call_operand.hbm [shape: bf16[1024,256], index: 8, kind: input, shape index: {}]   ;;  %s17519_s9 = inlined_call_operand.hbm [shape: f32[2,256], index: 9, kind: input, shape index: {}]   ;;  %s17520_s10 = inlined_call_operand.hbm [shape: bf16[4,8,16], index: 10, kind: input, shape index: {}]   ;;  %s17521_s11 = inlined_call_operand.hbm [shape: bf16[1024,256], index: 11, kind: input, shape index: {}]   ;;  %s17522_s12 = inlined_call_operand.hbm [shape: f32[2,256], index: 12, kind: input, shape index: {}]   ;;  %s17523_s13 = inlined_call_operand.vmem [shape: bf16[4,4,8], index: 13, kind: input, shape index: {}]   ;;  %s17524_s14 = inlined_call_operand.hbm [shape: bf16[1024,256], index: 14, kind: input, shape index: {}]   ;;  %s17525_s15 = inlined_call_operand.hbm [shape: f32[2,256], index: 15, kind: input, shape index: {}]   ;;  %s17526_s16 = inlined_call_operand.hbm [shape: bf16[4,2,4], index: 16, kind: input, shape index: {}]   ;;  %s17527_s17 = inlined_call_operand.hbm [shape: bf16[1024,256], index: 17, kind: input, shape index: {}]   ;;  %s17528_s18 = inlined_call_operand.hbm [shape: f32[2,256], index: 18, kind: input, shape index: {}]   ;;  %s17529_s19 = inlined_call_operand.vmem [shape: bf16[512,128], index: 19, kind: input, shape index: {}]   ;;  %s17530_s20 = inlined_call_operand.vmem [shape: f32[1,128], index: 20, kind: input, shape index: {}]   ;;  %s17531_s21 = inlined_call_operand.vmem [shape: f32[2,128], index: 21, kind: output, shape index: {}]  }
   0x1   :  { %17921 = sst [smem:[#allocation129_spill]] %s17510_s0 }
   0x2   :  { %17922 = sst [smem:[#allocation130_spill]] %s17511_s1 }
   0x3   :  { %17923 = sst [smem:[#allocation131_spill]] %s17512_s2 }
   0x4   :  { %17924 = sst [smem:[#allocation132_spill]] %s17513_s3 }
   0x5   :  { %17925 = sst [smem:[#allocation133_spill]] %s17514_s4 }
   0x6   :  { %17926 = sst [smem:[#allocation134_spill]] %s17515_s5 }
   0x7   :  { %26 = vsyncpa [#allocation3], 0 }
   0x8   :  { %27 = vsyncpa [#allocation5], 0 }
   0x9   :  { %28 = vsyncpa [#allocation8], 0 }
   0xa   :  { %29 = vsyncpa [#allocation11], 0 }
   0xb   :  { %30 = vsyncpa [#allocation14], 0 }
   0xc   :  { %31 = vsyncpa [#allocation17], 0 }
   0xd   :  { %32 = vsyncpa [#allocation20], 0 }
   0xe   :  { %33 = vsyncpa [#allocation23], 0  ;;  %s13025_s2 = smov [#allocation4]   ;;  %s13026_s26 = smov [#allocation7]  }
   0xf   :  { %s56_s25 = sshll.u32 %s13025_s2, 4  ;;  %s80_s27 = sshll.u32 %s13026_s26, 4  ;;  %s57_s25 = int_to_ptr.vmem [resolvable:$true] %s56_s25  ;;  %s81_s27 = int_to_ptr.vmem [resolvable:$true] %s80_s27 }
  0x10   :  { %s17927_s29 = sld [smem:[#allocation132_spill]] }
  0x16   :  { %s12679_s0 = scalar_lea.hbm %s17927_s29, 64 }
  0x17   :  { %p12680_p0 = scmp.ne.s32.totalorder %s17927_s29, %s12679_s0  ;;  %p12683_p1 = scmp.lt.u32.totalorder %s12679_s0, %s17927_s29 }
  0x19   :  { %p12685_p2 = pnand %p12683_p1, %p12680_p0 }
  0x1b   :  { %12688 = shalt.err (!%p12685_p2)
}
  0x1c   :  { %s12689_s23 = scalar_lea.vmem %s57_s25, 64  ;;  %p12694_p4 = scmp.lt.s32.totalorder %s57_s25, %s57_s25 }
  0x1d   :  { %p12690_p3 = scmp.ne.s32.totalorder %s57_s25, %s12689_s23  ;;  %p12695_p5 = scmp.lt.s32.totalorder %s12689_s23, %s12689_s23 }
  0x1f   :  { %p12696_p6 = por %p12695_p5, %p12694_p4 }
  0x21   :  { %p12697_p7 = pnand %p12696_p6, %p12690_p3 }
  0x23   :  { %12700 = shalt.err (!%p12697_p7)
}
  0x24   :  { %59 = dma.hbm_to_vmem [thread:$0]  %s17927_s29, 64, %s57_s25, [#allocation5]  }
  0x25   :  { %s12701_s3 = scalar_lea.hbm %s17516_s6, 64 }
  0x26   :  { %p12702_p8 = scmp.ne.s32.totalorder %s17516_s6, %s12701_s3  ;;  %p12705_p9 = scmp.lt.u32.totalorder %s12701_s3, %s17516_s6 }
  0x28   :  { %p12707_p10 = pnand %p12705_p9, %p12702_p8 }
  0x2a   :  { %12710 = shalt.err (!%p12707_p10)
}
  0x2b   :  { %s12711_s5 = scalar_lea.vmem %s81_s27, 64  ;;  %p12716_p12 = scmp.lt.s32.totalorder %s81_s27, %s81_s27 }
  0x2c   :  { %p12712_p11 = scmp.ne.s32.totalorder %s81_s27, %s12711_s5  ;;  %p12717_p13 = scmp.lt.s32.totalorder %s12711_s5, %s12711_s5 }
  0x2e   :  { %p12718_p0 = por %p12717_p13, %p12716_p12 }
  0x30   :  { %p12719_p1 = pnand %p12718_p0, %p12712_p11 }
  0x32   :  { %12722 = shalt.err (!%p12719_p1)
}
  0x33   :  { %83 = dma.hbm_to_vmem [thread:$0]  %s17516_s6, 64, %s81_s27, [#allocation8]  }
  0x34   :  { %s13027_s22 = smov [#allocation10]   ;;  %s12723_s2 = scalar_lea.hbm %s17518_s8, 16384 }
  0x35   :  { %s101_s23 = sshll.u32 %s13027_s22, 4  ;;  %p12724_p2 = scmp.ne.s32.totalorder %s17518_s8, %s12723_s2  ;;  %s102_s23 = int_to_ptr.vmem [resolvable:$true] %s101_s23 }
  0x36   :  { %p12727_p3 = scmp.lt.u32.totalorder %s12723_s2, %s17518_s8 }
  0x38   :  { %p12729_p4 = pnand %p12727_p3, %p12724_p2 }
  0x3a   :  { %12732 = shalt.err (!%p12729_p4)
}
  0x3b   :  { %s12733_s0 = scalar_lea.vmem %s102_s23, 16384  ;;  %p12738_p6 = scmp.lt.s32.totalorder %s102_s23, %s102_s23 }
  0x3c   :  { %p12734_p5 = scmp.ne.s32.totalorder %s102_s23, %s12733_s0  ;;  %p12739_p7 = scmp.lt.s32.totalorder %s12733_s0, %s12733_s0 }
  0x3e   :  { %p12740_p8 = por %p12739_p7, %p12738_p6 }
  0x40   :  { %p12741_p9 = pnand %p12740_p8, %p12734_p5 }
  0x42   :  { %12744 = shalt.err (!%p12741_p9)
}
  0x43   :  { %s13028_s6 = smov 128   ;;  %s13029_s27 = smov 8  }
  0x44   :  { %107 = dma.hbm_to_vmem [thread:$0]  %s17518_s8, 16384, %s102_s23, [#allocation11], %s13028_s6, %s13028_s6, %s13029_s27  }
  0x45   :  { %s13030_s25 = smov [#allocation13]   ;;  %s13031_s22 = smov [#allocation16]  }
  0x46   :  { %s123_s29 = sshll.u32 %s13030_s25, 4  ;;  %s148_s1 = sshll.u32 %s13031_s22, 4  ;;  %s124_s29 = int_to_ptr.vmem [resolvable:$true] %s123_s29  ;;  %s149_s1 = int_to_ptr.vmem [resolvable:$true] %s148_s1 }
  0x47   :  { %s12745_s26 = scalar_lea.hbm %s17520_s10, 256 }
  0x48   :  { %p12746_p10 = scmp.ne.s32.totalorder %s17520_s10, %s12745_s26  ;;  %p12749_p11 = scmp.lt.u32.totalorder %s12745_s26, %s17520_s10 }
  0x4a   :  { %p12751_p12 = pnand %p12749_p11, %p12746_p10 }
  0x4c   :  { %12754 = shalt.err (!%p12751_p12)
}
  0x4d   :  { %s12755_s8 = scalar_lea.vmem %s124_s29, 256  ;;  %p12760_p0 = scmp.lt.s32.totalorder %s124_s29, %s124_s29 }
  0x4e   :  { %p12756_p13 = scmp.ne.s32.totalorder %s124_s29, %s12755_s8  ;;  %p12761_p1 = scmp.lt.s32.totalorder %s12755_s8, %s12755_s8 }
  0x50   :  { %p12762_p2 = por %p12761_p1, %p12760_p0 }
  0x52   :  { %p12763_p3 = pnand %p12762_p2, %p12756_p13 }
  0x54   :  { %12766 = shalt.err (!%p12763_p3)
}
  0x55   :  { %s13032_s23 = smov 64   ;;  %s13033_s30 = smov 4  }
  0x56   :  { %129 = dma.hbm_to_vmem [thread:$0]  %s17520_s10, 256, %s124_s29, [#allocation14], %s13032_s23, %s13032_s23, %s13033_s30  }
  0x57   :  { %s12767_s2 = scalar_lea.hbm %s17522_s12, 64 }
  0x58   :  { %p12768_p4 = scmp.ne.s32.totalorder %s17522_s12, %s12767_s2  ;;  %p12771_p5 = scmp.lt.u32.totalorder %s12767_s2, %s17522_s12 }
  0x5a   :  { %p12773_p6 = pnand %p12771_p5, %p12768_p4 }
  0x5c   :  { %12776 = shalt.err (!%p12773_p6)
}
  0x5d   :  { %s12777_s0 = scalar_lea.vmem %s149_s1, 64  ;;  %p12782_p8 = scmp.lt.s32.totalorder %s149_s1, %s149_s1 }
  0x5e   :  { %p12778_p7 = scmp.ne.s32.totalorder %s149_s1, %s12777_s0  ;;  %p12783_p9 = scmp.lt.s32.totalorder %s12777_s0, %s12777_s0 }
  0x60   :  { %p12784_p10 = por %p12783_p9, %p12782_p8 }
  0x62   :  { %p12785_p11 = pnand %p12784_p10, %p12778_p7 }
  0x64   :  { %12788 = shalt.err (!%p12785_p11)
}
  0x65   :  { %151 = dma.hbm_to_vmem [thread:$0]  %s17522_s12, 64, %s149_s1, [#allocation17]  }
  0x66   :  { %s13034_s8 = smov [#allocation19]   ;;  %s13035_s25 = smov [#allocation22]  }
  0x67   :  { %s172_s5 = sshll.u32 %s13034_s8, 4  ;;  %s193_s22 = sshll.u32 %s13035_s25, 4  ;;  %s173_s5 = int_to_ptr.vmem [resolvable:$true] %s172_s5  ;;  %s194_s22 = int_to_ptr.vmem [resolvable:$true] %s193_s22 }
  0x68   :  { %s12789_s26 = scalar_lea.hbm %s17525_s15, 64 }
  0x69   :  { %p12790_p12 = scmp.ne.s32.totalorder %s17525_s15, %s12789_s26  ;;  %p12793_p13 = scmp.lt.u32.totalorder %s12789_s26, %s17525_s15 }
  0x6b   :  { %p12795_p0 = pnand %p12793_p13, %p12790_p12 }
  0x6d   :  { %12798 = shalt.err (!%p12795_p0)
}
  0x6e   :  { %s12799_s12 = scalar_lea.vmem %s173_s5, 64  ;;  %p12804_p2 = scmp.lt.s32.totalorder %s173_s5, %s173_s5 }
  0x6f   :  { %p12800_p1 = scmp.ne.s32.totalorder %s173_s5, %s12799_s12  ;;  %p12805_p3 = scmp.lt.s32.totalorder %s12799_s12, %s12799_s12 }
  0x71   :  { %p12806_p4 = por %p12805_p3, %p12804_p2 }
  0x73   :  { %p12807_p5 = pnand %p12806_p4, %p12800_p1 }
  0x75   :  { %12810 = shalt.err (!%p12807_p5)
}
  0x76   :  { %175 = dma.hbm_to_vmem [thread:$0]  %s17525_s15, 64, %s173_s5, [#allocation20]  }
  0x77   :  { %s12811_s25 = scalar_lea.hbm %s17527_s17, 16384 }
  0x78   :  { %p12812_p6 = scmp.ne.s32.totalorder %s17527_s17, %s12811_s25  ;;  %p12815_p7 = scmp.lt.u32.totalorder %s12811_s25, %s17527_s17 }
  0x7a   :  { %p12817_p8 = pnand %p12815_p7, %p12812_p6 }
  0x7c   :  { %12820 = shalt.err (!%p12817_p8)
}
  0x7d   :  { %s12821_s28 = scalar_lea.vmem %s194_s22, 16384  ;;  %p12826_p10 = scmp.lt.s32.totalorder %s194_s22, %s194_s22 }
  0x7e   :  { %p12822_p9 = scmp.ne.s32.totalorder %s194_s22, %s12821_s28  ;;  %p12827_p11 = scmp.lt.s32.totalorder %s12821_s28, %s12821_s28 }
  0x80   :  { %p12828_p12 = por %p12827_p11, %p12826_p10 }
  0x82   :  { %p12829_p13 = pnand %p12828_p12, %p12822_p9 }
  0x84   :  { %12832 = shalt.err (!%p12829_p13)
}
  0x85   :  { %199 = dma.hbm_to_vmem [thread:$0]  %s17527_s17, 16384, %s194_s22, [#allocation23], %s13028_s6, %s13028_s6, %s13029_s27  }
  0x86   :  { %s13036_s4 = smov [#allocation2]   ;;  %s13037_s12 = smov [#allocation6]  }
  0x87   :  { %s43_s0 = sshll.u32 %s13036_s4, 4  ;;  %s67_s1 = sshll.u32 %s13037_s12, 4  ;;  %s44_s0 = int_to_ptr.vmem [resolvable:$true] %s43_s0  ;;  %s68_s1 = int_to_ptr.vmem [resolvable:$true] %s67_s1 }
  0x88   :  { %s17928_s8 = sld [smem:[#allocation131_spill]] }
  0x8e   :  { %s12833_s25 = scalar_lea.hbm %s17928_s8, 8192 }
  0x8f   :  { %p12834_p0 = scmp.ne.s32.totalorder %s17928_s8, %s12833_s25  ;;  %p12837_p1 = scmp.lt.u32.totalorder %s12833_s25, %s17928_s8 }
  0x91   :  { %p12839_p2 = pnand %p12837_p1, %p12834_p0 }
  0x93   :  { %12842 = shalt.err (!%p12839_p2)
}
  0x94   :  { %s12843_s17 = scalar_lea.vmem %s44_s0, 8192  ;;  %p12848_p4 = scmp.lt.s32.totalorder %s44_s0, %s44_s0 }
  0x95   :  { %p12844_p3 = scmp.ne.s32.totalorder %s44_s0, %s12843_s17  ;;  %p12849_p5 = scmp.lt.s32.totalorder %s12843_s17, %s12843_s17 }
  0x97   :  { %p12850_p6 = por %p12849_p5, %p12848_p4 }
  0x99   :  { %p12851_p7 = pnand %p12850_p6, %p12844_p3 }
  0x9b   :  { %12854 = shalt.err (!%p12851_p7)
}
  0x9c   :  { %49 = dma.hbm_to_vmem [thread:$0]  %s17928_s8, 8192, %s44_s0, [#allocation3], %s13028_s6, %s13028_s6, %s13029_s27  }
  0x9d   :  { %s17929_s4 = sld [smem:[#allocation134_spill]] }
  0xa3   :  { %s12855_s12 = scalar_lea.hbm %s17929_s4, 16384 }
  0xa4   :  { %p12856_p8 = scmp.ne.s32.totalorder %s17929_s4, %s12855_s12  ;;  %p12859_p9 = scmp.lt.u32.totalorder %s12855_s12, %s17929_s4 }
  0xa6   :  { %p12861_p10 = pnand %p12859_p9, %p12856_p8 }
  0xa8   :  { %12864 = shalt.err (!%p12861_p10)
}
  0xa9   :  { %s12865_s2 = scalar_lea.vmem %s68_s1, 16384  ;;  %p12870_p12 = scmp.lt.s32.totalorder %s68_s1, %s68_s1 }
  0xaa   :  { %p12866_p11 = scmp.ne.s32.totalorder %s68_s1, %s12865_s2  ;;  %p12871_p13 = scmp.lt.s32.totalorder %s12865_s2, %s12865_s2 }
  0xac   :  { %p12872_p0 = por %p12871_p13, %p12870_p12 }
  0xae   :  { %p12873_p1 = pnand %p12872_p0, %p12866_p11 }
  0xb0   :  { %12876 = shalt.err (!%p12873_p1)
}
  0xb1   :  { %73 = dma.hbm_to_vmem [thread:$0]  %s17929_s4, 16384, %s68_s1, [#allocation5], %s13028_s6, %s13028_s6, %s13029_s27  }
  0xb2   :  { %s13038_s26 = smov [#allocation9]   ;;  %s13039_s17 = smov [#allocation12]  }
  0xb3   :  { %s89_s3 = sshll.u32 %s13038_s26, 4  ;;  %s114_s22 = sshll.u32 %s13039_s17, 4  ;;  %s90_s3 = int_to_ptr.vmem [resolvable:$true] %s89_s3  ;;  %s115_s22 = int_to_ptr.vmem [resolvable:$true] %s114_s22 }
  0xb4   :  { %s12877_s5 = scalar_lea.hbm %s17517_s7, 512 }
  0xb5   :  { %p12878_p2 = scmp.ne.s32.totalorder %s17517_s7, %s12877_s5  ;;  %p12881_p3 = scmp.lt.u32.totalorder %s12877_s5, %s17517_s7 }
  0xb7   :  { %p12883_p4 = pnand %p12881_p3, %p12878_p2 }
  0xb9   :  { %12886 = shalt.err (!%p12883_p4)
}
  0xba   :  { %s12887_s1 = scalar_lea.vmem %s90_s3, 512  ;;  %p12892_p6 = scmp.lt.s32.totalorder %s90_s3, %s90_s3 }
  0xbb   :  { %p12888_p5 = scmp.ne.s32.totalorder %s90_s3, %s12887_s1  ;;  %p12893_p7 = scmp.lt.s32.totalorder %s12887_s1, %s12887_s1 }
  0xbd   :  { %p12894_p8 = por %p12893_p7, %p12892_p6 }
  0xbf   :  { %p12895_p9 = pnand %p12894_p8, %p12888_p5 }
  0xc1   :  { %12898 = shalt.err (!%p12895_p9)
}
  0xc2   :  { %95 = dma.hbm_to_vmem [thread:$0]  %s17517_s7, 512, %s90_s3, [#allocation8], %s13032_s23, %s13032_s23, %s13033_s30  }
  0xc3   :  { %s12899_s8 = scalar_lea.hbm %s17519_s9, 64 }
  0xc4   :  { %p12900_p10 = scmp.ne.s32.totalorder %s17519_s9, %s12899_s8  ;;  %p12903_p11 = scmp.lt.u32.totalorder %s12899_s8, %s17519_s9 }
  0xc6   :  { %p12905_p12 = pnand %p12903_p11, %p12900_p10 }
  0xc8   :  { %12908 = shalt.err (!%p12905_p12)
}
  0xc9   :  { %s12909_s5 = scalar_lea.vmem %s115_s22, 64  ;;  %p12914_p0 = scmp.lt.s32.totalorder %s115_s22, %s115_s22 }
  0xca   :  { %p12910_p13 = scmp.ne.s32.totalorder %s115_s22, %s12909_s5  ;;  %p12915_p1 = scmp.lt.s32.totalorder %s12909_s5, %s12909_s5 }
  0xcc   :  { %p12916_p2 = por %p12915_p1, %p12914_p0 }
  0xce   :  { %p12917_p3 = pnand %p12916_p2, %p12910_p13 }
  0xd0   :  { %12920 = shalt.err (!%p12917_p3)
}
  0xd1   :  { %117 = dma.hbm_to_vmem [thread:$0]  %s17519_s9, 64, %s115_s22, [#allocation11]  }
  0xd2   :  { %s13040_s30 = smov [#allocation15]   ;;  %s13041_s12 = smov [#allocation18]  }
  0xd3   :  { %s135_s3 = sshll.u32 %s13040_s30, 4  ;;  %s159_s10 = sshll.u32 %s13041_s12, 4  ;;  %s136_s3 = int_to_ptr.vmem [resolvable:$true] %s135_s3  ;;  %s160_s10 = int_to_ptr.vmem [resolvable:$true] %s159_s10 }
  0xd4   :  { %s12921_s1 = scalar_lea.hbm %s17521_s11, 16384 }
  0xd5   :  { %p12922_p4 = scmp.ne.s32.totalorder %s17521_s11, %s12921_s1  ;;  %p12925_p5 = scmp.lt.u32.totalorder %s12921_s1, %s17521_s11 }
  0xd7   :  { %p12927_p6 = pnand %p12925_p5, %p12922_p4 }
  0xd9   :  { %12930 = shalt.err (!%p12927_p6)
}
  0xda   :  { %s12931_s9 = scalar_lea.vmem %s136_s3, 16384  ;;  %p12936_p8 = scmp.lt.s32.totalorder %s136_s3, %s136_s3 }
  0xdb   :  { %p12932_p7 = scmp.ne.s32.totalorder %s136_s3, %s12931_s9  ;;  %p12937_p9 = scmp.lt.s32.totalorder %s12931_s9, %s12931_s9 }
  0xdd   :  { %p12938_p10 = por %p12937_p9, %p12936_p8 }
  0xdf   :  { %p12939_p11 = pnand %p12938_p10, %p12932_p7 }
  0xe1   :  { %12942 = shalt.err (!%p12939_p11)
}
  0xe2   :  { %141 = dma.hbm_to_vmem [thread:$0]  %s17521_s11, 16384, %s136_s3, [#allocation14], %s13028_s6, %s13028_s6, %s13029_s27  }
  0xe3   :  { %s12943_s28 = scalar_lea.hbm %s17524_s14, 16384 }
  0xe4   :  { %p12944_p12 = scmp.ne.s32.totalorder %s17524_s14, %s12943_s28  ;;  %p12947_p13 = scmp.lt.u32.totalorder %s12943_s28, %s17524_s14 }
  0xe6   :  { %p12949_p0 = pnand %p12947_p13, %p12944_p12 }
  0xe8   :  { %12952 = shalt.err (!%p12949_p0)
}
  0xe9   :  { %s12953_s30 = scalar_lea.vmem %s160_s10, 16384  ;;  %p12958_p2 = scmp.lt.s32.totalorder %s160_s10, %s160_s10 }
  0xea   :  { %p12954_p1 = scmp.ne.s32.totalorder %s160_s10, %s12953_s30  ;;  %p12959_p3 = scmp.lt.s32.totalorder %s12953_s30, %s12953_s30 }
  0xec   :  { %p12960_p4 = por %p12959_p3, %p12958_p2 }
  0xee   :  { %p12961_p5 = pnand %p12960_p4, %p12954_p1 }
  0xf0   :  { %12964 = shalt.err (!%p12961_p5)
}
  0xf1   :  { %165 = dma.hbm_to_vmem [thread:$0]  %s17524_s14, 16384, %s160_s10, [#allocation17], %s13028_s6, %s13028_s6, %s13029_s27  }
  0xf2   :  { %s13042_s12 = smov [#allocation21]   ;;  %s12965_s4 = scalar_lea.hbm %s17526_s16, 64 }
  0xf3   :  { %s181_s29 = sshll.u32 %s13042_s12, 4  ;;  %p12966_p6 = scmp.ne.s32.totalorder %s17526_s16, %s12965_s4  ;;  %s182_s29 = int_to_ptr.vmem [resolvable:$true] %s181_s29 }
  0xf4   :  { %p12969_p7 = scmp.lt.u32.totalorder %s12965_s4, %s17526_s16 }
  0xf6   :  { %p12971_p8 = pnand %p12969_p7, %p12966_p6 }
  0xf8   :  { %12974 = shalt.err (!%p12971_p8)
}
  0xf9   :  { %s12975_s22 = scalar_lea.vmem %s182_s29, 64  ;;  %p12980_p10 = scmp.lt.s32.totalorder %s182_s29, %s182_s29 }
  0xfa   :  { %p12976_p9 = scmp.ne.s32.totalorder %s182_s29, %s12975_s22  ;;  %p12981_p11 = scmp.lt.s32.totalorder %s12975_s22, %s12975_s22 }
  0xfc   :  { %p12982_p12 = por %p12981_p11, %p12980_p10 }
  0xfe   :  { %p12983_p13 = pnand %p12982_p12, %p12976_p9 }
 0x100   :  { %12986 = shalt.err (!%p12983_p13)
}
 0x101   :  { %s13043_s14 = smov 16   ;;  %s13044_s6 = smov 1  }
 0x102   :  { %187 = dma.hbm_to_vmem [thread:$0]  %s17526_s16, 64, %s182_s29, [#allocation20], %s13043_s14, %s13043_s14, %s13044_s6  }
 0x103   :  { %s13045_s8 = smov [#allocation24]   ;;  %s12987_s15 = scalar_lea.hbm %s17528_s18, 64 }
 0x104   :  { %s206_s26 = sshll.u32 %s13045_s8, 4  ;;  %p12988_p0 = scmp.ne.s32.totalorder %s17528_s18, %s12987_s15  ;;  %s207_s26 = int_to_ptr.vmem [resolvable:$true] %s206_s26 }
 0x105   :  { %p12991_p1 = scmp.lt.u32.totalorder %s12987_s15, %s17528_s18 }
 0x107   :  { %p12993_p2 = pnand %p12991_p1, %p12988_p0 }
 0x109   :  { %12996 = shalt.err (!%p12993_p2)
}
 0x10a   :  { %s12997_s11 = scalar_lea.vmem %s207_s26, 64  ;;  %p13002_p4 = scmp.lt.s32.totalorder %s207_s26, %s207_s26 }
 0x10b   :  { %p12998_p3 = scmp.ne.s32.totalorder %s207_s26, %s12997_s11  ;;  %p13003_p5 = scmp.lt.s32.totalorder %s12997_s11, %s12997_s11 }
 0x10d   :  { %p13004_p6 = por %p13003_p5, %p13002_p4 }
 0x10f   :  { %p13005_p7 = pnand %p13004_p6, %p12998_p3 }
 0x111   :  { %13008 = shalt.err (!%p13005_p7)
}
 0x112   :  { %209 = dma.hbm_to_vmem [thread:$0]  %s17528_s18, 64, %s207_s26, [#allocation23]  }
 0x113   :  { %13009 = dma.done.wait [#allocation3], 8192  }
 0x114   :  { %13010 = vsyncadd [#allocation3], 4294959104 }
 0x115   :  { %13011 = dma.done.wait [#allocation5], 16448  }
 0x116   :  { %13012 = vsyncadd [#allocation5], 4294950848 }
 0x117   :  { %13013 = dma.done.wait [#allocation8], 576  }
 0x118   :  { %13014 = vsyncadd [#allocation8], 4294966720 }
 0x119   :  { %13015 = dma.done.wait [#allocation11], 16448  }
 0x11a   :  { %13016 = vsyncadd [#allocation11], 4294950848 }
 0x11b   :  { %13017 = dma.done.wait [#allocation14], 16640  }
 0x11c   :  { %13018 = vsyncadd [#allocation14], 4294950656 }
 0x11d   :  { %13019 = dma.done.wait [#allocation17], 16448  }
 0x11e   :  { %13020 = vsyncadd [#allocation17], 4294950848 }
 0x11f   :  { %13021 = dma.done.wait [#allocation20], 128  }
 0x120   :  { %13022 = vsyncadd [#allocation20], 4294967168 }
 0x121   :  { %13023 = dma.done.wait [#allocation23], 16448  }
 0x122   :  { %13024 = vsyncadd [#allocation23], 4294950848  ;;  %s17930_s25 = sld [smem:[#allocation129_spill]]  ;;  %s17931_s14 = sld [smem:[#allocation130_spill]]  ;;  %v11542_v13 = vld [vmem:[#allocation2 + $0x4] ss:$8 sps:$4 sm:$0xff]  }
 0x123   :  { %v11540_v15 = vld [vmem:[#allocation2] ss:$8 sps:$4 sm:$0xff]   ;;  %v11546_v16 = vld [vmem:[#allocation2 + $0x14] ss:$8 sps:$4 sm:$0xff]   ;;  %v11544_v17 = vld [vmem:[#allocation2 + $0x10] ss:$8 sps:$4 sm:$0xff]  }
 0x124   :  { %v11548_v21 = vld [vmem:[#allocation2 + $0x20] ss:$8 sps:$4 sm:$0xff]   ;;  %v11550_v22 = vld [vmem:[#allocation2 + $0x24] ss:$8 sps:$4 sm:$0xff]   ;;  %v11553_v23 = vld [vmem:[#allocation2 + $0x34] ss:$8 sps:$4 sm:$0xff]  }
 0x125   :  { %v11551_v24 = vld [vmem:[#allocation2 + $0x30] ss:$8 sps:$4 sm:$0xff]   ;;  %v11556_v25 = vld [vmem:[#allocation2 + $0x44] ss:$8 sps:$4 sm:$0xff]   ;;  %v11554_v26 = vld [vmem:[#allocation2 + $0x40] ss:$8 sps:$4 sm:$0xff]  }
 0x126   :  { %v11559_v27 = vld [vmem:[#allocation2 + $0x54] ss:$8 sps:$4 sm:$0xff]   ;;  %v11557_v28 = vld [vmem:[#allocation2 + $0x50] ss:$8 sps:$4 sm:$0xff]   ;;  %v11562_v29 = vld [vmem:[#allocation2 + $0x64] ss:$8 sps:$4 sm:$0xff]  }
 0x127   :  { %v11560_v30 = vld [vmem:[#allocation2 + $0x60] ss:$8 sps:$4 sm:$0xff]   ;;  %v11565_v45 = vld [vmem:[#allocation2 + $0x74] ss:$8 sps:$4 sm:$0xff]   ;;  %v11563_v47 = vld [vmem:[#allocation2 + $0x70] ss:$8 sps:$4 sm:$0xff]  }
 0x128   :  { %v13364_v0 = vld [vmem:[%s17930_s25] sm:$0xff]   ;;  %v13369_v1 = vld [vmem:[%s17930_s25 + $0x8] sm:$0xff]   ;;  %v13379_v2 = vld [vmem:[%s17930_s25 + $0x10] sm:$0xff]   ;;  %s17936_s11 = sld [smem:[#allocation133_spill]] }
 0x129   :  { %11120 = vmatprep.subr.bf16.mxu1 %v13364_v0  ;;  %11168 = vmatprep.subr.bf16.mxu0 %v13364_v0  ;;  %v13386_v3 = vld [vmem:[%s17930_s25 + $0x18] sm:$0xff]   ;;  %v13393_v4 = vld [vmem:[%s17931_s14] sm:$0xff]   ;;  %v13412_v6 = vld [vmem:[%s17930_s25 + $0x28] sm:$0xff]  }
 0x12a   :  { %11121 = vmatpush3.bf16.msra.mxu1 %v13364_v0  ;;  %11169 = vmatpush3.bf16.msra.mxu0 %v13364_v0  ;;  %v13403_v5 = vld [vmem:[%s17930_s25 + $0x20] sm:$0xff]   ;;  %v13424_v8 = vld [vmem:[%s17930_s25 + $0x30] sm:$0xff]   ;;  %v13433_v9 = vld [vmem:[%s17930_s25 + $0x38] sm:$0xff]  }
 0x12b   :  { %11122 = vmatprep.subr.bf16.mxu1 %v13369_v1  ;;  %11170 = vmatprep.subr.bf16.mxu0 %v13369_v1  ;;  %v11527_v7 = vld [vmem:[%s17931_s14 + $0x40] sm:$0xff]   ;;  %v13442_v10 = vld [vmem:[%s17931_s14 + $0x8] sm:$0xff]   ;;  %v13448_v11 = vld [vmem:[%s17931_s14 + $0x10] sm:$0xff]  }
 0x12c   :  { %11136 = vmatprep.mubr.bf16.mxu1 %v13393_v4  ;;  %11184 = vmatprep.mubr.bf16.mxu0 %v11527_v7  ;;  %v11529_v12 = vld [vmem:[%s17931_s14 + $0x48] sm:$0xff]   ;;  %v11531_v14 = vld [vmem:[%s17931_s14 + $0x50] sm:$0xff]   ;;  %v13466_v18 = vld [vmem:[%s17931_s14 + $0x18] sm:$0xff]  }
 0x12d   :  { %v11533_v19 = vld [vmem:[%s17931_s14 + $0x58] sm:$0xff]   ;;  %v13475_v20 = vld [vmem:[%s17931_s14 + $0x20] sm:$0xff]   ;;  %v13493_v31 = vld [vmem:[%s17931_s14 + $0x28] sm:$0xff]  }
 0x12e   :  { %11123 = vmatpush3.bf16.msra.mxu1 %v13369_v1  ;;  %11171 = vmatpush3.bf16.msra.mxu0 %v13369_v1  ;;  %v13498_v32 = vld [vmem:[%s17931_s14 + $0x30] sm:$0xff]   ;;  %v13508_v33 = vld [vmem:[%s17931_s14 + $0x38] sm:$0xff]   ;;  %v13514_v34 = vld [vmem:[%s17931_s14 + $0x60] sm:$0xff]  }
 0x12f   :  { %11124 = vmatprep.subr.bf16.mxu1 %v13379_v2  ;;  %11172 = vmatprep.subr.bf16.mxu0 %v13379_v2  ;;  %v13531_v35 = vld [vmem:[%s17930_s25 + $0x40] sm:$0xff]   ;;  %v13538_v36 = vld [vmem:[%s17931_s14 + $0x68] sm:$0xff]   ;;  %v13543_v37 = vld [vmem:[%s17931_s14 + $0x70] sm:$0xff]  }
 0x130   :  { %v13548_v38 = vld [vmem:[%s17930_s25 + $0x48] sm:$0xff]   ;;  %v13556_v39 = vld [vmem:[%s17930_s25 + $0x50] sm:$0xff]   ;;  %v13563_v40 = vld [vmem:[%s17931_s14 + $0x78] sm:$0xff]  }
 0x131   :  { %v13569_v41 = vld [vmem:[%s17930_s25 + $0x58] sm:$0xff]   ;;  %v13577_v42 = vld [vmem:[%s17930_s25 + $0x60] sm:$0xff]   ;;  %v13585_v43 = vld [vmem:[%s17930_s25 + $0x68] sm:$0xff]  }
 0x132   :  { %11125 = vmatpush3.bf16.msra.mxu1 %v13379_v2  ;;  %11173 = vmatpush3.bf16.msra.mxu0 %v13379_v2  ;;  %v13592_v44 = vld [vmem:[%s17930_s25 + $0x70] sm:$0xff]   ;;  %v13599_v46 = vld [vmem:[%s17930_s25 + $0x78] sm:$0xff]   ;;  %v11566_v48 = vld [vmem:[#allocation2 + $0x80] ss:$8 sps:$4 sm:$0xff]  }
 0x133   :  { %11126 = vmatprep.subr.bf16.mxu1 %v13386_v3  ;;  %11174 = vmatprep.subr.bf16.mxu0 %v13386_v3  ;;  %v11568_v49 = vld [vmem:[#allocation2 + $0x84] ss:$8 sps:$4 sm:$0xff]   ;;  %v11571_v50 = vld [vmem:[#allocation2 + $0x94] ss:$8 sps:$4 sm:$0xff]   ;;  %v11569_v51 = vld [vmem:[#allocation2 + $0x90] ss:$8 sps:$4 sm:$0xff]  }
 0x134   :  { %v11574_v52 = vld [vmem:[#allocation2 + $0xa4] ss:$8 sps:$4 sm:$0xff]   ;;  %v11572_v53 = vld [vmem:[#allocation2 + $0xa0] ss:$8 sps:$4 sm:$0xff]   ;;  %v11577_v54 = vld [vmem:[#allocation2 + $0xb4] ss:$8 sps:$4 sm:$0xff]  }
 0x135   :  { %v11575_v55 = vld [vmem:[#allocation2 + $0xb0] ss:$8 sps:$4 sm:$0xff]   ;;  %v11580_v56 = vld [vmem:[#allocation2 + $0xc4] ss:$8 sps:$4 sm:$0xff]   ;;  %v11578_v57 = vld [vmem:[#allocation2 + $0xc0] ss:$8 sps:$4 sm:$0xff]  }
 0x136   :  { %11127 = vmatpush3.bf16.msra.mxu1 %v13386_v3  ;;  %11175 = vmatpush3.bf16.msra.mxu0 %v13386_v3  ;;  %v11583_v58 = vld [vmem:[#allocation2 + $0xd4] ss:$8 sps:$4 sm:$0xff]   ;;  %v11581_v59 = vld [vmem:[#allocation2 + $0xd0] ss:$8 sps:$4 sm:$0xff]   ;;  %v11586_v60 = vld [vmem:[#allocation2 + $0xe4] ss:$8 sps:$4 sm:$0xff]  }
 0x137   :  { %11128 = vmatprep.subr.bf16.mxu1 %v13403_v5  ;;  %11176 = vmatprep.subr.bf16.mxu0 %v13403_v5  ;;  %v11584_v61 = vld [vmem:[#allocation2 + $0xe0] ss:$8 sps:$4 sm:$0xff]   ;;  %v11589_v62 = vld [vmem:[#allocation2 + $0xf4] ss:$8 sps:$4 sm:$0xff]   ;;  %v11587_v63 = vld [vmem:[#allocation2 + $0xf0] ss:$8 sps:$4 sm:$0xff]  }
 0x13a   :  { %11129 = vmatpush3.bf16.msra.mxu1 %v13403_v5  ;;  %11177 = vmatpush3.bf16.msra.mxu0 %v13403_v5 }
 0x13b   :  { %11130 = vmatprep.subr.bf16.mxu1 %v13412_v6  ;;  %11178 = vmatprep.subr.bf16.mxu0 %v13412_v6 }
 0x13e   :  { %11131 = vmatpush3.bf16.msra.mxu1 %v13412_v6  ;;  %11179 = vmatpush3.bf16.msra.mxu0 %v13412_v6 }
 0x13f   :  { %11132 = vmatprep.subr.bf16.mxu1 %v13424_v8  ;;  %11180 = vmatprep.subr.bf16.mxu0 %v13424_v8 }
 0x142   :  { %11133 = vmatpush3.bf16.msra.mxu1 %v13424_v8  ;;  %11181 = vmatpush3.bf16.msra.mxu0 %v13424_v8 }
 0x143   :  { %11134 = vmatprep.subr.bf16.mxu1 %v13433_v9  ;;  %11182 = vmatprep.subr.bf16.mxu0 %v13433_v9 }
 0x146   :  { %11135 = vmatpush3.bf16.msra.mxu1 %v13433_v9  ;;  %11183 = vmatpush3.bf16.msra.mxu0 %v13433_v9 }
 0x147   :  { %11144 = vmatprep.subr.bf16.mxu1 %v13364_v0  ;;  %1133 = vmatprep.subr.bf16.mxu0 %v11542_v13 }
 0x149   :  { %11137 = vmatmul.mubr.bf16.vlgmr.msra.gmra.mrb[0].mxu1 %v13442_v10  ;;  %11185 = vmatmul.mubr.bf16.vlgmr.msra.gmra.mrb[0].mxu0 %v11529_v12 }
 0x14a   :  { %11145 = vmatpush3.bf16.msra.mxu1 %v13364_v0  ;;  %11140 = vmatprep.mubr.bf16.mxu1 %v13448_v11 }
 0x14b   :  { %11146 = vmatprep.subr.bf16.mxu1 %v13369_v1  ;;  %11188 = vmatprep.mubr.bf16.mxu0 %v11531_v14 }
 0x14c   :  { %1134 = vmatpush1.bf16.msra.mxu0 %v11540_v15 }
 0x14d   :  { %1135 = vmatprep.subr.bf16.mxu0 %v11546_v16 }
 0x14e   :  { %11147 = vmatpush3.bf16.msra.mxu1 %v13369_v1 }
 0x14f   :  { %11148 = vmatprep.subr.bf16.mxu1 %v13379_v2 }
 0x150   :  { %1136 = vmatpush1.bf16.msra.mxu0 %v11544_v17 }
 0x151   :  { %11141 = vmatmul.mubr.bf16.gmra.mrb[4].mxu1 %v13466_v18  ;;  %11189 = vmatmul.mubr.bf16.gmra.mrb[4].mxu0 %v11533_v19 }
 0x152   :  { %11149 = vmatpush3.bf16.msra.mxu1 %v13379_v2  ;;  %11160 = vmatprep.mubr.bf16.mxu1 %v13475_v20 }
 0x153   :  { %11150 = vmatprep.subr.bf16.mxu1 %v13386_v3  ;;  %1137 = vmatprep.subr.bf16.mxu0 %v11550_v22 }
 0x154   :  { %1138 = vmatpush1.bf16.msra.mxu0 %v11548_v21 }
 0x155   :  { %1139 = vmatprep.subr.bf16.mxu0 %v11553_v23 }
 0x156   :  { %11151 = vmatpush3.bf16.msra.mxu1 %v13386_v3 }
 0x157   :  { %11152 = vmatprep.subr.bf16.mxu1 %v13403_v5 }
 0x158   :  { %1140 = vmatpush1.bf16.msra.mxu0 %v11551_v24 }
 0x159   :  { %1141 = vmatprep.subr.bf16.mxu0 %v11556_v25 }
 0x15a   :  { %11153 = vmatpush3.bf16.msra.mxu1 %v13403_v5 }
 0x15b   :  { %11154 = vmatprep.subr.bf16.mxu1 %v13412_v6 }
 0x15c   :  { %1142 = vmatpush1.bf16.msra.mxu0 %v11554_v26 }
 0x15d   :  { %1143 = vmatprep.subr.bf16.mxu0 %v11559_v27 }
 0x15e   :  { %11155 = vmatpush3.bf16.msra.mxu1 %v13412_v6 }
 0x15f   :  { %11156 = vmatprep.subr.bf16.mxu1 %v13424_v8 }
 0x160   :  { %1144 = vmatpush1.bf16.msra.mxu0 %v11557_v28 }
 0x161   :  { %1145 = vmatprep.subr.bf16.mxu0 %v11562_v29 }
 0x162   :  { %11157 = vmatpush3.bf16.msra.mxu1 %v13424_v8 }
 0x163   :  { %11158 = vmatprep.subr.bf16.mxu1 %v13433_v9 }
 0x164   :  { %1146 = vmatpush1.bf16.msra.mxu0 %v11560_v30 }
 0x165   :  { %1147 = vmatprep.subr.bf16.mxu0 %v11565_v45 }
 0x166   :  { %11159 = vmatpush3.bf16.msra.mxu1 %v13433_v9 }
 0x167   :  { %11192 = vmatprep.subr.bf16.mxu1 %v13364_v0 }
 0x168   :  { %1148 = vmatpush1.bf16.msra.mxu0 %v11563_v47  ;;  %v13717_v47 = vld [vmem:[#allocation2 + $0x130] ss:$8 sps:$4 sm:$0xff]  }
 0x169   :  { %11161 = vmatmul.mubr.bf16.vlgmr.msra.gmra.mrb[8].mxu1 %v13493_v31  ;;  %1149 = vmatprep.subr.bf16.mxu0 %v11568_v49  ;;  %v13723_v49 = vld [vmem:[#allocation2 + $0x140] ss:$8 sps:$4 sm:$0xff]  }
 0x16a   :  { %11164 = vmatprep.mubr.bf16.mxu1 %v13498_v32  ;;  %11193 = vmatpush3.bf16.msra.mxu1 %v13364_v0  ;;  %v11592_v0 = vld [vmem:[#allocation2 + $0x104] ss:$8 sps:$4 sm:$0xff]  }
 0x16b   :  { %11194 = vmatprep.subr.bf16.mxu1 %v13369_v1 }
 0x16c   :  { %1150 = vmatpush1.bf16.msra.mxu0 %v11566_v48  ;;  %v13719_v48 = vld [vmem:[#allocation2 + $0x144] ss:$8 sps:$4 sm:$0xff]  }
 0x16d   :  { %1151 = vmatprep.subr.bf16.mxu0 %v11571_v50  ;;  %v13725_v50 = vld [vmem:[#allocation2 + $0x154] ss:$8 sps:$4 sm:$0xff]  }
 0x16e   :  { %11195 = vmatpush3.bf16.msra.mxu1 %v13369_v1  ;;  %v12642_v1 = vld [vmem:[%s17931_s14 + $0x40] sm:$0xff]  }
 0x16f   :  { %11196 = vmatprep.subr.bf16.mxu1 %v13379_v2 }
 0x170   :  { %1152 = vmatpush1.bf16.msra.mxu0 %v11569_v51  ;;  %v13729_v51 = vld [vmem:[#allocation2 + $0x150] ss:$8 sps:$4 sm:$0xff]  }
 0x171   :  { %11165 = vmatmul.mubr.bf16.gmra.mrb[12].mxu1 %v13508_v33  ;;  %1153 = vmatprep.subr.bf16.mxu0 %v11574_v52  ;;  %v13731_v52 = vld [vmem:[#allocation2 + $0x164] ss:$8 sps:$4 sm:$0xff]  }
 0x172   :  { %11197 = vmatpush3.bf16.msra.mxu1 %v13379_v2  ;;  %11208 = vmatprep.mubr.bf16.mxu1 %v13514_v34  ;;  %v12643_v2 = vld [vmem:[%s17931_s14 + $0x48] sm:$0xff]  }
 0x173   :  { %11198 = vmatprep.subr.bf16.mxu1 %v13386_v3 }
 0x174   :  { %1154 = vmatpush1.bf16.msra.mxu0 %v11572_v53  ;;  %v13735_v53 = vld [vmem:[#allocation2 + $0x160] ss:$8 sps:$4 sm:$0xff]  }
 0x175   :  { %1155 = vmatprep.subr.bf16.mxu0 %v11577_v54  ;;  %v13737_v54 = vld [vmem:[#allocation2 + $0x174] ss:$8 sps:$4 sm:$0xff]  }
 0x176   :  { %11199 = vmatpush3.bf16.msra.mxu1 %v13386_v3  ;;  %v12644_v3 = vld [vmem:[%s17931_s14 + $0x50] sm:$0xff]  }
 0x177   :  { %11200 = vmatprep.subr.bf16.mxu1 %v13403_v5 }
 0x178   :  { %1156 = vmatpush1.bf16.msra.mxu0 %v11575_v55  ;;  %v13741_v55 = vld [vmem:[#allocation2 + $0x170] ss:$8 sps:$4 sm:$0xff]  }
 0x179   :  { %1157 = vmatprep.subr.bf16.mxu0 %v11580_v56  ;;  %v13743_v56 = vld [vmem:[#allocation2 + $0x184] ss:$8 sps:$4 sm:$0xff]  }
 0x17a   :  { %11201 = vmatpush3.bf16.msra.mxu1 %v13403_v5 }
 0x17b   :  { %11202 = vmatprep.subr.bf16.mxu1 %v13412_v6 }
 0x17c   :  { %1158 = vmatpush1.bf16.msra.mxu0 %v11578_v57 }
 0x17d   :  { %1159 = vmatprep.subr.bf16.mxu0 %v11583_v58 }
 0x17e   :  { %11203 = vmatpush3.bf16.msra.mxu1 %v13412_v6 }
 0x17f   :  { %11204 = vmatprep.subr.bf16.mxu1 %v13424_v8 }
 0x180   :  { %1160 = vmatpush1.bf16.msra.mxu0 %v11581_v59  ;;  %v13747_v59 = vld [vmem:[#allocation2 + $0x180] ss:$8 sps:$4 sm:$0xff]  }
 0x181   :  { %1161 = vmatprep.subr.bf16.mxu0 %v11586_v60 }
 0x182   :  { %11205 = vmatpush3.bf16.msra.mxu1 %v13424_v8 }
 0x183   :  { %11206 = vmatprep.subr.bf16.mxu1 %v13433_v9 }
 0x184   :  { %1162 = vmatpush1.bf16.msra.mxu0 %v11584_v61  ;;  %v13749_v61 = vld [vmem:[#allocation2 + $0x194] ss:$8 sps:$4 sm:$0xff]  }
 0x185   :  { %1163 = vmatprep.subr.bf16.mxu0 %v11589_v62 }
 0x186   :  { %11207 = vmatpush3.bf16.msra.mxu1 %v13433_v9 }
 0x187   :  { %11216 = vmatprep.subr.bf16.mxu1 %v13531_v35 }
 0x188   :  { %1164 = vmatpush1.bf16.msra.mxu0 %v11587_v63 }
 0x189   :  { %11209 = vmatmul.mubr.bf16.vlgmr.msra.gmra.mrb[16].mxu1 %v13538_v36  ;;  %1206 = vmatprep.subr.bf16.mxu0 %v11592_v0 }
 0x18a   :  { %11212 = vmatprep.mubr.bf16.mxu1 %v13543_v37  ;;  %11217 = vmatpush3.bf16.msra.mxu1 %v13531_v35 }
 0x18b   :  { %11218 = vmatprep.subr.bf16.mxu1 %v13548_v38 }
 0x18e   :  { %11219 = vmatpush3.bf16.msra.mxu1 %v13548_v38 }
 0x18f   :  { %11220 = vmatprep.subr.bf16.mxu1 %v13556_v39 }
 0x191   :  { %11213 = vmatmul.mubr.bf16.gmra.mrb[20].mxu1 %v13563_v40 }
 0x192   :  { %11221 = vmatpush3.bf16.msra.mxu1 %v13556_v39  ;;  %11232 = vmatprep.mubr.bf16.mxu1 %v13393_v4  ;;  %v12645_v4 = vld [vmem:[%s17931_s14 + $0x58] sm:$0xff]  }
 0x193   :  { %11222 = vmatprep.subr.bf16.mxu1 %v13569_v41 }
 0x196   :  { %11223 = vmatpush3.bf16.msra.mxu1 %v13569_v41 }
 0x197   :  { %11224 = vmatprep.subr.bf16.mxu1 %v13577_v42 }
 0x19a   :  { %11225 = vmatpush3.bf16.msra.mxu1 %v13577_v42 }
 0x19b   :  { %11226 = vmatprep.subr.bf16.mxu1 %v13585_v43 }
 0x19e   :  { %11227 = vmatpush3.bf16.msra.mxu1 %v13585_v43 }
 0x19f   :  { %11228 = vmatprep.subr.bf16.mxu1 %v13592_v44 }
 0x1a2   :  { %11229 = vmatpush3.bf16.msra.mxu1 %v13592_v44 }
 0x1a3   :  { %11230 = vmatprep.subr.bf16.mxu1 %v13599_v46 }
 0x1a6   :  { %11231 = vmatpush3.bf16.msra.mxu1 %v13599_v46 }
 0x1a7   :  { %11240 = vmatprep.subr.bf16.mxu1 %v13531_v35 }
 0x1a9   :  { %11233 = vmatmul.mubr.bf16.vlgmr.msra.gmra.mrb[24].mxu1 %v13442_v10 }
 0x1aa   :  { %11241 = vmatpush3.bf16.msra.mxu1 %v13531_v35  ;;  %11236 = vmatprep.mubr.bf16.mxu1 %v13448_v11 }
 0x1ab   :  { %11242 = vmatprep.subr.bf16.mxu1 %v13548_v38 }
 0x1ae   :  { %11243 = vmatpush3.bf16.msra.mxu1 %v13548_v38 }
 0x1af   :  { %11244 = vmatprep.subr.bf16.mxu1 %v13556_v39 }
 0x1b1   :  { %11237 = vmatmul.mubr.bf16.gmra.mrb[28].mxu1 %v13466_v18 }
 0x1b2   :  { %11245 = vmatpush3.bf16.msra.mxu1 %v13556_v39  ;;  %11256 = vmatprep.mubr.bf16.mxu1 %v13475_v20 }
 0x1b3   :  { %11246 = vmatprep.subr.bf16.mxu1 %v13569_v41 }
 0x1b6   :  { %11247 = vmatpush3.bf16.msra.mxu1 %v13569_v41 }
 0x1b7   :  { %11248 = vmatprep.subr.bf16.mxu1 %v13577_v42 }
 0x1ba   :  { %11249 = vmatpush3.bf16.msra.mxu1 %v13577_v42 }
 0x1bb   :  { %11250 = vmatprep.subr.bf16.mxu1 %v13585_v43 }
 0x1be   :  { %11251 = vmatpush3.bf16.msra.mxu1 %v13585_v43 }
 0x1bf   :  { %11252 = vmatprep.subr.bf16.mxu1 %v13592_v44 }
 0x1c2   :  { %11253 = vmatpush3.bf16.msra.mxu1 %v13592_v44 }
 0x1c3   :  { %11254 = vmatprep.subr.bf16.mxu1 %v13599_v46 }
 0x1c6   :  { %11255 = vmatpush3.bf16.msra.mxu1 %v13599_v46 }
 0x1c7   :  { %11264 = vmatprep.subr.bf16.mxu1 %v13531_v35 }
 0x1c9   :  { %11257 = vmatmul.mubr.bf16.vlgmr.msra.gmra.mrb[32].mxu1 %v13493_v31 }
 0x1ca   :  { %11265 = vmatpush3.bf16.msra.mxu1 %v13531_v35  ;;  %11260 = vmatprep.mubr.bf16.mxu1 %v13498_v32  ;;  %v13701_v32 = vld [vmem:[#allocation2 + $0x100] ss:$8 sps:$4 sm:$0xff]  }
 0x1cb   :  { %11266 = vmatprep.subr.bf16.mxu1 %v13548_v38 }
 0x1ce   :  { %11267 = vmatpush3.bf16.msra.mxu1 %v13548_v38 }
 0x1cf   :  { %11268 = vmatprep.subr.bf16.mxu1 %v13556_v39 }
 0x1d1   :  { %11261 = vmatmul.mubr.bf16.gmra.mrb[36].mxu1 %v13508_v33 }
 0x1d2   :  { %11269 = vmatpush3.bf16.msra.mxu1 %v13556_v39  ;;  %11280 = vmatprep.mubr.bf16.mxu1 %v12642_v1  ;;  %v13753_v1 = vld [vmem:[#allocation2 + $0x190] ss:$8 sps:$4 sm:$0xff]  }
 0x1d3   :  { %11270 = vmatprep.subr.bf16.mxu1 %v13569_v41 }
 0x1d6   :  { %11271 = vmatpush3.bf16.msra.mxu1 %v13569_v41 }
 0x1d7   :  { %11272 = vmatprep.subr.bf16.mxu1 %v13577_v42 }
 0x1da   :  { %11273 = vmatpush3.bf16.msra.mxu1 %v13577_v42 }
 0x1db   :  { %11274 = vmatprep.subr.bf16.mxu1 %v13585_v43 }
 0x1de   :  { %11275 = vmatpush3.bf16.msra.mxu1 %v13585_v43 }
 0x1df   :  { %11276 = vmatprep.subr.bf16.mxu1 %v13592_v44 }
 0x1e2   :  { %11277 = vmatpush3.bf16.msra.mxu1 %v13592_v44 }
 0x1e3   :  { %11278 = vmatprep.subr.bf16.mxu1 %v13599_v46 }
 0x1e6   :  { %11279 = vmatpush3.bf16.msra.mxu1 %v13599_v46 }
 0x1e7   :  { %11288 = vmatprep.subr.bf16.mxu1 %v13531_v35 }
 0x1e9   :  { %11281 = vmatmul.mubr.bf16.vlgmr.msra.gmra.mrb[40].mxu1 %v12643_v2  ;;  %v13755_v2 = vld [vmem:[#allocation2 + $0x1a4] ss:$8 sps:$4 sm:$0xff]  }
 0x1ea   :  { %11289 = vmatpush3.bf16.msra.mxu1 %v13531_v35  ;;  %11284 = vmatprep.mubr.bf16.mxu1 %v12644_v3  ;;  %v13703_v35 = vld [vmem:[#allocation2 + $0x114] ss:$8 sps:$4 sm:$0xff]  }
 0x1eb   :  { %11290 = vmatprep.subr.bf16.mxu1 %v13548_v38 }
 0x1ee   :  { %11291 = vmatpush3.bf16.msra.mxu1 %v13548_v38  ;;  %v13707_v38 = vld [vmem:[#allocation2 + $0x124] ss:$8 sps:$4 sm:$0xff]  }
 0x1ef   :  { %11292 = vmatprep.subr.bf16.mxu1 %v13556_v39 }
 0x1f1   :  { %11285 = vmatmul.mubr.bf16.gmra.mrb[44].mxu1 %v12645_v4 }
 0x1f2   :  { %11293 = vmatpush3.bf16.msra.mxu1 %v13556_v39  ;;  %11304 = vmatprep.mubr.bf16.mxu1 %v13514_v34 }
 0x1f3   :  { %11294 = vmatprep.subr.bf16.mxu1 %v13569_v41 }
 0x1f6   :  { %11295 = vmatpush3.bf16.msra.mxu1 %v13569_v41  ;;  %v13711_v41 = vld [vmem:[#allocation2 + $0x120] ss:$8 sps:$4 sm:$0xff]  }
 0x1f7   :  { %11296 = vmatprep.subr.bf16.mxu1 %v13577_v42 }
 0x1fa   :  { %11297 = vmatpush3.bf16.msra.mxu1 %v13577_v42 }
 0x1fb   :  { %11298 = vmatprep.subr.bf16.mxu1 %v13585_v43 }
 0x1fe   :  { %11299 = vmatpush3.bf16.msra.mxu1 %v13585_v43 }
 0x1ff   :  { %11300 = vmatprep.subr.bf16.mxu1 %v13592_v44 }
 0x202   :  { %11301 = vmatpush3.bf16.msra.mxu1 %v13592_v44  ;;  %v13713_v44 = vld [vmem:[#allocation2 + $0x134] ss:$8 sps:$4 sm:$0xff]  }
 0x203   :  { %11302 = vmatprep.subr.bf16.mxu1 %v13599_v46 }
 0x206   :  { %11303 = vmatpush3.bf16.msra.mxu1 %v13599_v46 }
 0x209   :  { %11305 = vmatmul.mubr.bf16.vlgmr.msra.gmra.mrb[48].mxu1 %v13538_v36 }
 0x20a   :  { %11308 = vmatprep.mubr.bf16.mxu1 %v13543_v37  ;;  %v13705_v37 = vld [vmem:[#allocation2 + $0x110] ss:$8 sps:$4 sm:$0xff]  }
 0x211   :  { %11309 = vmatmul.mubr.bf16.gmra.mrb[52].mxu1 %v13563_v40 }
 0x21c   :  { %v11138_v5 = vpop.f32.mrb[0].mxu1  ;;  %v13677_v6 = vpop.f32.mrb[0].mxu0 }
 0x21d   :  { %v499_v7 = vpop.f32.mrb[1].mxu1  ;;  %v13679_v8 = vpop.f32.mrb[1].mxu0 }
 0x21e   :  { %v11139_v9 = vpop.f32.mrb[2].mxu1  ;;  %v13681_v10 = vpop.f32.mrb[2].mxu0 }
 0x21f   :  { %v531_v11 = vpack.c.bf16 %v11139_v9, %v11138_v5  ;;  %v502_v12 = vpop.f32.mrb[3].mxu1  ;;  %v717_v13 = vpack.c.bf16 %v13681_v10, %v13677_v6  ;;  %v13685_v14 = vpop.f32.mrb[3].mxu0  ;;  %v12657_v6 = vld [vmem:[#allocation2 + $0x50] ss:$8 sps:$4 sm:$0xff]   ;;  %v12658_v10 = vld [vmem:[#allocation2 + $0x64] ss:$8 sps:$4 sm:$0xff]  }
 0x220   :  { %v530_v15 = vpack.c.bf16 %v502_v12, %v499_v7  ;;  %v716_v16 = vpack.c.bf16 %v13685_v14, %v13679_v8  ;;  %v12650_v14 = vld [vmem:[#allocation2 + $0x24] ss:$8 sps:$4 sm:$0xff]  }
 0x224   :  { %v11142_v17 = vpop.f32.mrb[4].mxu1  ;;  %v13689_v18 = vpop.f32.mrb[4].mxu0 }
 0x225   :  { %v515_v19 = vpop.f32.mrb[5].mxu1  ;;  %v13691_v20 = vpop.f32.mrb[5].mxu0 }
 0x226   :  { %v11143_v21 = vpop.f32.mrb[6].mxu1  ;;  %v13693_v22 = vpop.f32.mrb[6].mxu0 }
 0x227   :  { %v533_v23 = vpack.c.bf16 %v11143_v21, %v11142_v17  ;;  %v518_v24 = vpop.f32.mrb[7].mxu1  ;;  %v719_v25 = vpack.c.bf16 %v13693_v22, %v13689_v18  ;;  %v13697_v26 = vpop.f32.mrb[7].mxu0  ;;  %v13772_v17 = vld [vmem:[#allocation2 + $0x1b0] ss:$8 sps:$4 sm:$0xff]   ;;  %v13778_v21 = vld [vmem:[#allocation2 + $0x1c0] ss:$8 sps:$4 sm:$0xff]  }
 0x228   :  { %v532_v27 = vpack.c.bf16 %v518_v24, %v515_v19  ;;  %v718_v28 = vpack.c.bf16 %v13697_v26, %v13691_v20  ;;  %v13775_v19 = vld [vmem:[#allocation2 + $0x1c4] ss:$8 sps:$4 sm:$0xff]   ;;  %v13784_v24 = vld [vmem:[#allocation2 + $0x1d0] ss:$8 sps:$4 sm:$0xff]   ;;  %v12664_v18 = vld [vmem:[#allocation2 + $0x94] ss:$8 sps:$4 sm:$0xff]  }
 0x23c   :  { %v11162_v29 = vpop.f32.mrb[8].mxu1 }
 0x23d   :  { %v592_v30 = vpop.f32.mrb[9].mxu1 }
 0x23e   :  { %v11163_v31 = vpop.f32.mrb[10].mxu1 }
 0x23f   :  { %v624_v33 = vpack.c.bf16 %v11163_v31, %v11162_v29  ;;  %v595_v34 = vpop.f32.mrb[11].mxu1  ;;  %v13790_v29 = vld [vmem:[#allocation2 + $0x1e0] ss:$8 sps:$4 sm:$0xff]   ;;  %v13796_v31 = vld [vmem:[#allocation2 + $0x1f0] ss:$8 sps:$4 sm:$0xff]  }
 0x240   :  { %v623_v36 = vpack.c.bf16 %v595_v34, %v592_v30  ;;  %v13793_v30 = vld [vmem:[#allocation2 + $0x1f4] ss:$8 sps:$4 sm:$0xff]  }
 0x242   :  { %1165 = vmatprep.mubr.bf16.mxu0 %v623_v36 }
 0x243   :  { %1166 = vmatmul.mubr.bf16.vlgmr.msra.gmra.mrb[8].mxu0 %v530_v15  ;;  %v13769_v15 = vld [vmem:[#allocation2 + $0x1b4] ss:$8 sps:$4 sm:$0xff]  }
 0x244   :  { %1207 = vmatpush1.bf16.msra.mxu0 %v13701_v32  ;;  %1175 = vmatprep.mubr.bf16.mxu0 %v624_v33  ;;  %v11166_v39 = vpop.f32.mrb[12].mxu1 }
 0x245   :  { %1208 = vmatprep.subr.bf16.mxu0 %v13703_v35  ;;  %v608_v40 = vpop.f32.mrb[13].mxu1 }
 0x246   :  { %v11167_v42 = vpop.f32.mrb[14].mxu1 }
 0x247   :  { %v626_v43 = vpack.c.bf16 %v11167_v42, %v11166_v39  ;;  %v611_v45 = vpop.f32.mrb[15].mxu1 }
 0x248   :  { %1209 = vmatpush1.bf16.msra.mxu0 %v13705_v37  ;;  %v625_v46 = vpack.c.bf16 %v611_v45, %v608_v40  ;;  %v12647_v45 = vld [vmem:[#allocation2] ss:$8 sps:$4 sm:$0xff]  }
 0x249   :  { %1210 = vmatprep.subr.bf16.mxu0 %v13707_v38 }
 0x24b   :  { %1176 = vmatmul.mubr.bf16.gmra.mrb[12].mxu0 %v531_v11  ;;  %v13766_v11 = vld [vmem:[#allocation2 + $0x1a0] ss:$8 sps:$4 sm:$0xff]  }
 0x24c   :  { %1211 = vmatpush1.bf16.msra.mxu0 %v13711_v41  ;;  %1185 = vmatprep.mubr.bf16.mxu0 %v625_v46 }
 0x24d   :  { %1212 = vmatprep.subr.bf16.mxu0 %v13713_v44 }
 0x250   :  { %1213 = vmatpush1.bf16.msra.mxu0 %v13717_v47 }
 0x251   :  { %1214 = vmatprep.subr.bf16.mxu0 %v13719_v48 }
 0x253   :  { %1186 = vmatmul.mubr.bf16.gmra.mrb[16].mxu0 %v532_v27  ;;  %v13787_v27 = vld [vmem:[#allocation2 + $0x1e4] ss:$8 sps:$4 sm:$0xff]  }
 0x254   :  { %1215 = vmatpush1.bf16.msra.mxu0 %v13723_v49  ;;  %1195 = vmatprep.mubr.bf16.mxu0 %v626_v43  ;;  %v12646_v43 = vld [vmem:[#allocation2 + $0x4] ss:$8 sps:$4 sm:$0xff]  }
 0x255   :  { %1216 = vmatprep.subr.bf16.mxu0 %v13725_v50 }
 0x258   :  { %1217 = vmatpush1.bf16.msra.mxu0 %v13729_v51 }
 0x259   :  { %1218 = vmatprep.subr.bf16.mxu0 %v13731_v52 }
 0x25b   :  { %1196 = vmatmul.mubr.bf16.gmra.mrb[20].mxu0 %v533_v23  ;;  %v13781_v23 = vld [vmem:[#allocation2 + $0x1d4] ss:$8 sps:$4 sm:$0xff]  }
 0x25c   :  { %1219 = vmatpush1.bf16.msra.mxu0 %v13735_v53  ;;  %v11210_v57 = vpop.f32.mrb[16].mxu1 }
 0x25d   :  { %1220 = vmatprep.subr.bf16.mxu0 %v13737_v54  ;;  %v778_v58 = vpop.f32.mrb[17].mxu1 }
 0x25e   :  { %v11211_v60 = vpop.f32.mrb[18].mxu1 }
 0x25f   :  { %v810_v62 = vpack.c.bf16 %v11211_v60, %v11210_v57  ;;  %v781_v63 = vpop.f32.mrb[19].mxu1  ;;  %v12648_v57 = vld [vmem:[#allocation2 + $0x14] ss:$8 sps:$4 sm:$0xff]  }
 0x260   :  { %1221 = vmatpush1.bf16.msra.mxu0 %v13741_v55  ;;  %v809_v0 = vpack.c.bf16 %v781_v63, %v778_v58 }
 0x261   :  { %1222 = vmatprep.subr.bf16.mxu0 %v13743_v56 }
 0x262   :  { %1238 = vmatprep.mubr.bf16.mxu0 %v809_v0 }
 0x264   :  { %1223 = vmatpush1.bf16.msra.mxu0 %v13747_v59  ;;  %v13758_v3 = vpop.f32.mrb[20].mxu1 }
 0x265   :  { %1224 = vmatprep.subr.bf16.mxu0 %v13749_v61  ;;  %v794_v4 = vpop.f32.mrb[21].mxu1 }
 0x266   :  { %v13761_v5 = vpop.f32.mrb[22].mxu1 }
 0x267   :  { %v812_v7 = vpack.c.bf16 %v13761_v5, %v13758_v3  ;;  %v797_v9 = vpop.f32.mrb[23].mxu1  ;;  %v12649_v3 = vld [vmem:[#allocation2 + $0x10] ss:$8 sps:$4 sm:$0xff]   ;;  %v12654_v5 = vld [vmem:[#allocation2 + $0x44] ss:$8 sps:$4 sm:$0xff]  }
 0x268   :  { %1225 = vmatpush1.bf16.msra.mxu0 %v13753_v1  ;;  %v811_v12 = vpack.c.bf16 %v797_v9, %v794_v4  ;;  %v12653_v4 = vld [vmem:[#allocation2 + $0x30] ss:$8 sps:$4 sm:$0xff]   ;;  %v12655_v9 = vld [vmem:[#allocation2 + $0x40] ss:$8 sps:$4 sm:$0xff]  }
 0x269   :  { %1226 = vmatprep.subr.bf16.mxu0 %v13755_v2 }
 0x26c   :  { %1227 = vmatpush1.bf16.msra.mxu0 %v13766_v11 }
 0x26d   :  { %1228 = vmatprep.subr.bf16.mxu0 %v13769_v15 }
 0x270   :  { %1229 = vmatpush1.bf16.msra.mxu0 %v13772_v17 }
 0x271   :  { %1230 = vmatprep.subr.bf16.mxu0 %v13775_v19 }
 0x274   :  { %1231 = vmatpush1.bf16.msra.mxu0 %v13778_v21 }
 0x275   :  { %1232 = vmatprep.subr.bf16.mxu0 %v13781_v23 }
 0x278   :  { %1233 = vmatpush1.bf16.msra.mxu0 %v13784_v24 }
 0x279   :  { %1234 = vmatprep.subr.bf16.mxu0 %v13787_v27 }
 0x27c   :  { %1235 = vmatpush1.bf16.msra.mxu0 %v13790_v29  ;;  %v13798_v33 = vpop.f32.mrb[24].mxu1 }
 0x27d   :  { %1236 = vmatprep.subr.bf16.mxu0 %v13793_v30  ;;  %v13801_v34 = vpop.f32.mrb[25].mxu1 }
 0x27e   :  { %v13803_v36 = vpop.f32.mrb[26].mxu1 }
 0x27f   :  { %v1518_v39 = vpack.c.bf16 %v13803_v36, %v13798_v33  ;;  %v13807_v40 = vpop.f32.mrb[27].mxu1 }
 0x280   :  { %1237 = vmatpush1.bf16.msra.mxu0 %v13796_v31  ;;  %v1517_v42 = vpack.c.bf16 %v13807_v40, %v13801_v34 }
 0x281   :  { %1728 = vmatprep.subr.bf16.mxu0 %v12646_v43  ;;  %v12656_v43 = vld [vmem:[#allocation2 + $0x54] ss:$8 sps:$4 sm:$0xff]  }
 0x283   :  { %1239 = vmatmul.mubr.bf16.vlgmr.msra.gmra.mrb[8].mxu0 %v716_v16  ;;  %v12651_v16 = vld [vmem:[#allocation2 + $0x20] ss:$8 sps:$4 sm:$0xff]  }
 0x284   :  { %1248 = vmatprep.mubr.bf16.mxu0 %v810_v62  ;;  %1729 = vmatpush1.bf16.msra.mxu0 %v12647_v45  ;;  %v13815_v46 = vpop.f32.mrb[28].mxu1  ;;  %v12652_v62 = vld [vmem:[#allocation2 + $0x34] ss:$8 sps:$4 sm:$0xff]  }
 0x285   :  { %1730 = vmatprep.subr.bf16.mxu0 %v12648_v57  ;;  %v13817_v58 = vpop.f32.mrb[29].mxu1  ;;  %v12660_v45 = vld [vmem:[#allocation2 + $0x74] ss:$8 sps:$4 sm:$0xff]   ;;  %v12661_v57 = vld [vmem:[#allocation2 + $0x70] ss:$8 sps:$4 sm:$0xff]  }
 0x286   :  { %v13819_v60 = vpop.f32.mrb[30].mxu1 }
 0x287   :  { %v1520_v63 = vpack.c.bf16 %v13819_v60, %v13815_v46  ;;  %v13823_v0 = vpop.f32.mrb[31].mxu1 }
 0x288   :  { %1731 = vmatpush1.bf16.msra.mxu0 %v12649_v3  ;;  %v1519_v8 = vpack.c.bf16 %v13823_v0, %v13817_v58 }
 0x289   :  { %1732 = vmatprep.subr.bf16.mxu0 %v12650_v14  ;;  %v12662_v14 = vld [vmem:[#allocation2 + $0x84] ss:$8 sps:$4 sm:$0xff]  }
 0x28b   :  { %1249 = vmatmul.mubr.bf16.gmra.mrb[12].mxu0 %v717_v13  ;;  %v12659_v13 = vld [vmem:[#allocation2 + $0x60] ss:$8 sps:$4 sm:$0xff]  }
 0x28c   :  { %1258 = vmatprep.mubr.bf16.mxu0 %v811_v12  ;;  %1733 = vmatpush1.bf16.msra.mxu0 %v12651_v16  ;;  %v12663_v16 = vld [vmem:[#allocation2 + $0x80] ss:$8 sps:$4 sm:$0xff]  }
 0x28d   :  { %1734 = vmatprep.subr.bf16.mxu0 %v12652_v62 }
 0x290   :  { %1735 = vmatpush1.bf16.msra.mxu0 %v12653_v4 }
 0x291   :  { %1736 = vmatprep.subr.bf16.mxu0 %v12654_v5 }
 0x293   :  { %1259 = vmatmul.mubr.bf16.gmra.mrb[16].mxu0 %v718_v28 }
 0x294   :  { %1268 = vmatprep.mubr.bf16.mxu0 %v812_v7  ;;  %1737 = vmatpush1.bf16.msra.mxu0 %v12655_v9  ;;  %v12665_v9 = vld [vmem:[#allocation2 + $0x90] ss:$8 sps:$4 sm:$0xff]  }
 0x295   :  { %1738 = vmatprep.subr.bf16.mxu0 %v12656_v43 }
 0x298   :  { %1739 = vmatpush1.bf16.msra.mxu0 %v12657_v6  ;;  %v12666_v6 = vld [vmem:[#allocation2 + $0xa4] ss:$8 sps:$4 sm:$0xff]  }
 0x299   :  { %1740 = vmatprep.subr.bf16.mxu0 %v12658_v10  ;;  %v12667_v10 = vld [vmem:[#allocation2 + $0xa0] ss:$8 sps:$4 sm:$0xff]  }
 0x29b   :  { %1269 = vmatmul.mubr.bf16.gmra.mrb[20].mxu0 %v719_v25 }
 0x29c   :  { %1741 = vmatpush1.bf16.msra.mxu0 %v12659_v13  ;;  %v11258_v12 = vpop.f32.mrb[32].mxu1  ;;  %v12668_v13 = vld [vmem:[#allocation2 + $0xb4] ss:$8 sps:$4 sm:$0xff]  }
 0x29d   :  { %1742 = vmatprep.subr.bf16.mxu0 %v12660_v45  ;;  %v1555_v20 = vpop.f32.mrb[33].mxu1  ;;  %v12670_v45 = vld [vmem:[#allocation2 + $0xc4] ss:$8 sps:$4 sm:$0xff]  }
 0x29e   :  { %v11259_v26 = vpop.f32.mrb[34].mxu1 }
 0x29f   :  { %v1587_v28 = vpack.c.bf16 %v11259_v26, %v11258_v12  ;;  %v1558_v7 = vpop.f32.mrb[35].mxu1  ;;  %v12669_v12 = vld [vmem:[#allocation2 + $0xb0] ss:$8 sps:$4 sm:$0xff]   ;;  %v12672_v26 = vld [vmem:[#allocation2 + $0xd4] ss:$8 sps:$4 sm:$0xff]  }
 0x2a0   :  { %1743 = vmatpush1.bf16.msra.mxu0 %v12661_v57  ;;  %v1586_v3 = vpack.c.bf16 %v1558_v7, %v1555_v20  ;;  %v12671_v20 = vld [vmem:[#allocation2 + $0xc0] ss:$8 sps:$4 sm:$0xff]   ;;  %v12673_v7 = vld [vmem:[#allocation2 + $0xd0] ss:$8 sps:$4 sm:$0xff]   ;;  %v12674_v57 = vld [vmem:[#allocation2 + $0xe4] ss:$8 sps:$4 sm:$0xff]  }
 0x2a1   :  { %1744 = vmatprep.subr.bf16.mxu0 %v12662_v14 }
 0x2a2   :  { %1760 = vmatprep.mubr.bf16.mxu0 %v1586_v3  ;;  %v12675_v3 = vld [vmem:[#allocation2 + $0xe0] ss:$8 sps:$4 sm:$0xff]  }
 0x2a4   :  { %1745 = vmatpush1.bf16.msra.mxu0 %v12663_v16  ;;  %v11262_v62 = vpop.f32.mrb[36].mxu1  ;;  %v12676_v16 = vld [vmem:[#allocation2 + $0xf4] ss:$8 sps:$4 sm:$0xff]  }
 0x2a5   :  { %1746 = vmatprep.subr.bf16.mxu0 %v12664_v18  ;;  %v1571_v22 = vpop.f32.mrb[37].mxu1 }
 0x2a6   :  { %v11263_v25 = vpop.f32.mrb[38].mxu1 }
 0x2a7   :  { %v1589_v4 = vpack.c.bf16 %v11263_v25, %v11262_v62  ;;  %v1574_v5 = vpop.f32.mrb[39].mxu1 }
 0x2a8   :  { %1747 = vmatpush1.bf16.msra.mxu0 %v12665_v9  ;;  %v1588_v43 = vpack.c.bf16 %v1574_v5, %v1571_v22  ;;  %v12677_v5 = vld [vmem:[#allocation2 + $0xf0] ss:$8 sps:$4 sm:$0xff]  }
 0x2a9   :  { %1748 = vmatprep.subr.bf16.mxu0 %v12666_v6  ;;  %v12678_v6 = vld [vmem:[#allocation2 + $0x104] ss:$8 sps:$4 sm:$0xff]  }
 0x2ac   :  { %1749 = vmatpush1.bf16.msra.mxu0 %v12667_v10 }
 0x2ad   :  { %1750 = vmatprep.subr.bf16.mxu0 %v12668_v13 }
 0x2b0   :  { %1751 = vmatpush1.bf16.msra.mxu0 %v12669_v12 }
 0x2b1   :  { %1752 = vmatprep.subr.bf16.mxu0 %v12670_v45 }
 0x2b4   :  { %1753 = vmatpush1.bf16.msra.mxu0 %v12671_v20 }
 0x2b5   :  { %1754 = vmatprep.subr.bf16.mxu0 %v12672_v26 }
 0x2b8   :  { %1755 = vmatpush1.bf16.msra.mxu0 %v12673_v7 }
 0x2b9   :  { %1756 = vmatprep.subr.bf16.mxu0 %v12674_v57 }
 0x2bc   :  { %1757 = vmatpush1.bf16.msra.mxu0 %v12675_v3  ;;  %v13836_v14 = vpop.f32.mrb[40].mxu1 }
 0x2bd   :  { %1758 = vmatprep.subr.bf16.mxu0 %v12676_v16  ;;  %v13838_v62 = vpop.f32.mrb[41].mxu1 }
 0x2be   :  { %v13840_v18 = vpop.f32.mrb[42].mxu1 }
 0x2bf   :  { %v1656_v22 = vpack.c.bf16 %v13840_v18, %v13836_v14  ;;  %v13844_v25 = vpop.f32.mrb[43].mxu1 }
 0x2c0   :  { %1759 = vmatpush1.bf16.msra.mxu0 %v12677_v5  ;;  %v1655_v9 = vpack.c.bf16 %v13844_v25, %v13838_v62 }
 0x2c1   :  { %1801 = vmatprep.subr.bf16.mxu0 %v12678_v6 }
 0x2c3   :  { %1761 = vmatmul.mubr.bf16.vlgmr.msra.gmra.mrb[24].mxu0 %v1517_v42 }
 0x2c4   :  { %1802 = vmatpush1.bf16.msra.mxu0 %v13701_v32  ;;  %1770 = vmatprep.mubr.bf16.mxu0 %v1587_v28  ;;  %v11286_v10 = vpop.f32.mrb[44].mxu1 }
 0x2c5   :  { %1803 = vmatprep.subr.bf16.mxu0 %v13703_v35  ;;  %v1640_v13 = vpop.f32.mrb[45].mxu1 }
 0x2c6   :  { %v11287_v12 = vpop.f32.mrb[46].mxu1 }
 0x2c7   :  { %v1658_v45 = vpack.c.bf16 %v11287_v12, %v11286_v10  ;;  %v1643_v20 = vpop.f32.mrb[47].mxu1 }
 0x2c8   :  { %1804 = vmatpush1.bf16.msra.mxu0 %v13705_v37  ;;  %v1657_v26 = vpack.c.bf16 %v1643_v20, %v1640_v13 }
 0x2c9   :  { %1805 = vmatprep.subr.bf16.mxu0 %v13707_v38 }
 0x2cb   :  { %1771 = vmatmul.mubr.bf16.gmra.mrb[28].mxu0 %v1518_v39 }
 0x2cc   :  { %1806 = vmatpush1.bf16.msra.mxu0 %v13711_v41  ;;  %1780 = vmatprep.mubr.bf16.mxu0 %v1588_v43 }
 0x2cd   :  { %1807 = vmatprep.subr.bf16.mxu0 %v13713_v44 }
 0x2d0   :  { %1808 = vmatpush1.bf16.msra.mxu0 %v13717_v47 }
 0x2d1   :  { %1809 = vmatprep.subr.bf16.mxu0 %v13719_v48 }
 0x2d3   :  { %1781 = vmatmul.mubr.bf16.gmra.mrb[32].mxu0 %v1519_v8 }
 0x2d4   :  { %1810 = vmatpush1.bf16.msra.mxu0 %v13723_v49  ;;  %1790 = vmatprep.mubr.bf16.mxu0 %v1589_v4 }
 0x2d5   :  { %1811 = vmatprep.subr.bf16.mxu0 %v13725_v50 }
 0x2d8   :  { %1812 = vmatpush1.bf16.msra.mxu0 %v13729_v51 }
 0x2d9   :  { %1813 = vmatprep.subr.bf16.mxu0 %v13731_v52 }
 0x2db   :  { %1791 = vmatmul.mubr.bf16.gmra.mrb[36].mxu0 %v1520_v63 }
 0x2dc   :  { %1814 = vmatpush1.bf16.msra.mxu0 %v13735_v53  ;;  %v11306_v32 = vpop.f32.mrb[48].mxu1  ;;  %v17538_v53 = vmov 0  }
 0x2dd   :  { %1815 = vmatprep.subr.bf16.mxu0 %v13737_v54  ;;  %v1693_v35 = vpop.f32.mrb[49].mxu1  ;;  %2159 = vmatprep.mubr.bf16.mxu1 %v17538_v53  ;;  %v1280_v54 = vlaneseq }
 0x2de   :  { %v11307_v37 = vpop.f32.mrb[50].mxu1 }
 0x2df   :  { %v1725_v38 = vpack.c.bf16 %v11307_v37, %v11306_v32  ;;  %v1696_v41 = vpop.f32.mrb[51].mxu1 }
 0x2e0   :  { %1816 = vmatpush1.bf16.msra.mxu0 %v13741_v55  ;;  %v1724_v44 = vpack.c.bf16 %v1696_v41, %v1693_v35  ;;  %v1281_v55 = vshrl.u32 %v1280_v54, 7 }
 0x2e1   :  { %1817 = vmatprep.subr.bf16.mxu0 %v13743_v56 }
 0x2e2   :  { %1833 = vmatprep.mubr.bf16.mxu0 %v1724_v44  ;;  %v13896_v56 = vsub.s32 0, %v1281_v55 }
 0x2e4   :  { %1818 = vmatpush1.bf16.msra.mxu0 %v13747_v59  ;;  %v11310_v47 = vpop.f32.mrb[52].mxu1  ;;  %17932 = vst [vmem:[#allocation33_spill] sm:$0xff] %v13896_v56  ;;  %v357_v59 = vld [vmem:[#allocation4] sm:$0xf] }
 0x2e5   :  { %1819 = vmatprep.subr.bf16.mxu0 %v13749_v61  ;;  %v1709_v48 = vpop.f32.mrb[53].mxu1  ;;  %v13898_v61 = vsub.s32 2, %v1281_v55 }
 0x2e6   :  { %v11311_v49 = vpop.f32.mrb[54].mxu1 }
 0x2e7   :  { %v1727_v50 = vpack.c.bf16 %v11311_v49, %v11310_v47  ;;  %v1712_v51 = vpop.f32.mrb[55].mxu1  ;;  %17933 = vst [vmem:[#allocation34_spill] sm:$0xff] %v13898_v61 }
 0x2e8   :  { %1820 = vmatpush1.bf16.msra.mxu0 %v13753_v1  ;;  %v1726_v52 = vpack.c.bf16 %v1712_v51, %v1709_v48  ;;  %v13900_v1 = vsub.s32 1, %v1281_v55 }
 0x2e9   :  { %1821 = vmatprep.subr.bf16.mxu0 %v13755_v2  ;;  %v13902_v2 = vsub.s32 3, %v1281_v55 }
 0x2ea   :  { %17934 = vst [vmem:[#allocation35_spill] sm:$0xff] %v13900_v1 }
 0x2eb   :  { %17935 = vst [vmem:[#allocation36_spill] sm:$0xff] %v13902_v2 }
 0x2ec   :  { %1822 = vmatpush1.bf16.msra.mxu0 %v13766_v11  ;;  %v1283_v11 = vrot.slane %v357_v59, %v13896_v56 }
 0x2ed   :  { %1823 = vmatprep.subr.bf16.mxu0 %v13769_v15  ;;  %v1287_v15 = vrot.slane %v357_v59, %v13898_v61 }
 0x2f0   :  { %1824 = vmatpush1.bf16.msra.mxu0 %v13772_v17  ;;  %v1317_v17 = vrot.slane %v357_v59, %v13900_v1 }
 0x2f1   :  { %1825 = vmatprep.subr.bf16.mxu0 %v13775_v19  ;;  %v1321_v19 = vrot.slane %v357_v59, %v13902_v2 }
 0x2f4   :  { %1826 = vmatpush1.bf16.msra.mxu0 %v13778_v21  ;;  %v13909_v21 = vrot.slane %v1283_v11, %v13896_v56 }
 0x2f5   :  { %1827 = vmatprep.subr.bf16.mxu0 %v13781_v23  ;;  %v13912_v23 = vrot.slane %v1287_v15, %v13896_v56 }
 0x2f8   :  { %1828 = vmatpush1.bf16.msra.mxu0 %v13784_v24  ;;  %v13915_v24 = vrot.slane %v1317_v17, %v13900_v1 }
 0x2f9   :  { %1829 = vmatprep.subr.bf16.mxu0 %v13787_v27 }
 0x2fc   :  { %1830 = vmatpush1.bf16.msra.mxu0 %v13790_v29  ;;  %v13918_v29 = vrot.slane %v1321_v19, %v13900_v1 }
 0x2fd   :  { %1831 = vmatprep.subr.bf16.mxu0 %v13793_v30 }
 0x300   :  { %1832 = vmatpush1.bf16.msra.mxu0 %v13796_v31 }
 0x303   :  { %1834 = vmatmul.mubr.bf16.vlgmr.msra.gmra.mrb[24].mxu0 %v1655_v9 }
 0x304   :  { %1843 = vmatprep.mubr.bf16.mxu0 %v1725_v38 }
 0x30b   :  { %1844 = vmatmul.mubr.bf16.gmra.mrb[28].mxu0 %v1656_v22 }
 0x30c   :  { %1853 = vmatprep.mubr.bf16.mxu0 %v1726_v52 }
 0x313   :  { %1854 = vmatmul.mubr.bf16.gmra.mrb[32].mxu0 %v1657_v26 }
 0x314   :  { %1863 = vmatprep.mubr.bf16.mxu0 %v1727_v50 }
 0x31b   :  { %1864 = vmatmul.mubr.bf16.gmra.mrb[36].mxu0 %v1658_v45 }
 0x31c   :  { %3368 = vmatprep.mubr.bf16.mxu0 %v17538_v53 }
 0x356   :  { %v1240_v27 = vpop.f32.mrb[8].mxu0 }
 0x357   :  { %v1298_v30 = vmul.f32 %v13909_v21, %v1240_v27  ;;  %v1242_v31 = vpop.f32.mrb[9].mxu0 }
 0x358   :  { %v1299_v33 = vmul.f32 %v13912_v23, %v1242_v31  ;;  %v1244_v34 = vpop.f32.mrb[10].mxu0 }
 0x359   :  { %v1332_v36 = vadd.f32 %v13915_v24, %v1298_v30  ;;  %v1300_v39 = vmul.f32 %v13909_v21, %v1244_v34  ;;  %v1246_v40 = vpop.f32.mrb[11].mxu0 }
 0x35a   :  { %v1333_v42 = vadd.f32 %v13918_v29, %v1299_v33  ;;  %v1301_v46 = vmul.f32 %v13912_v23, %v1246_v40 }
 0x35b   :  { %v1364_v58 = vmul.f32 0.2, %v1332_v36  ;;  %v1334_v60 = vadd.f32 %v13915_v24, %v1300_v39  ;;  %vm1348_vm0 = vcmp.ge.f32.partialorder %v1332_v36, 0.0 }
 0x35c   :  { %v1365_v63 = vmul.f32 0.2, %v1333_v42  ;;  %v1335_v0 = vadd.f32 %v13918_v29, %v1301_v46  ;;  %vm1349_vm1 = vcmp.ge.f32.partialorder %v1333_v42, 0.0 }
 0x35d   :  { %vm1350_vm2 = vcmp.ge.f32.partialorder %v1334_v60, 0.0  ;;  %v1366_v8 = vmul.f32 0.2, %v1334_v60  ;;  %v1380_v43 = vsel %vm1348_vm0, %v1332_v36, %v1364_v58  ;;  %vm2120_vm0 = vcmask 523264  }
 0x35e   :  { %vm1351_vm3 = vcmp.ge.f32.partialorder %v1335_v0, 0.0  ;;  %v1367_v28 = vmul.f32 0.2, %v1335_v0  ;;  %v1250_v4 = vpop.f32.mrb[12].mxu0  ;;  %v1381_v14 = vsel %vm1349_vm1, %v1333_v42, %v1365_v63 }
 0x35f   :  { %v1382_v7 = vsel %vm1350_vm2, %v1334_v60, %v1366_v8  ;;  %v1302_v57 = vmul.f32 %v13909_v21, %v1250_v4  ;;  %v1252_v3 = vpop.f32.mrb[13].mxu0 }
 0x360   :  { %v1383_v16 = vsel %vm1351_vm3, %v1335_v0, %v1367_v28  ;;  %v1303_v62 = vmul.f32 %v13912_v23, %v1252_v3  ;;  %v1254_v18 = vpop.f32.mrb[14].mxu0  ;;  %v13930_v22 = vpack.c.bf16 %v1382_v7, %v1380_v43 }
 0x361   :  { %v1336_v25 = vadd.f32 %v13915_v24, %v1302_v57  ;;  %v1304_v5 = vmul.f32 %v13909_v21, %v1254_v18  ;;  %v1256_v9 = vpop.f32.mrb[15].mxu0  ;;  %v13934_v6 = vpack.c.bf16 %v1383_v16, %v1381_v14 }
 0x362   :  { %v1337_v10 = vadd.f32 %v13918_v29, %v1303_v62  ;;  %v1305_v13 = vmul.f32 %v13912_v23, %v1256_v9 }
 0x363   :  { %v1368_v12 = vmul.f32 0.2, %v1336_v25  ;;  %v1338_v45 = vadd.f32 %v13915_v24, %v1304_v5  ;;  %2127 = vmatprep.subr.bf16.mxu1 %v13934_v6  ;;  %vm1352_vm4 = vcmp.ge.f32.partialorder %v1336_v25, 0.0 }
 0x364   :  { %v1369_v20 = vmul.f32 0.2, %v1337_v10  ;;  %v1339_v26 = vadd.f32 %v13918_v29, %v1305_v13  ;;  %2128 = vmatpush1.bf16.msra.mxu1 %v13930_v22  ;;  %vm1353_vm5 = vcmp.ge.f32.partialorder %v1337_v10, 0.0 }
 0x365   :  { %vm1354_vm6 = vcmp.ge.f32.partialorder %v1338_v45, 0.0  ;;  %v1370_v32 = vmul.f32 0.2, %v1338_v45  ;;  %v1384_v38 = vsel %vm1352_vm4, %v1336_v25, %v1368_v12 }
 0x366   :  { %vm1355_vm7 = vcmp.ge.f32.partialorder %v1339_v26, 0.0  ;;  %v1371_v35 = vmul.f32 0.2, %v1339_v26  ;;  %v1260_v37 = vpop.f32.mrb[16].mxu0  ;;  %v1385_v48 = vsel %vm1353_vm5, %v1337_v10, %v1369_v20 }
 0x367   :  { %v1386_v41 = vsel %vm1354_vm6, %v1338_v45, %v1370_v32  ;;  %v1306_v44 = vmul.f32 %v13909_v21, %v1260_v37  ;;  %v1262_v47 = vpop.f32.mrb[17].mxu0  ;;  %v13981_v32 = vld [vmem:[%s17936_s11 + $0x8] sm:$0xff]   ;;  %v14002_v37 = vld [vmem:[%s17936_s11 + $0x18] sm:$0xff]  }
 0x368   :  { %v1387_v49 = vsel %vm1355_vm7, %v1339_v26, %v1371_v35  ;;  %v1307_v50 = vmul.f32 %v13912_v23, %v1262_v47  ;;  %v1264_v51 = vpop.f32.mrb[18].mxu0  ;;  %v13944_v52 = vpack.c.bf16 %v1386_v41, %v1384_v38  ;;  %v13970_v26 = vld [vmem:[%s17936_s11] sm:$0xff]   ;;  %v13991_v35 = vld [vmem:[%s17936_s11 + $0x10] sm:$0xff]   ;;  %v14023_v41 = vld [vmem:[%s17936_s11 + $0x28] sm:$0xff]  }
 0x369   :  { %v1340_v54 = vadd.f32 %v13915_v24, %v1306_v44  ;;  %v1308_v55 = vmul.f32 %v13909_v21, %v1264_v51  ;;  %v1266_v59 = vpop.f32.mrb[19].mxu0  ;;  %v13948_v11 = vpack.c.bf16 %v1387_v49, %v1385_v48  ;;  %v14012_v38 = vld [vmem:[%s17936_s11 + $0x20] sm:$0xff]   ;;  %v14045_v48 = vld [vmem:[#allocation6 + $0x10] ss:$8 sps:$4 sm:$0xff]   ;;  %v14049_v49 = vld [vmem:[#allocation6 + $0x24] ss:$8 sps:$4 sm:$0xff]  }
 0x36a   :  { %v1341_v15 = vadd.f32 %v13918_v29, %v1307_v50  ;;  %v1309_v17 = vmul.f32 %v13912_v23, %v1266_v59  ;;  %v14037_v44 = vld [vmem:[#allocation6] ss:$8 sps:$4 sm:$0xff]   ;;  %v14040_v47 = vld [vmem:[#allocation6 + $0x14] ss:$8 sps:$4 sm:$0xff]  }
 0x36b   :  { %v1372_v19 = vmul.f32 0.2, %v1340_v54  ;;  %v1342_v27 = vadd.f32 %v13915_v24, %v1308_v55  ;;  %2129 = vmatprep.subr.bf16.mxu1 %v13948_v11  ;;  %vm1356_vm8 = vcmp.ge.f32.partialorder %v1340_v54, 0.0  ;;  %v14054_v50 = vld [vmem:[%s17936_s11 + $0x38] sm:$0xff]   ;;  %v14057_v51 = vld [vmem:[#allocation6 + $0x20] ss:$8 sps:$4 sm:$0xff]  }
 0x36c   :  { %v1373_v30 = vmul.f32 0.2, %v1341_v15  ;;  %v1343_v31 = vadd.f32 %v13918_v29, %v1309_v17  ;;  %2130 = vmatpush1.bf16.msra.mxu1 %v13944_v52  ;;  %vm1357_vm9 = vcmp.ge.f32.partialorder %v1341_v15, 0.0  ;;  %v14068_v55 = vld [vmem:[#allocation6 + $0x44] ss:$8 sps:$4 sm:$0xff]  }
 0x36d   :  { %vm1358_vm10 = vcmp.ge.f32.partialorder %v1342_v27, 0.0  ;;  %v1374_v33 = vmul.f32 0.2, %v1342_v27  ;;  %v1388_v39 = vsel %vm1356_vm8, %v1340_v54, %v1372_v19  ;;  %v14065_v54 = vld [vmem:[#allocation6 + $0x30] ss:$8 sps:$4 sm:$0xff]  }
 0x36e   :  { %vm1359_vm11 = vcmp.ge.f32.partialorder %v1343_v31, 0.0  ;;  %v1375_v34 = vmul.f32 0.2, %v1343_v31  ;;  %v1270_v36 = vpop.f32.mrb[20].mxu0  ;;  %v1389_v58 = vsel %vm1357_vm9, %v1341_v15, %v1373_v30  ;;  %v14071_v59 = vld [vmem:[#allocation6 + $0x40] ss:$8 sps:$4 sm:$0xff]  }
 0x36f   :  { %v1390_v40 = vsel %vm1358_vm10, %v1342_v27, %v1374_v33  ;;  %v1310_v42 = vmul.f32 %v13909_v21, %v1270_v36  ;;  %v1272_v46 = vpop.f32.mrb[21].mxu0  ;;  %v14077_v15 = vld [vmem:[#allocation6 + $0x50] ss:$8 sps:$4 sm:$0xff]   ;;  %v14080_v17 = vld [vmem:[#allocation6 + $0x64] ss:$8 sps:$4 sm:$0xff]  }
 0x370   :  { %v1391_v60 = vsel %vm1359_vm11, %v1343_v31, %v1375_v34  ;;  %v1311_v63 = vmul.f32 %v13912_v23, %v1272_v46  ;;  %v1274_v0 = vpop.f32.mrb[22].mxu0  ;;  %v13958_v8 = vpack.c.bf16 %v1390_v40, %v1388_v39  ;;  %v14083_v19 = vld [vmem:[#allocation6 + $0x60] ss:$8 sps:$4 sm:$0xff]   ;;  %v14086_v27 = vld [vmem:[#allocation6 + $0x74] ss:$8 sps:$4 sm:$0xff]  }
 0x371   :  { %v1344_v28 = vadd.f32 %v13915_v24, %v1310_v42  ;;  %v1312_v4 = vmul.f32 %v13909_v21, %v1274_v0  ;;  %v1276_v43 = vpop.f32.mrb[23].mxu0  ;;  %v1401_v7 = vpack.c.bf16 %v1391_v60, %v1389_v58  ;;  %v14089_v30 = vld [vmem:[#allocation6 + $0x70] ss:$8 sps:$4 sm:$0xff]   ;;  %v14092_v31 = vld [vmem:[#allocation6 + $0x84] ss:$8 sps:$4 sm:$0xff]  }
 0x372   :  { %v1345_v57 = vadd.f32 %v13918_v29, %v1311_v63  ;;  %v1313_v3 = vmul.f32 %v13912_v23, %v1276_v43  ;;  %v14095_v33 = vld [vmem:[#allocation6 + $0x80] ss:$8 sps:$4 sm:$0xff]   ;;  %v14098_v34 = vld [vmem:[#allocation6 + $0x94] ss:$8 sps:$4 sm:$0xff]   ;;  %v14101_v36 = vld [vmem:[#allocation6 + $0x90] ss:$8 sps:$4 sm:$0xff]  }
 0x373   :  { %v1376_v14 = vmul.f32 0.2, %v1344_v28  ;;  %v1346_v16 = vadd.f32 %v13915_v24, %v1312_v4  ;;  %2131 = vmatprep.subr.bf16.mxu1 %v1401_v7  ;;  %vm1360_vm12 = vcmp.ge.f32.partialorder %v1344_v28, 0.0  ;;  %v14104_v39 = vld [vmem:[#allocation6 + $0xa4] ss:$8 sps:$4 sm:$0xff]  }
 0x374   :  { %v1377_v62 = vmul.f32 0.2, %v1345_v57  ;;  %v1347_v18 = vadd.f32 %v13918_v29, %v1313_v3  ;;  %2132 = vmatpush1.bf16.msra.mxu1 %v13958_v8  ;;  %vm1361_vm13 = vcmp.ge.f32.partialorder %v1345_v57, 0.0  ;;  %v14107_v40 = vld [vmem:[#allocation6 + $0xa0] ss:$8 sps:$4 sm:$0xff]  }
 0x375   :  { %vm1362_vm14 = vcmp.ge.f32.partialorder %v1346_v16, 0.0  ;;  %v1378_v25 = vmul.f32 0.2, %v1346_v16  ;;  %v1392_v9 = vsel %vm1360_vm12, %v1344_v28, %v1376_v14  ;;  %v14110_v42 = vld [vmem:[#allocation6 + $0xb4] ss:$8 sps:$4 sm:$0xff]  }
 0x376   :  { %vm1363_vm15 = vcmp.ge.f32.partialorder %v1347_v18, 0.0  ;;  %v1379_v5 = vmul.f32 0.2, %v1347_v18  ;;  %v1393_v13 = vsel %vm1361_vm13, %v1345_v57, %v1377_v62 }
 0x377   :  { %v1394_v10 = vsel %vm1362_vm14, %v1346_v16, %v1378_v25  ;;  %v14127_v25 = vld [vmem:[#allocation6 + $0xc0] ss:$8 sps:$4 sm:$0xff]  }
 0x378   :  { %v1395_v12 = vsel %vm1363_vm15, %v1347_v18, %v1379_v5  ;;  %v1402_v45 = vpack.c.bf16 %v1394_v10, %v1392_v9  ;;  %v14130_v10 = vld [vmem:[#allocation6 + $0xd4] ss:$8 sps:$4 sm:$0xff]  }
 0x379   :  { %v1403_v20 = vpack.c.bf16 %v1395_v12, %v1393_v13 }
 0x37b   :  { %2133 = vmatprep.subr.bf16.mxu1 %v1403_v20 }
 0x37c   :  { %2134 = vmatpush1.bf16.msra.mxu1 %v1402_v45 }
 0x37d   :  { %2200 = vmatprep.subr.bf16.mxu1 %v13934_v6 }
 0x37f   :  { %10246 = vmatmul.mubr.msk.bf16.vlgmr.msra.gmra.mrb[56].mxu1 %vm2120_vm0, %v13970_v26 }
 0x380   :  { %2201 = vmatpush1.bf16.msra.mxu1 %v13930_v22  ;;  %2169 = vmatprep.mubr.bf16.mxu1 %v17538_v53 }
 0x381   :  { %2202 = vmatprep.subr.bf16.mxu1 %v13948_v11 }
 0x384   :  { %2203 = vmatpush1.bf16.msra.mxu1 %v13944_v52 }
 0x385   :  { %2204 = vmatprep.subr.bf16.mxu1 %v1401_v7 }
 0x387   :  { %10247 = vmatmul.mubr.msk.bf16.gmra.mrb[60].mxu1 %vm2120_vm0, %v13981_v32 }
 0x388   :  { %2205 = vmatpush1.bf16.msra.mxu1 %v13958_v8  ;;  %2232 = vmatprep.mubr.bf16.mxu1 %v17538_v53 }
 0x389   :  { %2206 = vmatprep.subr.bf16.mxu1 %v1403_v20 }
 0x38c   :  { %2207 = vmatpush1.bf16.msra.mxu1 %v1402_v45 }
 0x38d   :  { %2273 = vmatprep.subr.bf16.mxu1 %v13934_v6 }
 0x38f   :  { %10250 = vmatmul.mubr.msk.bf16.vlgmr.msra.gmra.mrb[64].mxu1 %vm2120_vm0, %v13991_v35 }
 0x390   :  { %2274 = vmatpush1.bf16.msra.mxu1 %v13930_v22  ;;  %2242 = vmatprep.mubr.bf16.mxu1 %v17538_v53 }
 0x391   :  { %2275 = vmatprep.subr.bf16.mxu1 %v13948_v11 }
 0x394   :  { %2276 = vmatpush1.bf16.msra.mxu1 %v13944_v52 }
 0x395   :  { %2277 = vmatprep.subr.bf16.mxu1 %v1401_v7 }
 0x397   :  { %10251 = vmatmul.mubr.msk.bf16.gmra.mrb[68].mxu1 %vm2120_vm0, %v14002_v37 }
 0x398   :  { %2278 = vmatpush1.bf16.msra.mxu1 %v13958_v8  ;;  %2305 = vmatprep.mubr.bf16.mxu1 %v17538_v53 }
 0x399   :  { %2279 = vmatprep.subr.bf16.mxu1 %v1403_v20 }
 0x39c   :  { %2280 = vmatpush1.bf16.msra.mxu1 %v1402_v45 }
 0x39d   :  { %2346 = vmatprep.subr.bf16.mxu1 %v13934_v6  ;;  %v14035_v6 = vld [vmem:[%s17936_s11 + $0x30] sm:$0xff]  }
 0x39f   :  { %10254 = vmatmul.mubr.msk.bf16.vlgmr.msra.gmra.mrb[72].mxu1 %vm2120_vm0, %v14012_v38 }
 0x3a0   :  { %2347 = vmatpush1.bf16.msra.mxu1 %v13930_v22  ;;  %2315 = vmatprep.mubr.bf16.mxu1 %v17538_v53  ;;  %v14030_v22 = vld [vmem:[#allocation6 + $0x4] ss:$8 sps:$4 sm:$0xff]  }
 0x3a1   :  { %2348 = vmatprep.subr.bf16.mxu1 %v13948_v11  ;;  %v14074_v11 = vld [vmem:[#allocation6 + $0x54] ss:$8 sps:$4 sm:$0xff]  }
 0x3a4   :  { %2349 = vmatpush1.bf16.msra.mxu1 %v13944_v52  ;;  %v14060_v52 = vld [vmem:[#allocation6 + $0x34] ss:$8 sps:$4 sm:$0xff]  }
 0x3a5   :  { %2350 = vmatprep.subr.bf16.mxu1 %v1401_v7  ;;  %v14120_v7 = vld [vmem:[#allocation6 + $0xc4] ss:$8 sps:$4 sm:$0xff]  }
 0x3a7   :  { %10255 = vmatmul.mubr.msk.bf16.gmra.mrb[76].mxu1 %vm2120_vm0, %v14023_v41 }
 0x3a8   :  { %2351 = vmatpush1.bf16.msra.mxu1 %v13958_v8  ;;  %2378 = vmatprep.mubr.bf16.mxu1 %v17538_v53  ;;  %v14115_v8 = vld [vmem:[#allocation6 + $0xb0] ss:$8 sps:$4 sm:$0xff]  }
 0x3a9   :  { %2352 = vmatprep.subr.bf16.mxu1 %v1403_v20 }
 0x3ac   :  { %2353 = vmatpush1.bf16.msra.mxu1 %v1402_v45 }
 0x3ad   :  { %3043 = vmatprep.subr.bf16.mxu1 %v14030_v22 }
 0x3af   :  { %10258 = vmatmul.mubr.msk.bf16.vlgmr.msra.gmra.mrb[80].mxu1 %vm2120_vm0, %v14035_v6 }
 0x3b0   :  { %3044 = vmatpush1.bf16.msra.mxu1 %v14037_v44  ;;  %2388 = vmatprep.mubr.bf16.mxu1 %v17538_v53 }
 0x3b1   :  { %3045 = vmatprep.subr.bf16.mxu1 %v14040_v47 }
 0x3b4   :  { %3046 = vmatpush1.bf16.msra.mxu1 %v14045_v48 }
 0x3b5   :  { %3047 = vmatprep.subr.bf16.mxu1 %v14049_v49 }
 0x3b7   :  { %10259 = vmatmul.mubr.msk.bf16.gmra.mrb[84].mxu1 %vm2120_vm0, %v14054_v50 }
 0x3b8   :  { %3048 = vmatpush1.bf16.msra.mxu1 %v14057_v51 }
 0x3b9   :  { %3049 = vmatprep.subr.bf16.mxu1 %v14060_v52 }
 0x3bc   :  { %3050 = vmatpush1.bf16.msra.mxu1 %v14065_v54 }
 0x3bd   :  { %3051 = vmatprep.subr.bf16.mxu1 %v14068_v55 }
 0x3c0   :  { %3052 = vmatpush1.bf16.msra.mxu1 %v14071_v59 }
 0x3c1   :  { %3053 = vmatprep.subr.bf16.mxu1 %v14074_v11 }
 0x3c4   :  { %3054 = vmatpush1.bf16.msra.mxu1 %v14077_v15 }
 0x3c5   :  { %3055 = vmatprep.subr.bf16.mxu1 %v14080_v17 }
 0x3c8   :  { %3056 = vmatpush1.bf16.msra.mxu1 %v14083_v19 }
 0x3c9   :  { %3057 = vmatprep.subr.bf16.mxu1 %v14086_v27 }
 0x3cc   :  { %3058 = vmatpush1.bf16.msra.mxu1 %v14089_v30 }
 0x3cd   :  { %3059 = vmatprep.subr.bf16.mxu1 %v14092_v31 }
 0x3d0   :  { %3060 = vmatpush1.bf16.msra.mxu1 %v14095_v33 }
 0x3d1   :  { %3061 = vmatprep.subr.bf16.mxu1 %v14098_v34 }
 0x3d4   :  { %3062 = vmatpush1.bf16.msra.mxu1 %v14101_v36 }
 0x3d5   :  { %3063 = vmatprep.subr.bf16.mxu1 %v14104_v39 }
 0x3d6   :  { %v1835_v46 = vpop.f32.mrb[24].mxu0 }
 0x3d7   :  { %v1874_v58 = vmul.f32 %v1835_v46, %v13909_v21  ;;  %v1837_v60 = vpop.f32.mrb[25].mxu0 }
 0x3d8   :  { %v1875_v63 = vmul.f32 %v1837_v60, %v13912_v23  ;;  %v1839_v0 = vpop.f32.mrb[26].mxu0  ;;  %3064 = vmatpush1.bf16.msra.mxu1 %v14107_v40 }
 0x3d9   :  { %v1890_v28 = vadd.f32 %v1874_v58, %v13915_v24  ;;  %v1876_v4 = vmul.f32 %v1839_v0, %v13909_v21  ;;  %v1841_v43 = vpop.f32.mrb[27].mxu0  ;;  %3065 = vmatprep.subr.bf16.mxu1 %v14110_v42 }
 0x3da   :  { %v1891_v57 = vadd.f32 %v1875_v63, %v13918_v29  ;;  %v1877_v3 = vmul.f32 %v1841_v43, %v13912_v23 }
 0x3db   :  { %vm1906_vm1 = vcmp.ge.f32.partialorder %v1890_v28, 0.0  ;;  %v1922_v14 = vmul.f32 0.2, %v1890_v28  ;;  %v1892_v16 = vadd.f32 %v1876_v4, %v13915_v24 }
 0x3dc   :  { %vm1907_vm2 = vcmp.ge.f32.partialorder %v1891_v57, 0.0  ;;  %v1923_v62 = vmul.f32 0.2, %v1891_v57  ;;  %v1893_v18 = vadd.f32 %v1877_v3, %v13918_v29  ;;  %3066 = vmatpush1.bf16.msra.mxu1 %v14115_v8 }
 0x3dd   :  { %v1938_v5 = vsel %vm1906_vm1, %v1890_v28, %v1922_v14  ;;  %vm1908_vm3 = vcmp.ge.f32.partialorder %v1892_v16, 0.0  ;;  %v1924_v9 = vmul.f32 0.2, %v1892_v16  ;;  %3067 = vmatprep.subr.bf16.mxu1 %v14120_v7  ;;  %v14137_v28 = vld [vmem:[#allocation6 + $0xd0] ss:$8 sps:$4 sm:$0xff]  }
 0x3de   :  { %v1939_v13 = vsel %vm1907_vm2, %v1891_v57, %v1923_v62  ;;  %vm1909_vm4 = vcmp.ge.f32.partialorder %v1893_v18, 0.0  ;;  %v1925_v12 = vmul.f32 0.2, %v1893_v18  ;;  %v1845_v45 = vpop.f32.mrb[28].mxu0  ;;  %17937 = vst [vmem:[#allocation37_spill] sm:$0xff] %v14137_v28 }
 0x3df   :  { %v1940_v20 = vsel %vm1908_vm3, %v1892_v16, %v1924_v9  ;;  %v1878_v46 = vmul.f32 %v1845_v45, %v13909_v21  ;;  %v1847_v58 = vpop.f32.mrb[29].mxu0  ;;  %v14144_v16 = vld [vmem:[#allocation6 + $0xe4] ss:$8 sps:$4 sm:$0xff]  }
 0x3e0   :  { %v1941_v60 = vsel %vm1909_vm4, %v1893_v18, %v1925_v12  ;;  %v1879_v63 = vmul.f32 %v1847_v58, %v13912_v23  ;;  %v1849_v0 = vpop.f32.mrb[30].mxu0  ;;  %v14134_v4 = vpack.c.bf16 %v1940_v20, %v1938_v5  ;;  %3068 = vmatpush1.bf16.msra.mxu1 %v14127_v25  ;;  %17938 = vst [vmem:[#allocation38_spill] sm:$0xff] %v14144_v16  ;;  %v14156_v58 = vld [vmem:[#allocation6 + $0xf4] ss:$8 sps:$4 sm:$0xff]  }
 0x3e1   :  { %v1894_v43 = vadd.f32 %v1878_v46, %v13915_v24  ;;  %v1880_v57 = vmul.f32 %v1849_v0, %v13909_v21  ;;  %v1851_v3 = vpop.f32.mrb[31].mxu0  ;;  %v14141_v14 = vpack.c.bf16 %v1941_v60, %v1939_v13  ;;  %3069 = vmatprep.subr.bf16.mxu1 %v14130_v10  ;;  %v14153_v13 = vld [vmem:[#allocation6 + $0xe0] ss:$8 sps:$4 sm:$0xff]   ;;  %17940 = vst [vmem:[#allocation40_spill] sm:$0xff] %v14156_v58 }
 0x3e2   :  { %v1895_v62 = vadd.f32 %v1879_v63, %v13918_v29  ;;  %v1881_v18 = vmul.f32 %v1851_v3, %v13912_v23  ;;  %17939 = vst [vmem:[#allocation39_spill] sm:$0xff] %v14153_v13 }
 0x3e3   :  { %vm1910_vm5 = vcmp.ge.f32.partialorder %v1894_v43, 0.0  ;;  %v1926_v5 = vmul.f32 0.2, %v1894_v43  ;;  %v1896_v9 = vadd.f32 %v1880_v57, %v13915_v24  ;;  %3336 = vmatprep.subr.bf16.mxu0 %v14141_v14 }
 0x3e4   :  { %vm1911_vm6 = vcmp.ge.f32.partialorder %v1895_v62, 0.0  ;;  %v1927_v12 = vmul.f32 0.2, %v1895_v62  ;;  %v1897_v45 = vadd.f32 %v1881_v18, %v13918_v29  ;;  %3337 = vmatpush1.bf16.msra.mxu0 %v14134_v4  ;;  %3070 = vmatpush1.bf16.msra.mxu1 %v14137_v28 }
 0x3e5   :  { %v1942_v20 = vsel %vm1910_vm5, %v1894_v43, %v1926_v5  ;;  %vm1912_vm7 = vcmp.ge.f32.partialorder %v1896_v9, 0.0  ;;  %v1928_v46 = vmul.f32 0.2, %v1896_v9  ;;  %3071 = vmatprep.subr.bf16.mxu1 %v14144_v16  ;;  %v14163_v43 = vld [vmem:[#allocation6 + $0xf0] ss:$8 sps:$4 sm:$0xff]  }
 0x3e6   :  { %v1943_v60 = vsel %vm1911_vm6, %v1895_v62, %v1927_v12  ;;  %vm1913_vm8 = vcmp.ge.f32.partialorder %v1897_v45, 0.0  ;;  %v1929_v63 = vmul.f32 0.2, %v1897_v45  ;;  %v1855_v0 = vpop.f32.mrb[32].mxu0  ;;  %17941 = vst [vmem:[#allocation41_spill] sm:$0xff] %v14163_v43 }
 0x3e7   :  { %v1944_v57 = vsel %vm1912_vm7, %v1896_v9, %v1928_v46  ;;  %v1882_v3 = vmul.f32 %v1855_v0, %v13909_v21  ;;  %v1857_v18 = vpop.f32.mrb[33].mxu0  ;;  %v14170_v9 = vld [vmem:[#allocation6 + $0x104] ss:$8 sps:$4 sm:$0xff]  }
 0x3e8   :  { %v1945_v53 = vsel %vm1913_vm8, %v1897_v45, %v1929_v63  ;;  %v1883_v2 = vmul.f32 %v1857_v18, %v13912_v23  ;;  %v1859_v1 = vpop.f32.mrb[34].mxu0  ;;  %v14160_v61 = vpack.c.bf16 %v1944_v57, %v1942_v20  ;;  %3072 = vmatpush1.bf16.msra.mxu1 %v14153_v13 }
 0x3e9   :  { %v1898_v5 = vadd.f32 %v1882_v3, %v13915_v24  ;;  %v1884_v62 = vmul.f32 %v1859_v1, %v13909_v21  ;;  %v1861_v12 = vpop.f32.mrb[35].mxu0  ;;  %v14167_v56 = vpack.c.bf16 %v1945_v53, %v1943_v60  ;;  %3073 = vmatprep.subr.bf16.mxu1 %v14156_v58 }
 0x3ea   :  { %v1899_v45 = vadd.f32 %v1883_v2, %v13918_v29  ;;  %v1885_v20 = vmul.f32 %v1861_v12, %v13912_v23 }
 0x3eb   :  { %vm1914_vm9 = vcmp.ge.f32.partialorder %v1898_v5, 0.0  ;;  %v1930_v46 = vmul.f32 0.2, %v1898_v5  ;;  %v1900_v63 = vadd.f32 %v1884_v62, %v13915_v24  ;;  %3338 = vmatprep.subr.bf16.mxu0 %v14167_v56 }
 0x3ec   :  { %vm1915_vm10 = vcmp.ge.f32.partialorder %v1899_v45, 0.0  ;;  %v1931_v0 = vmul.f32 0.2, %v1899_v45  ;;  %v1901_v1 = vadd.f32 %v1885_v20, %v13918_v29  ;;  %3339 = vmatpush1.bf16.msra.mxu0 %v14160_v61  ;;  %3074 = vmatpush1.bf16.msra.mxu1 %v14163_v43 }
 0x3ed   :  { %v1946_v53 = vsel %vm1914_vm9, %v1898_v5, %v1930_v46  ;;  %vm1916_vm11 = vcmp.ge.f32.partialorder %v1900_v63, 0.0  ;;  %v1932_v60 = vmul.f32 0.2, %v1900_v63  ;;  %3096 = vmatprep.subr.bf16.mxu1 %v14170_v9  ;;  %vm3965_vm9 = vcmask 261120  }
 0x3ee   :  { %v1947_v2 = vsel %vm1915_vm10, %v1899_v45, %v1931_v0  ;;  %vm1917_vm12 = vcmp.ge.f32.partialorder %v1901_v1, 0.0  ;;  %v1933_v57 = vmul.f32 0.2, %v1901_v1  ;;  %v1865_v3 = vpop.f32.mrb[36].mxu0 }
 0x3ef   :  { %v1948_v18 = vsel %vm1916_vm11, %v1900_v63, %v1932_v60  ;;  %v1886_v62 = vmul.f32 %v1865_v3, %v13909_v21  ;;  %v1867_v12 = vpop.f32.mrb[37].mxu0 }
 0x3f0   :  { %v1949_v58 = vsel %vm1917_vm12, %v1901_v1, %v1933_v57  ;;  %v1887_v20 = vmul.f32 %v1867_v12, %v13912_v23  ;;  %v1869_v13 = vpop.f32.mrb[38].mxu0  ;;  %v1958_v16 = vpack.c.bf16 %v1948_v18, %v1946_v53 }
 0x3f1   :  { %v1902_v43 = vadd.f32 %v1886_v62, %v13915_v24  ;;  %v1888_v5 = vmul.f32 %v1869_v13, %v13909_v21  ;;  %v1871_v46 = vpop.f32.mrb[39].mxu0  ;;  %v1959_v28 = vpack.c.bf16 %v1949_v58, %v1947_v2  ;;  %v14315_v62 = vld [vmem:[#allocation6 + $0x170] ss:$8 sps:$4 sm:$0xff]  }
 0x3f2   :  { %v1903_v45 = vadd.f32 %v1887_v20, %v13918_v29  ;;  %v1889_v0 = vmul.f32 %v1871_v46, %v13912_v23  ;;  %v14477_v46 = vld [vmem:[#allocation6 + $0x280] ss:$8 sps:$4 sm:$0xff]  }
 0x3f3   :  { %vm1918_vm13 = vcmp.ge.f32.partialorder %v1902_v43, 0.0  ;;  %v1934_v63 = vmul.f32 0.2, %v1902_v43  ;;  %v1904_v60 = vadd.f32 %v1888_v5, %v13915_v24  ;;  %3340 = vmatprep.subr.bf16.mxu0 %v1959_v28  ;;  %v17942_v24 = vmov 0   ;;  %17959 = vst [vmem:[#allocation48_spill] sm:$0xff] %v14477_v46 }
 0x3f4   :  { %vm1919_vm14 = vcmp.ge.f32.partialorder %v1903_v45, 0.0  ;;  %v1935_v1 = vmul.f32 0.2, %v1903_v45  ;;  %v1905_v57 = vadd.f32 %v1889_v0, %v13918_v29  ;;  %3341 = vmatpush1.bf16.msra.mxu0 %v1958_v16  ;;  %v14331_v0 = vld [vmem:[#allocation6 + $0x180] ss:$8 sps:$4 sm:$0xff]  }
 0x3f5   :  { %v1950_v53 = vsel %vm1918_vm13, %v1902_v43, %v1934_v63  ;;  %vm1920_vm15 = vcmp.ge.f32.partialorder %v1904_v60, 0.0  ;;  %v1936_v3 = vmul.f32 0.2, %v1904_v60  ;;  %v14312_v43 = vld [vmem:[#allocation6 + $0x174] ss:$8 sps:$4 sm:$0xff]  }
 0x3f6   :  { %v1951_v21 = vsel %vm1919_vm14, %v1903_v45, %v1935_v1  ;;  %vm1921_vm1 = vcmp.ge.f32.partialorder %v1905_v57, 0.0  ;;  %v1937_v13 = vmul.f32 0.2, %v1905_v57  ;;  %v14339_v1 = vld [vmem:[#allocation6 + $0x190] ss:$8 sps:$4 sm:$0xff]  }
 0x3f7   :  { %v1952_v58 = vsel %vm1920_vm15, %v1904_v60, %v1936_v3  ;;  %v14336_v60 = vld [vmem:[#allocation6 + $0x194] ss:$8 sps:$4 sm:$0xff]  }
 0x3f8   :  { %v1953_v2 = vsel %vm1921_vm1, %v1905_v57, %v1937_v13  ;;  %v1960_v18 = vpack.c.bf16 %v1952_v58, %v1950_v53  ;;  %v14344_v53 = vld [vmem:[#allocation6 + $0x1a4] ss:$8 sps:$4 sm:$0xff]  }
 0x3f9   :  { %v1961_v23 = vpack.c.bf16 %v1953_v2, %v1951_v21  ;;  %v14355_v2 = vld [vmem:[#allocation6 + $0x1a0] ss:$8 sps:$4 sm:$0xff]  }
 0x3fb   :  { %3342 = vmatprep.subr.bf16.mxu0 %v1961_v23 }
 0x3fc   :  { %3343 = vmatpush1.bf16.msra.mxu0 %v1960_v18 }
 0x3fd   :  { %3393 = vmatprep.subr.bf16.mxu0 %v14141_v14 }
 0x3ff   :  { %10388 = vmatmul.mubr.msk.bf16.vlgmr.msra.gmra.mrb[40].mxu0 %vm2120_vm0, %v13970_v26 }
 0x400   :  { %3394 = vmatpush1.bf16.msra.mxu0 %v14134_v4  ;;  %3378 = vmatprep.mubr.bf16.mxu0 %v17942_v24 }
 0x401   :  { %3395 = vmatprep.subr.bf16.mxu0 %v14167_v56 }
 0x404   :  { %3396 = vmatpush1.bf16.msra.mxu0 %v14160_v61 }
 0x405   :  { %3397 = vmatprep.subr.bf16.mxu0 %v1959_v28 }
 0x407   :  { %10389 = vmatmul.mubr.msk.bf16.gmra.mrb[44].mxu0 %vm2120_vm0, %v13981_v32 }
 0x408   :  { %3398 = vmatpush1.bf16.msra.mxu0 %v1958_v16  ;;  %3425 = vmatprep.mubr.bf16.mxu0 %v17942_v24 }
 0x409   :  { %3399 = vmatprep.subr.bf16.mxu0 %v1961_v23 }
 0x40c   :  { %3400 = vmatpush1.bf16.msra.mxu0 %v1960_v18 }
 0x40d   :  { %3450 = vmatprep.subr.bf16.mxu0 %v14141_v14 }
 0x40f   :  { %10390 = vmatmul.mubr.msk.bf16.vlgmr.msra.gmra.mrb[48].mxu0 %vm2120_vm0, %v13991_v35 }
 0x410   :  { %3451 = vmatpush1.bf16.msra.mxu0 %v14134_v4  ;;  %3435 = vmatprep.mubr.bf16.mxu0 %v17942_v24 }
 0x411   :  { %3452 = vmatprep.subr.bf16.mxu0 %v14167_v56 }
 0x414   :  { %3453 = vmatpush1.bf16.msra.mxu0 %v14160_v61 }
 0x415   :  { %3454 = vmatprep.subr.bf16.mxu0 %v1959_v28 }
 0x417   :  { %10391 = vmatmul.mubr.msk.bf16.gmra.mrb[52].mxu0 %vm2120_vm0, %v14002_v37  ;;  %v14244_v37 = vld [vmem:[#allocation6 + $0x100] ss:$8 sps:$4 sm:$0xff]  }
 0x418   :  { %3455 = vmatpush1.bf16.msra.mxu0 %v1958_v16  ;;  %3482 = vmatprep.mubr.bf16.mxu0 %v17942_v24 }
 0x419   :  { %3456 = vmatprep.subr.bf16.mxu0 %v1961_v23 }
 0x41c   :  { %3457 = vmatpush1.bf16.msra.mxu0 %v1960_v18 }
 0x41d   :  { %3507 = vmatprep.subr.bf16.mxu0 %v14141_v14  ;;  %v14307_v14 = vld [vmem:[#allocation6 + $0x160] ss:$8 sps:$4 sm:$0xff]  }
 0x41f   :  { %10392 = vmatmul.mubr.msk.bf16.vlgmr.msra.gmra.mrb[56].mxu0 %vm2120_vm0, %v14012_v38  ;;  %v14246_v38 = vld [vmem:[#allocation6 + $0x114] ss:$8 sps:$4 sm:$0xff]  }
 0x420   :  { %3508 = vmatpush1.bf16.msra.mxu0 %v14134_v4  ;;  %3492 = vmatprep.mubr.bf16.mxu0 %v17942_v24 }
 0x421   :  { %3509 = vmatprep.subr.bf16.mxu0 %v14167_v56 }
 0x424   :  { %3510 = vmatpush1.bf16.msra.mxu0 %v14160_v61 }
 0x425   :  { %3511 = vmatprep.subr.bf16.mxu0 %v1959_v28 }
 0x427   :  { %10393 = vmatmul.mubr.msk.bf16.gmra.mrb[60].mxu0 %vm2120_vm0, %v14023_v41  ;;  %v14251_v41 = vld [vmem:[#allocation6 + $0x110] ss:$8 sps:$4 sm:$0xff]  }
 0x428   :  { %3512 = vmatpush1.bf16.msra.mxu0 %v1958_v16  ;;  %3539 = vmatprep.mubr.bf16.mxu0 %v17942_v24 }
 0x429   :  { %3513 = vmatprep.subr.bf16.mxu0 %v1961_v23  ;;  %v14360_v23 = vld [vmem:[#allocation6 + $0x1b4] ss:$8 sps:$4 sm:$0xff]  }
 0x42c   :  { %3514 = vmatpush1.bf16.msra.mxu0 %v1960_v18  ;;  %v14424_v18 = vld [vmem:[#allocation6 + $0x210] ss:$8 sps:$4 sm:$0xff]  }
 0x42d   :  { %3564 = vmatprep.subr.bf16.mxu0 %v14030_v22 }
 0x42f   :  { %10394 = vmatmul.mubr.msk.bf16.vlgmr.msra.gmra.mrb[64].mxu0 %vm2120_vm0, %v14035_v6  ;;  %v14254_v6 = vld [vmem:[#allocation6 + $0x124] ss:$8 sps:$4 sm:$0xff]  }
 0x430   :  { %3565 = vmatpush1.bf16.msra.mxu0 %v14037_v44  ;;  %3549 = vmatprep.mubr.bf16.mxu0 %v17942_v24 }
 0x431   :  { %3566 = vmatprep.subr.bf16.mxu0 %v14040_v47 }
 0x434   :  { %3567 = vmatpush1.bf16.msra.mxu0 %v14045_v48 }
 0x435   :  { %3568 = vmatprep.subr.bf16.mxu0 %v14049_v49 }
 0x437   :  { %10395 = vmatmul.mubr.msk.bf16.gmra.mrb[68].mxu0 %vm2120_vm0, %v14054_v50  ;;  %v14259_v50 = vld [vmem:[#allocation6 + $0x120] ss:$8 sps:$4 sm:$0xff]  }
 0x438   :  { %3569 = vmatpush1.bf16.msra.mxu0 %v14057_v51 }
 0x439   :  { %3570 = vmatprep.subr.bf16.mxu0 %v14060_v52  ;;  %v14262_v52 = vld [vmem:[#allocation6 + $0x134] ss:$8 sps:$4 sm:$0xff]  }
 0x43c   :  { %3571 = vmatpush1.bf16.msra.mxu0 %v14065_v54  ;;  %v14267_v54 = vld [vmem:[#allocation6 + $0x130] ss:$8 sps:$4 sm:$0xff]  }
 0x43d   :  { %3572 = vmatprep.subr.bf16.mxu0 %v14068_v55 }
 0x440   :  { %3573 = vmatpush1.bf16.msra.mxu0 %v14071_v59  ;;  %v14272_v59 = vld [vmem:[#allocation6 + $0x144] ss:$8 sps:$4 sm:$0xff]  }
 0x441   :  { %3574 = vmatprep.subr.bf16.mxu0 %v14074_v11 }
 0x444   :  { %3575 = vmatpush1.bf16.msra.mxu0 %v14077_v15 }
 0x445   :  { %3576 = vmatprep.subr.bf16.mxu0 %v14080_v17  ;;  %v17943_v17 = vld [vmem:[#allocation37_spill] sm:$0xff] }
 0x448   :  { %3577 = vmatpush1.bf16.msra.mxu0 %v14083_v19 }
 0x449   :  { %3578 = vmatprep.subr.bf16.mxu0 %v14086_v27 }
 0x44c   :  { %3579 = vmatpush1.bf16.msra.mxu0 %v14089_v30  ;;  %v17944_v30 = vld [vmem:[#allocation38_spill] sm:$0xff] }
 0x44d   :  { %3580 = vmatprep.subr.bf16.mxu0 %v14092_v31  ;;  %v14281_v31 = vld [vmem:[#allocation6 + $0x140] ss:$8 sps:$4 sm:$0xff]  }
 0x450   :  { %3581 = vmatpush1.bf16.msra.mxu0 %v14095_v33 }
 0x451   :  { %3582 = vmatprep.subr.bf16.mxu0 %v14098_v34  ;;  %v14284_v34 = vld [vmem:[#allocation6 + $0x154] ss:$8 sps:$4 sm:$0xff]  }
 0x452   :  { %v2161_v56 = vpop.f32.mrb[56].mxu1 }
 0x453   :  { %v2163_v61 = vpop.f32.mrb[57].mxu1 }
 0x454   :  { %v2165_v29 = vpop.f32.mrb[58].mxu1  ;;  %3583 = vmatpush1.bf16.msra.mxu0 %v14101_v36  ;;  %v17945_v36 = vld [vmem:[#allocation39_spill] sm:$0xff] }
 0x455   :  { %v2180_v26 = vpack.c.bf16 %v2165_v29, %v2161_v56  ;;  %v2167_v32 = vpop.f32.mrb[59].mxu1  ;;  %3584 = vmatprep.subr.bf16.mxu0 %v14104_v39  ;;  %v17946_v39 = vld [vmem:[#allocation40_spill] sm:$0xff]  ;;  %v14363_v56 = vld [vmem:[#allocation6 + $0x1b0] ss:$8 sps:$4 sm:$0xff]  }
 0x456   :  { %v2181_v35 = vpack.c.bf16 %v2167_v32, %v2163_v61  ;;  %v14368_v29 = vld [vmem:[#allocation6 + $0x1c4] ss:$8 sps:$4 sm:$0xff]  }
 0x458   :  { %3075 = vmatprep.mubr.bf16.mxu1 %v2181_v35  ;;  %3585 = vmatpush1.bf16.msra.mxu0 %v14107_v40  ;;  %v14289_v40 = vld [vmem:[#allocation6 + $0x150] ss:$8 sps:$4 sm:$0xff]  }
 0x459   :  { %3076 = vmatmul.mubr.bf16.vlgmr.msra.gmra.mrb[88].mxu1 %v2180_v26  ;;  %3586 = vmatprep.subr.bf16.mxu0 %v14110_v42 }
 0x45a   :  { %3097 = vmatpush1.bf16.msra.mxu1 %v14244_v37  ;;  %v2171_v22 = vpop.f32.mrb[60].mxu1 }
 0x45b   :  { %3098 = vmatprep.subr.bf16.mxu1 %v14246_v38  ;;  %v2173_v44 = vpop.f32.mrb[61].mxu1 }
 0x45c   :  { %v2175_v47 = vpop.f32.mrb[62].mxu1  ;;  %3587 = vmatpush1.bf16.msra.mxu0 %v14115_v8  ;;  %v14294_v8 = vld [vmem:[#allocation6 + $0x164] ss:$8 sps:$4 sm:$0xff]  }
 0x45d   :  { %v2182_v48 = vpack.c.bf16 %v2175_v47, %v2171_v22  ;;  %v2177_v49 = vpop.f32.mrb[63].mxu1  ;;  %3588 = vmatprep.subr.bf16.mxu0 %v14120_v7  ;;  %v14474_v47 = vld [vmem:[#allocation6 + $0x284] ss:$8 sps:$4 sm:$0xff]  }
 0x45e   :  { %3099 = vmatpush1.bf16.msra.mxu1 %v14251_v41  ;;  %v2183_v51 = vpack.c.bf16 %v2177_v49, %v2173_v44  ;;  %v14379_v44 = vld [vmem:[#allocation6 + $0x1c0] ss:$8 sps:$4 sm:$0xff]   ;;  %v14387_v49 = vld [vmem:[#allocation6 + $0x1d0] ss:$8 sps:$4 sm:$0xff]   ;;  %17958 = vst [vmem:[#allocation47_spill] sm:$0xff] %v14474_v47 }
 0x45f   :  { %3100 = vmatprep.subr.bf16.mxu1 %v14254_v6 }
 0x460   :  { %3085 = vmatprep.mubr.bf16.mxu1 %v2183_v51  ;;  %3589 = vmatpush1.bf16.msra.mxu0 %v14127_v25  ;;  %v14390_v51 = vld [vmem:[#allocation6 + $0x1e4] ss:$8 sps:$4 sm:$0xff]  }
 0x461   :  { %3086 = vmatmul.mubr.bf16.gmra.mrb[92].mxu1 %v2182_v48  ;;  %3590 = vmatprep.subr.bf16.mxu0 %v14130_v10  ;;  %v17947_v10 = vld [vmem:[#allocation41_spill] sm:$0xff]  ;;  %v14384_v48 = vld [vmem:[#allocation6 + $0x1d4] ss:$8 sps:$4 sm:$0xff]  }
 0x462   :  { %3101 = vmatpush1.bf16.msra.mxu1 %v14259_v50  ;;  %v14269_v55 = vpop.f32.mrb[64].mxu1 }
 0x463   :  { %3102 = vmatprep.subr.bf16.mxu1 %v14262_v52  ;;  %v2236_v11 = vpop.f32.mrb[65].mxu1 }
 0x464   :  { %v14274_v15 = vpop.f32.mrb[66].mxu1  ;;  %3591 = vmatpush1.bf16.msra.mxu0 %v17943_v17  ;;  %v14396_v17 = vld [vmem:[#allocation6 + $0x1f4] ss:$8 sps:$4 sm:$0xff]  }
 0x465   :  { %v2253_v19 = vpack.c.bf16 %v14274_v15, %v14269_v55  ;;  %v2240_v27 = vpop.f32.mrb[67].mxu1  ;;  %3592 = vmatprep.subr.bf16.mxu0 %v17944_v30  ;;  %v14402_v30 = vld [vmem:[#allocation6 + $0x204] ss:$8 sps:$4 sm:$0xff]   ;;  %v14435_v15 = vld [vmem:[#allocation6 + $0x220] ss:$8 sps:$4 sm:$0xff]  }
 0x466   :  { %3103 = vmatpush1.bf16.msra.mxu1 %v14267_v54  ;;  %v2254_v33 = vpack.c.bf16 %v2240_v27, %v2236_v11  ;;  %v14393_v11 = vld [vmem:[#allocation6 + $0x1e0] ss:$8 sps:$4 sm:$0xff]   ;;  %v14399_v27 = vld [vmem:[#allocation6 + $0x1f0] ss:$8 sps:$4 sm:$0xff]   ;;  %v14432_v55 = vld [vmem:[#allocation6 + $0x224] ss:$8 sps:$4 sm:$0xff]  }
 0x467   :  { %3104 = vmatprep.subr.bf16.mxu1 %v14272_v59 }
 0x468   :  { %3128 = vmatprep.mubr.bf16.mxu1 %v2254_v33  ;;  %3593 = vmatpush1.bf16.msra.mxu0 %v17945_v36  ;;  %v14405_v33 = vld [vmem:[#allocation6 + $0x200] ss:$8 sps:$4 sm:$0xff]  }
 0x469   :  { %3594 = vmatprep.subr.bf16.mxu0 %v17946_v39  ;;  %v14410_v39 = vld [vmem:[#allocation6 + $0x214] ss:$8 sps:$4 sm:$0xff]  }
 0x46a   :  { %3105 = vmatpush1.bf16.msra.mxu1 %v14281_v31  ;;  %v14291_v42 = vpop.f32.mrb[68].mxu1 }
 0x46b   :  { %3106 = vmatprep.subr.bf16.mxu1 %v14284_v34  ;;  %v14296_v7 = vpop.f32.mrb[69].mxu1 }
 0x46c   :  { %v14298_v25 = vpop.f32.mrb[70].mxu1  ;;  %3595 = vmatpush1.bf16.msra.mxu0 %v17947_v10 }
 0x46d   :  { %v2255_v4 = vpack.c.bf16 %v14298_v25, %v14291_v42  ;;  %v14303_v28 = vpop.f32.mrb[71].mxu1  ;;  %3617 = vmatprep.subr.bf16.mxu0 %v14170_v9  ;;  %v14320_v9 = vld [vmem:[#allocation6 + $0x184] ss:$8 sps:$4 sm:$0xff]   ;;  %v14456_v42 = vld [vmem:[#allocation6 + $0x254] ss:$8 sps:$4 sm:$0xff]  }
 0x46e   :  { %3107 = vmatpush1.bf16.msra.mxu1 %v14289_v40  ;;  %v2256_v16 = vpack.c.bf16 %v14303_v28, %v14296_v7  ;;  %v14444_v7 = vld [vmem:[#allocation6 + $0x230] ss:$8 sps:$4 sm:$0xff]   ;;  %v14450_v28 = vld [vmem:[#allocation6 + $0x244] ss:$8 sps:$4 sm:$0xff]   ;;  %17952 = vst [vmem:[#allocation41_spill] sm:$0xff] %v14456_v42 }
 0x46f   :  { %3108 = vmatprep.subr.bf16.mxu1 %v14294_v8  ;;  %17949 = vst [vmem:[#allocation38_spill] sm:$0xff] %v14444_v7  ;;  %17950 = vst [vmem:[#allocation39_spill] sm:$0xff] %v14450_v28  ;;  %v14459_v25 = vld [vmem:[#allocation6 + $0x250] ss:$8 sps:$4 sm:$0xff]  }
 0x470   :  { %17953 = vst [vmem:[#allocation42_spill] sm:$0xff] %v14459_v25 }
 0x472   :  { %3109 = vmatpush1.bf16.msra.mxu1 %v14307_v14  ;;  %v14317_v12 = vpop.f32.mrb[72].mxu1 }
 0x473   :  { %3110 = vmatprep.subr.bf16.mxu1 %v14312_v43  ;;  %v14322_v20 = vpop.f32.mrb[73].mxu1 }
 0x474   :  { %v14324_v5 = vpop.f32.mrb[74].mxu1 }
 0x475   :  { %v14328_v45 = vpop.f32.mrb[75].mxu1 }
 0x476   :  { %3111 = vmatpush1.bf16.msra.mxu1 %v14315_v62  ;;  %v2327_v63 = vpack.c.bf16 %v14328_v45, %v14322_v20  ;;  %v14465_v20 = vld [vmem:[#allocation6 + $0x260] ss:$8 sps:$4 sm:$0xff]   ;;  %v14468_v45 = vld [vmem:[#allocation6 + $0x274] ss:$8 sps:$4 sm:$0xff]  }
 0x477   :  { %3112 = vmatprep.subr.bf16.mxu1 %v14320_v9  ;;  %17955 = vst [vmem:[#allocation44_spill] sm:$0xff] %v14465_v20  ;;  %17956 = vst [vmem:[#allocation45_spill] sm:$0xff] %v14468_v45 }
 0x47a   :  { %3113 = vmatpush1.bf16.msra.mxu1 %v14331_v0  ;;  %v14341_v57 = vpop.f32.mrb[76].mxu1 }
 0x47b   :  { %3114 = vmatprep.subr.bf16.mxu1 %v14336_v60  ;;  %v14346_v3 = vpop.f32.mrb[77].mxu1 }
 0x47c   :  { %v14348_v21 = vpop.f32.mrb[78].mxu1 }
 0x47d   :  { %v14352_v58 = vpop.f32.mrb[79].mxu1 }
 0x47e   :  { %3115 = vmatpush1.bf16.msra.mxu1 %v14339_v1 }
 0x47f   :  { %3116 = vmatprep.subr.bf16.mxu1 %v14344_v53 }
 0x482   :  { %3117 = vmatpush1.bf16.msra.mxu1 %v14355_v2  ;;  %v14365_v61 = vpop.f32.mrb[80].mxu1 }
 0x483   :  { %3118 = vmatprep.subr.bf16.mxu1 %v14360_v23  ;;  %v14370_v26 = vpop.f32.mrb[81].mxu1 }
 0x484   :  { %v14372_v32 = vpop.f32.mrb[82].mxu1 }
 0x485   :  { %v14376_v22 = vpop.f32.mrb[83].mxu1 }
 0x486   :  { %3119 = vmatpush1.bf16.msra.mxu1 %v14363_v56 }
 0x487   :  { %3120 = vmatprep.subr.bf16.mxu1 %v14368_v29 }
 0x48a   :  { %3121 = vmatpush1.bf16.msra.mxu1 %v14379_v44  ;;  %v14407_v36 = vpop.f32.mrb[84].mxu1 }
 0x48b   :  { %3122 = vmatprep.subr.bf16.mxu1 %v14384_v48  ;;  %v14412_v10 = vpop.f32.mrb[85].mxu1 }
 0x48c   :  { %v14414_v35 = vpop.f32.mrb[86].mxu1 }
 0x48d   :  { %v14421_v13 = vpop.f32.mrb[87].mxu1 }
 0x48e   :  { %3123 = vmatpush1.bf16.msra.mxu1 %v14387_v49 }
 0x48f   :  { %3124 = vmatprep.subr.bf16.mxu1 %v14390_v51 }
 0x492   :  { %3125 = vmatpush1.bf16.msra.mxu1 %v14393_v11 }
 0x493   :  { %3126 = vmatprep.subr.bf16.mxu1 %v14396_v17 }
 0x496   :  { %3127 = vmatpush1.bf16.msra.mxu1 %v14399_v27 }
 0x497   :  { %3149 = vmatprep.subr.bf16.mxu1 %v14402_v30 }
 0x499   :  { %3129 = vmatmul.mubr.bf16.vlgmr.msra.gmra.mrb[88].mxu1 %v2253_v19  ;;  %v14438_v19 = vld [vmem:[#allocation6 + $0x234] ss:$8 sps:$4 sm:$0xff]  }
 0x49a   :  { %3150 = vmatpush1.bf16.msra.mxu1 %v14405_v33  ;;  %3138 = vmatprep.mubr.bf16.mxu1 %v2256_v16  ;;  %17948 = vst [vmem:[#allocation37_spill] sm:$0xff] %v14438_v19  ;;  %v14453_v16 = vld [vmem:[#allocation6 + $0x240] ss:$8 sps:$4 sm:$0xff]  }
 0x49b   :  { %3151 = vmatprep.subr.bf16.mxu1 %v14410_v39  ;;  %17951 = vst [vmem:[#allocation40_spill] sm:$0xff] %v14453_v16 }
 0x49e   :  { %3152 = vmatpush1.bf16.msra.mxu1 %v14424_v18 }
 0x49f   :  { %3153 = vmatprep.subr.bf16.mxu1 %v14432_v55 }
 0x4a1   :  { %3139 = vmatmul.mubr.bf16.gmra.mrb[92].mxu1 %v2255_v4  ;;  %v14462_v4 = vld [vmem:[#allocation6 + $0x264] ss:$8 sps:$4 sm:$0xff]  }
 0x4a2   :  { %3154 = vmatpush1.bf16.msra.mxu1 %v14435_v15  ;;  %3181 = vmatprep.mubr.bf16.mxu1 %v2327_v63  ;;  %17954 = vst [vmem:[#allocation43_spill] sm:$0xff] %v14462_v4  ;;  %v14471_v63 = vld [vmem:[#allocation6 + $0x270] ss:$8 sps:$4 sm:$0xff]  }
 0x4a3   :  { %3155 = vmatprep.subr.bf16.mxu1 %v14438_v19  ;;  %17957 = vst [vmem:[#allocation46_spill] sm:$0xff] %v14471_v63  ;;  %v14528_v19 = vld [vmem:[#allocation6 + $0x314] ss:$8 sps:$4 sm:$0xff]  }
 0x4a6   :  { %3156 = vmatpush1.bf16.msra.mxu1 %v14444_v7 }
 0x4a7   :  { %3157 = vmatprep.subr.bf16.mxu1 %v14450_v28 }
 0x4aa   :  { %3158 = vmatpush1.bf16.msra.mxu1 %v14453_v16 }
 0x4ab   :  { %3159 = vmatprep.subr.bf16.mxu1 %v14456_v42 }
 0x4ae   :  { %3160 = vmatpush1.bf16.msra.mxu1 %v14459_v25  ;;  %v14480_v25 = vld [vmem:[#allocation6 + $0x294] ss:$8 sps:$4 sm:$0xff]  }
 0x4af   :  { %3161 = vmatprep.subr.bf16.mxu1 %v14462_v4  ;;  %17960 = vst [vmem:[#allocation49_spill] sm:$0xff] %v14480_v25  ;;  %v14483_v4 = vld [vmem:[#allocation6 + $0x290] ss:$8 sps:$4 sm:$0xff]  }
 0x4b0   :  { %17961 = vst [vmem:[#allocation50_spill] sm:$0xff] %v14483_v4 }
 0x4b2   :  { %3162 = vmatpush1.bf16.msra.mxu1 %v14465_v20  ;;  %v14486_v20 = vld [vmem:[#allocation6 + $0x2a4] ss:$8 sps:$4 sm:$0xff]  }
 0x4b3   :  { %3163 = vmatprep.subr.bf16.mxu1 %v14468_v45  ;;  %17962 = vst [vmem:[#allocation51_spill] sm:$0xff] %v14486_v20  ;;  %v14489_v45 = vld [vmem:[#allocation6 + $0x2a0] ss:$8 sps:$4 sm:$0xff]  }
 0x4b4   :  { %17963 = vst [vmem:[#allocation52_spill] sm:$0xff] %v14489_v45 }
 0x4b6   :  { %3164 = vmatpush1.bf16.msra.mxu1 %v14471_v63  ;;  %v14492_v63 = vld [vmem:[#allocation6 + $0x2b4] ss:$8 sps:$4 sm:$0xff]  }
 0x4b7   :  { %3165 = vmatprep.subr.bf16.mxu1 %v14474_v47  ;;  %17964 = vst [vmem:[#allocation53_spill] sm:$0xff] %v14492_v63  ;;  %v14495_v47 = vld [vmem:[#allocation6 + $0x2b0] ss:$8 sps:$4 sm:$0xff]  }
 0x4b8   :  { %17965 = vst [vmem:[#allocation54_spill] sm:$0xff] %v14495_v47 }
 0x4ba   :  { %3166 = vmatpush1.bf16.msra.mxu1 %v14477_v46  ;;  %v14498_v46 = vld [vmem:[#allocation6 + $0x2c4] ss:$8 sps:$4 sm:$0xff]  }
 0x4bb   :  { %3167 = vmatprep.subr.bf16.mxu1 %v14480_v25  ;;  %17966 = vst [vmem:[#allocation55_spill] sm:$0xff] %v14498_v46  ;;  %v14501_v25 = vld [vmem:[#allocation6 + $0x2c0] ss:$8 sps:$4 sm:$0xff]  }
 0x4bc   :  { %17967 = vst [vmem:[#allocation56_spill] sm:$0xff] %v14501_v25 }
 0x4be   :  { %3168 = vmatpush1.bf16.msra.mxu1 %v14483_v4  ;;  %v14504_v4 = vld [vmem:[#allocation6 + $0x2d4] ss:$8 sps:$4 sm:$0xff]  }
 0x4bf   :  { %3169 = vmatprep.subr.bf16.mxu1 %v14486_v20  ;;  %17968 = vst [vmem:[#allocation57_spill] sm:$0xff] %v14504_v4  ;;  %v14507_v20 = vld [vmem:[#allocation6 + $0x2d0] ss:$8 sps:$4 sm:$0xff]  }
 0x4c0   :  { %17969 = vst [vmem:[#allocation58_spill] sm:$0xff] %v14507_v20 }
 0x4c2   :  { %3170 = vmatpush1.bf16.msra.mxu1 %v14489_v45  ;;  %v14510_v45 = vld [vmem:[#allocation6 + $0x2e4] ss:$8 sps:$4 sm:$0xff]  }
 0x4c3   :  { %3171 = vmatprep.subr.bf16.mxu1 %v14492_v63  ;;  %17970 = vst [vmem:[#allocation59_spill] sm:$0xff] %v14510_v45  ;;  %v14513_v63 = vld [vmem:[#allocation6 + $0x2e0] ss:$8 sps:$4 sm:$0xff]  }
 0x4c4   :  { %17971 = vst [vmem:[#allocation60_spill] sm:$0xff] %v14513_v63 }
 0x4c6   :  { %3172 = vmatpush1.bf16.msra.mxu1 %v14495_v47  ;;  %v14516_v47 = vld [vmem:[#allocation6 + $0x2f4] ss:$8 sps:$4 sm:$0xff]  }
 0x4c7   :  { %3173 = vmatprep.subr.bf16.mxu1 %v14498_v46  ;;  %17972 = vst [vmem:[#allocation61_spill] sm:$0xff] %v14516_v47  ;;  %v14519_v46 = vld [vmem:[#allocation6 + $0x2f0] ss:$8 sps:$4 sm:$0xff]  }
 0x4ca   :  { %3174 = vmatpush1.bf16.msra.mxu1 %v14501_v25  ;;  %v14522_v25 = vld [vmem:[#allocation6 + $0x304] ss:$8 sps:$4 sm:$0xff]  }
 0x4cb   :  { %3175 = vmatprep.subr.bf16.mxu1 %v14504_v4 }
 0x4ce   :  { %3176 = vmatpush1.bf16.msra.mxu1 %v14507_v20  ;;  %v14525_v20 = vld [vmem:[#allocation6 + $0x300] ss:$8 sps:$4 sm:$0xff]  }
 0x4cf   :  { %3177 = vmatprep.subr.bf16.mxu1 %v14510_v45 }
 0x4d2   :  { %3178 = vmatpush1.bf16.msra.mxu1 %v14513_v63  ;;  %v3370_v42 = vpop.f32.mrb[40].mxu0  ;;  %v17973_v63 = vpack.c.bf16 %v14324_v5, %v14317_v12 }
 0x4d3   :  { %3179 = vmatprep.subr.bf16.mxu1 %v14516_v47  ;;  %v3372_v4 = vpop.f32.mrb[41].mxu0  ;;  %v14534_v47 = vld [vmem:[#allocation6 + $0x310] ss:$8 sps:$4 sm:$0xff]  }
 0x4d4   :  { %v3374_v16 = vpop.f32.mrb[42].mxu0 }
 0x4d5   :  { %v3389_v28 = vpack.c.bf16 %v3374_v16, %v3370_v42  ;;  %v3376_v7 = vpop.f32.mrb[43].mxu0  ;;  %v17974_v16 = vpack.c.bf16 %v14352_v58, %v14346_v3  ;;  %v14548_v3 = vld [vmem:[#allocation6 + $0x334] ss:$8 sps:$4 sm:$0xff]   ;;  %v17976_v58 = vpack.c.bf16 %v14376_v22, %v14370_v26  ;;  %v14573_v26 = vld [vmem:[#allocation6 + $0x340] ss:$8 sps:$4 sm:$0xff]  }
 0x4d6   :  { %3180 = vmatpush1.bf16.msra.mxu1 %v14519_v46  ;;  %v3390_v45 = vpack.c.bf16 %v3376_v7, %v3372_v4  ;;  %v14540_v7 = vld [vmem:[#allocation6 + $0x324] ss:$8 sps:$4 sm:$0xff]  }
 0x4d7   :  { %3202 = vmatprep.subr.bf16.mxu1 %v14522_v25 }
 0x4d8   :  { %3596 = vmatprep.mubr.bf16.mxu0 %v3390_v45  ;;  %v14545_v45 = vld [vmem:[#allocation6 + $0x320] ss:$8 sps:$4 sm:$0xff]  }
 0x4d9   :  { %3182 = vmatmul.mubr.bf16.vlgmr.msra.gmra.mrb[88].mxu1 %v17973_v63  ;;  %3597 = vmatmul.mubr.bf16.vlgmr.msra.gmra.mrb[72].mxu0 %v3389_v28 }
 0x4da   :  { %3203 = vmatpush1.bf16.msra.mxu1 %v14525_v20  ;;  %3191 = vmatprep.mubr.bf16.mxu1 %v17974_v16  ;;  %v3380_v42 = vpop.f32.mrb[44].mxu0 }
 0x4db   :  { %3204 = vmatprep.subr.bf16.mxu1 %v14528_v19  ;;  %3618 = vmatpush1.bf16.msra.mxu0 %v14244_v37  ;;  %v3382_v4 = vpop.f32.mrb[45].mxu0  ;;  %v17975_v37 = vpack.c.bf16 %v14348_v21, %v14341_v57  ;;  %v14671_v21 = vld [vmem:[#allocation6 + $0x3d0] ss:$8 sps:$4 sm:$0xff]  }
 0x4dc   :  { %3619 = vmatprep.subr.bf16.mxu0 %v14246_v38  ;;  %v3384_v12 = vpop.f32.mrb[46].mxu0  ;;  %v14556_v38 = vld [vmem:[#allocation6 + $0x330] ss:$8 sps:$4 sm:$0xff]   ;;  %17980 = vst [vmem:[#allocation65_spill] sm:$0xff] %v14671_v21 }
 0x4dd   :  { %v3391_v5 = vpack.c.bf16 %v3384_v12, %v3380_v42  ;;  %v3386_v28 = vpop.f32.mrb[47].mxu0  ;;  %v14586_v12 = vld [vmem:[#allocation6 + $0x364] ss:$8 sps:$4 sm:$0xff]  }
 0x4de   :  { %3205 = vmatpush1.bf16.msra.mxu1 %v14534_v47  ;;  %v3392_v63 = vpack.c.bf16 %v3386_v28, %v3382_v4  ;;  %v14576_v4 = vld [vmem:[#allocation6 + $0x354] ss:$8 sps:$4 sm:$0xff]  }
 0x4df   :  { %3206 = vmatprep.subr.bf16.mxu1 %v14540_v7  ;;  %3620 = vmatpush1.bf16.msra.mxu0 %v14251_v41  ;;  %v14564_v41 = vld [vmem:[#allocation6 + $0x344] ss:$8 sps:$4 sm:$0xff]  }
 0x4e0   :  { %3621 = vmatprep.subr.bf16.mxu0 %v14254_v6  ;;  %3606 = vmatprep.mubr.bf16.mxu0 %v3392_v63  ;;  %v14599_v63 = vld [vmem:[#allocation6 + $0x360] ss:$8 sps:$4 sm:$0xff]  }
 0x4e1   :  { %3192 = vmatmul.mubr.bf16.gmra.mrb[92].mxu1 %v17975_v37  ;;  %3607 = vmatmul.mubr.bf16.gmra.mrb[76].mxu0 %v3391_v5  ;;  %v14645_v37 = vld [vmem:[#allocation6 + $0x3a0] ss:$8 sps:$4 sm:$0xff]  }
 0x4e2   :  { %3207 = vmatpush1.bf16.msra.mxu1 %v14545_v45  ;;  %3234 = vmatprep.mubr.bf16.mxu1 %v17976_v58  ;;  %v14561_v16 = vpop.f32.mrb[48].mxu0 }
 0x4e3   :  { %3208 = vmatprep.subr.bf16.mxu1 %v14548_v3  ;;  %3622 = vmatpush1.bf16.msra.mxu0 %v14259_v50  ;;  %v3429_v6 = vpop.f32.mrb[49].mxu0  ;;  %v14581_v50 = vld [vmem:[#allocation6 + $0x350] ss:$8 sps:$4 sm:$0xff]  }
 0x4e4   :  { %3623 = vmatprep.subr.bf16.mxu0 %v14262_v52  ;;  %v14568_v57 = vpop.f32.mrb[50].mxu0 }
 0x4e5   :  { %v3433_v42 = vpop.f32.mrb[51].mxu0 }
 0x4e6   :  { %3209 = vmatpush1.bf16.msra.mxu1 %v14556_v38  ;;  %v3447_v22 = vpack.c.bf16 %v3433_v42, %v3429_v6  ;;  %v14614_v6 = vld [vmem:[#allocation6 + $0x384] ss:$8 sps:$4 sm:$0xff]  }
 0x4e7   :  { %3210 = vmatprep.subr.bf16.mxu1 %v14564_v41  ;;  %3624 = vmatpush1.bf16.msra.mxu0 %v14267_v54 }
 0x4e8   :  { %3625 = vmatprep.subr.bf16.mxu0 %v14272_v59  ;;  %3649 = vmatprep.mubr.bf16.mxu0 %v3447_v22  ;;  %v14627_v59 = vld [vmem:[#allocation6 + $0x380] ss:$8 sps:$4 sm:$0xff]  }
 0x4ea   :  { %3211 = vmatpush1.bf16.msra.mxu1 %v14573_v26  ;;  %v14583_v52 = vpop.f32.mrb[52].mxu0 }
 0x4eb   :  { %3212 = vmatprep.subr.bf16.mxu1 %v14576_v4  ;;  %3626 = vmatpush1.bf16.msra.mxu0 %v14281_v31  ;;  %v14589_v5 = vpop.f32.mrb[53].mxu0  ;;  %v14604_v31 = vld [vmem:[#allocation6 + $0x374] ss:$8 sps:$4 sm:$0xff]  }
 0x4ec   :  { %3627 = vmatprep.subr.bf16.mxu0 %v14284_v34  ;;  %v14592_v54 = vpop.f32.mrb[54].mxu0  ;;  %v14609_v34 = vld [vmem:[#allocation6 + $0x370] ss:$8 sps:$4 sm:$0xff]  }
 0x4ed   :  { %v14596_v28 = vpop.f32.mrb[55].mxu0 }
 0x4ee   :  { %3213 = vmatpush1.bf16.msra.mxu1 %v14581_v50 }
 0x4ef   :  { %3214 = vmatprep.subr.bf16.mxu1 %v14586_v12  ;;  %3628 = vmatpush1.bf16.msra.mxu0 %v14289_v40  ;;  %v14640_v40 = vld [vmem:[#allocation6 + $0x3a4] ss:$8 sps:$4 sm:$0xff]  }
 0x4f0   :  { %3629 = vmatprep.subr.bf16.mxu0 %v14294_v8 }
 0x4f2   :  { %3215 = vmatpush1.bf16.msra.mxu1 %v14599_v63  ;;  %v14611_v58 = vpop.f32.mrb[56].mxu0 }
 0x4f3   :  { %3216 = vmatprep.subr.bf16.mxu1 %v14604_v31  ;;  %3630 = vmatpush1.bf16.msra.mxu0 %v14307_v14  ;;  %v14617_v42 = vpop.f32.mrb[57].mxu0  ;;  %v14632_v14 = vld [vmem:[#allocation6 + $0x394] ss:$8 sps:$4 sm:$0xff]  }
 0x4f4   :  { %3631 = vmatprep.subr.bf16.mxu0 %v14312_v43  ;;  %v14620_v22 = vpop.f32.mrb[58].mxu0  ;;  %v14637_v43 = vld [vmem:[#allocation6 + $0x390] ss:$8 sps:$4 sm:$0xff]  }
 0x4f5   :  { %v14624_v8 = vpop.f32.mrb[59].mxu0 }
 0x4f6   :  { %3217 = vmatpush1.bf16.msra.mxu1 %v14609_v34 }
 0x4f7   :  { %3218 = vmatprep.subr.bf16.mxu1 %v14614_v6  ;;  %3632 = vmatpush1.bf16.msra.mxu0 %v14315_v62  ;;  %v14648_v62 = vld [vmem:[#allocation6 + $0x3b4] ss:$8 sps:$4 sm:$0xff]  }
 0x4f8   :  { %3633 = vmatprep.subr.bf16.mxu0 %v14320_v9  ;;  %v14653_v9 = vld [vmem:[#allocation6 + $0x3b0] ss:$8 sps:$4 sm:$0xff]  }
 0x4fa   :  { %3219 = vmatpush1.bf16.msra.mxu1 %v14627_v59 }
 0x4fb   :  { %3220 = vmatprep.subr.bf16.mxu1 %v14632_v14  ;;  %3634 = vmatpush1.bf16.msra.mxu0 %v14331_v0  ;;  %v14656_v0 = vld [vmem:[#allocation6 + $0x3c4] ss:$8 sps:$4 sm:$0xff]  }
 0x4fc   :  { %3635 = vmatprep.subr.bf16.mxu0 %v14336_v60  ;;  %17977 = vst [vmem:[#allocation62_spill] sm:$0xff] %v14656_v0  ;;  %v14661_v60 = vld [vmem:[#allocation6 + $0x3c0] ss:$8 sps:$4 sm:$0xff]  }
 0x4fd   :  { %17978 = vst [vmem:[#allocation63_spill] sm:$0xff] %v14661_v60 }
 0x4fe   :  { %3221 = vmatpush1.bf16.msra.mxu1 %v14637_v43 }
 0x4ff   :  { %3222 = vmatprep.subr.bf16.mxu1 %v14640_v40  ;;  %3636 = vmatpush1.bf16.msra.mxu0 %v14339_v1  ;;  %v14664_v1 = vld [vmem:[#allocation6 + $0x3d4] ss:$8 sps:$4 sm:$0xff]  }
 0x500   :  { %3637 = vmatprep.subr.bf16.mxu0 %v14344_v53  ;;  %17979 = vst [vmem:[#allocation64_spill] sm:$0xff] %v14664_v1  ;;  %v14668_v53 = vpop.f32.mrb[60].mxu0 }
 0x502   :  { %3223 = vmatpush1.bf16.msra.mxu1 %v14645_v37 }
 0x503   :  { %3224 = vmatprep.subr.bf16.mxu1 %v14648_v62  ;;  %3638 = vmatpush1.bf16.msra.mxu0 %v14355_v2  ;;  %v14674_v2 = vld [vmem:[#allocation6 + $0x3e4] ss:$8 sps:$4 sm:$0xff]  }
 0x504   :  { %3639 = vmatprep.subr.bf16.mxu0 %v14360_v23  ;;  %v14677_v23 = vpop.f32.mrb[61].mxu0 }
 0x506   :  { %3225 = vmatpush1.bf16.msra.mxu1 %v14653_v9 }
 0x507   :  { %3226 = vmatprep.subr.bf16.mxu1 %v14656_v0  ;;  %3640 = vmatpush1.bf16.msra.mxu0 %v14363_v56  ;;  %v14680_v0 = vpop.f32.mrb[62].mxu0  ;;  %v14699_v56 = vld [vmem:[#allocation6 + $0x3f0] ss:$8 sps:$4 sm:$0xff]  }
 0x508   :  { %3641 = vmatprep.subr.bf16.mxu0 %v14368_v29  ;;  %v14684_v29 = vpop.f32.mrb[63].mxu0 }
 0x50a   :  { %3227 = vmatpush1.bf16.msra.mxu1 %v14661_v60  ;;  %v14687_v60 = vld [vmem:[#allocation6 + $0x3e0] ss:$8 sps:$4 sm:$0xff]  }
 0x50b   :  { %3228 = vmatprep.subr.bf16.mxu1 %v14664_v1  ;;  %3642 = vmatpush1.bf16.msra.mxu0 %v14379_v44  ;;  %17981 = vst [vmem:[#allocation66_spill] sm:$0xff] %v14687_v60  ;;  %v14692_v44 = vld [vmem:[#allocation6 + $0x3f4] ss:$8 sps:$4 sm:$0xff]  }
 0x50c   :  { %3643 = vmatprep.subr.bf16.mxu0 %v14384_v48  ;;  %v14696_v48 = vpop.f32.mrb[64].mxu0 }
 0x50d   :  { %17982 = vst [vmem:[#allocation67_spill] sm:$0xff] %v14696_v48 }
 0x50e   :  { %3229 = vmatpush1.bf16.msra.mxu1 %v14671_v21  ;;  %v14703_v21 = vpop.f32.mrb[65].mxu0 }
 0x50f   :  { %3230 = vmatprep.subr.bf16.mxu1 %v14674_v2  ;;  %3644 = vmatpush1.bf16.msra.mxu0 %v14387_v49  ;;  %v14706_v1 = vpop.f32.mrb[66].mxu0  ;;  %v17985_v49 = vpack.c.bf16 %v14568_v57, %v14561_v16  ;;  %v17989_v16 = vpack.c.bf16 %v14624_v8, %v14617_v42  ;;  %v17990_v57 = vld [vmem:[#allocation37_spill] sm:$0xff]  ;;  %v18001_v42 = vld [vmem:[#allocation48_spill] sm:$0xff] }
 0x510   :  { %3645 = vmatprep.subr.bf16.mxu0 %v14390_v51  ;;  %v3547_v51 = vpop.f32.mrb[67].mxu0  ;;  %v18002_v8 = vld [vmem:[#allocation49_spill] sm:$0xff] }
 0x511   :  { %v14723_v48 = vpop.f32.mrb[68].mxu0 }
 0x512   :  { %3231 = vmatpush1.bf16.msra.mxu1 %v14687_v60  ;;  %v3561_v60 = vpack.c.bf16 %v3547_v51, %v14703_v21  ;;  %v17995_v21 = vld [vmem:[#allocation42_spill] sm:$0xff]  ;;  %v18004_v51 = vld [vmem:[#allocation51_spill] sm:$0xff] }
 0x513   :  { %3232 = vmatprep.subr.bf16.mxu1 %v14692_v44  ;;  %3646 = vmatpush1.bf16.msra.mxu0 %v14393_v11  ;;  %v17983_v11 = vpack.c.bf16 %v14372_v32, %v14365_v61 }
 0x514   :  { %3647 = vmatprep.subr.bf16.mxu0 %v14396_v17  ;;  %v17984_v17 = vpack.c.bf16 %v14421_v13, %v14412_v10 }
 0x516   :  { %3233 = vmatpush1.bf16.msra.mxu1 %v14699_v56 }
 0x517   :  { %3648 = vmatpush1.bf16.msra.mxu0 %v14399_v27  ;;  %v17986_v27 = vpack.c.bf16 %v14596_v28, %v14589_v5  ;;  %v17997_v5 = vld [vmem:[#allocation44_spill] sm:$0xff]  ;;  %v18000_v28 = vld [vmem:[#allocation47_spill] sm:$0xff] }
 0x518   :  { %3670 = vmatprep.subr.bf16.mxu0 %v14402_v30  ;;  %v14729_v30 = vpop.f32.mrb[69].mxu0 }
 0x519   :  { %3235 = vmatmul.mubr.bf16.vlgmr.msra.gmra.mrb[88].mxu1 %v17983_v11  ;;  %v14732_v61 = vpop.f32.mrb[70].mxu0  ;;  %v18005_v11 = vld [vmem:[#allocation52_spill] sm:$0xff] }
 0x51a   :  { %3244 = vmatprep.mubr.bf16.mxu1 %v17984_v17  ;;  %3650 = vmatmul.mubr.bf16.vlgmr.msra.gmra.mrb[72].mxu0 %v17985_v49  ;;  %v3562_v13 = vpack.c.bf16 %v14732_v61, %v14723_v48  ;;  %v14736_v32 = vpop.f32.mrb[71].mxu0  ;;  %v18003_v49 = vld [vmem:[#allocation50_spill] sm:$0xff]  ;;  %v18006_v17 = vld [vmem:[#allocation53_spill] sm:$0xff] }
 0x51b   :  { %3671 = vmatpush1.bf16.msra.mxu0 %v14405_v33  ;;  %3659 = vmatprep.mubr.bf16.mxu0 %v17986_v27  ;;  %v3563_v10 = vpack.c.bf16 %v14736_v32, %v14729_v30  ;;  %v17987_v33 = vpack.c.bf16 %v14414_v35, %v14407_v36  ;;  %v17993_v35 = vld [vmem:[#allocation40_spill] sm:$0xff]  ;;  %v17994_v36 = vld [vmem:[#allocation41_spill] sm:$0xff]  ;;  %v18007_v27 = vld [vmem:[#allocation54_spill] sm:$0xff] }
 0x51c   :  { %3672 = vmatprep.subr.bf16.mxu0 %v14410_v39  ;;  %v17988_v39 = vpack.c.bf16 %v14592_v54, %v14583_v52  ;;  %v17996_v52 = vld [vmem:[#allocation43_spill] sm:$0xff]  ;;  %v17999_v54 = vld [vmem:[#allocation46_spill] sm:$0xff] }
 0x51f   :  { %3673 = vmatpush1.bf16.msra.mxu0 %v14424_v18  ;;  %v17991_v18 = vld [vmem:[#allocation38_spill] sm:$0xff] }
 0x520   :  { %3674 = vmatprep.subr.bf16.mxu0 %v14432_v55  ;;  %v17992_v55 = vld [vmem:[#allocation39_spill] sm:$0xff] }
 0x521   :  { %3245 = vmatmul.mubr.bf16.gmra.mrb[92].mxu1 %v17987_v33  ;;  %v18008_v33 = vld [vmem:[#allocation55_spill] sm:$0xff] }
 0x522   :  { %3660 = vmatmul.mubr.bf16.gmra.mrb[76].mxu0 %v17988_v39  ;;  %4001 = vmatprep.mubr.bf16.mxu1 %v17942_v24  ;;  %v18009_v39 = vld [vmem:[#allocation56_spill] sm:$0xff] }
 0x523   :  { %3675 = vmatpush1.bf16.msra.mxu0 %v14435_v15  ;;  %3702 = vmatprep.mubr.bf16.mxu0 %v17989_v16  ;;  %v17998_v15 = vld [vmem:[#allocation45_spill] sm:$0xff] }
 0x524   :  { %3676 = vmatprep.subr.bf16.mxu0 %v17990_v57  ;;  %v18010_v16 = vld [vmem:[#allocation57_spill] sm:$0xff]  ;;  %v18011_v57 = vld [vmem:[#allocation58_spill] sm:$0xff] }
 0x527   :  { %3677 = vmatpush1.bf16.msra.mxu0 %v17991_v18  ;;  %v18012_v18 = vld [vmem:[#allocation59_spill] sm:$0xff] }
 0x528   :  { %3678 = vmatprep.subr.bf16.mxu0 %v17992_v55  ;;  %v18013_v55 = vld [vmem:[#allocation60_spill] sm:$0xff] }
 0x52b   :  { %3679 = vmatpush1.bf16.msra.mxu0 %v17993_v35  ;;  %v18014_v35 = vld [vmem:[#allocation61_spill] sm:$0xff] }
 0x52c   :  { %3680 = vmatprep.subr.bf16.mxu0 %v17994_v36  ;;  %v18015_v36 = vpack.c.bf16 %v14620_v22, %v14611_v58 }
 0x52f   :  { %3681 = vmatpush1.bf16.msra.mxu0 %v17995_v21  ;;  %v18016_v21 = vpack.c.bf16 %v14684_v29, %v14677_v23 }
 0x530   :  { %3682 = vmatprep.subr.bf16.mxu0 %v17996_v52 }
 0x533   :  { %3683 = vmatpush1.bf16.msra.mxu0 %v17997_v5 }
 0x534   :  { %3684 = vmatprep.subr.bf16.mxu0 %v17998_v15 }
 0x537   :  { %3685 = vmatpush1.bf16.msra.mxu0 %v17999_v54 }
 0x538   :  { %3686 = vmatprep.subr.bf16.mxu0 %v18000_v28 }
 0x53b   :  { %3687 = vmatpush1.bf16.msra.mxu0 %v18001_v42 }
 0x53c   :  { %3688 = vmatprep.subr.bf16.mxu0 %v18002_v8 }
 0x53f   :  { %3689 = vmatpush1.bf16.msra.mxu0 %v18003_v49 }
 0x540   :  { %3690 = vmatprep.subr.bf16.mxu0 %v18004_v51 }
 0x543   :  { %3691 = vmatpush1.bf16.msra.mxu0 %v18005_v11 }
 0x544   :  { %3692 = vmatprep.subr.bf16.mxu0 %v18006_v17 }
 0x547   :  { %3693 = vmatpush1.bf16.msra.mxu0 %v18007_v27 }
 0x548   :  { %3694 = vmatprep.subr.bf16.mxu0 %v18008_v33 }
 0x54b   :  { %3695 = vmatpush1.bf16.msra.mxu0 %v18009_v39 }
 0x54c   :  { %3696 = vmatprep.subr.bf16.mxu0 %v18010_v16 }
 0x54f   :  { %3697 = vmatpush1.bf16.msra.mxu0 %v18011_v57 }
 0x550   :  { %3698 = vmatprep.subr.bf16.mxu0 %v18012_v18 }
 0x553   :  { %3699 = vmatpush1.bf16.msra.mxu0 %v18013_v55 }
 0x554   :  { %3700 = vmatprep.subr.bf16.mxu0 %v18014_v35 }
 0x557   :  { %3701 = vmatpush1.bf16.msra.mxu0 %v14519_v46  ;;  %v18017_v46 = vpack.c.bf16 %v14680_v0, %v14668_v53 }
 0x558   :  { %3723 = vmatprep.subr.bf16.mxu0 %v14522_v25  ;;  %v18020_v25 = vld [vmem:[#allocation64_spill] sm:$0xff] }
 0x55a   :  { %3703 = vmatmul.mubr.bf16.vlgmr.msra.gmra.mrb[72].mxu0 %v18015_v36 }
 0x55b   :  { %3724 = vmatpush1.bf16.msra.mxu0 %v14525_v20  ;;  %3712 = vmatprep.mubr.bf16.mxu0 %v18016_v21  ;;  %v18021_v20 = vld [vmem:[#allocation65_spill] sm:$0xff] }
 0x55c   :  { %3725 = vmatprep.subr.bf16.mxu0 %v14528_v19  ;;  %v18019_v19 = vld [vmem:[#allocation63_spill] sm:$0xff] }
 0x55f   :  { %3726 = vmatpush1.bf16.msra.mxu0 %v14534_v47  ;;  %v18018_v47 = vld [vmem:[#allocation62_spill] sm:$0xff] }
 0x560   :  { %3727 = vmatprep.subr.bf16.mxu0 %v14540_v7  ;;  %v18022_v7 = vld [vmem:[#allocation66_spill] sm:$0xff] }
 0x562   :  { %3713 = vmatmul.mubr.bf16.gmra.mrb[76].mxu0 %v18017_v46 }
 0x563   :  { %3728 = vmatpush1.bf16.msra.mxu0 %v14545_v45  ;;  %3755 = vmatprep.mubr.bf16.mxu0 %v3561_v60  ;;  %v18023_v45 = vld [vmem:[#allocation67_spill] sm:$0xff] }
 0x564   :  { %3729 = vmatprep.subr.bf16.mxu0 %v14548_v3  ;;  %v18024_v3 = vpack.c.bf16 %v14706_v1, %v18023_v45  ;;  %v14879_v45 = vld [vmem:[#allocation9 + $0x18] sm:$0xff]  }
 0x567   :  { %3730 = vmatpush1.bf16.msra.mxu0 %v14556_v38  ;;  %v2090_v38 = vld [vmem:[#allocation7] sm:$0xf] }
 0x568   :  { %3731 = vmatprep.subr.bf16.mxu0 %v14564_v41  ;;  %v18025_v41 = vld [vmem:[#allocation33_spill] sm:$0xff] }
 0x56b   :  { %3732 = vmatpush1.bf16.msra.mxu0 %v14573_v26  ;;  %v3259_v26 = vrot.slane %v2090_v38, %v18025_v41 }
 0x56c   :  { %3733 = vmatprep.subr.bf16.mxu0 %v14576_v4  ;;  %v18026_v4 = vld [vmem:[#allocation34_spill] sm:$0xff] }
 0x56f   :  { %3734 = vmatpush1.bf16.msra.mxu0 %v14581_v50  ;;  %v3263_v50 = vrot.slane %v2090_v38, %v18026_v4 }
 0x570   :  { %3735 = vmatprep.subr.bf16.mxu0 %v14586_v12  ;;  %v18027_v12 = vld [vmem:[#allocation35_spill] sm:$0xff] }
 0x573   :  { %3736 = vmatpush1.bf16.msra.mxu0 %v14599_v63  ;;  %v18028_v63 = vld [vmem:[#allocation36_spill] sm:$0xff] }
 0x574   :  { %3737 = vmatprep.subr.bf16.mxu0 %v14604_v31  ;;  %v14835_v31 = vrot.slane %v3259_v26, %v18025_v41  ;;  %v14889_v26 = vld [vmem:[#allocation10 + $0x10] ss:$8 sps:$4 sm:$0xff]  }
 0x577   :  { %3738 = vmatpush1.bf16.msra.mxu0 %v14609_v34  ;;  %v14838_v34 = vrot.slane %v3263_v50, %v18025_v41  ;;  %v14892_v50 = vld [vmem:[#allocation10 + $0x24] ss:$8 sps:$4 sm:$0xff]  }
 0x578   :  { %3739 = vmatprep.subr.bf16.mxu0 %v14614_v6 }
 0x57b   :  { %3740 = vmatpush1.bf16.msra.mxu0 %v14627_v59  ;;  %v3285_v59 = vrot.slane %v2090_v38, %v18027_v12 }
 0x57c   :  { %3741 = vmatprep.subr.bf16.mxu0 %v14632_v14 }
 0x57d   :  { %v14841_v58 = vrot.slane %v3285_v59, %v18027_v12  ;;  %v14895_v59 = vld [vmem:[#allocation10 + $0x20] ss:$8 sps:$4 sm:$0xff]  }
 0x57f   :  { %3742 = vmatpush1.bf16.msra.mxu0 %v14637_v43 }
 0x580   :  { %3743 = vmatprep.subr.bf16.mxu0 %v14640_v40 }
 0x583   :  { %3744 = vmatpush1.bf16.msra.mxu0 %v14645_v37  ;;  %v3289_v37 = vrot.slane %v2090_v38, %v18028_v63  ;;  %v14884_v38 = vld [vmem:[#allocation10 + $0x14] ss:$8 sps:$4 sm:$0xff]  }
 0x584   :  { %3745 = vmatprep.subr.bf16.mxu0 %v14648_v62 }
 0x585   :  { %v14844_v22 = vrot.slane %v3289_v37, %v18027_v12  ;;  %v14898_v37 = vld [vmem:[#allocation10 + $0x34] ss:$8 sps:$4 sm:$0xff]  }
 0x587   :  { %3746 = vmatpush1.bf16.msra.mxu0 %v14653_v9 }
 0x588   :  { %3747 = vmatprep.subr.bf16.mxu0 %v18018_v47 }
 0x58b   :  { %3748 = vmatpush1.bf16.msra.mxu0 %v18019_v19  ;;  %v14862_v19 = vld [vmem:[#allocation9] sm:$0xff]  }
 0x58c   :  { %3749 = vmatprep.subr.bf16.mxu0 %v18020_v25  ;;  %v14867_v25 = vld [vmem:[#allocation9 + $0x8] sm:$0xff]  }
 0x58f   :  { %3750 = vmatpush1.bf16.msra.mxu0 %v18021_v20  ;;  %v14872_v20 = vld [vmem:[#allocation9 + $0x10] sm:$0xff]  }
 0x590   :  { %3751 = vmatprep.subr.bf16.mxu0 %v14674_v2 }
 0x593   :  { %3752 = vmatpush1.bf16.msra.mxu0 %v18022_v7  ;;  %v14877_v7 = vld [vmem:[#allocation10 + $0x4] ss:$8 sps:$4 sm:$0xff]  }
 0x594   :  { %3753 = vmatprep.subr.bf16.mxu0 %v14692_v44 }
 0x597   :  { %3754 = vmatpush1.bf16.msra.mxu0 %v14699_v56 }
 0x59a   :  { %3756 = vmatmul.mubr.bf16.vlgmr.msra.gmra.mrb[72].mxu0 %v18024_v3  ;;  %v14881_v3 = vld [vmem:[#allocation10] ss:$8 sps:$4 sm:$0xff]  }
 0x59b   :  { %3765 = vmatprep.mubr.bf16.mxu0 %v3563_v10 }
 0x5a2   :  { %3766 = vmatmul.mubr.bf16.gmra.mrb[76].mxu0 %v3562_v13 }
 0x5a3   :  { %5121 = vmatprep.mubr.bf16.mxu0 %v17942_v24 }
 0x5ec   :  { %v3236_v6 = vpop.f32.mrb[88].mxu1 }
 0x5ed   :  { %v3274_v40 = vmul.f32 %v14835_v31, %v3236_v6  ;;  %v3238_v14 = vpop.f32.mrb[89].mxu1  ;;  %v14901_v6 = vld [vmem:[#allocation10 + $0x30] ss:$8 sps:$4 sm:$0xff]  }
 0x5ee   :  { %v3275_v43 = vmul.f32 %v14838_v34, %v3238_v14  ;;  %v3240_v62 = vpop.f32.mrb[90].mxu1  ;;  %v14907_v14 = vld [vmem:[#allocation10 + $0x40] ss:$8 sps:$4 sm:$0xff]  }
 0x5ef   :  { %v3300_v9 = vadd.f32 %v14841_v58, %v3274_v40  ;;  %v3276_v0 = vmul.f32 %v14835_v31, %v3240_v62  ;;  %v3242_v60 = vpop.f32.mrb[91].mxu1  ;;  %v14904_v40 = vld [vmem:[#allocation10 + $0x44] ss:$8 sps:$4 sm:$0xff]   ;;  %v14913_v62 = vld [vmem:[#allocation10 + $0x50] ss:$8 sps:$4 sm:$0xff]  }
 0x5f0   :  { %v3301_v1 = vadd.f32 %v14844_v22, %v3275_v43  ;;  %v3277_v53 = vmul.f32 %v14838_v34, %v3242_v60  ;;  %v14910_v43 = vld [vmem:[#allocation10 + $0x54] ss:$8 sps:$4 sm:$0xff]  }
 0x5f1   :  { %v3316_v2 = vmul.f32 0.2, %v3300_v9  ;;  %v3302_v23 = vadd.f32 %v14841_v58, %v3276_v0  ;;  %vm3308_vm0 = vcmp.ge.f32.partialorder %v3300_v9, 0.0  ;;  %v14919_v0 = vld [vmem:[#allocation10 + $0x60] ss:$8 sps:$4 sm:$0xff]  }
 0x5f2   :  { %v3317_v56 = vmul.f32 0.2, %v3301_v1  ;;  %v3303_v29 = vadd.f32 %v14844_v22, %v3277_v53  ;;  %vm3309_vm2 = vcmp.ge.f32.partialorder %v3301_v1, 0.0  ;;  %v14922_v60 = vld [vmem:[#allocation10 + $0x74] ss:$8 sps:$4 sm:$0xff]  }
 0x5f3   :  { %vm3310_vm3 = vcmp.ge.f32.partialorder %v3302_v23, 0.0  ;;  %v3318_v44 = vmul.f32 0.2, %v3302_v23  ;;  %v3324_v61 = vsel %vm3308_vm0, %v3300_v9, %v3316_v2  ;;  %v14916_v9 = vld [vmem:[#allocation10 + $0x64] ss:$8 sps:$4 sm:$0xff]  }
 0x5f4   :  { %vm3311_vm4 = vcmp.ge.f32.partialorder %v3303_v29, 0.0  ;;  %v3319_v48 = vmul.f32 0.2, %v3303_v29  ;;  %v3246_v30 = vpop.f32.mrb[92].mxu1  ;;  %v3325_v52 = vsel %vm3309_vm2, %v3301_v1, %v3317_v56  ;;  %v14925_v1 = vld [vmem:[#allocation10 + $0x70] ss:$8 sps:$4 sm:$0xff]  }
 0x5f5   :  { %v3326_v13 = vsel %vm3310_vm3, %v3302_v23, %v3318_v44  ;;  %v3278_v32 = vmul.f32 %v14835_v31, %v3246_v30  ;;  %v3248_v10 = vpop.f32.mrb[93].mxu1  ;;  %v14928_v53 = vld [vmem:[#allocation10 + $0x84] ss:$8 sps:$4 sm:$0xff]   ;;  %v14931_v2 = vld [vmem:[#allocation10 + $0x80] ss:$8 sps:$4 sm:$0xff]  }
 0x5f6   :  { %v3327_v5 = vsel %vm3311_vm4, %v3303_v29, %v3319_v48  ;;  %v3279_v15 = vmul.f32 %v14838_v34, %v3248_v10  ;;  %v3250_v54 = vpop.f32.mrb[94].mxu1  ;;  %v3332_v28 = vpack.c.bf16 %v3326_v13, %v3324_v61  ;;  %v14934_v23 = vld [vmem:[#allocation10 + $0x94] ss:$8 sps:$4 sm:$0xff]   ;;  %v14937_v56 = vld [vmem:[#allocation10 + $0x90] ss:$8 sps:$4 sm:$0xff]  }
 0x5f7   :  { %v3304_v42 = vadd.f32 %v14841_v58, %v3278_v32  ;;  %v3280_v8 = vmul.f32 %v14835_v31, %v3250_v54  ;;  %v3252_v49 = vpop.f32.mrb[95].mxu1  ;;  %v3333_v51 = vpack.c.bf16 %v3327_v5, %v3325_v52  ;;  %v14940_v29 = vld [vmem:[#allocation10 + $0xa4] ss:$8 sps:$4 sm:$0xff]   ;;  %v14943_v44 = vld [vmem:[#allocation10 + $0xa0] ss:$8 sps:$4 sm:$0xff]  }
 0x5f8   :  { %v3305_v11 = vadd.f32 %v14844_v22, %v3279_v15  ;;  %v3281_v17 = vmul.f32 %v14838_v34, %v3252_v49  ;;  %v14946_v48 = vld [vmem:[#allocation10 + $0xb4] ss:$8 sps:$4 sm:$0xff]   ;;  %v14949_v30 = vld [vmem:[#allocation10 + $0xb0] ss:$8 sps:$4 sm:$0xff]   ;;  %v14952_v61 = vld [vmem:[#allocation10 + $0xc4] ss:$8 sps:$4 sm:$0xff]  }
 0x5f9   :  { %v3320_v27 = vmul.f32 0.2, %v3304_v42  ;;  %v3306_v33 = vadd.f32 %v14841_v58, %v3280_v8  ;;  %3969 = vmatprep.subr.bf16.mxu1 %v3333_v51  ;;  %vm3312_vm5 = vcmp.ge.f32.partialorder %v3304_v42, 0.0  ;;  %v14955_v13 = vld [vmem:[#allocation10 + $0xc0] ss:$8 sps:$4 sm:$0xff]  }
 0x5fa   :  { %v3321_v39 = vmul.f32 0.2, %v3305_v11  ;;  %v3307_v16 = vadd.f32 %v14844_v22, %v3281_v17  ;;  %3970 = vmatpush1.bf16.msra.mxu1 %v3332_v28  ;;  %vm3313_vm6 = vcmp.ge.f32.partialorder %v3305_v11, 0.0  ;;  %v14958_v32 = vld [vmem:[#allocation10 + $0xd4] ss:$8 sps:$4 sm:$0xff]  }
 0x5fb   :  { %vm3314_vm7 = vcmp.ge.f32.partialorder %v3306_v33, 0.0  ;;  %v3322_v57 = vmul.f32 0.2, %v3306_v33  ;;  %v3328_v55 = vsel %vm3312_vm5, %v3304_v42, %v3320_v27  ;;  %v14961_v10 = vld [vmem:[#allocation10 + $0xd0] ss:$8 sps:$4 sm:$0xff]  }
 0x5fc   :  { %vm3315_vm8 = vcmp.ge.f32.partialorder %v3307_v16, 0.0  ;;  %v3323_v18 = vmul.f32 0.2, %v3307_v16  ;;  %v3329_v36 = vsel %vm3313_vm6, %v3305_v11, %v3321_v39  ;;  %v14964_v52 = vld [vmem:[#allocation10 + $0xe4] ss:$8 sps:$4 sm:$0xff]   ;;  %vm5554_vm6 = vcmask 130048  }
 0x5fd   :  { %v3330_v35 = vsel %vm3314_vm7, %v3306_v33, %v3322_v57  ;;  %v14967_v5 = vld [vmem:[#allocation10 + $0xe0] ss:$8 sps:$4 sm:$0xff]   ;;  %v14971_v15 = vld [vmem:[#allocation10 + $0xf4] ss:$8 sps:$4 sm:$0xff]   ;;  %v14973_v54 = vld [vmem:[#allocation10 + $0xf0] ss:$8 sps:$4 sm:$0xff]  }
 0x5fe   :  { %v3331_v21 = vsel %vm3315_vm8, %v3307_v16, %v3323_v18  ;;  %v3334_v46 = vpack.c.bf16 %v3330_v35, %v3328_v55 }
 0x5ff   :  { %v3335_v47 = vpack.c.bf16 %v3331_v21, %v3329_v36 }
 0x601   :  { %3971 = vmatprep.subr.bf16.mxu1 %v3335_v47 }
 0x602   :  { %3972 = vmatpush1.bf16.msra.mxu1 %v3334_v46 }
 0x603   :  { %4022 = vmatprep.subr.bf16.mxu1 %v3333_v51 }
 0x605   :  { %10397 = vmatmul.mubr.msk.bf16.vlgmr.msra.gmra.mrb[96].mxu1 %vm3965_vm9, %v14862_v19 }
 0x606   :  { %4023 = vmatpush1.bf16.msra.mxu1 %v3332_v28  ;;  %4054 = vmatprep.mubr.bf16.mxu1 %v17942_v24 }
 0x607   :  { %4024 = vmatprep.subr.bf16.mxu1 %v3335_v47 }
 0x60a   :  { %4025 = vmatpush1.bf16.msra.mxu1 %v3334_v46 }
 0x60b   :  { %4075 = vmatprep.subr.bf16.mxu1 %v3333_v51 }
 0x60d   :  { %10399 = vmatmul.mubr.msk.bf16.vlgmr.msra.gmra.mrb[100].mxu1 %vm3965_vm9, %v14867_v25 }
 0x60e   :  { %4076 = vmatpush1.bf16.msra.mxu1 %v3332_v28  ;;  %4107 = vmatprep.mubr.bf16.mxu1 %v17942_v24 }
 0x60f   :  { %4077 = vmatprep.subr.bf16.mxu1 %v3335_v47 }
 0x612   :  { %4078 = vmatpush1.bf16.msra.mxu1 %v3334_v46 }
 0x613   :  { %4128 = vmatprep.subr.bf16.mxu1 %v3333_v51 }
 0x615   :  { %10401 = vmatmul.mubr.msk.bf16.vlgmr.msra.gmra.mrb[104].mxu1 %vm3965_vm9, %v14872_v20 }
 0x616   :  { %4129 = vmatpush1.bf16.msra.mxu1 %v3332_v28  ;;  %4160 = vmatprep.mubr.bf16.mxu1 %v17942_v24  ;;  %v14977_v28 = vld [vmem:[#allocation10 + $0x104] ss:$8 sps:$4 sm:$0xff]  }
 0x617   :  { %4130 = vmatprep.subr.bf16.mxu1 %v3335_v47 }
 0x61a   :  { %4131 = vmatpush1.bf16.msra.mxu1 %v3334_v46 }
 0x61b   :  { %4813 = vmatprep.subr.bf16.mxu1 %v14877_v7 }
 0x61d   :  { %10403 = vmatmul.mubr.msk.bf16.vlgmr.msra.gmra.mrb[108].mxu1 %vm3965_vm9, %v14879_v45 }
 0x61e   :  { %4814 = vmatpush1.bf16.msra.mxu1 %v14881_v3 }
 0x61f   :  { %4815 = vmatprep.subr.bf16.mxu1 %v14884_v38 }
 0x622   :  { %4816 = vmatpush1.bf16.msra.mxu1 %v14889_v26 }
 0x623   :  { %4817 = vmatprep.subr.bf16.mxu1 %v14892_v50 }
 0x626   :  { %4818 = vmatpush1.bf16.msra.mxu1 %v14895_v59 }
 0x627   :  { %4819 = vmatprep.subr.bf16.mxu1 %v14898_v37 }
 0x62a   :  { %4820 = vmatpush1.bf16.msra.mxu1 %v14901_v6 }
 0x62b   :  { %4821 = vmatprep.subr.bf16.mxu1 %v14904_v40 }
 0x62e   :  { %4822 = vmatpush1.bf16.msra.mxu1 %v14907_v14 }
 0x62f   :  { %4823 = vmatprep.subr.bf16.mxu1 %v14910_v43 }
 0x632   :  { %4824 = vmatpush1.bf16.msra.mxu1 %v14913_v62 }
 0x633   :  { %4825 = vmatprep.subr.bf16.mxu1 %v14916_v9 }
 0x636   :  { %4826 = vmatpush1.bf16.msra.mxu1 %v14919_v0 }
 0x637   :  { %4827 = vmatprep.subr.bf16.mxu1 %v14922_v60 }
 0x63a   :  { %4828 = vmatpush1.bf16.msra.mxu1 %v14925_v1 }
 0x63b   :  { %4829 = vmatprep.subr.bf16.mxu1 %v14928_v53 }
 0x63e   :  { %4830 = vmatpush1.bf16.msra.mxu1 %v14931_v2 }
 0x63f   :  { %4831 = vmatprep.subr.bf16.mxu1 %v14934_v23 }
 0x642   :  { %4832 = vmatpush1.bf16.msra.mxu1 %v14937_v56 }
 0x643   :  { %4833 = vmatprep.subr.bf16.mxu1 %v14940_v29 }
 0x646   :  { %4834 = vmatpush1.bf16.msra.mxu1 %v14943_v44 }
 0x647   :  { %4835 = vmatprep.subr.bf16.mxu1 %v14946_v48 }
 0x64a   :  { %4836 = vmatpush1.bf16.msra.mxu1 %v14949_v30 }
 0x64b   :  { %4837 = vmatprep.subr.bf16.mxu1 %v14952_v61 }
 0x64e   :  { %4838 = vmatpush1.bf16.msra.mxu1 %v14955_v13 }
 0x64f   :  { %4839 = vmatprep.subr.bf16.mxu1 %v14958_v32 }
 0x652   :  { %4840 = vmatpush1.bf16.msra.mxu1 %v14961_v10 }
 0x653   :  { %4841 = vmatprep.subr.bf16.mxu1 %v14964_v52 }
 0x656   :  { %4842 = vmatpush1.bf16.msra.mxu1 %v14967_v5 }
 0x657   :  { %4843 = vmatprep.subr.bf16.mxu1 %v14971_v15 }
 0x65a   :  { %4844 = vmatpush1.bf16.msra.mxu1 %v14973_v54 }
 0x65b   :  { %4856 = vmatprep.subr.bf16.mxu1 %v14977_v28 }
 0x66d   :  { %v3757_v42 = vpop.f32.mrb[72].mxu0 }
 0x66e   :  { %v3776_v8 = vmul.f32 %v3757_v42, %v14835_v31  ;;  %v3759_v49 = vpop.f32.mrb[73].mxu0 }
 0x66f   :  { %v3777_v51 = vmul.f32 %v3759_v49, %v14838_v34  ;;  %v3761_v11 = vpop.f32.mrb[74].mxu0 }
 0x670   :  { %v3784_v17 = vadd.f32 %v3776_v8, %v14841_v58  ;;  %v3778_v27 = vmul.f32 %v3761_v11, %v14835_v31  ;;  %v3763_v33 = vpop.f32.mrb[75].mxu0 }
 0x671   :  { %v3785_v39 = vadd.f32 %v3777_v51, %v14844_v22  ;;  %v3779_v16 = vmul.f32 %v3763_v33, %v14838_v34 }
 0x672   :  { %vm3792_vm10 = vcmp.ge.f32.partialorder %v3784_v17, 0.0  ;;  %v3800_v57 = vmul.f32 0.2, %v3784_v17  ;;  %v3786_v18 = vadd.f32 %v3778_v27, %v14841_v58 }
 0x673   :  { %vm3793_vm11 = vcmp.ge.f32.partialorder %v3785_v39, 0.0  ;;  %v3801_v55 = vmul.f32 0.2, %v3785_v39  ;;  %v3787_v35 = vadd.f32 %v3779_v16, %v14844_v22 }
 0x674   :  { %v3808_v36 = vsel %vm3792_vm10, %v3784_v17, %v3800_v57  ;;  %vm3794_vm12 = vcmp.ge.f32.partialorder %v3786_v18, 0.0  ;;  %v3802_v21 = vmul.f32 0.2, %v3786_v18 }
 0x675   :  { %v3809_v46 = vsel %vm3793_vm11, %v3785_v39, %v3801_v55  ;;  %vm3795_vm13 = vcmp.ge.f32.partialorder %v3787_v35, 0.0  ;;  %v3803_v47 = vmul.f32 0.2, %v3787_v35  ;;  %v3767_v42 = vpop.f32.mrb[76].mxu0 }
 0x676   :  { %v3810_v8 = vsel %vm3794_vm12, %v3786_v18, %v3802_v21  ;;  %v3780_v49 = vmul.f32 %v3767_v42, %v14835_v31  ;;  %v3769_v51 = vpop.f32.mrb[77].mxu0 }
 0x677   :  { %v3811_v11 = vsel %vm3795_vm13, %v3787_v35, %v3803_v47  ;;  %v3781_v33 = vmul.f32 %v3769_v51, %v14838_v34  ;;  %v3771_v63 = vpop.f32.mrb[78].mxu0  ;;  %v14990_v27 = vpack.c.bf16 %v3810_v8, %v3808_v36  ;;  %v15131_v51 = vld [vmem:[#allocation10 + $0x184] ss:$8 sps:$4 sm:$0xff]   ;;  %vm7080_vm13 = vcmask 1043456  }
 0x678   :  { %v3788_v12 = vadd.f32 %v3780_v49, %v14841_v58  ;;  %v3782_v17 = vmul.f32 %v3771_v63, %v14835_v31  ;;  %v3773_v16 = vpop.f32.mrb[79].mxu0  ;;  %v14994_v57 = vpack.c.bf16 %v3811_v11, %v3809_v46  ;;  %v15134_v11 = vld [vmem:[#allocation10 + $0x180] ss:$8 sps:$4 sm:$0xff]  }
 0x679   :  { %v3789_v39 = vadd.f32 %v3781_v33, %v14844_v22  ;;  %v3783_v18 = vmul.f32 %v3773_v16, %v14838_v34  ;;  %v15137_v33 = vld [vmem:[#allocation10 + $0x194] ss:$8 sps:$4 sm:$0xff]   ;;  %v15143_v16 = vld [vmem:[#allocation10 + $0x1a4] ss:$8 sps:$4 sm:$0xff]  }
 0x67a   :  { %vm3796_vm14 = vcmp.ge.f32.partialorder %v3788_v12, 0.0  ;;  %v3804_v55 = vmul.f32 0.2, %v3788_v12  ;;  %v3790_v35 = vadd.f32 %v3782_v17, %v14841_v58  ;;  %5089 = vmatprep.subr.bf16.mxu0 %v14994_v57  ;;  %v15140_v17 = vld [vmem:[#allocation10 + $0x190] ss:$8 sps:$4 sm:$0xff]  }
 0x67b   :  { %vm3797_vm15 = vcmp.ge.f32.partialorder %v3789_v39, 0.0  ;;  %v3805_v36 = vmul.f32 0.2, %v3789_v39  ;;  %v3791_v21 = vadd.f32 %v3783_v18, %v14844_v22  ;;  %5090 = vmatpush1.bf16.msra.mxu0 %v14990_v27  ;;  %v15149_v18 = vld [vmem:[#allocation10 + $0x1b4] ss:$8 sps:$4 sm:$0xff]  }
 0x67c   :  { %v3812_v63 = vsel %vm3796_vm14, %v3788_v12, %v3804_v55  ;;  %vm3798_vm1 = vcmp.ge.f32.partialorder %v3790_v35, 0.0  ;;  %v3806_v31 = vmul.f32 0.2, %v3790_v35  ;;  %v15152_v55 = vld [vmem:[#allocation10 + $0x1b0] ss:$8 sps:$4 sm:$0xff]   ;;  %vm7076_vm14 = vcmask 64512  }
 0x67d   :  { %v3813_v46 = vsel %vm3797_vm15, %v3789_v39, %v3805_v36  ;;  %vm3799_vm0 = vcmp.ge.f32.partialorder %v3791_v21, 0.0  ;;  %v3807_v47 = vmul.f32 0.2, %v3791_v21  ;;  %v15146_v39 = vld [vmem:[#allocation10 + $0x1a0] ss:$8 sps:$4 sm:$0xff]  }
 0x67e   :  { %v3814_v42 = vsel %vm3798_vm1, %v3790_v35, %v3806_v31  ;;  %v15155_v35 = vld [vmem:[#allocation10 + $0x1c4] ss:$8 sps:$4 sm:$0xff]   ;;  %v15158_v36 = vld [vmem:[#allocation10 + $0x1c0] ss:$8 sps:$4 sm:$0xff]  }
 0x67f   :  { %v3815_v34 = vsel %vm3799_vm0, %v3791_v21, %v3807_v47  ;;  %v15002_v8 = vpack.c.bf16 %v3814_v42, %v3812_v63  ;;  %v15161_v21 = vld [vmem:[#allocation10 + $0x1d4] ss:$8 sps:$4 sm:$0xff]   ;;  %v15164_v63 = vld [vmem:[#allocation10 + $0x1d0] ss:$8 sps:$4 sm:$0xff]   ;;  %v15167_v31 = vld [vmem:[#allocation10 + $0x1e4] ss:$8 sps:$4 sm:$0xff]  }
 0x680   :  { %v15004_v49 = vpack.c.bf16 %v3815_v34, %v3813_v46  ;;  %v15170_v46 = vld [vmem:[#allocation10 + $0x1e0] ss:$8 sps:$4 sm:$0xff]   ;;  %v15173_v47 = vld [vmem:[#allocation10 + $0x1f4] ss:$8 sps:$4 sm:$0xff]   ;;  %v15176_v42 = vld [vmem:[#allocation10 + $0x1f0] ss:$8 sps:$4 sm:$0xff]  }
 0x681   :  { %v15179_v34 = vld [vmem:[#allocation10 + $0x204] ss:$8 sps:$4 sm:$0xff]  }
 0x682   :  { %5091 = vmatprep.subr.bf16.mxu0 %v15004_v49 }
 0x683   :  { %5092 = vmatpush1.bf16.msra.mxu0 %v15002_v8 }
 0x684   :  { %5134 = vmatprep.subr.bf16.mxu0 %v14994_v57 }
 0x686   :  { %10533 = vmatmul.mubr.msk.bf16.vlgmr.msra.gmra.mrb[80].mxu0 %vm3965_vm9, %v14867_v25 }
 0x687   :  { %5135 = vmatpush1.bf16.msra.mxu0 %v14990_v27  ;;  %5166 = vmatprep.mubr.bf16.mxu0 %v17942_v24 }
 0x688   :  { %5136 = vmatprep.subr.bf16.mxu0 %v15004_v49 }
 0x68b   :  { %5137 = vmatpush1.bf16.msra.mxu0 %v15002_v8 }
 0x68c   :  { %5179 = vmatprep.subr.bf16.mxu0 %v14994_v57 }
 0x68e   :  { %10534 = vmatmul.mubr.msk.bf16.vlgmr.msra.gmra.mrb[84].mxu0 %vm3965_vm9, %v14872_v20 }
 0x68f   :  { %5180 = vmatpush1.bf16.msra.mxu0 %v14990_v27  ;;  %5211 = vmatprep.mubr.bf16.mxu0 %v17942_v24 }
 0x690   :  { %5181 = vmatprep.subr.bf16.mxu0 %v15004_v49 }
 0x693   :  { %5182 = vmatpush1.bf16.msra.mxu0 %v15002_v8 }
 0x694   :  { %5224 = vmatprep.subr.bf16.mxu0 %v14877_v7 }
 0x696   :  { %10535 = vmatmul.mubr.msk.bf16.vlgmr.msra.gmra.mrb[88].mxu0 %vm3965_vm9, %v14879_v45  ;;  %v15057_v45 = vld [vmem:[#allocation10 + $0x100] ss:$8 sps:$4 sm:$0xff]  }
 0x697   :  { %5225 = vmatpush1.bf16.msra.mxu0 %v14881_v3  ;;  %v15059_v3 = vld [vmem:[#allocation10 + $0x114] ss:$8 sps:$4 sm:$0xff]  }
 0x698   :  { %5226 = vmatprep.subr.bf16.mxu0 %v14884_v38  ;;  %v15062_v38 = vld [vmem:[#allocation10 + $0x110] ss:$8 sps:$4 sm:$0xff]  }
 0x69b   :  { %5227 = vmatpush1.bf16.msra.mxu0 %v14889_v26 }
 0x69c   :  { %5228 = vmatprep.subr.bf16.mxu0 %v14892_v50  ;;  %v15067_v50 = vld [vmem:[#allocation10 + $0x124] ss:$8 sps:$4 sm:$0xff]  }
 0x69f   :  { %5229 = vmatpush1.bf16.msra.mxu0 %v14895_v59 }
 0x6a0   :  { %5230 = vmatprep.subr.bf16.mxu0 %v14898_v37 }
 0x6a3   :  { %5231 = vmatpush1.bf16.msra.mxu0 %v14901_v6 }
 0x6a4   :  { %5232 = vmatprep.subr.bf16.mxu0 %v14904_v40 }
 0x6a7   :  { %5233 = vmatpush1.bf16.msra.mxu0 %v14907_v14  ;;  %v15074_v14 = vld [vmem:[#allocation10 + $0x120] ss:$8 sps:$4 sm:$0xff]  }
 0x6a8   :  { %5234 = vmatprep.subr.bf16.mxu0 %v14910_v43 }
 0x6ab   :  { %5235 = vmatpush1.bf16.msra.mxu0 %v14913_v62  ;;  %v15077_v62 = vld [vmem:[#allocation10 + $0x134] ss:$8 sps:$4 sm:$0xff]  }
 0x6ac   :  { %5236 = vmatprep.subr.bf16.mxu0 %v14916_v9  ;;  %v15080_v9 = vld [vmem:[#allocation10 + $0x130] ss:$8 sps:$4 sm:$0xff]  }
 0x6af   :  { %5237 = vmatpush1.bf16.msra.mxu0 %v14919_v0 }
 0x6b0   :  { %5238 = vmatprep.subr.bf16.mxu0 %v14922_v60  ;;  %v15085_v60 = vld [vmem:[#allocation10 + $0x144] ss:$8 sps:$4 sm:$0xff]  }
 0x6b3   :  { %5239 = vmatpush1.bf16.msra.mxu0 %v14925_v1 }
 0x6b4   :  { %5240 = vmatprep.subr.bf16.mxu0 %v14928_v53 }
 0x6b7   :  { %5241 = vmatpush1.bf16.msra.mxu0 %v14931_v2  ;;  %v15236_v2 = vld [vmem:[#allocation10 + $0x294] ss:$8 sps:$4 sm:$0xff]  }
 0x6b8   :  { %5242 = vmatprep.subr.bf16.mxu0 %v14934_v23  ;;  %18044 = vst [vmem:[#allocation52_spill] sm:$0xff] %v15236_v2 }
 0x6bb   :  { %5243 = vmatpush1.bf16.msra.mxu0 %v14937_v56  ;;  %v15096_v56 = vld [vmem:[#allocation10 + $0x140] ss:$8 sps:$4 sm:$0xff]  }
 0x6bc   :  { %5244 = vmatprep.subr.bf16.mxu0 %v14940_v29 }
 0x6bf   :  { %5245 = vmatpush1.bf16.msra.mxu0 %v14943_v44  ;;  %v15101_v44 = vld [vmem:[#allocation10 + $0x154] ss:$8 sps:$4 sm:$0xff]  }
 0x6c0   :  { %5246 = vmatprep.subr.bf16.mxu0 %v14946_v48  ;;  %v15104_v48 = vld [vmem:[#allocation10 + $0x150] ss:$8 sps:$4 sm:$0xff]  }
 0x6c3   :  { %5247 = vmatpush1.bf16.msra.mxu0 %v14949_v30 }
 0x6c4   :  { %5248 = vmatprep.subr.bf16.mxu0 %v14952_v61  ;;  %v15109_v61 = vld [vmem:[#allocation10 + $0x164] ss:$8 sps:$4 sm:$0xff]  }
 0x6c7   :  { %5249 = vmatpush1.bf16.msra.mxu0 %v14955_v13 }
 0x6c8   :  { %5250 = vmatprep.subr.bf16.mxu0 %v14958_v32 }
 0x6cb   :  { %5251 = vmatpush1.bf16.msra.mxu0 %v14961_v10  ;;  %v15230_v10 = vld [vmem:[#allocation10 + $0x284] ss:$8 sps:$4 sm:$0xff]  }
 0x6cc   :  { %5252 = vmatprep.subr.bf16.mxu0 %v14964_v52  ;;  %18042 = vst [vmem:[#allocation50_spill] sm:$0xff] %v15230_v10 }
 0x6cf   :  { %5253 = vmatpush1.bf16.msra.mxu0 %v14967_v5  ;;  %v15120_v5 = vld [vmem:[#allocation10 + $0x160] ss:$8 sps:$4 sm:$0xff]  }
 0x6d0   :  { %5254 = vmatprep.subr.bf16.mxu0 %v14971_v15  ;;  %v15233_v15 = vld [vmem:[#allocation10 + $0x280] ss:$8 sps:$4 sm:$0xff]  }
 0x6d1   :  { %18043 = vst [vmem:[#allocation51_spill] sm:$0xff] %v15233_v15 }
 0x6d3   :  { %5255 = vmatpush1.bf16.msra.mxu0 %v14973_v54  ;;  %v15125_v54 = vld [vmem:[#allocation10 + $0x174] ss:$8 sps:$4 sm:$0xff]  }
 0x6d4   :  { %5267 = vmatprep.subr.bf16.mxu0 %v14977_v28  ;;  %v15128_v28 = vld [vmem:[#allocation10 + $0x170] ss:$8 sps:$4 sm:$0xff]  }
 0x6d8   :  { %v4003_v12 = vpop.f32.mrb[96].mxu1 }
 0x6d9   :  { %v4005_v58 = vpop.f32.mrb[97].mxu1 }
 0x6da   :  { %v4007_v22 = vpop.f32.mrb[98].mxu1 }
 0x6db   :  { %v4012_v25 = vpack.c.bf16 %v4007_v22, %v4003_v12  ;;  %v4009_v20 = vpop.f32.mrb[99].mxu1  ;;  %v15182_v12 = vld [vmem:[#allocation10 + $0x200] ss:$8 sps:$4 sm:$0xff]   ;;  %v15191_v22 = vld [vmem:[#allocation10 + $0x210] ss:$8 sps:$4 sm:$0xff]  }
 0x6dc   :  { %v4013_v7 = vpack.c.bf16 %v4009_v20, %v4005_v58  ;;  %v15185_v58 = vld [vmem:[#allocation10 + $0x214] ss:$8 sps:$4 sm:$0xff]   ;;  %18029 = vst [vmem:[#allocation37_spill] sm:$0xff] %v15191_v22  ;;  %v15197_v20 = vld [vmem:[#allocation10 + $0x220] ss:$8 sps:$4 sm:$0xff]  }
 0x6dd   :  { %18031 = vst [vmem:[#allocation39_spill] sm:$0xff] %v15197_v20 }
 0x6de   :  { %4845 = vmatprep.mubr.bf16.mxu1 %v4013_v7  ;;  %v15200_v7 = vld [vmem:[#allocation10 + $0x234] ss:$8 sps:$4 sm:$0xff]  }
 0x6df   :  { %4846 = vmatmul.mubr.bf16.vlgmr.msra.gmra.mrb[112].mxu1 %v4012_v25  ;;  %v15194_v25 = vld [vmem:[#allocation10 + $0x224] ss:$8 sps:$4 sm:$0xff]   ;;  %18032 = vst [vmem:[#allocation40_spill] sm:$0xff] %v15200_v7 }
 0x6e0   :  { %4857 = vmatpush1.bf16.msra.mxu1 %v15057_v45  ;;  %v15064_v26 = vpop.f32.mrb[100].mxu1  ;;  %18030 = vst [vmem:[#allocation38_spill] sm:$0xff] %v15194_v25 }
 0x6e1   :  { %4858 = vmatprep.subr.bf16.mxu1 %v15059_v3  ;;  %v4058_v59 = vpop.f32.mrb[101].mxu1 }
 0x6e2   :  { %v15069_v37 = vpop.f32.mrb[102].mxu1 }
 0x6e3   :  { %v4065_v6 = vpack.c.bf16 %v15069_v37, %v15064_v26  ;;  %v4062_v40 = vpop.f32.mrb[103].mxu1  ;;  %v15203_v26 = vld [vmem:[#allocation10 + $0x230] ss:$8 sps:$4 sm:$0xff]   ;;  %v15209_v37 = vld [vmem:[#allocation10 + $0x240] ss:$8 sps:$4 sm:$0xff]  }
 0x6e4   :  { %4859 = vmatpush1.bf16.msra.mxu1 %v15062_v38  ;;  %v4066_v43 = vpack.c.bf16 %v4062_v40, %v4058_v59  ;;  %18033 = vst [vmem:[#allocation41_spill] sm:$0xff] %v15203_v26  ;;  %v15206_v59 = vld [vmem:[#allocation10 + $0x244] ss:$8 sps:$4 sm:$0xff]   ;;  %18035 = vst [vmem:[#allocation43_spill] sm:$0xff] %v15209_v37  ;;  %v15215_v40 = vld [vmem:[#allocation10 + $0x250] ss:$8 sps:$4 sm:$0xff]  }
 0x6e5   :  { %4860 = vmatprep.subr.bf16.mxu1 %v15067_v50  ;;  %18034 = vst [vmem:[#allocation42_spill] sm:$0xff] %v15206_v59  ;;  %18037 = vst [vmem:[#allocation45_spill] sm:$0xff] %v15215_v40 }
 0x6e6   :  { %4888 = vmatprep.mubr.bf16.mxu1 %v4066_v43  ;;  %v15218_v43 = vld [vmem:[#allocation10 + $0x264] ss:$8 sps:$4 sm:$0xff]  }
 0x6e7   :  { %18038 = vst [vmem:[#allocation46_spill] sm:$0xff] %v15218_v43 }
 0x6e8   :  { %4861 = vmatpush1.bf16.msra.mxu1 %v15074_v14  ;;  %v15082_v0 = vpop.f32.mrb[104].mxu1 }
 0x6e9   :  { %4862 = vmatprep.subr.bf16.mxu1 %v15077_v62  ;;  %v15087_v1 = vpop.f32.mrb[105].mxu1 }
 0x6ea   :  { %v15089_v53 = vpop.f32.mrb[106].mxu1 }
 0x6eb   :  { %v15093_v23 = vpop.f32.mrb[107].mxu1 }
 0x6ec   :  { %4863 = vmatpush1.bf16.msra.mxu1 %v15080_v9  ;;  %v4119_v29 = vpack.c.bf16 %v15093_v23, %v15087_v1  ;;  %v15221_v1 = vld [vmem:[#allocation10 + $0x260] ss:$8 sps:$4 sm:$0xff]   ;;  %v15224_v23 = vld [vmem:[#allocation10 + $0x274] ss:$8 sps:$4 sm:$0xff]  }
 0x6ed   :  { %4864 = vmatprep.subr.bf16.mxu1 %v15085_v60  ;;  %18039 = vst [vmem:[#allocation47_spill] sm:$0xff] %v15221_v1  ;;  %18040 = vst [vmem:[#allocation48_spill] sm:$0xff] %v15224_v23 }
 0x6f0   :  { %4865 = vmatpush1.bf16.msra.mxu1 %v15096_v56  ;;  %v15106_v30 = vpop.f32.mrb[108].mxu1 }
 0x6f1   :  { %4866 = vmatprep.subr.bf16.mxu1 %v15101_v44  ;;  %v15111_v13 = vpop.f32.mrb[109].mxu1 }
 0x6f2   :  { %v15113_v32 = vpop.f32.mrb[110].mxu1 }
 0x6f3   :  { %v15117_v52 = vpop.f32.mrb[111].mxu1 }
 0x6f4   :  { %4867 = vmatpush1.bf16.msra.mxu1 %v15104_v48 }
 0x6f5   :  { %4868 = vmatprep.subr.bf16.mxu1 %v15109_v61 }
 0x6f8   :  { %4869 = vmatpush1.bf16.msra.mxu1 %v15120_v5 }
 0x6f9   :  { %4870 = vmatprep.subr.bf16.mxu1 %v15125_v54 }
 0x6fc   :  { %4871 = vmatpush1.bf16.msra.mxu1 %v15128_v28 }
 0x6fd   :  { %4872 = vmatprep.subr.bf16.mxu1 %v15131_v51 }
 0x700   :  { %4873 = vmatpush1.bf16.msra.mxu1 %v15134_v11 }
 0x701   :  { %4874 = vmatprep.subr.bf16.mxu1 %v15137_v33 }
 0x704   :  { %4875 = vmatpush1.bf16.msra.mxu1 %v15140_v17 }
 0x705   :  { %4876 = vmatprep.subr.bf16.mxu1 %v15143_v16 }
 0x708   :  { %4877 = vmatpush1.bf16.msra.mxu1 %v15146_v39 }
 0x709   :  { %4878 = vmatprep.subr.bf16.mxu1 %v15149_v18 }
 0x70c   :  { %4879 = vmatpush1.bf16.msra.mxu1 %v15152_v55 }
 0x70d   :  { %4880 = vmatprep.subr.bf16.mxu1 %v15155_v35 }
 0x710   :  { %4881 = vmatpush1.bf16.msra.mxu1 %v15158_v36 }
 0x711   :  { %4882 = vmatprep.subr.bf16.mxu1 %v15161_v21 }
 0x714   :  { %4883 = vmatpush1.bf16.msra.mxu1 %v15164_v63 }
 0x715   :  { %4884 = vmatprep.subr.bf16.mxu1 %v15167_v31 }
 0x718   :  { %4885 = vmatpush1.bf16.msra.mxu1 %v15170_v46 }
 0x719   :  { %4886 = vmatprep.subr.bf16.mxu1 %v15173_v47 }
 0x71c   :  { %4887 = vmatpush1.bf16.msra.mxu1 %v15176_v42 }
 0x71d   :  { %4899 = vmatprep.subr.bf16.mxu1 %v15179_v34 }
 0x71f   :  { %4889 = vmatmul.mubr.bf16.vlgmr.msra.gmra.mrb[112].mxu1 %v4065_v6  ;;  %v15212_v6 = vld [vmem:[#allocation10 + $0x254] ss:$8 sps:$4 sm:$0xff]  }
 0x720   :  { %4900 = vmatpush1.bf16.msra.mxu1 %v15182_v12  ;;  %4931 = vmatprep.mubr.bf16.mxu1 %v4119_v29  ;;  %18036 = vst [vmem:[#allocation44_spill] sm:$0xff] %v15212_v6  ;;  %v15227_v29 = vld [vmem:[#allocation10 + $0x270] ss:$8 sps:$4 sm:$0xff]  }
 0x721   :  { %4901 = vmatprep.subr.bf16.mxu1 %v15185_v58  ;;  %18041 = vst [vmem:[#allocation49_spill] sm:$0xff] %v15227_v29 }
 0x724   :  { %4902 = vmatpush1.bf16.msra.mxu1 %v15191_v22 }
 0x725   :  { %4903 = vmatprep.subr.bf16.mxu1 %v15194_v25 }
 0x728   :  { %4904 = vmatpush1.bf16.msra.mxu1 %v15197_v20 }
 0x729   :  { %4905 = vmatprep.subr.bf16.mxu1 %v15200_v7 }
 0x72c   :  { %4906 = vmatpush1.bf16.msra.mxu1 %v15203_v26 }
 0x72d   :  { %4907 = vmatprep.subr.bf16.mxu1 %v15206_v59 }
 0x730   :  { %4908 = vmatpush1.bf16.msra.mxu1 %v15209_v37 }
 0x731   :  { %4909 = vmatprep.subr.bf16.mxu1 %v15212_v6 }
 0x734   :  { %4910 = vmatpush1.bf16.msra.mxu1 %v15215_v40 }
 0x735   :  { %4911 = vmatprep.subr.bf16.mxu1 %v15218_v43  ;;  %v15239_v43 = vld [vmem:[#allocation10 + $0x290] ss:$8 sps:$4 sm:$0xff]  }
 0x736   :  { %18045 = vst [vmem:[#allocation53_spill] sm:$0xff] %v15239_v43 }
 0x738   :  { %4912 = vmatpush1.bf16.msra.mxu1 %v15221_v1  ;;  %v15242_v1 = vld [vmem:[#allocation10 + $0x2a4] ss:$8 sps:$4 sm:$0xff]  }
 0x739   :  { %4913 = vmatprep.subr.bf16.mxu1 %v15224_v23  ;;  %18046 = vst [vmem:[#allocation54_spill] sm:$0xff] %v15242_v1  ;;  %v15245_v23 = vld [vmem:[#allocation10 + $0x2a0] ss:$8 sps:$4 sm:$0xff]  }
 0x73a   :  { %18047 = vst [vmem:[#allocation55_spill] sm:$0xff] %v15245_v23 }
 0x73c   :  { %4914 = vmatpush1.bf16.msra.mxu1 %v15227_v29  ;;  %v15248_v29 = vld [vmem:[#allocation10 + $0x2b4] ss:$8 sps:$4 sm:$0xff]  }
 0x73d   :  { %4915 = vmatprep.subr.bf16.mxu1 %v15230_v10  ;;  %18048 = vst [vmem:[#allocation56_spill] sm:$0xff] %v15248_v29  ;;  %v15251_v10 = vld [vmem:[#allocation10 + $0x2b0] ss:$8 sps:$4 sm:$0xff]  }
 0x73e   :  { %18049 = vst [vmem:[#allocation57_spill] sm:$0xff] %v15251_v10 }
 0x740   :  { %4916 = vmatpush1.bf16.msra.mxu1 %v15233_v15  ;;  %v15254_v15 = vld [vmem:[#allocation10 + $0x2c4] ss:$8 sps:$4 sm:$0xff]  }
 0x741   :  { %4917 = vmatprep.subr.bf16.mxu1 %v15236_v2  ;;  %18050 = vst [vmem:[#allocation58_spill] sm:$0xff] %v15254_v15  ;;  %v15257_v2 = vld [vmem:[#allocation10 + $0x2c0] ss:$8 sps:$4 sm:$0xff]  }
 0x742   :  { %18051 = vst [vmem:[#allocation59_spill] sm:$0xff] %v15257_v2 }
 0x744   :  { %4918 = vmatpush1.bf16.msra.mxu1 %v15239_v43  ;;  %v15260_v43 = vld [vmem:[#allocation10 + $0x2d4] ss:$8 sps:$4 sm:$0xff]  }
 0x745   :  { %4919 = vmatprep.subr.bf16.mxu1 %v15242_v1  ;;  %18052 = vst [vmem:[#allocation60_spill] sm:$0xff] %v15260_v43  ;;  %v15263_v1 = vld [vmem:[#allocation10 + $0x2d0] ss:$8 sps:$4 sm:$0xff]  }
 0x746   :  { %18053 = vst [vmem:[#allocation61_spill] sm:$0xff] %v15263_v1 }
 0x748   :  { %4920 = vmatpush1.bf16.msra.mxu1 %v15245_v23  ;;  %v15266_v23 = vld [vmem:[#allocation10 + $0x2e4] ss:$8 sps:$4 sm:$0xff]  }
 0x749   :  { %4921 = vmatprep.subr.bf16.mxu1 %v15248_v29  ;;  %18054 = vst [vmem:[#allocation62_spill] sm:$0xff] %v15266_v23  ;;  %v15269_v29 = vld [vmem:[#allocation10 + $0x2e0] ss:$8 sps:$4 sm:$0xff]  }
 0x74a   :  { %18055 = vst [vmem:[#allocation63_spill] sm:$0xff] %v15269_v29 }
 0x74c   :  { %4922 = vmatpush1.bf16.msra.mxu1 %v15251_v10  ;;  %v15272_v10 = vld [vmem:[#allocation10 + $0x2f4] ss:$8 sps:$4 sm:$0xff]  }
 0x74d   :  { %4923 = vmatprep.subr.bf16.mxu1 %v15254_v15  ;;  %18056 = vst [vmem:[#allocation64_spill] sm:$0xff] %v15272_v10  ;;  %v15275_v15 = vld [vmem:[#allocation10 + $0x2f0] ss:$8 sps:$4 sm:$0xff]  }
 0x74e   :  { %18057 = vst [vmem:[#allocation65_spill] sm:$0xff] %v15275_v15 }
 0x750   :  { %4924 = vmatpush1.bf16.msra.mxu1 %v15257_v2  ;;  %v15278_v2 = vld [vmem:[#allocation10 + $0x304] ss:$8 sps:$4 sm:$0xff]  }
 0x751   :  { %4925 = vmatprep.subr.bf16.mxu1 %v15260_v43  ;;  %18058 = vst [vmem:[#allocation66_spill] sm:$0xff] %v15278_v2  ;;  %v15281_v43 = vld [vmem:[#allocation10 + $0x300] ss:$8 sps:$4 sm:$0xff]  }
 0x752   :  { %18059 = vst [vmem:[#allocation67_spill] sm:$0xff] %v15281_v43 }
 0x754   :  { %4926 = vmatpush1.bf16.msra.mxu1 %v15263_v1  ;;  %v15284_v1 = vld [vmem:[#allocation10 + $0x314] ss:$8 sps:$4 sm:$0xff]  }
 0x755   :  { %4927 = vmatprep.subr.bf16.mxu1 %v15266_v23  ;;  %18060 = vst [vmem:[#allocation68_spill] sm:$0xff] %v15284_v1  ;;  %v18061_v23 = vpack.c.bf16 %v15089_v53, %v15082_v0  ;;  %v15302_v0 = vld [vmem:[#allocation10 + $0x334] ss:$8 sps:$4 sm:$0xff]   ;;  %v15305_v53 = vld [vmem:[#allocation10 + $0x330] ss:$8 sps:$4 sm:$0xff]  }
 0x756   :  { %18066 = vst [vmem:[#allocation72_spill] sm:$0xff] %v15302_v0  ;;  %18067 = vst [vmem:[#allocation73_spill] sm:$0xff] %v15305_v53 }
 0x758   :  { %4928 = vmatpush1.bf16.msra.mxu1 %v15269_v29  ;;  %v15290_v29 = vld [vmem:[#allocation10 + $0x310] ss:$8 sps:$4 sm:$0xff]  }
 0x759   :  { %4929 = vmatprep.subr.bf16.mxu1 %v15272_v10  ;;  %18062 = vst [vmem:[#allocation69_spill] sm:$0xff] %v15290_v29  ;;  %v18063_v10 = vpack.c.bf16 %v15117_v52, %v15111_v13  ;;  %v15308_v13 = vld [vmem:[#allocation10 + $0x344] ss:$8 sps:$4 sm:$0xff]   ;;  %v15314_v52 = vld [vmem:[#allocation10 + $0x354] ss:$8 sps:$4 sm:$0xff]  }
 0x75a   :  { %18068 = vst [vmem:[#allocation74_spill] sm:$0xff] %v15308_v13  ;;  %18070 = vst [vmem:[#allocation76_spill] sm:$0xff] %v15314_v52 }
 0x75c   :  { %4930 = vmatpush1.bf16.msra.mxu1 %v15275_v15  ;;  %v15296_v15 = vld [vmem:[#allocation10 + $0x324] ss:$8 sps:$4 sm:$0xff]  }
 0x75d   :  { %4942 = vmatprep.subr.bf16.mxu1 %v15278_v2  ;;  %18064 = vst [vmem:[#allocation70_spill] sm:$0xff] %v15296_v15  ;;  %v15299_v2 = vld [vmem:[#allocation10 + $0x320] ss:$8 sps:$4 sm:$0xff]  }
 0x75e   :  { %18065 = vst [vmem:[#allocation71_spill] sm:$0xff] %v15299_v2 }
 0x75f   :  { %4932 = vmatmul.mubr.bf16.vlgmr.msra.gmra.mrb[112].mxu1 %v18061_v23  ;;  %v15317_v23 = vld [vmem:[#allocation10 + $0x350] ss:$8 sps:$4 sm:$0xff]  }
 0x760   :  { %4943 = vmatpush1.bf16.msra.mxu1 %v15281_v43  ;;  %4974 = vmatprep.mubr.bf16.mxu1 %v18063_v10  ;;  %v15311_v10 = vld [vmem:[#allocation10 + $0x340] ss:$8 sps:$4 sm:$0xff]   ;;  %18071 = vst [vmem:[#allocation77_spill] sm:$0xff] %v15317_v23 }
 0x761   :  { %4944 = vmatprep.subr.bf16.mxu1 %v15284_v1  ;;  %18069 = vst [vmem:[#allocation75_spill] sm:$0xff] %v15311_v10 }
 0x764   :  { %4945 = vmatpush1.bf16.msra.mxu1 %v15290_v29 }
 0x765   :  { %4946 = vmatprep.subr.bf16.mxu1 %v15296_v15 }
 0x768   :  { %4947 = vmatpush1.bf16.msra.mxu1 %v15299_v2  ;;  %v15320_v2 = vld [vmem:[#allocation10 + $0x364] ss:$8 sps:$4 sm:$0xff]  }
 0x769   :  { %4948 = vmatprep.subr.bf16.mxu1 %v15302_v0  ;;  %18072 = vst [vmem:[#allocation78_spill] sm:$0xff] %v15320_v2  ;;  %v15323_v0 = vld [vmem:[#allocation10 + $0x360] ss:$8 sps:$4 sm:$0xff]  }
 0x76a   :  { %18073 = vst [vmem:[#allocation79_spill] sm:$0xff] %v15323_v0 }
 0x76c   :  { %4949 = vmatpush1.bf16.msra.mxu1 %v15305_v53  ;;  %v15326_v53 = vld [vmem:[#allocation10 + $0x374] ss:$8 sps:$4 sm:$0xff]  }
 0x76d   :  { %4950 = vmatprep.subr.bf16.mxu1 %v15308_v13  ;;  %18074 = vst [vmem:[#allocation80_spill] sm:$0xff] %v15326_v53  ;;  %v15329_v13 = vld [vmem:[#allocation10 + $0x370] ss:$8 sps:$4 sm:$0xff]  }
 0x76e   :  { %18075 = vst [vmem:[#allocation81_spill] sm:$0xff] %v15329_v13 }
 0x770   :  { %4951 = vmatpush1.bf16.msra.mxu1 %v15311_v10  ;;  %v15332_v10 = vld [vmem:[#allocation10 + $0x384] ss:$8 sps:$4 sm:$0xff]  }
 0x771   :  { %4952 = vmatprep.subr.bf16.mxu1 %v15314_v52  ;;  %18076 = vst [vmem:[#allocation82_spill] sm:$0xff] %v15332_v10  ;;  %v15335_v52 = vld [vmem:[#allocation10 + $0x380] ss:$8 sps:$4 sm:$0xff]  }
 0x772   :  { %18077 = vst [vmem:[#allocation83_spill] sm:$0xff] %v15335_v52 }
 0x774   :  { %4953 = vmatpush1.bf16.msra.mxu1 %v15317_v23  ;;  %v15338_v23 = vld [vmem:[#allocation10 + $0x394] ss:$8 sps:$4 sm:$0xff]  }
 0x775   :  { %4954 = vmatprep.subr.bf16.mxu1 %v15320_v2  ;;  %18078 = vst [vmem:[#allocation84_spill] sm:$0xff] %v15338_v23  ;;  %v15341_v2 = vld [vmem:[#allocation10 + $0x390] ss:$8 sps:$4 sm:$0xff]  }
 0x776   :  { %18079 = vst [vmem:[#allocation85_spill] sm:$0xff] %v15341_v2 }
 0x778   :  { %4955 = vmatpush1.bf16.msra.mxu1 %v15323_v0  ;;  %v15344_v0 = vld [vmem:[#allocation10 + $0x3a4] ss:$8 sps:$4 sm:$0xff]  }
 0x779   :  { %4956 = vmatprep.subr.bf16.mxu1 %v15326_v53  ;;  %18080 = vst [vmem:[#allocation86_spill] sm:$0xff] %v15344_v0  ;;  %v15347_v53 = vld [vmem:[#allocation10 + $0x3a0] ss:$8 sps:$4 sm:$0xff]  }
 0x77a   :  { %18081 = vst [vmem:[#allocation87_spill] sm:$0xff] %v15347_v53 }
 0x77c   :  { %4957 = vmatpush1.bf16.msra.mxu1 %v15329_v13  ;;  %v15350_v13 = vld [vmem:[#allocation10 + $0x3b4] ss:$8 sps:$4 sm:$0xff]  }
 0x77d   :  { %4958 = vmatprep.subr.bf16.mxu1 %v15332_v10  ;;  %18082 = vst [vmem:[#allocation88_spill] sm:$0xff] %v15350_v13  ;;  %v15353_v10 = vld [vmem:[#allocation10 + $0x3b0] ss:$8 sps:$4 sm:$0xff]  }
 0x77e   :  { %18083 = vst [vmem:[#allocation89_spill] sm:$0xff] %v15353_v10 }
 0x780   :  { %4959 = vmatpush1.bf16.msra.mxu1 %v15335_v52  ;;  %v15356_v52 = vld [vmem:[#allocation10 + $0x3c4] ss:$8 sps:$4 sm:$0xff]  }
 0x781   :  { %4960 = vmatprep.subr.bf16.mxu1 %v15338_v23  ;;  %18084 = vst [vmem:[#allocation90_spill] sm:$0xff] %v15356_v52  ;;  %v15359_v23 = vld [vmem:[#allocation10 + $0x3c0] ss:$8 sps:$4 sm:$0xff]  }
 0x782   :  { %18085 = vst [vmem:[#allocation91_spill] sm:$0xff] %v15359_v23 }
 0x784   :  { %4961 = vmatpush1.bf16.msra.mxu1 %v15341_v2  ;;  %v15362_v2 = vld [vmem:[#allocation10 + $0x3d4] ss:$8 sps:$4 sm:$0xff]  }
 0x785   :  { %4962 = vmatprep.subr.bf16.mxu1 %v15344_v0  ;;  %18086 = vst [vmem:[#allocation92_spill] sm:$0xff] %v15362_v2  ;;  %v15365_v0 = vld [vmem:[#allocation10 + $0x3d0] ss:$8 sps:$4 sm:$0xff]  }
 0x786   :  { %18087 = vst [vmem:[#allocation93_spill] sm:$0xff] %v15365_v0 }
 0x788   :  { %4963 = vmatpush1.bf16.msra.mxu1 %v15347_v53  ;;  %v15368_v53 = vld [vmem:[#allocation10 + $0x3e4] ss:$8 sps:$4 sm:$0xff]  }
 0x789   :  { %4964 = vmatprep.subr.bf16.mxu1 %v15350_v13  ;;  %18088 = vst [vmem:[#allocation94_spill] sm:$0xff] %v15368_v53  ;;  %v15371_v13 = vld [vmem:[#allocation10 + $0x3e0] ss:$8 sps:$4 sm:$0xff]  }
 0x78a   :  { %18089 = vst [vmem:[#allocation95_spill] sm:$0xff] %v15371_v13 }
 0x78c   :  { %4965 = vmatpush1.bf16.msra.mxu1 %v15353_v10  ;;  %v15374_v10 = vld [vmem:[#allocation10 + $0x3f4] ss:$8 sps:$4 sm:$0xff]  }
 0x78d   :  { %4966 = vmatprep.subr.bf16.mxu1 %v15356_v52  ;;  %18090 = vst [vmem:[#allocation96_spill] sm:$0xff] %v15374_v10  ;;  %v15377_v52 = vld [vmem:[#allocation10 + $0x3f0] ss:$8 sps:$4 sm:$0xff]  }
 0x78e   :  { %18091 = vst [vmem:[#allocation97_spill] sm:$0xff] %v15377_v52 }
 0x790   :  { %4967 = vmatpush1.bf16.msra.mxu1 %v15359_v23 }
 0x791   :  { %4968 = vmatprep.subr.bf16.mxu1 %v15362_v2  ;;  %v18092_v2 = vpack.c.bf16 %v15113_v32, %v15106_v30  ;;  %v3948_v32 = vld [vmem:[#allocation12] sm:$0xf] }
 0x794   :  { %4969 = vmatpush1.bf16.msra.mxu1 %v15365_v0 }
 0x795   :  { %4970 = vmatprep.subr.bf16.mxu1 %v15368_v53 }
 0x798   :  { %4971 = vmatpush1.bf16.msra.mxu1 %v15371_v13  ;;  %v18093_v13 = vld [vmem:[#allocation35_spill] sm:$0xff] }
 0x799   :  { %4972 = vmatprep.subr.bf16.mxu1 %v15374_v10  ;;  %v5011_v53 = vrot.slane %v3948_v32, %v18093_v13 }
 0x79b   :  { %v15409_v29 = vrot.slane %v5011_v53, %v18093_v13 }
 0x79c   :  { %4973 = vmatpush1.bf16.msra.mxu1 %v15377_v52  ;;  %v15392_v52 = vpop.f32.mrb[80].mxu0 }
 0x79d   :  { %5044 = vmatprep.subr.bf16.mxu1 %v14994_v57  ;;  %v5125_v57 = vpop.f32.mrb[81].mxu0  ;;  %18097 = vst [vmem:[#allocation100_spill] sm:$0xff] %v15409_v29 }
 0x79e   :  { %v15394_v10 = vpop.f32.mrb[82].mxu0 }
 0x79f   :  { %4975 = vmatmul.mubr.bf16.vlgmr.msra.gmra.mrb[112].mxu1 %v18092_v2 }
 0x7a0   :  { %5045 = vmatpush1.bf16.msra.mxu1 %v14990_v27  ;;  %5076 = vmatprep.mubr.bf16.mxu1 %v17942_v24  ;;  %v5129_v27 = vpop.f32.mrb[83].mxu0 }
 0x7a1   :  { %5046 = vmatprep.subr.bf16.mxu1 %v15004_v49  ;;  %v5133_v30 = vpack.c.bf16 %v5129_v27, %v5125_v57  ;;  %v4989_v49 = vrot.slane %v3948_v32, %v18025_v41 }
 0x7a3   :  { %v15403_v23 = vrot.slane %v4989_v49, %v18025_v41 }
 0x7a4   :  { %5047 = vmatpush1.bf16.msra.mxu1 %v15002_v8  ;;  %v4993_v8 = vrot.slane %v3948_v32, %v18026_v4 }
 0x7a5   :  { %18095 = vst [vmem:[#allocation98_spill] sm:$0xff] %v15403_v23 }
 0x7a6   :  { %v15406_v15 = vrot.slane %v4993_v8, %v18025_v41  ;;  %v15420_v41 = vpop.f32.mrb[84].mxu0 }
 0x7a7   :  { %10532 = vmatmul.mubr.msk.bf16.vlgmr.msra.gmra.mrb[116].mxu1 %vm3965_vm9, %v14862_v19  ;;  %v18094_v19 = vld [vmem:[#allocation36_spill] sm:$0xff] }
 0x7a8   :  { %5590 = vmatprep.mubr.bf16.mxu1 %v17942_v24  ;;  %v5015_v0 = vrot.slane %v3948_v32, %v18094_v19  ;;  %18096 = vst [vmem:[#allocation99_spill] sm:$0xff] %v15406_v15 }
 0x7aa   :  { %v15412_v57 = vrot.slane %v5015_v0, %v18093_v13  ;;  %v15423_v13 = vpop.f32.mrb[85].mxu0 }
 0x7ab   :  { %v15426_v6 = vpop.f32.mrb[86].mxu0 }
 0x7ac   :  { %18098 = vst [vmem:[#allocation101_spill] sm:$0xff] %v15412_v57 }
 0x872   :  { %v4976_v2 = vpop.f32.mrb[112].mxu1 }
 0x873   :  { %v5004_v27 = vmul.f32 %v15403_v23, %v4976_v2  ;;  %v4978_v4 = vpop.f32.mrb[113].mxu1 }
 0x874   :  { %v5005_v1 = vmul.f32 %v15406_v15, %v4978_v4  ;;  %v4980_v43 = vpop.f32.mrb[114].mxu1 }
 0x875   :  { %v5026_v32 = vadd.f32 %v15409_v29, %v5004_v27  ;;  %v5006_v49 = vmul.f32 %v15403_v23, %v4980_v43  ;;  %v4982_v19 = vpop.f32.mrb[115].mxu1 }
 0x876   :  { %v5027_v8 = vadd.f32 %v15412_v57, %v5005_v1  ;;  %v5007_v53 = vmul.f32 %v15406_v15, %v4982_v19  ;;  %v15430_v15 = vpop.f32.mrb[87].mxu0  ;;  %v15434_v1 = vld [vmem:[#allocation13] sm:$0xf] }
 0x877   :  { %v5034_v40 = vmul.f32 0.2, %v5026_v32  ;;  %v5028_v0 = vadd.f32 %v15409_v29, %v5006_v49  ;;  %vm5030_vm2 = vcmp.ge.f32.partialorder %v5026_v32, 0.0  ;;  %v5178_v37 = vpack.c.bf16 %v15430_v15, %v15423_v13  ;;  %v15545_v15 = vld [vmem:[#allocation15 + $0x60] ss:$8 sps:$4 sm:$0xff]  }
 0x878   :  { %v5035_v2 = vmul.f32 0.2, %v5027_v8  ;;  %v5029_v4 = vadd.f32 %v15412_v57, %v5007_v53  ;;  %vm5031_vm3 = vcmp.ge.f32.partialorder %v5027_v8, 0.0  ;;  %v18111_v13 = vld [vmem:[#allocation48_spill] sm:$0xff] }
 0x879   :  { %vm5032_vm4 = vcmp.ge.f32.partialorder %v5028_v0, 0.0  ;;  %v5036_v43 = vmul.f32 0.2, %v5028_v0  ;;  %v5038_v49 = vsel %vm5030_vm2, %v5026_v32, %v5034_v40  ;;  %v18110_v40 = vld [vmem:[#allocation47_spill] sm:$0xff] }
 0x87a   :  { %vm5033_vm5 = vcmp.ge.f32.partialorder %v5029_v4, 0.0  ;;  %v5037_v19 = vmul.f32 0.2, %v5029_v4  ;;  %v5078_v27 = vpop.f32.mrb[116].mxu1  ;;  %v5039_v53 = vsel %vm5031_vm3, %v5027_v8, %v5035_v2  ;;  %v18114_v32 = vld [vmem:[#allocation51_spill] sm:$0xff]  ;;  %vm8614_vm3 = vcmask 1040384  }
 0x87b   :  { %v5040_v29 = vsel %vm5032_vm4, %v5028_v0, %v5036_v43  ;;  %v5080_v23 = vpop.f32.mrb[117].mxu1  ;;  %v15597_v8 = vld [vmem:[#allocation15 + $0xd4] ss:$8 sps:$4 sm:$0xff]   ;;  %v18115_v0 = vld [vmem:[#allocation52_spill] sm:$0xff]  ;;  %v15601_v2 = vld [vmem:[#allocation15 + $0xd0] ss:$8 sps:$4 sm:$0xff]  }
 0x87c   :  { %v5041_v57 = vsel %vm5033_vm5, %v5029_v4, %v5037_v19  ;;  %v5082_v59 = vpop.f32.mrb[118].mxu1  ;;  %v5042_v26 = vpack.c.bf16 %v5040_v29, %v5038_v49  ;;  %v15581_v29 = vld [vmem:[#allocation15 + $0xb4] ss:$8 sps:$4 sm:$0xff]   ;;  %v15605_v43 = vld [vmem:[#allocation15 + $0xe4] ss:$8 sps:$4 sm:$0xff]  }
 0x87d   :  { %v5087_v7 = vpack.c.bf16 %v5082_v59, %v5078_v27  ;;  %v5084_v20 = vpop.f32.mrb[119].mxu1  ;;  %v5043_v25 = vpack.c.bf16 %v5041_v57, %v5039_v53  ;;  %v18109_v59 = vld [vmem:[#allocation46_spill] sm:$0xff]  ;;  %v15593_v57 = vld [vmem:[#allocation15 + $0xc0] ss:$8 sps:$4 sm:$0xff]   ;;  %v18116_v4 = vld [vmem:[#allocation53_spill] sm:$0xff] }
 0x87e   :  { %v5088_v22 = vpack.c.bf16 %v5084_v20, %v5080_v23  ;;  %v15569_v20 = vld [vmem:[#allocation15 + $0x90] ss:$8 sps:$4 sm:$0xff]   ;;  %v15589_v23 = vld [vmem:[#allocation15 + $0xc4] ss:$8 sps:$4 sm:$0xff]   ;;  %v15609_v27 = vld [vmem:[#allocation15 + $0xe0] ss:$8 sps:$4 sm:$0xff]  }
 0x87f   :  { %5558 = vmatprep.subr.bf16.mxu1 %v5043_v25  ;;  %v18117_v19 = vld [vmem:[#allocation54_spill] sm:$0xff]  ;;  %v18118_v49 = vld [vmem:[#allocation55_spill] sm:$0xff]  ;;  %vm8615_vm4 = vsmask.f32 256 }
 0x880   :  { %5256 = vmatprep.mubr.bf16.mxu0 %v5088_v22  ;;  %5559 = vmatpush1.bf16.msra.mxu1 %v5042_v26  ;;  %v15443_v22 = vld [vmem:[#allocation13 + $0x4] sm:$0xf]  ;;  %vm16771_vm5 = vmand %vm8614_vm3, %vm8615_vm4 }
 0x881   :  { %5257 = vmatmul.mubr.bf16.vlgmr.msra.gmra.mrb[92].mxu0 %v5087_v7  ;;  %5604 = vmatprep.subr.bf16.mxu1 %v5043_v25  ;;  %v18108_v7 = vld [vmem:[#allocation45_spill] sm:$0xff] }
 0x882   :  { %5268 = vmatpush1.bf16.msra.mxu0 %v15057_v45  ;;  %5299 = vmatprep.mubr.bf16.mxu0 %v5133_v30  ;;  %v15452_v45 = vpop.f32.mrb[88].mxu0  ;;  %v18113_v30 = vld [vmem:[#allocation50_spill] sm:$0xff] }
 0x883   :  { %10536 = vmatmul.mubr.msk.bf16.vlgmr.msra.gmra.mrb[120].mxu1 %vm5554_vm6, %v15434_v1  ;;  %5269 = vmatprep.subr.bf16.mxu0 %v15059_v3  ;;  %v15454_v3 = vld [vmem:[#allocation13 + $0x8] sm:$0xf]  ;;  %v15613_v53 = vld [vmem:[#allocation15 + $0xf4] ss:$8 sps:$4 sm:$0xff]  }
 0x884   :  { %5605 = vmatpush1.bf16.msra.mxu1 %v5042_v26  ;;  %5636 = vmatprep.mubr.bf16.mxu1 %v17942_v24 }
 0x885   :  { %5650 = vmatprep.subr.bf16.mxu1 %v5043_v25 }
 0x886   :  { %5270 = vmatpush1.bf16.msra.mxu0 %v15062_v38  ;;  %v15457_v38 = vpop.f32.mrb[89].mxu0 }
 0x887   :  { %5271 = vmatprep.subr.bf16.mxu0 %v15067_v50  ;;  %v15462_v50 = vpop.f32.mrb[90].mxu0 }
 0x88a   :  { %5272 = vmatpush1.bf16.msra.mxu0 %v15074_v14  ;;  %v5222_v14 = vpack.c.bf16 %v15462_v50, %v15452_v45  ;;  %v15683_v45 = vld [vmem:[#allocation15 + $0x124] ss:$8 sps:$4 sm:$0xff]  }
 0x88b   :  { %10537 = vmatmul.mubr.msk.bf16.vlgmr.msra.gmra.mrb[124].mxu1 %vm5554_vm6, %v15443_v22  ;;  %5273 = vmatprep.subr.bf16.mxu0 %v15077_v62  ;;  %v15466_v62 = vpop.f32.mrb[91].mxu0 }
 0x88c   :  { %5651 = vmatpush1.bf16.msra.mxu1 %v5042_v26  ;;  %5682 = vmatprep.mubr.bf16.mxu1 %v17942_v24 }
 0x88d   :  { %5696 = vmatprep.subr.bf16.mxu1 %v5043_v25  ;;  %v18107_v25 = vld [vmem:[#allocation44_spill] sm:$0xff] }
 0x88e   :  { %5274 = vmatpush1.bf16.msra.mxu0 %v15080_v9  ;;  %v5223_v9 = vpack.c.bf16 %v15466_v62, %v15457_v38  ;;  %v18141_v38 = vld [vmem:[#allocation77_spill] sm:$0xff]  ;;  %v18142_v62 = vld [vmem:[#allocation78_spill] sm:$0xff] }
 0x88f   :  { %5275 = vmatprep.subr.bf16.mxu0 %v15085_v60  ;;  %v15485_v60 = vld [vmem:[#allocation15 + $0x4] ss:$8 sps:$4 sm:$0xff]  }
 0x892   :  { %5276 = vmatpush1.bf16.msra.mxu0 %v15096_v56  ;;  %v15488_v56 = vld [vmem:[#allocation15] ss:$8 sps:$4 sm:$0xff]  }
 0x893   :  { %10538 = vmatmul.mubr.msk.bf16.vlgmr.msra.gmra.mrb[128].mxu1 %vm5554_vm6, %v15454_v3  ;;  %5277 = vmatprep.subr.bf16.mxu0 %v15101_v44  ;;  %v15492_v44 = vld [vmem:[#allocation13 + $0xc] sm:$0xf] }
 0x894   :  { %5697 = vmatpush1.bf16.msra.mxu1 %v5042_v26  ;;  %5728 = vmatprep.mubr.bf16.mxu1 %v17942_v24  ;;  %v15573_v26 = vld [vmem:[#allocation15 + $0xa4] ss:$8 sps:$4 sm:$0xff]  }
 0x895   :  { %6379 = vmatprep.subr.bf16.mxu1 %v15485_v60 }
 0x896   :  { %5278 = vmatpush1.bf16.msra.mxu0 %v15104_v48  ;;  %v15497_v48 = vld [vmem:[#allocation15 + $0x14] ss:$8 sps:$4 sm:$0xff]  }
 0x897   :  { %5279 = vmatprep.subr.bf16.mxu0 %v15109_v61  ;;  %v15500_v61 = vld [vmem:[#allocation15 + $0x10] ss:$8 sps:$4 sm:$0xff]  }
 0x89a   :  { %5280 = vmatpush1.bf16.msra.mxu0 %v15120_v5  ;;  %v15505_v5 = vld [vmem:[#allocation15 + $0x24] ss:$8 sps:$4 sm:$0xff]  }
 0x89b   :  { %5281 = vmatprep.subr.bf16.mxu0 %v15125_v54  ;;  %10539 = vmatmul.mubr.msk.bf16.vlgmr.msra.gmra.mrb[132].mxu1 %vm5554_vm6, %v15492_v44  ;;  %v15508_v54 = vld [vmem:[#allocation15 + $0x20] ss:$8 sps:$4 sm:$0xff]  }
 0x89c   :  { %6380 = vmatpush1.bf16.msra.mxu1 %v15488_v56 }
 0x89d   :  { %6381 = vmatprep.subr.bf16.mxu1 %v15497_v48 }
 0x89e   :  { %5282 = vmatpush1.bf16.msra.mxu0 %v15128_v28  ;;  %v15513_v28 = vld [vmem:[#allocation15 + $0x34] ss:$8 sps:$4 sm:$0xff]  }
 0x89f   :  { %5283 = vmatprep.subr.bf16.mxu0 %v15131_v51  ;;  %v15516_v51 = vld [vmem:[#allocation15 + $0x30] ss:$8 sps:$4 sm:$0xff]  }
 0x8a0   :  { %6382 = vmatpush1.bf16.msra.mxu1 %v15500_v61 }
 0x8a1   :  { %6383 = vmatprep.subr.bf16.mxu1 %v15505_v5 }
 0x8a2   :  { %5284 = vmatpush1.bf16.msra.mxu0 %v15134_v11  ;;  %v18099_v11 = vpack.c.bf16 %v15394_v10, %v15392_v52  ;;  %v15585_v10 = vld [vmem:[#allocation15 + $0xb0] ss:$8 sps:$4 sm:$0xff]  }
 0x8a3   :  { %5285 = vmatprep.subr.bf16.mxu0 %v15137_v33  ;;  %v15524_v33 = vld [vmem:[#allocation15 + $0x40] ss:$8 sps:$4 sm:$0xff]   ;;  %v18112_v52 = vld [vmem:[#allocation49_spill] sm:$0xff] }
 0x8a4   :  { %6384 = vmatpush1.bf16.msra.mxu1 %v15508_v54 }
 0x8a5   :  { %6385 = vmatprep.subr.bf16.mxu1 %v15513_v28 }
 0x8a6   :  { %5286 = vmatpush1.bf16.msra.mxu0 %v15140_v17  ;;  %v15526_v17 = vld [vmem:[#allocation15 + $0x44] ss:$8 sps:$4 sm:$0xff]  }
 0x8a7   :  { %5287 = vmatprep.subr.bf16.mxu0 %v15143_v16  ;;  %v15532_v16 = vld [vmem:[#allocation15 + $0x54] ss:$8 sps:$4 sm:$0xff]  }
 0x8a8   :  { %6386 = vmatpush1.bf16.msra.mxu1 %v15516_v51 }
 0x8a9   :  { %6387 = vmatprep.subr.bf16.mxu1 %v15526_v17 }
 0x8aa   :  { %5288 = vmatpush1.bf16.msra.mxu0 %v15146_v39  ;;  %v15537_v39 = vld [vmem:[#allocation15 + $0x50] ss:$8 sps:$4 sm:$0xff]  }
 0x8ab   :  { %5289 = vmatprep.subr.bf16.mxu0 %v15149_v18  ;;  %v18100_v18 = vld [vmem:[#allocation37_spill] sm:$0xff] }
 0x8ac   :  { %6388 = vmatpush1.bf16.msra.mxu1 %v15524_v33 }
 0x8ad   :  { %6389 = vmatprep.subr.bf16.mxu1 %v15532_v16 }
 0x8ae   :  { %5290 = vmatpush1.bf16.msra.mxu0 %v15152_v55  ;;  %v15541_v55 = vld [vmem:[#allocation15 + $0x64] ss:$8 sps:$4 sm:$0xff]  }
 0x8af   :  { %5291 = vmatprep.subr.bf16.mxu0 %v15155_v35  ;;  %v18101_v35 = vld [vmem:[#allocation38_spill] sm:$0xff] }
 0x8b0   :  { %6390 = vmatpush1.bf16.msra.mxu1 %v15537_v39 }
 0x8b1   :  { %6391 = vmatprep.subr.bf16.mxu1 %v15541_v55 }
 0x8b2   :  { %5292 = vmatpush1.bf16.msra.mxu0 %v15158_v36  ;;  %v18102_v36 = vld [vmem:[#allocation39_spill] sm:$0xff] }
 0x8b3   :  { %5293 = vmatprep.subr.bf16.mxu0 %v15161_v21  ;;  %v15549_v21 = vld [vmem:[#allocation15 + $0x74] ss:$8 sps:$4 sm:$0xff]  }
 0x8b4   :  { %6392 = vmatpush1.bf16.msra.mxu1 %v15545_v15 }
 0x8b5   :  { %6393 = vmatprep.subr.bf16.mxu1 %v15549_v21 }
 0x8b6   :  { %5294 = vmatpush1.bf16.msra.mxu0 %v15164_v63  ;;  %v18103_v63 = vld [vmem:[#allocation40_spill] sm:$0xff] }
 0x8b7   :  { %5295 = vmatprep.subr.bf16.mxu0 %v15167_v31  ;;  %v15553_v31 = vld [vmem:[#allocation15 + $0x70] ss:$8 sps:$4 sm:$0xff]  }
 0x8b8   :  { %6394 = vmatpush1.bf16.msra.mxu1 %v15553_v31 }
 0x8ba   :  { %5296 = vmatpush1.bf16.msra.mxu0 %v15170_v46  ;;  %v18104_v46 = vld [vmem:[#allocation41_spill] sm:$0xff] }
 0x8bb   :  { %5297 = vmatprep.subr.bf16.mxu0 %v15173_v47  ;;  %v15557_v47 = vld [vmem:[#allocation15 + $0x84] ss:$8 sps:$4 sm:$0xff]  }
 0x8bc   :  { %6395 = vmatprep.subr.bf16.mxu1 %v15557_v47 }
 0x8be   :  { %5298 = vmatpush1.bf16.msra.mxu0 %v15176_v42  ;;  %v18105_v42 = vld [vmem:[#allocation42_spill] sm:$0xff] }
 0x8bf   :  { %5310 = vmatprep.subr.bf16.mxu0 %v15179_v34  ;;  %v15561_v34 = vld [vmem:[#allocation15 + $0x80] ss:$8 sps:$4 sm:$0xff]  }
 0x8c0   :  { %6396 = vmatpush1.bf16.msra.mxu1 %v15561_v34 }
 0x8c1   :  { %5300 = vmatmul.mubr.bf16.vlgmr.msra.gmra.mrb[92].mxu0 %v18099_v11  ;;  %v18119_v11 = vld [vmem:[#allocation56_spill] sm:$0xff] }
 0x8c2   :  { %5311 = vmatpush1.bf16.msra.mxu0 %v15182_v12  ;;  %5342 = vmatprep.mubr.bf16.mxu0 %v5178_v37  ;;  %v18106_v12 = vld [vmem:[#allocation43_spill] sm:$0xff] }
 0x8c3   :  { %5312 = vmatprep.subr.bf16.mxu0 %v15185_v58  ;;  %v15565_v58 = vld [vmem:[#allocation15 + $0x94] ss:$8 sps:$4 sm:$0xff]   ;;  %v15577_v37 = vld [vmem:[#allocation15 + $0xa0] ss:$8 sps:$4 sm:$0xff]  }
 0x8c4   :  { %6397 = vmatprep.subr.bf16.mxu1 %v15565_v58 }
 0x8c5   :  { %6398 = vmatpush1.bf16.msra.mxu1 %v15569_v20 }
 0x8c6   :  { %5313 = vmatpush1.bf16.msra.mxu0 %v18100_v18  ;;  %6399 = vmatprep.subr.bf16.mxu1 %v15573_v26  ;;  %v15617_v18 = vld [vmem:[#allocation15 + $0xf0] ss:$8 sps:$4 sm:$0xff]  }
 0x8c7   :  { %5314 = vmatprep.subr.bf16.mxu0 %v18101_v35  ;;  %v18120_v35 = vld [vmem:[#allocation57_spill] sm:$0xff] }
 0x8c9   :  { %6400 = vmatpush1.bf16.msra.mxu1 %v15577_v37 }
 0x8ca   :  { %5315 = vmatpush1.bf16.msra.mxu0 %v18102_v36  ;;  %6401 = vmatprep.subr.bf16.mxu1 %v15581_v29  ;;  %v15621_v36 = vld [vmem:[#allocation15 + $0x104] ss:$8 sps:$4 sm:$0xff]  }
 0x8cb   :  { %5316 = vmatprep.subr.bf16.mxu0 %v18103_v63  ;;  %v18121_v63 = vld [vmem:[#allocation58_spill] sm:$0xff] }
 0x8cd   :  { %6402 = vmatpush1.bf16.msra.mxu1 %v15585_v10 }
 0x8ce   :  { %5317 = vmatpush1.bf16.msra.mxu0 %v18104_v46  ;;  %6403 = vmatprep.subr.bf16.mxu1 %v15589_v23  ;;  %v18122_v46 = vld [vmem:[#allocation59_spill] sm:$0xff] }
 0x8cf   :  { %5318 = vmatprep.subr.bf16.mxu0 %v18105_v42  ;;  %v18123_v42 = vld [vmem:[#allocation60_spill] sm:$0xff] }
 0x8d1   :  { %6404 = vmatpush1.bf16.msra.mxu1 %v15593_v57 }
 0x8d2   :  { %5319 = vmatpush1.bf16.msra.mxu0 %v18106_v12  ;;  %6405 = vmatprep.subr.bf16.mxu1 %v15597_v8  ;;  %v18124_v12 = vld [vmem:[#allocation61_spill] sm:$0xff] }
 0x8d3   :  { %5320 = vmatprep.subr.bf16.mxu0 %v18107_v25  ;;  %v18125_v25 = vld [vmem:[#allocation62_spill] sm:$0xff] }
 0x8d5   :  { %6406 = vmatpush1.bf16.msra.mxu1 %v15601_v2 }
 0x8d6   :  { %5321 = vmatpush1.bf16.msra.mxu0 %v18108_v7  ;;  %6407 = vmatprep.subr.bf16.mxu1 %v15605_v43  ;;  %v18126_v7 = vld [vmem:[#allocation63_spill] sm:$0xff] }
 0x8d7   :  { %5322 = vmatprep.subr.bf16.mxu0 %v18109_v59  ;;  %v18127_v59 = vld [vmem:[#allocation64_spill] sm:$0xff] }
 0x8d9   :  { %6408 = vmatpush1.bf16.msra.mxu1 %v15609_v27 }
 0x8da   :  { %5323 = vmatpush1.bf16.msra.mxu0 %v18110_v40  ;;  %6409 = vmatprep.subr.bf16.mxu1 %v15613_v53  ;;  %v18128_v40 = vld [vmem:[#allocation65_spill] sm:$0xff] }
 0x8db   :  { %5324 = vmatprep.subr.bf16.mxu0 %v18111_v13  ;;  %v18129_v13 = vld [vmem:[#allocation66_spill] sm:$0xff] }
 0x8dd   :  { %6410 = vmatpush1.bf16.msra.mxu1 %v15617_v18 }
 0x8de   :  { %5325 = vmatpush1.bf16.msra.mxu0 %v18112_v52  ;;  %6420 = vmatprep.subr.bf16.mxu1 %v15621_v36  ;;  %v18130_v52 = vpack.c.bf16 %v15426_v6, %v15420_v41  ;;  %v18138_v41 = vld [vmem:[#allocation74_spill] sm:$0xff]  ;;  %v18139_v6 = vld [vmem:[#allocation75_spill] sm:$0xff] }
 0x8df   :  { %5326 = vmatprep.subr.bf16.mxu0 %v18113_v30  ;;  %v18131_v30 = vld [vmem:[#allocation67_spill] sm:$0xff] }
 0x8e2   :  { %5327 = vmatpush1.bf16.msra.mxu0 %v18114_v32  ;;  %v18132_v32 = vld [vmem:[#allocation68_spill] sm:$0xff] }
 0x8e3   :  { %5328 = vmatprep.subr.bf16.mxu0 %v18115_v0  ;;  %v18133_v0 = vld [vmem:[#allocation69_spill] sm:$0xff] }
 0x8e6   :  { %5329 = vmatpush1.bf16.msra.mxu0 %v18116_v4  ;;  %v18134_v4 = vld [vmem:[#allocation70_spill] sm:$0xff] }
 0x8e7   :  { %5330 = vmatprep.subr.bf16.mxu0 %v18117_v19  ;;  %v18135_v19 = vld [vmem:[#allocation71_spill] sm:$0xff] }
 0x8ea   :  { %5331 = vmatpush1.bf16.msra.mxu0 %v18118_v49  ;;  %v18136_v49 = vld [vmem:[#allocation72_spill] sm:$0xff] }
 0x8eb   :  { %5332 = vmatprep.subr.bf16.mxu0 %v18119_v11  ;;  %v18137_v11 = vld [vmem:[#allocation73_spill] sm:$0xff] }
 0x8ee   :  { %5333 = vmatpush1.bf16.msra.mxu0 %v18120_v35  ;;  %v18140_v35 = vld [vmem:[#allocation76_spill] sm:$0xff] }
 0x8ef   :  { %5334 = vmatprep.subr.bf16.mxu0 %v18121_v63  ;;  %v18144_v63 = vld [vmem:[#allocation80_spill] sm:$0xff] }
 0x8f2   :  { %5335 = vmatpush1.bf16.msra.mxu0 %v18122_v46  ;;  %v18145_v46 = vld [vmem:[#allocation81_spill] sm:$0xff] }
 0x8f3   :  { %5336 = vmatprep.subr.bf16.mxu0 %v18123_v42  ;;  %v18146_v42 = vld [vmem:[#allocation82_spill] sm:$0xff] }
 0x8f6   :  { %5337 = vmatpush1.bf16.msra.mxu0 %v18124_v12  ;;  %v18147_v12 = vld [vmem:[#allocation83_spill] sm:$0xff] }
 0x8f7   :  { %5338 = vmatprep.subr.bf16.mxu0 %v18125_v25  ;;  %v18148_v25 = vld [vmem:[#allocation84_spill] sm:$0xff] }
 0x8fa   :  { %5339 = vmatpush1.bf16.msra.mxu0 %v18126_v7  ;;  %v18149_v7 = vld [vmem:[#allocation85_spill] sm:$0xff] }
 0x8fb   :  { %5340 = vmatprep.subr.bf16.mxu0 %v18127_v59  ;;  %v18150_v59 = vld [vmem:[#allocation86_spill] sm:$0xff] }
 0x8fe   :  { %5341 = vmatpush1.bf16.msra.mxu0 %v18128_v40  ;;  %v18151_v40 = vld [vmem:[#allocation87_spill] sm:$0xff] }
 0x8ff   :  { %5353 = vmatprep.subr.bf16.mxu0 %v18129_v13  ;;  %v18152_v13 = vld [vmem:[#allocation88_spill] sm:$0xff] }
 0x901   :  { %5343 = vmatmul.mubr.bf16.vlgmr.msra.gmra.mrb[92].mxu0 %v18130_v52  ;;  %v18153_v52 = vld [vmem:[#allocation89_spill] sm:$0xff] }
 0x902   :  { %5354 = vmatpush1.bf16.msra.mxu0 %v18131_v30  ;;  %5385 = vmatprep.mubr.bf16.mxu0 %v5223_v9  ;;  %v18143_v9 = vld [vmem:[#allocation79_spill] sm:$0xff]  ;;  %v18154_v30 = vld [vmem:[#allocation90_spill] sm:$0xff] }
 0x903   :  { %5355 = vmatprep.subr.bf16.mxu0 %v18132_v32  ;;  %v18155_v32 = vld [vmem:[#allocation91_spill] sm:$0xff] }
 0x906   :  { %5356 = vmatpush1.bf16.msra.mxu0 %v18133_v0  ;;  %v18156_v0 = vld [vmem:[#allocation92_spill] sm:$0xff] }
 0x907   :  { %5357 = vmatprep.subr.bf16.mxu0 %v18134_v4  ;;  %v18157_v4 = vld [vmem:[#allocation93_spill] sm:$0xff] }
 0x90a   :  { %5358 = vmatpush1.bf16.msra.mxu0 %v18135_v19  ;;  %v18158_v19 = vld [vmem:[#allocation94_spill] sm:$0xff] }
 0x90b   :  { %5359 = vmatprep.subr.bf16.mxu0 %v18136_v49  ;;  %v18159_v49 = vld [vmem:[#allocation95_spill] sm:$0xff] }
 0x90e   :  { %5360 = vmatpush1.bf16.msra.mxu0 %v18137_v11  ;;  %v18160_v11 = vld [vmem:[#allocation96_spill] sm:$0xff] }
 0x90f   :  { %5361 = vmatprep.subr.bf16.mxu0 %v18138_v41  ;;  %v18161_v41 = vld [vmem:[#allocation97_spill] sm:$0xff] }
 0x912   :  { %5362 = vmatpush1.bf16.msra.mxu0 %v18139_v6 }
 0x913   :  { %5363 = vmatprep.subr.bf16.mxu0 %v18140_v35 }
 0x916   :  { %5364 = vmatpush1.bf16.msra.mxu0 %v18141_v38 }
 0x917   :  { %5365 = vmatprep.subr.bf16.mxu0 %v18142_v62 }
 0x91a   :  { %5366 = vmatpush1.bf16.msra.mxu0 %v18143_v9  ;;  %v15675_v9 = vld [vmem:[#allocation15 + $0x100] ss:$8 sps:$4 sm:$0xff]  }
 0x91b   :  { %5367 = vmatprep.subr.bf16.mxu0 %v18144_v63 }
 0x91e   :  { %5368 = vmatpush1.bf16.msra.mxu0 %v18145_v46  ;;  %v15677_v46 = vld [vmem:[#allocation15 + $0x114] ss:$8 sps:$4 sm:$0xff]  }
 0x91f   :  { %5369 = vmatprep.subr.bf16.mxu0 %v18146_v42 }
 0x922   :  { %5370 = vmatpush1.bf16.msra.mxu0 %v18147_v12  ;;  %v15680_v12 = vld [vmem:[#allocation15 + $0x110] ss:$8 sps:$4 sm:$0xff]  }
 0x923   :  { %5371 = vmatprep.subr.bf16.mxu0 %v18148_v25  ;;  %v15688_v25 = vld [vmem:[#allocation15 + $0x120] ss:$8 sps:$4 sm:$0xff]  }
 0x926   :  { %5372 = vmatpush1.bf16.msra.mxu0 %v18149_v7 }
 0x927   :  { %5373 = vmatprep.subr.bf16.mxu0 %v18150_v59 }
 0x92a   :  { %5374 = vmatpush1.bf16.msra.mxu0 %v18151_v40  ;;  %v15691_v40 = vld [vmem:[#allocation15 + $0x134] ss:$8 sps:$4 sm:$0xff]  }
 0x92b   :  { %5375 = vmatprep.subr.bf16.mxu0 %v18152_v13 }
 0x92e   :  { %5376 = vmatpush1.bf16.msra.mxu0 %v18153_v52  ;;  %v15694_v52 = vld [vmem:[#allocation15 + $0x130] ss:$8 sps:$4 sm:$0xff]  }
 0x92f   :  { %5377 = vmatprep.subr.bf16.mxu0 %v18154_v30  ;;  %v15697_v30 = vld [vmem:[#allocation15 + $0x144] ss:$8 sps:$4 sm:$0xff]  }
 0x930   :  { %18162 = vst [vmem:[#allocation37_spill] sm:$0xff] %v15697_v30 }
 0x932   :  { %5378 = vmatpush1.bf16.msra.mxu0 %v18155_v32 }
 0x933   :  { %5379 = vmatprep.subr.bf16.mxu0 %v18156_v0 }
 0x936   :  { %5380 = vmatpush1.bf16.msra.mxu0 %v18157_v4  ;;  %v15702_v4 = vld [vmem:[#allocation15 + $0x140] ss:$8 sps:$4 sm:$0xff]  }
 0x937   :  { %5381 = vmatprep.subr.bf16.mxu0 %v18158_v19  ;;  %18163 = vst [vmem:[#allocation38_spill] sm:$0xff] %v15702_v4 }
 0x93a   :  { %5382 = vmatpush1.bf16.msra.mxu0 %v18159_v49  ;;  %v15705_v49 = vld [vmem:[#allocation15 + $0x154] ss:$8 sps:$4 sm:$0xff]  }
 0x93b   :  { %5383 = vmatprep.subr.bf16.mxu0 %v18160_v11  ;;  %18164 = vst [vmem:[#allocation39_spill] sm:$0xff] %v15705_v49 }
 0x93e   :  { %5384 = vmatpush1.bf16.msra.mxu0 %v18161_v41  ;;  %v15708_v41 = vld [vmem:[#allocation15 + $0x150] ss:$8 sps:$4 sm:$0xff]  }
 0x93f   :  { %18165 = vst [vmem:[#allocation40_spill] sm:$0xff] %v15708_v41 }
 0x941   :  { %5386 = vmatmul.mubr.bf16.vlgmr.msra.gmra.mrb[92].mxu0 %v5222_v14 }
 0x942   :  { %6624 = vmatprep.mubr.bf16.mxu0 %v17942_v24 }
 0x956   :  { %v5592_v6 = vpop.f32.mrb[120].mxu1 }
 0x957   :  { %v5599_v35 = vpack.c.bf16 %v5592_v6, %v5592_v6  ;;  %v5594_v38 = vpop.f32.mrb[121].mxu1  ;;  %v15711_v6 = vld [vmem:[#allocation15 + $0x164] ss:$8 sps:$4 sm:$0xff]  }
 0x958   :  { %v5600_v62 = vpack.c.bf16 %v5594_v38, %v5594_v38  ;;  %v5596_v63 = vpop.f32.mrb[122].mxu1  ;;  %18166 = vst [vmem:[#allocation41_spill] sm:$0xff] %v15711_v6  ;;  %v15717_v38 = vld [vmem:[#allocation15 + $0x174] ss:$8 sps:$4 sm:$0xff]  }
 0x959   :  { %v5597_v42 = vpop.f32.mrb[123].mxu1  ;;  %18168 = vst [vmem:[#allocation43_spill] sm:$0xff] %v15717_v38  ;;  %v15723_v63 = vld [vmem:[#allocation15 + $0x184] ss:$8 sps:$4 sm:$0xff]  }
 0x95a   :  { %6411 = vmatprep.mubr.bf16.mxu1 %v5600_v62  ;;  %v15720_v62 = vld [vmem:[#allocation15 + $0x170] ss:$8 sps:$4 sm:$0xff]   ;;  %18170 = vst [vmem:[#allocation45_spill] sm:$0xff] %v15723_v63  ;;  %v15726_v42 = vld [vmem:[#allocation15 + $0x180] ss:$8 sps:$4 sm:$0xff]  }
 0x95b   :  { %6412 = vmatmul.mubr.bf16.vlgmr.msra.gmra.mrb[136].mxu1 %v5599_v35  ;;  %v15714_v35 = vld [vmem:[#allocation15 + $0x160] ss:$8 sps:$4 sm:$0xff]   ;;  %18169 = vst [vmem:[#allocation44_spill] sm:$0xff] %v15720_v62  ;;  %18171 = vst [vmem:[#allocation46_spill] sm:$0xff] %v15726_v42 }
 0x95c   :  { %6421 = vmatpush1.bf16.msra.mxu1 %v15675_v9  ;;  %18167 = vst [vmem:[#allocation42_spill] sm:$0xff] %v15714_v35 }
 0x95d   :  { %6422 = vmatprep.subr.bf16.mxu1 %v15677_v46 }
 0x95e   :  { %v15685_v50 = vpop.f32.mrb[124].mxu1 }
 0x95f   :  { %v5640_v14 = vpop.f32.mrb[125].mxu1 }
 0x960   :  { %6423 = vmatpush1.bf16.msra.mxu1 %v15680_v12  ;;  %v5646_v7 = vpack.c.bf16 %v5640_v14, %v5640_v14  ;;  %v5642_v59 = vpop.f32.mrb[126].mxu1  ;;  %v15729_v14 = vld [vmem:[#allocation15 + $0x194] ss:$8 sps:$4 sm:$0xff]  }
 0x961   :  { %6424 = vmatprep.subr.bf16.mxu1 %v15683_v45  ;;  %v5643_v13 = vpop.f32.mrb[127].mxu1  ;;  %18172 = vst [vmem:[#allocation47_spill] sm:$0xff] %v15729_v14  ;;  %v15735_v59 = vld [vmem:[#allocation15 + $0x1a4] ss:$8 sps:$4 sm:$0xff]  }
 0x962   :  { %6452 = vmatprep.mubr.bf16.mxu1 %v5646_v7  ;;  %v15732_v7 = vld [vmem:[#allocation15 + $0x190] ss:$8 sps:$4 sm:$0xff]   ;;  %18174 = vst [vmem:[#allocation49_spill] sm:$0xff] %v15735_v59  ;;  %v15738_v13 = vld [vmem:[#allocation15 + $0x1a0] ss:$8 sps:$4 sm:$0xff]  }
 0x963   :  { %18173 = vst [vmem:[#allocation48_spill] sm:$0xff] %v15732_v7  ;;  %18175 = vst [vmem:[#allocation50_spill] sm:$0xff] %v15738_v13 }
 0x964   :  { %6425 = vmatpush1.bf16.msra.mxu1 %v15688_v25 }
 0x965   :  { %6426 = vmatprep.subr.bf16.mxu1 %v15691_v40 }
 0x966   :  { %v15699_v32 = vpop.f32.mrb[128].mxu1 }
 0x967   :  { %v5686_v0 = vpop.f32.mrb[129].mxu1 }
 0x968   :  { %6427 = vmatpush1.bf16.msra.mxu1 %v15694_v52  ;;  %v5688_v19 = vpop.f32.mrb[130].mxu1 }
 0x969   :  { %6428 = vmatprep.subr.bf16.mxu1 %v15697_v30  ;;  %v5689_v11 = vpop.f32.mrb[131].mxu1  ;;  %v15741_v19 = vld [vmem:[#allocation15 + $0x1b4] ss:$8 sps:$4 sm:$0xff]  }
 0x96a   :  { %18176 = vst [vmem:[#allocation51_spill] sm:$0xff] %v15741_v19  ;;  %v15744_v11 = vld [vmem:[#allocation15 + $0x1b0] ss:$8 sps:$4 sm:$0xff]  }
 0x96b   :  { %18177 = vst [vmem:[#allocation52_spill] sm:$0xff] %v15744_v11 }
 0x96c   :  { %6429 = vmatpush1.bf16.msra.mxu1 %v15702_v4 }
 0x96d   :  { %6430 = vmatprep.subr.bf16.mxu1 %v15705_v49  ;;  %v18253_v49 = vld [vmem:[#allocation101_spill] sm:$0xff] }
 0x970   :  { %6431 = vmatpush1.bf16.msra.mxu1 %v15708_v41 }
 0x971   :  { %6432 = vmatprep.subr.bf16.mxu1 %v15711_v6 }
 0x974   :  { %6433 = vmatpush1.bf16.msra.mxu1 %v15714_v35 }
 0x975   :  { %6434 = vmatprep.subr.bf16.mxu1 %v15717_v38 }
 0x978   :  { %6435 = vmatpush1.bf16.msra.mxu1 %v15720_v62  ;;  %v15829_v62 = vld [vmem:[#allocation15 + $0x294] ss:$8 sps:$4 sm:$0xff]  }
 0x979   :  { %6436 = vmatprep.subr.bf16.mxu1 %v15723_v63  ;;  %v5692_v63 = vpack.c.bf16 %v5686_v0, %v5686_v0  ;;  %v15791_v0 = vld [vmem:[#allocation15 + $0x234] ss:$8 sps:$4 sm:$0xff]   ;;  %18204 = vst [vmem:[#allocation79_spill] sm:$0xff] %v15829_v62 }
 0x97a   :  { %18192 = vst [vmem:[#allocation67_spill] sm:$0xff] %v15791_v0 }
 0x97c   :  { %6437 = vmatpush1.bf16.msra.mxu1 %v15726_v42  ;;  %v15747_v42 = vld [vmem:[#allocation15 + $0x1c4] ss:$8 sps:$4 sm:$0xff]  }
 0x97d   :  { %6438 = vmatprep.subr.bf16.mxu1 %v15729_v14  ;;  %18178 = vst [vmem:[#allocation53_spill] sm:$0xff] %v15747_v42  ;;  %v15750_v14 = vld [vmem:[#allocation15 + $0x1c0] ss:$8 sps:$4 sm:$0xff]  }
 0x97e   :  { %18179 = vst [vmem:[#allocation54_spill] sm:$0xff] %v15750_v14 }
 0x980   :  { %6439 = vmatpush1.bf16.msra.mxu1 %v15732_v7  ;;  %v15753_v7 = vld [vmem:[#allocation15 + $0x1d4] ss:$8 sps:$4 sm:$0xff]  }
 0x981   :  { %6440 = vmatprep.subr.bf16.mxu1 %v15735_v59  ;;  %18180 = vst [vmem:[#allocation55_spill] sm:$0xff] %v15753_v7  ;;  %v15756_v59 = vld [vmem:[#allocation15 + $0x1d0] ss:$8 sps:$4 sm:$0xff]  }
 0x982   :  { %18181 = vst [vmem:[#allocation56_spill] sm:$0xff] %v15756_v59 }
 0x984   :  { %6441 = vmatpush1.bf16.msra.mxu1 %v15738_v13  ;;  %v15759_v13 = vld [vmem:[#allocation15 + $0x1e4] ss:$8 sps:$4 sm:$0xff]  }
 0x985   :  { %6442 = vmatprep.subr.bf16.mxu1 %v15741_v19  ;;  %18182 = vst [vmem:[#allocation57_spill] sm:$0xff] %v15759_v13  ;;  %v15762_v19 = vld [vmem:[#allocation15 + $0x1e0] ss:$8 sps:$4 sm:$0xff]  }
 0x986   :  { %18183 = vst [vmem:[#allocation58_spill] sm:$0xff] %v15762_v19 }
 0x988   :  { %6443 = vmatpush1.bf16.msra.mxu1 %v15744_v11  ;;  %v15765_v11 = vld [vmem:[#allocation15 + $0x1f4] ss:$8 sps:$4 sm:$0xff]  }
 0x989   :  { %6444 = vmatprep.subr.bf16.mxu1 %v15747_v42  ;;  %18184 = vst [vmem:[#allocation59_spill] sm:$0xff] %v15765_v11  ;;  %v15768_v42 = vld [vmem:[#allocation15 + $0x1f0] ss:$8 sps:$4 sm:$0xff]  }
 0x98a   :  { %18185 = vst [vmem:[#allocation60_spill] sm:$0xff] %v15768_v42 }
 0x98c   :  { %6445 = vmatpush1.bf16.msra.mxu1 %v15750_v14  ;;  %v15771_v14 = vld [vmem:[#allocation15 + $0x204] ss:$8 sps:$4 sm:$0xff]  }
 0x98d   :  { %6446 = vmatprep.subr.bf16.mxu1 %v15753_v7  ;;  %18186 = vst [vmem:[#allocation61_spill] sm:$0xff] %v15771_v14  ;;  %v5645_v7 = vpack.c.bf16 %v15685_v50, %v15685_v50  ;;  %v15788_v50 = vld [vmem:[#allocation15 + $0x220] ss:$8 sps:$4 sm:$0xff]  }
 0x98e   :  { %18191 = vst [vmem:[#allocation66_spill] sm:$0xff] %v15788_v50 }
 0x990   :  { %6447 = vmatpush1.bf16.msra.mxu1 %v15756_v59  ;;  %v15776_v59 = vld [vmem:[#allocation15 + $0x200] ss:$8 sps:$4 sm:$0xff]  }
 0x991   :  { %6448 = vmatprep.subr.bf16.mxu1 %v15759_v13  ;;  %18187 = vst [vmem:[#allocation62_spill] sm:$0xff] %v15776_v59  ;;  %v15779_v13 = vld [vmem:[#allocation15 + $0x214] ss:$8 sps:$4 sm:$0xff]  }
 0x992   :  { %18188 = vst [vmem:[#allocation63_spill] sm:$0xff] %v15779_v13 }
 0x994   :  { %6449 = vmatpush1.bf16.msra.mxu1 %v15762_v19  ;;  %v15782_v19 = vld [vmem:[#allocation15 + $0x210] ss:$8 sps:$4 sm:$0xff]  }
 0x995   :  { %6450 = vmatprep.subr.bf16.mxu1 %v15765_v11  ;;  %18189 = vst [vmem:[#allocation64_spill] sm:$0xff] %v15782_v19  ;;  %v15785_v11 = vld [vmem:[#allocation15 + $0x224] ss:$8 sps:$4 sm:$0xff]  }
 0x996   :  { %18190 = vst [vmem:[#allocation65_spill] sm:$0xff] %v15785_v11 }
 0x998   :  { %6451 = vmatpush1.bf16.msra.mxu1 %v15768_v42 }
 0x999   :  { %6461 = vmatprep.subr.bf16.mxu1 %v15771_v14 }
 0x99b   :  { %6453 = vmatmul.mubr.bf16.vlgmr.msra.gmra.mrb[136].mxu1 %v5645_v7  ;;  %v15794_v7 = vld [vmem:[#allocation15 + $0x230] ss:$8 sps:$4 sm:$0xff]  }
 0x99c   :  { %6462 = vmatpush1.bf16.msra.mxu1 %v15776_v59  ;;  %6493 = vmatprep.mubr.bf16.mxu1 %v5692_v63  ;;  %18193 = vst [vmem:[#allocation68_spill] sm:$0xff] %v15794_v7  ;;  %v15797_v59 = vld [vmem:[#allocation15 + $0x244] ss:$8 sps:$4 sm:$0xff]   ;;  %v15800_v63 = vld [vmem:[#allocation15 + $0x240] ss:$8 sps:$4 sm:$0xff]  }
 0x99d   :  { %6463 = vmatprep.subr.bf16.mxu1 %v15779_v13  ;;  %18194 = vst [vmem:[#allocation69_spill] sm:$0xff] %v15797_v59  ;;  %18195 = vst [vmem:[#allocation70_spill] sm:$0xff] %v15800_v63  ;;  %v15811_v13 = vpop.f32.mrb[132].mxu1 }
 0x99e   :  { %v5737_v41 = vpack.c.bf16 %v15811_v13, %v15811_v13 }
 0x9a0   :  { %6464 = vmatpush1.bf16.msra.mxu1 %v15782_v19  ;;  %v15803_v19 = vld [vmem:[#allocation15 + $0x254] ss:$8 sps:$4 sm:$0xff]  }
 0x9a1   :  { %6465 = vmatprep.subr.bf16.mxu1 %v15785_v11  ;;  %18196 = vst [vmem:[#allocation71_spill] sm:$0xff] %v15803_v19  ;;  %v15806_v11 = vld [vmem:[#allocation15 + $0x250] ss:$8 sps:$4 sm:$0xff]  }
 0x9a2   :  { %18197 = vst [vmem:[#allocation72_spill] sm:$0xff] %v15806_v11 }
 0x9a4   :  { %6466 = vmatpush1.bf16.msra.mxu1 %v15788_v50  ;;  %v15809_v50 = vld [vmem:[#allocation15 + $0x264] ss:$8 sps:$4 sm:$0xff]  }
 0x9a5   :  { %6467 = vmatprep.subr.bf16.mxu1 %v15791_v0  ;;  %18198 = vst [vmem:[#allocation73_spill] sm:$0xff] %v15809_v50  ;;  %v15814_v0 = vld [vmem:[#allocation15 + $0x260] ss:$8 sps:$4 sm:$0xff]  }
 0x9a6   :  { %18199 = vst [vmem:[#allocation74_spill] sm:$0xff] %v15814_v0 }
 0x9a8   :  { %6468 = vmatpush1.bf16.msra.mxu1 %v15794_v7  ;;  %v5732_v7 = vpop.f32.mrb[133].mxu1 }
 0x9a9   :  { %6469 = vmatprep.subr.bf16.mxu1 %v15797_v59  ;;  %v15817_v59 = vld [vmem:[#allocation15 + $0x274] ss:$8 sps:$4 sm:$0xff]   ;;  %v5734_v14 = vpop.f32.mrb[134].mxu1 }
 0x9aa   :  { %18200 = vst [vmem:[#allocation75_spill] sm:$0xff] %v15817_v59  ;;  %v5735_v42 = vpop.f32.mrb[135].mxu1  ;;  %v15832_v14 = vld [vmem:[#allocation15 + $0x290] ss:$8 sps:$4 sm:$0xff]  }
 0x9ab   :  { %18205 = vst [vmem:[#allocation80_spill] sm:$0xff] %v15832_v14  ;;  %v15835_v42 = vld [vmem:[#allocation15 + $0x2a4] ss:$8 sps:$4 sm:$0xff]  }
 0x9ac   :  { %6470 = vmatpush1.bf16.msra.mxu1 %v15800_v63  ;;  %v15820_v63 = vld [vmem:[#allocation15 + $0x270] ss:$8 sps:$4 sm:$0xff]   ;;  %18206 = vst [vmem:[#allocation81_spill] sm:$0xff] %v15835_v42 }
 0x9ad   :  { %6471 = vmatprep.subr.bf16.mxu1 %v15803_v19  ;;  %18201 = vst [vmem:[#allocation76_spill] sm:$0xff] %v15820_v63  ;;  %v15823_v19 = vld [vmem:[#allocation15 + $0x284] ss:$8 sps:$4 sm:$0xff]  }
 0x9ae   :  { %18202 = vst [vmem:[#allocation77_spill] sm:$0xff] %v15823_v19 }
 0x9b0   :  { %6472 = vmatpush1.bf16.msra.mxu1 %v15806_v11  ;;  %v15826_v11 = vld [vmem:[#allocation15 + $0x280] ss:$8 sps:$4 sm:$0xff]  }
 0x9b1   :  { %6473 = vmatprep.subr.bf16.mxu1 %v15809_v50  ;;  %18203 = vst [vmem:[#allocation78_spill] sm:$0xff] %v15826_v11 }
 0x9b4   :  { %6474 = vmatpush1.bf16.msra.mxu1 %v15814_v0  ;;  %v5738_v0 = vpack.c.bf16 %v5732_v7, %v5732_v7  ;;  %v15891_v7 = vld [vmem:[#allocation15 + $0x334] ss:$8 sps:$4 sm:$0xff]  }
 0x9b5   :  { %6475 = vmatprep.subr.bf16.mxu1 %v15817_v59  ;;  %v15838_v59 = vld [vmem:[#allocation15 + $0x2a0] ss:$8 sps:$4 sm:$0xff]   ;;  %18224 = vst [vmem:[#allocation103_spill] sm:$0xff] %v15891_v7 }
 0x9b6   :  { %18207 = vst [vmem:[#allocation82_spill] sm:$0xff] %v15838_v59 }
 0x9b8   :  { %6476 = vmatpush1.bf16.msra.mxu1 %v15820_v63  ;;  %v15841_v63 = vld [vmem:[#allocation15 + $0x2b4] ss:$8 sps:$4 sm:$0xff]  }
 0x9b9   :  { %6477 = vmatprep.subr.bf16.mxu1 %v15823_v19  ;;  %18208 = vst [vmem:[#allocation83_spill] sm:$0xff] %v15841_v63  ;;  %v15844_v19 = vld [vmem:[#allocation15 + $0x2b0] ss:$8 sps:$4 sm:$0xff]  }
 0x9ba   :  { %18209 = vst [vmem:[#allocation84_spill] sm:$0xff] %v15844_v19 }
 0x9bc   :  { %6478 = vmatpush1.bf16.msra.mxu1 %v15826_v11  ;;  %v15847_v11 = vld [vmem:[#allocation15 + $0x2c4] ss:$8 sps:$4 sm:$0xff]  }
 0x9bd   :  { %6479 = vmatprep.subr.bf16.mxu1 %v15829_v62  ;;  %18210 = vst [vmem:[#allocation85_spill] sm:$0xff] %v15847_v11  ;;  %v15850_v62 = vld [vmem:[#allocation15 + $0x2c0] ss:$8 sps:$4 sm:$0xff]  }
 0x9be   :  { %18211 = vst [vmem:[#allocation86_spill] sm:$0xff] %v15850_v62 }
 0x9c0   :  { %6480 = vmatpush1.bf16.msra.mxu1 %v15832_v14  ;;  %v15853_v14 = vld [vmem:[#allocation15 + $0x2d4] ss:$8 sps:$4 sm:$0xff]  }
 0x9c1   :  { %6481 = vmatprep.subr.bf16.mxu1 %v15835_v42  ;;  %18212 = vst [vmem:[#allocation87_spill] sm:$0xff] %v15853_v14  ;;  %v15856_v42 = vld [vmem:[#allocation15 + $0x2d0] ss:$8 sps:$4 sm:$0xff]  }
 0x9c2   :  { %18213 = vst [vmem:[#allocation88_spill] sm:$0xff] %v15856_v42 }
 0x9c4   :  { %6482 = vmatpush1.bf16.msra.mxu1 %v15838_v59  ;;  %v15859_v59 = vld [vmem:[#allocation15 + $0x2e4] ss:$8 sps:$4 sm:$0xff]  }
 0x9c5   :  { %6483 = vmatprep.subr.bf16.mxu1 %v15841_v63  ;;  %18214 = vst [vmem:[#allocation89_spill] sm:$0xff] %v15859_v59  ;;  %v15862_v63 = vld [vmem:[#allocation15 + $0x2e0] ss:$8 sps:$4 sm:$0xff]  }
 0x9c6   :  { %18215 = vst [vmem:[#allocation90_spill] sm:$0xff] %v15862_v63 }
 0x9c8   :  { %6484 = vmatpush1.bf16.msra.mxu1 %v15844_v19  ;;  %v15865_v19 = vld [vmem:[#allocation15 + $0x2f4] ss:$8 sps:$4 sm:$0xff]  }
 0x9c9   :  { %6485 = vmatprep.subr.bf16.mxu1 %v15847_v11  ;;  %18216 = vst [vmem:[#allocation91_spill] sm:$0xff] %v15865_v19  ;;  %v15868_v11 = vld [vmem:[#allocation15 + $0x2f0] ss:$8 sps:$4 sm:$0xff]  }
 0x9ca   :  { %18217 = vst [vmem:[#allocation92_spill] sm:$0xff] %v15868_v11 }
 0x9cc   :  { %6486 = vmatpush1.bf16.msra.mxu1 %v15850_v62  ;;  %v15871_v62 = vld [vmem:[#allocation15 + $0x304] ss:$8 sps:$4 sm:$0xff]  }
 0x9cd   :  { %6487 = vmatprep.subr.bf16.mxu1 %v15853_v14  ;;  %18218 = vst [vmem:[#allocation93_spill] sm:$0xff] %v15871_v62  ;;  %v5691_v14 = vpack.c.bf16 %v15699_v32, %v15699_v32  ;;  %v15888_v32 = vld [vmem:[#allocation15 + $0x320] ss:$8 sps:$4 sm:$0xff]  }
 0x9ce   :  { %18223 = vst [vmem:[#allocation102_spill] sm:$0xff] %v15888_v32 }
 0x9d0   :  { %6488 = vmatpush1.bf16.msra.mxu1 %v15856_v42  ;;  %v15876_v42 = vld [vmem:[#allocation15 + $0x300] ss:$8 sps:$4 sm:$0xff]  }
 0x9d1   :  { %6489 = vmatprep.subr.bf16.mxu1 %v15859_v59  ;;  %18219 = vst [vmem:[#allocation94_spill] sm:$0xff] %v15876_v42  ;;  %v15879_v59 = vld [vmem:[#allocation15 + $0x314] ss:$8 sps:$4 sm:$0xff]  }
 0x9d2   :  { %18220 = vst [vmem:[#allocation95_spill] sm:$0xff] %v15879_v59 }
 0x9d4   :  { %6490 = vmatpush1.bf16.msra.mxu1 %v15862_v63  ;;  %v15882_v63 = vld [vmem:[#allocation15 + $0x310] ss:$8 sps:$4 sm:$0xff]  }
 0x9d5   :  { %6491 = vmatprep.subr.bf16.mxu1 %v15865_v19  ;;  %18221 = vst [vmem:[#allocation96_spill] sm:$0xff] %v15882_v63  ;;  %v15885_v19 = vld [vmem:[#allocation15 + $0x324] ss:$8 sps:$4 sm:$0xff]  }
 0x9d6   :  { %18222 = vst [vmem:[#allocation97_spill] sm:$0xff] %v15885_v19 }
 0x9d8   :  { %6492 = vmatpush1.bf16.msra.mxu1 %v15868_v11 }
 0x9d9   :  { %6502 = vmatprep.subr.bf16.mxu1 %v15871_v62 }
 0x9db   :  { %6494 = vmatmul.mubr.bf16.vlgmr.msra.gmra.mrb[136].mxu1 %v5691_v14  ;;  %v15894_v14 = vld [vmem:[#allocation15 + $0x330] ss:$8 sps:$4 sm:$0xff]  }
 0x9dc   :  { %6503 = vmatpush1.bf16.msra.mxu1 %v15876_v42  ;;  %6534 = vmatprep.mubr.bf16.mxu1 %v5738_v0  ;;  %18225 = vst [vmem:[#allocation104_spill] sm:$0xff] %v15894_v14  ;;  %v15897_v42 = vld [vmem:[#allocation15 + $0x344] ss:$8 sps:$4 sm:$0xff]   ;;  %v15900_v0 = vld [vmem:[#allocation15 + $0x340] ss:$8 sps:$4 sm:$0xff]  }
 0x9dd   :  { %6504 = vmatprep.subr.bf16.mxu1 %v15879_v59  ;;  %18226 = vst [vmem:[#allocation105_spill] sm:$0xff] %v15897_v42  ;;  %18227 = vst [vmem:[#allocation106_spill] sm:$0xff] %v15900_v0 }
 0x9e0   :  { %6505 = vmatpush1.bf16.msra.mxu1 %v15882_v63  ;;  %v15903_v63 = vld [vmem:[#allocation15 + $0x354] ss:$8 sps:$4 sm:$0xff]  }
 0x9e1   :  { %6506 = vmatprep.subr.bf16.mxu1 %v15885_v19  ;;  %18228 = vst [vmem:[#allocation107_spill] sm:$0xff] %v15903_v63  ;;  %v15906_v19 = vld [vmem:[#allocation15 + $0x350] ss:$8 sps:$4 sm:$0xff]  }
 0x9e2   :  { %18229 = vst [vmem:[#allocation108_spill] sm:$0xff] %v15906_v19 }
 0x9e4   :  { %6507 = vmatpush1.bf16.msra.mxu1 %v15888_v32  ;;  %v15909_v32 = vld [vmem:[#allocation15 + $0x364] ss:$8 sps:$4 sm:$0xff]  }
 0x9e5   :  { %6508 = vmatprep.subr.bf16.mxu1 %v15891_v7  ;;  %18230 = vst [vmem:[#allocation109_spill] sm:$0xff] %v15909_v32  ;;  %v15912_v7 = vld [vmem:[#allocation15 + $0x360] ss:$8 sps:$4 sm:$0xff]  }
 0x9e6   :  { %18231 = vst [vmem:[#allocation110_spill] sm:$0xff] %v15912_v7 }
 0x9e8   :  { %6509 = vmatpush1.bf16.msra.mxu1 %v15894_v14  ;;  %v15915_v14 = vld [vmem:[#allocation15 + $0x374] ss:$8 sps:$4 sm:$0xff]  }
 0x9e9   :  { %6510 = vmatprep.subr.bf16.mxu1 %v15897_v42  ;;  %18232 = vst [vmem:[#allocation111_spill] sm:$0xff] %v15915_v14  ;;  %v15918_v42 = vld [vmem:[#allocation15 + $0x370] ss:$8 sps:$4 sm:$0xff]  }
 0x9ea   :  { %18233 = vst [vmem:[#allocation112_spill] sm:$0xff] %v15918_v42 }
 0x9ec   :  { %6511 = vmatpush1.bf16.msra.mxu1 %v15900_v0  ;;  %v15921_v0 = vld [vmem:[#allocation15 + $0x384] ss:$8 sps:$4 sm:$0xff]  }
 0x9ed   :  { %6512 = vmatprep.subr.bf16.mxu1 %v15903_v63  ;;  %18234 = vst [vmem:[#allocation113_spill] sm:$0xff] %v15921_v0  ;;  %v15924_v63 = vld [vmem:[#allocation15 + $0x380] ss:$8 sps:$4 sm:$0xff]  }
 0x9ee   :  { %18235 = vst [vmem:[#allocation114_spill] sm:$0xff] %v15924_v63 }
 0x9f0   :  { %6513 = vmatpush1.bf16.msra.mxu1 %v15906_v19  ;;  %v15927_v19 = vld [vmem:[#allocation15 + $0x394] ss:$8 sps:$4 sm:$0xff]  }
 0x9f1   :  { %6514 = vmatprep.subr.bf16.mxu1 %v15909_v32  ;;  %18236 = vst [vmem:[#allocation115_spill] sm:$0xff] %v15927_v19  ;;  %v15930_v32 = vld [vmem:[#allocation15 + $0x390] ss:$8 sps:$4 sm:$0xff]  }
 0x9f2   :  { %18237 = vst [vmem:[#allocation116_spill] sm:$0xff] %v15930_v32 }
 0x9f4   :  { %6515 = vmatpush1.bf16.msra.mxu1 %v15912_v7  ;;  %v15933_v7 = vld [vmem:[#allocation15 + $0x3a4] ss:$8 sps:$4 sm:$0xff]  }
 0x9f5   :  { %6516 = vmatprep.subr.bf16.mxu1 %v15915_v14  ;;  %18238 = vst [vmem:[#allocation117_spill] sm:$0xff] %v15933_v7  ;;  %v15936_v14 = vld [vmem:[#allocation15 + $0x3a0] ss:$8 sps:$4 sm:$0xff]  }
 0x9f6   :  { %18239 = vst [vmem:[#allocation118_spill] sm:$0xff] %v15936_v14 }
 0x9f8   :  { %6517 = vmatpush1.bf16.msra.mxu1 %v15918_v42  ;;  %v15939_v42 = vld [vmem:[#allocation15 + $0x3b4] ss:$8 sps:$4 sm:$0xff]  }
 0x9f9   :  { %6518 = vmatprep.subr.bf16.mxu1 %v15921_v0  ;;  %18240 = vst [vmem:[#allocation119_spill] sm:$0xff] %v15939_v42  ;;  %v15942_v0 = vld [vmem:[#allocation15 + $0x3b0] ss:$8 sps:$4 sm:$0xff]  }
 0x9fa   :  { %18241 = vst [vmem:[#allocation120_spill] sm:$0xff] %v15942_v0 }
 0x9fc   :  { %6519 = vmatpush1.bf16.msra.mxu1 %v15924_v63  ;;  %v15945_v63 = vld [vmem:[#allocation15 + $0x3c4] ss:$8 sps:$4 sm:$0xff]  }
 0x9fd   :  { %6520 = vmatprep.subr.bf16.mxu1 %v15927_v19  ;;  %18242 = vst [vmem:[#allocation121_spill] sm:$0xff] %v15945_v63  ;;  %v15948_v19 = vld [vmem:[#allocation15 + $0x3c0] ss:$8 sps:$4 sm:$0xff]  }
 0x9fe   :  { %18243 = vst [vmem:[#allocation122_spill] sm:$0xff] %v15948_v19 }
 0xa00   :  { %6521 = vmatpush1.bf16.msra.mxu1 %v15930_v32  ;;  %v15951_v32 = vld [vmem:[#allocation15 + $0x3d4] ss:$8 sps:$4 sm:$0xff]  }
 0xa01   :  { %6522 = vmatprep.subr.bf16.mxu1 %v15933_v7  ;;  %18244 = vst [vmem:[#allocation123_spill] sm:$0xff] %v15951_v32  ;;  %v15954_v7 = vld [vmem:[#allocation15 + $0x3d0] ss:$8 sps:$4 sm:$0xff]  }
 0xa02   :  { %18245 = vst [vmem:[#allocation124_spill] sm:$0xff] %v15954_v7 }
 0xa04   :  { %6523 = vmatpush1.bf16.msra.mxu1 %v15936_v14  ;;  %v15957_v14 = vld [vmem:[#allocation15 + $0x3e4] ss:$8 sps:$4 sm:$0xff]  }
 0xa05   :  { %6524 = vmatprep.subr.bf16.mxu1 %v15939_v42  ;;  %18246 = vst [vmem:[#allocation125_spill] sm:$0xff] %v15957_v14  ;;  %v15960_v42 = vld [vmem:[#allocation15 + $0x3e0] ss:$8 sps:$4 sm:$0xff]  }
 0xa06   :  { %18247 = vst [vmem:[#allocation126_spill] sm:$0xff] %v15960_v42 }
 0xa08   :  { %6525 = vmatpush1.bf16.msra.mxu1 %v15942_v0  ;;  %v15963_v0 = vld [vmem:[#allocation15 + $0x3f4] ss:$8 sps:$4 sm:$0xff]  }
 0xa09   :  { %6526 = vmatprep.subr.bf16.mxu1 %v15945_v63  ;;  %18248 = vst [vmem:[#allocation127_spill] sm:$0xff] %v15963_v0  ;;  %v15966_v63 = vld [vmem:[#allocation15 + $0x3f0] ss:$8 sps:$4 sm:$0xff]  }
 0xa0a   :  { %18249 = vst [vmem:[#allocation128_spill] sm:$0xff] %v15966_v63 }
 0xa0c   :  { %6527 = vmatpush1.bf16.msra.mxu1 %v15948_v19  ;;  %v18250_v19 = vld [vmem:[#allocation98_spill] sm:$0xff] }
 0xa0d   :  { %6528 = vmatprep.subr.bf16.mxu1 %v15951_v32  ;;  %v18251_v32 = vld [vmem:[#allocation99_spill] sm:$0xff] }
 0xa10   :  { %6529 = vmatpush1.bf16.msra.mxu1 %v15954_v7  ;;  %v18252_v7 = vld [vmem:[#allocation100_spill] sm:$0xff] }
 0xa11   :  { %6530 = vmatprep.subr.bf16.mxu1 %v15957_v14 }
 0xa14   :  { %v5387_v59 = vpop.f32.mrb[92].mxu0  ;;  %6531 = vmatpush1.bf16.msra.mxu1 %v15960_v42 }
 0xa15   :  { %v5396_v62 = vmul.f32 %v5387_v59, %v18250_v19  ;;  %v5389_v11 = vpop.f32.mrb[93].mxu0  ;;  %6532 = vmatprep.subr.bf16.mxu1 %v15963_v0 }
 0xa16   :  { %v5397_v50 = vmul.f32 %v5389_v11, %v18251_v32  ;;  %v5391_v38 = vpop.f32.mrb[94].mxu0 }
 0xa17   :  { %v5400_v35 = vadd.f32 %v5396_v62, %v18252_v7  ;;  %v5398_v6 = vmul.f32 %v5391_v38, %v18250_v19  ;;  %v5393_v14 = vpop.f32.mrb[95].mxu0 }
 0xa18   :  { %v5401_v42 = vadd.f32 %v5397_v50, %v18253_v49  ;;  %v5399_v4 = vmul.f32 %v5393_v14, %v18251_v32  ;;  %6533 = vmatpush1.bf16.msra.mxu1 %v15966_v63 }
 0xa19   :  { %v5408_v59 = vmul.f32 0.2, %v5400_v35  ;;  %v5402_v0 = vadd.f32 %v5398_v6, %v18252_v7  ;;  %vm5404_vm7 = vcmp.ge.f32.partialorder %v5400_v35, 0.0 }
 0xa1a   :  { %v5409_v11 = vmul.f32 0.2, %v5401_v42  ;;  %v5403_v30 = vadd.f32 %v5399_v4, %v18253_v49  ;;  %vm5405_vm8 = vcmp.ge.f32.partialorder %v5401_v42, 0.0  ;;  %v16065_v49 = vld [vmem:[%s17523_s13 + $0x2] sm:$0x3] }
 0xa1b   :  { %vm5406_vm9 = vcmp.ge.f32.partialorder %v5402_v0, 0.0  ;;  %v5410_v38 = vmul.f32 0.2, %v5402_v0  ;;  %6535 = vmatmul.mubr.bf16.vlgmr.msra.gmra.mrb[136].mxu1 %v5737_v41  ;;  %v5412_v13 = vsel %vm5404_vm7, %v5400_v35, %v5408_v59  ;;  %v18258_v41 = vld [vmem:[#allocation37_spill] sm:$0xff]  ;;  %v18259_v35 = vld [vmem:[#allocation38_spill] sm:$0xff] }
 0xa1c   :  { %vm5407_vm10 = vcmp.ge.f32.partialorder %v5403_v30, 0.0  ;;  %v5411_v62 = vmul.f32 0.2, %v5403_v30  ;;  %7119 = vmatprep.mubr.bf16.mxu1 %v17942_v24  ;;  %v5413_v50 = vsel %vm5405_vm8, %v5401_v42, %v5409_v11  ;;  %v18261_v42 = vld [vmem:[#allocation40_spill] sm:$0xff]  ;;  %v18263_v11 = vld [vmem:[#allocation42_spill] sm:$0xff] }
 0xa1d   :  { %v5414_v19 = vsel %vm5406_vm9, %v5402_v0, %v5410_v38  ;;  %v18262_v0 = vld [vmem:[#allocation41_spill] sm:$0xff]  ;;  %v18264_v38 = vld [vmem:[#allocation43_spill] sm:$0xff] }
 0xa1e   :  { %v5415_v32 = vsel %vm5407_vm10, %v5403_v30, %v5411_v62  ;;  %v5416_v14 = vpack.c.bf16 %v5414_v19, %v5412_v13  ;;  %v18265_v62 = vld [vmem:[#allocation44_spill] sm:$0xff]  ;;  %v18266_v13 = vld [vmem:[#allocation45_spill] sm:$0xff]  ;;  %v18267_v19 = vld [vmem:[#allocation46_spill] sm:$0xff] }
 0xa1f   :  { %v5417_v63 = vpack.c.bf16 %v5415_v32, %v5413_v50  ;;  %v18268_v50 = vld [vmem:[#allocation47_spill] sm:$0xff]  ;;  %v18269_v32 = vld [vmem:[#allocation48_spill] sm:$0xff] }
 0xa21   :  { %6592 = vmatprep.subr.bf16.mxu0 %v5417_v63 }
 0xa22   :  { %6593 = vmatpush1.bf16.msra.mxu0 %v5416_v14 }
 0xa23   :  { %6635 = vmatprep.subr.bf16.mxu0 %v5417_v63 }
 0xa25   :  { %10668 = vmatmul.mubr.msk.bf16.vlgmr.msra.gmra.mrb[96].mxu0 %vm5554_vm6, %v15434_v1  ;;  %v5546_v1 = vld [vmem:[#allocation16] sm:$0xf] }
 0xa26   :  { %6636 = vmatpush1.bf16.msra.mxu0 %v5416_v14  ;;  %6667 = vmatprep.mubr.bf16.mxu0 %v17942_v24 }
 0xa27   :  { %6678 = vmatprep.subr.bf16.mxu0 %v5417_v63 }
 0xa2d   :  { %10669 = vmatmul.mubr.msk.bf16.vlgmr.msra.gmra.mrb[100].mxu0 %vm5554_vm6, %v15443_v22  ;;  %v18254_v22 = vld [vmem:[#allocation33_spill] sm:$0xff] }
 0xa2e   :  { %6679 = vmatpush1.bf16.msra.mxu0 %v5416_v14  ;;  %6710 = vmatprep.mubr.bf16.mxu0 %v17942_v24 }
 0xa2f   :  { %6721 = vmatprep.subr.bf16.mxu0 %v5417_v63 }
 0xa35   :  { %10670 = vmatmul.mubr.msk.bf16.vlgmr.msra.gmra.mrb[104].mxu0 %vm5554_vm6, %v15454_v3  ;;  %v6547_v3 = vrot.slane %v5546_v1, %v18254_v22 }
 0xa36   :  { %6722 = vmatpush1.bf16.msra.mxu0 %v5416_v14  ;;  %6753 = vmatprep.mubr.bf16.mxu0 %v17942_v24  ;;  %v18270_v14 = vld [vmem:[#allocation49_spill] sm:$0xff] }
 0xa37   :  { %6764 = vmatprep.subr.bf16.mxu0 %v15485_v60  ;;  %v18255_v60 = vld [vmem:[#allocation34_spill] sm:$0xff] }
 0xa3d   :  { %10671 = vmatmul.mubr.msk.bf16.vlgmr.msra.gmra.mrb[108].mxu0 %vm5554_vm6, %v15492_v44  ;;  %v18256_v44 = vld [vmem:[#allocation35_spill] sm:$0xff] }
 0xa3e   :  { %6765 = vmatpush1.bf16.msra.mxu0 %v15488_v56  ;;  %v6551_v56 = vrot.slane %v5546_v1, %v18255_v60 }
 0xa3f   :  { %6766 = vmatprep.subr.bf16.mxu0 %v15497_v48  ;;  %v6567_v48 = vrot.slane %v5546_v1, %v18256_v44 }
 0xa42   :  { %6767 = vmatpush1.bf16.msra.mxu0 %v15500_v61  ;;  %v18257_v61 = vld [vmem:[#allocation36_spill] sm:$0xff] }
 0xa43   :  { %6768 = vmatprep.subr.bf16.mxu0 %v15505_v5  ;;  %v6571_v5 = vrot.slane %v5546_v1, %v18257_v61  ;;  %v18271_v1 = vld [vmem:[#allocation50_spill] sm:$0xff] }
 0xa46   :  { %6769 = vmatpush1.bf16.msra.mxu0 %v15508_v54  ;;  %v16030_v54 = vrot.slane %v6547_v3, %v18254_v22  ;;  %v18272_v3 = vld [vmem:[#allocation51_spill] sm:$0xff] }
 0xa47   :  { %6770 = vmatprep.subr.bf16.mxu0 %v15513_v28  ;;  %v16033_v28 = vrot.slane %v6551_v56, %v18254_v22  ;;  %v18273_v56 = vld [vmem:[#allocation52_spill] sm:$0xff] }
 0xa4a   :  { %6771 = vmatpush1.bf16.msra.mxu0 %v15516_v51  ;;  %v16036_v51 = vrot.slane %v6567_v48, %v18256_v44  ;;  %v18274_v48 = vld [vmem:[#allocation53_spill] sm:$0xff] }
 0xa4b   :  { %6772 = vmatprep.subr.bf16.mxu0 %v15526_v17  ;;  %v16039_v17 = vrot.slane %v6571_v5, %v18256_v44  ;;  %v16108_v5 = vld [vmem:[#allocation18 + $0x4] ss:$8 sps:$4 sm:$0xff]  }
 0xa4e   :  { %6773 = vmatpush1.bf16.msra.mxu0 %v15524_v33 }
 0xa4f   :  { %6774 = vmatprep.subr.bf16.mxu0 %v15532_v16 }
 0xa52   :  { %6775 = vmatpush1.bf16.msra.mxu0 %v15537_v39 }
 0xa53   :  { %6776 = vmatprep.subr.bf16.mxu0 %v15541_v55 }
 0xa56   :  { %6777 = vmatpush1.bf16.msra.mxu0 %v15545_v15 }
 0xa57   :  { %6778 = vmatprep.subr.bf16.mxu0 %v15549_v21 }
 0xa5a   :  { %6779 = vmatpush1.bf16.msra.mxu0 %v15553_v31 }
 0xa5b   :  { %6780 = vmatprep.subr.bf16.mxu0 %v15557_v47 }
 0xa5e   :  { %6781 = vmatpush1.bf16.msra.mxu0 %v15561_v34 }
 0xa5f   :  { %6782 = vmatprep.subr.bf16.mxu0 %v15565_v58 }
 0xa62   :  { %6783 = vmatpush1.bf16.msra.mxu0 %v15569_v20 }
 0xa63   :  { %6784 = vmatprep.subr.bf16.mxu0 %v15573_v26 }
 0xa66   :  { %6785 = vmatpush1.bf16.msra.mxu0 %v15577_v37 }
 0xa67   :  { %6786 = vmatprep.subr.bf16.mxu0 %v15581_v29 }
 0xa6a   :  { %6787 = vmatpush1.bf16.msra.mxu0 %v15585_v10 }
 0xa6b   :  { %6788 = vmatprep.subr.bf16.mxu0 %v15589_v23 }
 0xa6e   :  { %6789 = vmatpush1.bf16.msra.mxu0 %v15593_v57 }
 0xa6f   :  { %6790 = vmatprep.subr.bf16.mxu0 %v15597_v8 }
 0xa72   :  { %6791 = vmatpush1.bf16.msra.mxu0 %v15601_v2 }
 0xa73   :  { %6792 = vmatprep.subr.bf16.mxu0 %v15605_v43  ;;  %v16050_v43 = vld [vmem:[%s17523_s13] sm:$0x3] }
 0xa76   :  { %6793 = vmatpush1.bf16.msra.mxu0 %v15609_v27 }
 0xa77   :  { %6794 = vmatprep.subr.bf16.mxu0 %v15613_v53 }
 0xa7a   :  { %6795 = vmatpush1.bf16.msra.mxu0 %v15617_v18 }
 0xa7b   :  { %6805 = vmatprep.subr.bf16.mxu0 %v15621_v36 }
 0xaee   :  { %v6536_v33 = vpop.f32.mrb[136].mxu1 }
 0xaef   :  { %v6562_v16 = vmul.f32 %v16030_v54, %v6536_v33  ;;  %v6538_v39 = vpop.f32.mrb[137].mxu1  ;;  %v16110_v33 = vld [vmem:[#allocation18] ss:$8 sps:$4 sm:$0xff]  }
 0xaf0   :  { %v6563_v55 = vmul.f32 %v16033_v28, %v6538_v39  ;;  %v6540_v15 = vpop.f32.mrb[138].mxu1  ;;  %v18275_v39 = vld [vmem:[#allocation54_spill] sm:$0xff] }
 0xaf1   :  { %v6582_v21 = vadd.f32 %v16036_v51, %v6562_v16  ;;  %v6541_v31 = vpop.f32.mrb[139].mxu1  ;;  %v16116_v16 = vld [vmem:[%s17523_s13 + $0x6] sm:$0x3]  ;;  %v16123_v15 = vld [vmem:[#allocation18 + $0x14] ss:$8 sps:$4 sm:$0xff]  }
 0xaf2   :  { %v6583_v47 = vadd.f32 %v16039_v17, %v6563_v55  ;;  %v18276_v55 = vld [vmem:[#allocation55_spill] sm:$0xff]  ;;  %v18277_v31 = vld [vmem:[#allocation56_spill] sm:$0xff] }
 0xaf3   :  { %vm6584_vm11 = vcmp.ge.f32.partialorder %v6582_v21, 0.0  ;;  %v6586_v34 = vmul.f32 0.2, %v6582_v21 }
 0xaf4   :  { %vm6585_vm12 = vcmp.ge.f32.partialorder %v6583_v47, 0.0  ;;  %v6587_v58 = vmul.f32 0.2, %v6583_v47 }
 0xaf5   :  { %v6588_v20 = vsel %vm6584_vm11, %v6582_v21, %v6586_v34  ;;  %v16125_v21 = vld [vmem:[#allocation18 + $0x10] ss:$8 sps:$4 sm:$0xff]   ;;  %v16131_v34 = vld [vmem:[#allocation18 + $0x24] ss:$8 sps:$4 sm:$0xff]  }
 0xaf6   :  { %v6589_v26 = vsel %vm6585_vm12, %v6583_v47, %v6587_v58  ;;  %v6590_v37 = vpack.c.bf16 %v6588_v20, %v6588_v20  ;;  %v18278_v47 = vld [vmem:[#allocation57_spill] sm:$0xff]  ;;  %v16133_v58 = vld [vmem:[#allocation18 + $0x20] ss:$8 sps:$4 sm:$0xff]   ;;  %v18279_v20 = vld [vmem:[#allocation58_spill] sm:$0xff] }
 0xaf7   :  { %v6591_v29 = vpack.c.bf16 %v6589_v26, %v6589_v26  ;;  %v18280_v26 = vld [vmem:[#allocation59_spill] sm:$0xff] }
 0xaf8   :  { %v6626_v10 = vpop.f32.mrb[96].mxu0  ;;  %v7082_v23 = vsel %vm7080_vm13, %v6590_v37, 0  ;;  %v16139_v37 = vld [vmem:[#allocation18 + $0x34] ss:$8 sps:$4 sm:$0xff]  }
 0xaf9   :  { %v6628_v57 = vpop.f32.mrb[97].mxu0  ;;  %10675 = vmatprep.subr.msk.bf16.mxu1 %vm7080_vm13, %v6591_v29  ;;  %v6633_v27 = vpack.c.bf16 %v6626_v10, %v6626_v10 }
 0xafa   :  { %v6634_v8 = vpack.c.bf16 %v6628_v57, %v6628_v57  ;;  %v6630_v2 = vpop.f32.mrb[98].mxu0  ;;  %7088 = vmatpush1.bf16.msra.mxu1 %v7082_v23 }
 0xafb   :  { %v6631_v53 = vpop.f32.mrb[99].mxu0  ;;  %10677 = vmatprep.subr.msk.bf16.mxu1 %vm7080_vm13, %v6591_v29  ;;  %v16151_v2 = vld [vmem:[#allocation18 + $0x44] ss:$8 sps:$4 sm:$0xff]  }
 0xafc   :  { %6796 = vmatprep.mubr.bf16.mxu0 %v6634_v8  ;;  %v18282_v8 = vld [vmem:[#allocation61_spill] sm:$0xff]  ;;  %v16156_v53 = vld [vmem:[#allocation18 + $0x54] ss:$8 sps:$4 sm:$0xff]  }
 0xafd   :  { %6797 = vmatmul.mubr.bf16.vlgmr.msra.gmra.mrb[112].mxu0 %v6633_v27  ;;  %10676 = vmatmul.mubr.msk.bf16.vlgmr.msra.gmra.mrb[140].mxu1 %vm7076_vm14, %v16050_v43  ;;  %v16153_v27 = vld [vmem:[#allocation18 + $0x40] ss:$8 sps:$4 sm:$0xff]  }
 0xafe   :  { %6806 = vmatpush1.bf16.msra.mxu0 %v15675_v9  ;;  %7134 = vmatpush1.bf16.msra.mxu1 %v7082_v23 }
 0xaff   :  { %6807 = vmatprep.subr.bf16.mxu0 %v15677_v46  ;;  %7165 = vmatprep.mubr.bf16.mxu1 %v17942_v24 }
 0xb00   :  { %v16058_v18 = vpop.f32.mrb[100].mxu0  ;;  %10679 = vmatprep.subr.msk.bf16.mxu1 %vm7080_vm13, %v6591_v29 }
 0xb01   :  { %v6671_v36 = vpop.f32.mrb[101].mxu0  ;;  %v6676_v10 = vpack.c.bf16 %v16058_v18, %v16058_v18  ;;  %v18283_v18 = vld [vmem:[#allocation62_spill] sm:$0xff] }
 0xb02   :  { %6808 = vmatpush1.bf16.msra.mxu0 %v15680_v12  ;;  %v6677_v30 = vpack.c.bf16 %v6671_v36, %v6671_v36  ;;  %v6673_v4 = vpop.f32.mrb[102].mxu0  ;;  %v18284_v36 = vld [vmem:[#allocation63_spill] sm:$0xff] }
 0xb03   :  { %6809 = vmatprep.subr.bf16.mxu0 %v15683_v45  ;;  %v6674_v9 = vpop.f32.mrb[103].mxu0  ;;  %v16164_v4 = vld [vmem:[#allocation18 + $0x64] ss:$8 sps:$4 sm:$0xff]  }
 0xb04   :  { %6837 = vmatprep.mubr.bf16.mxu0 %v6677_v30  ;;  %v16161_v30 = vld [vmem:[#allocation18 + $0x50] ss:$8 sps:$4 sm:$0xff]   ;;  %v18285_v9 = vld [vmem:[#allocation64_spill] sm:$0xff] }
 0xb05   :  { %10678 = vmatmul.mubr.msk.bf16.vlgmr.msra.gmra.mrb[144].mxu1 %vm7076_vm14, %v16065_v49 }
 0xb06   :  { %6810 = vmatpush1.bf16.msra.mxu0 %v15688_v25  ;;  %7180 = vmatpush1.bf16.msra.mxu1 %v7082_v23  ;;  %v18260_v25 = vld [vmem:[#allocation39_spill] sm:$0xff] }
 0xb07   :  { %6811 = vmatprep.subr.bf16.mxu0 %v15691_v40  ;;  %7211 = vmatprep.mubr.bf16.mxu1 %v17942_v24 }
 0xb08   :  { %v16073_v46 = vpop.f32.mrb[104].mxu0  ;;  %10681 = vmatprep.subr.msk.bf16.mxu1 %vm7080_vm13, %v6591_v29  ;;  %v16141_v29 = vld [vmem:[#allocation18 + $0x30] ss:$8 sps:$4 sm:$0xff]  }
 0xb09   :  { %v16076_v12 = vpop.f32.mrb[105].mxu0 }
 0xb0a   :  { %6812 = vmatpush1.bf16.msra.mxu0 %v15694_v52  ;;  %v6716_v45 = vpop.f32.mrb[106].mxu0  ;;  %v16091_v52 = vld [vmem:[%s17523_s13 + $0x4] sm:$0x3]  ;;  %v6720_v57 = vpack.c.bf16 %v16076_v12, %v16076_v12  ;;  %v18286_v12 = vld [vmem:[#allocation65_spill] sm:$0xff] }
 0xb0b   :  { %6813 = vmatprep.subr.bf16.mxu0 %v18258_v41  ;;  %v6717_v6 = vpop.f32.mrb[107].mxu0  ;;  %v16169_v45 = vld [vmem:[#allocation18 + $0x60] ss:$8 sps:$4 sm:$0xff]   ;;  %v16172_v41 = vld [vmem:[#allocation18 + $0x74] ss:$8 sps:$4 sm:$0xff]  }
 0xb0c   :  { %v18287_v6 = vld [vmem:[#allocation66_spill] sm:$0xff] }
 0xb0d   :  { %10680 = vmatmul.mubr.msk.bf16.vlgmr.msra.gmra.mrb[148].mxu1 %vm7076_vm14, %v16091_v52 }
 0xb0e   :  { %6814 = vmatpush1.bf16.msra.mxu0 %v18259_v35  ;;  %7226 = vmatpush1.bf16.msra.mxu1 %v7082_v23  ;;  %v18281_v23 = vld [vmem:[#allocation60_spill] sm:$0xff]  ;;  %v18288_v35 = vld [vmem:[#allocation67_spill] sm:$0xff] }
 0xb0f   :  { %6815 = vmatprep.subr.bf16.mxu0 %v18260_v25  ;;  %7257 = vmatprep.mubr.bf16.mxu1 %v17942_v24  ;;  %v16177_v25 = vld [vmem:[#allocation18 + $0x70] ss:$8 sps:$4 sm:$0xff]  }
 0xb10   :  { %v16082_v63 = vpop.f32.mrb[108].mxu0  ;;  %7908 = vmatprep.subr.bf16.mxu1 %v16108_v5 }
 0xb11   :  { %v16084_v40 = vpop.f32.mrb[109].mxu0 }
 0xb12   :  { %6816 = vmatpush1.bf16.msra.mxu0 %v18261_v42  ;;  %v6759_v7 = vpop.f32.mrb[110].mxu0  ;;  %v16180_v42 = vld [vmem:[#allocation18 + $0x84] ss:$8 sps:$4 sm:$0xff]  }
 0xb13   :  { %6817 = vmatprep.subr.bf16.mxu0 %v18262_v0  ;;  %v6760_v59 = vpop.f32.mrb[111].mxu0  ;;  %v18289_v7 = vld [vmem:[#allocation68_spill] sm:$0xff]  ;;  %v18290_v0 = vld [vmem:[#allocation69_spill] sm:$0xff] }
 0xb14   :  { %v16185_v59 = vld [vmem:[#allocation18 + $0x80] ss:$8 sps:$4 sm:$0xff]  }
 0xb15   :  { %10682 = vmatmul.mubr.msk.bf16.vlgmr.msra.gmra.mrb[152].mxu1 %vm7076_vm14, %v16116_v16 }
 0xb16   :  { %6818 = vmatpush1.bf16.msra.mxu0 %v18263_v11  ;;  %7909 = vmatpush1.bf16.msra.mxu1 %v16110_v33  ;;  %v16188_v11 = vld [vmem:[#allocation18 + $0x94] ss:$8 sps:$4 sm:$0xff]  }
 0xb17   :  { %6819 = vmatprep.subr.bf16.mxu0 %v18264_v38  ;;  %7910 = vmatprep.subr.bf16.mxu1 %v16123_v15  ;;  %v18291_v38 = vld [vmem:[#allocation70_spill] sm:$0xff] }
 0xb1a   :  { %6820 = vmatpush1.bf16.msra.mxu0 %v18265_v62  ;;  %7911 = vmatpush1.bf16.msra.mxu1 %v16125_v21  ;;  %v18292_v62 = vld [vmem:[#allocation71_spill] sm:$0xff] }
 0xb1b   :  { %6821 = vmatprep.subr.bf16.mxu0 %v18266_v13  ;;  %7912 = vmatprep.subr.bf16.mxu1 %v16131_v34  ;;  %v16193_v13 = vld [vmem:[#allocation18 + $0x90] ss:$8 sps:$4 sm:$0xff]  }
 0xb1e   :  { %6822 = vmatpush1.bf16.msra.mxu0 %v18267_v19  ;;  %7913 = vmatpush1.bf16.msra.mxu1 %v16133_v58  ;;  %v16196_v19 = vld [vmem:[#allocation18 + $0xa4] ss:$8 sps:$4 sm:$0xff]  }
 0xb1f   :  { %6823 = vmatprep.subr.bf16.mxu0 %v18268_v50  ;;  %7914 = vmatprep.subr.bf16.mxu1 %v16139_v37  ;;  %v18293_v50 = vld [vmem:[#allocation72_spill] sm:$0xff] }
 0xb22   :  { %6824 = vmatpush1.bf16.msra.mxu0 %v18269_v32  ;;  %7915 = vmatpush1.bf16.msra.mxu1 %v16141_v29  ;;  %v18294_v32 = vld [vmem:[#allocation73_spill] sm:$0xff] }
 0xb23   :  { %6825 = vmatprep.subr.bf16.mxu0 %v18270_v14  ;;  %7916 = vmatprep.subr.bf16.mxu1 %v16151_v2  ;;  %v16201_v14 = vld [vmem:[#allocation18 + $0xa0] ss:$8 sps:$4 sm:$0xff]  }
 0xb26   :  { %6826 = vmatpush1.bf16.msra.mxu0 %v18271_v1  ;;  %7917 = vmatpush1.bf16.msra.mxu1 %v16153_v27  ;;  %v16204_v1 = vld [vmem:[#allocation18 + $0xb4] ss:$8 sps:$4 sm:$0xff]  }
 0xb27   :  { %6827 = vmatprep.subr.bf16.mxu0 %v18272_v3  ;;  %7918 = vmatprep.subr.bf16.mxu1 %v16156_v53  ;;  %v18295_v3 = vld [vmem:[#allocation74_spill] sm:$0xff] }
 0xb2a   :  { %6828 = vmatpush1.bf16.msra.mxu0 %v18273_v56  ;;  %7919 = vmatpush1.bf16.msra.mxu1 %v16161_v30  ;;  %v18296_v56 = vld [vmem:[#allocation75_spill] sm:$0xff] }
 0xb2b   :  { %6829 = vmatprep.subr.bf16.mxu0 %v18274_v48  ;;  %7920 = vmatprep.subr.bf16.mxu1 %v16164_v4  ;;  %v16209_v48 = vld [vmem:[#allocation18 + $0xb0] ss:$8 sps:$4 sm:$0xff]  }
 0xb2e   :  { %6830 = vmatpush1.bf16.msra.mxu0 %v18275_v39  ;;  %7921 = vmatpush1.bf16.msra.mxu1 %v16169_v45  ;;  %v16212_v39 = vld [vmem:[#allocation18 + $0xc4] ss:$8 sps:$4 sm:$0xff]  }
 0xb2f   :  { %6831 = vmatprep.subr.bf16.mxu0 %v18276_v55  ;;  %7922 = vmatprep.subr.bf16.mxu1 %v16172_v41  ;;  %v18297_v55 = vld [vmem:[#allocation76_spill] sm:$0xff] }
 0xb32   :  { %6832 = vmatpush1.bf16.msra.mxu0 %v18277_v31  ;;  %7923 = vmatpush1.bf16.msra.mxu1 %v16177_v25  ;;  %v18298_v31 = vld [vmem:[#allocation77_spill] sm:$0xff] }
 0xb33   :  { %6833 = vmatprep.subr.bf16.mxu0 %v18278_v47  ;;  %7924 = vmatprep.subr.bf16.mxu1 %v16180_v42  ;;  %v16217_v47 = vld [vmem:[#allocation18 + $0xc0] ss:$8 sps:$4 sm:$0xff]  }
 0xb36   :  { %6834 = vmatpush1.bf16.msra.mxu0 %v18279_v20  ;;  %7925 = vmatpush1.bf16.msra.mxu1 %v16185_v59  ;;  %v16220_v20 = vld [vmem:[#allocation18 + $0xd4] ss:$8 sps:$4 sm:$0xff]  }
 0xb37   :  { %6835 = vmatprep.subr.bf16.mxu0 %v18280_v26  ;;  %7926 = vmatprep.subr.bf16.mxu1 %v16188_v11  ;;  %v18299_v26 = vld [vmem:[#allocation78_spill] sm:$0xff] }
 0xb3a   :  { %6836 = vmatpush1.bf16.msra.mxu0 %v18281_v23  ;;  %7927 = vmatpush1.bf16.msra.mxu1 %v16193_v13  ;;  %v16225_v23 = vld [vmem:[#allocation18 + $0xd0] ss:$8 sps:$4 sm:$0xff]  }
 0xb3b   :  { %6846 = vmatprep.subr.bf16.mxu0 %v18282_v8  ;;  %7928 = vmatprep.subr.bf16.mxu1 %v16196_v19  ;;  %v18301_v8 = vld [vmem:[#allocation80_spill] sm:$0xff] }
 0xb3d   :  { %6838 = vmatmul.mubr.bf16.vlgmr.msra.gmra.mrb[112].mxu0 %v6676_v10  ;;  %v18300_v10 = vld [vmem:[#allocation79_spill] sm:$0xff] }
 0xb3e   :  { %6847 = vmatpush1.bf16.msra.mxu0 %v18283_v18  ;;  %6878 = vmatprep.mubr.bf16.mxu0 %v6720_v57  ;;  %v16228_v57 = vld [vmem:[#allocation18 + $0xe4] ss:$8 sps:$4 sm:$0xff]  }
 0xb3f   :  { %6848 = vmatprep.subr.bf16.mxu0 %v18284_v36  ;;  %7929 = vmatpush1.bf16.msra.mxu1 %v16201_v14  ;;  %v18302_v18 = vld [vmem:[#allocation81_spill] sm:$0xff]  ;;  %v16233_v36 = vld [vmem:[#allocation18 + $0xe0] ss:$8 sps:$4 sm:$0xff]  }
 0xb40   :  { %7930 = vmatprep.subr.bf16.mxu1 %v16204_v1 }
 0xb42   :  { %6849 = vmatpush1.bf16.msra.mxu0 %v18285_v9  ;;  %v16236_v9 = vld [vmem:[#allocation18 + $0xf4] ss:$8 sps:$4 sm:$0xff]  }
 0xb43   :  { %6850 = vmatprep.subr.bf16.mxu0 %v18286_v12  ;;  %7931 = vmatpush1.bf16.msra.mxu1 %v16209_v48  ;;  %v18303_v12 = vld [vmem:[#allocation82_spill] sm:$0xff] }
 0xb44   :  { %7932 = vmatprep.subr.bf16.mxu1 %v16212_v39 }
 0xb46   :  { %6851 = vmatpush1.bf16.msra.mxu0 %v18287_v6  ;;  %v18304_v6 = vld [vmem:[#allocation83_spill] sm:$0xff] }
 0xb47   :  { %6852 = vmatprep.subr.bf16.mxu0 %v18288_v35  ;;  %7933 = vmatpush1.bf16.msra.mxu1 %v16217_v47  ;;  %v16241_v35 = vld [vmem:[#allocation18 + $0xf0] ss:$8 sps:$4 sm:$0xff]  }
 0xb48   :  { %7934 = vmatprep.subr.bf16.mxu1 %v16220_v20 }
 0xb4a   :  { %6853 = vmatpush1.bf16.msra.mxu0 %v18289_v7  ;;  %v16244_v7 = vld [vmem:[#allocation18 + $0x104] ss:$8 sps:$4 sm:$0xff]  }
 0xb4b   :  { %6854 = vmatprep.subr.bf16.mxu0 %v18290_v0  ;;  %7935 = vmatpush1.bf16.msra.mxu1 %v16225_v23  ;;  %v18305_v0 = vld [vmem:[#allocation84_spill] sm:$0xff] }
 0xb4c   :  { %7936 = vmatprep.subr.bf16.mxu1 %v16228_v57 }
 0xb4e   :  { %6855 = vmatpush1.bf16.msra.mxu0 %v18291_v38  ;;  %v18306_v38 = vld [vmem:[#allocation85_spill] sm:$0xff] }
 0xb4f   :  { %6856 = vmatprep.subr.bf16.mxu0 %v18292_v62  ;;  %7937 = vmatpush1.bf16.msra.mxu1 %v16233_v36  ;;  %v18307_v62 = vld [vmem:[#allocation86_spill] sm:$0xff] }
 0xb50   :  { %7938 = vmatprep.subr.bf16.mxu1 %v16236_v9 }
 0xb52   :  { %6857 = vmatpush1.bf16.msra.mxu0 %v18293_v50  ;;  %v18308_v50 = vld [vmem:[#allocation87_spill] sm:$0xff] }
 0xb53   :  { %6858 = vmatprep.subr.bf16.mxu0 %v18294_v32  ;;  %7939 = vmatpush1.bf16.msra.mxu1 %v16241_v35  ;;  %v18309_v32 = vld [vmem:[#allocation88_spill] sm:$0xff] }
 0xb54   :  { %7949 = vmatprep.subr.bf16.mxu1 %v16244_v7 }
 0xb56   :  { %6859 = vmatpush1.bf16.msra.mxu0 %v18295_v3  ;;  %v18310_v3 = vld [vmem:[#allocation89_spill] sm:$0xff] }
 0xb57   :  { %6860 = vmatprep.subr.bf16.mxu0 %v18296_v56  ;;  %v18311_v56 = vld [vmem:[#allocation90_spill] sm:$0xff] }
 0xb5a   :  { %6861 = vmatpush1.bf16.msra.mxu0 %v18297_v55  ;;  %v18312_v55 = vld [vmem:[#allocation91_spill] sm:$0xff] }
 0xb5b   :  { %6862 = vmatprep.subr.bf16.mxu0 %v18298_v31  ;;  %v6719_v31 = vpack.c.bf16 %v16073_v46, %v16073_v46  ;;  %v18320_v46 = vld [vmem:[#allocation103_spill] sm:$0xff] }
 0xb5e   :  { %6863 = vmatpush1.bf16.msra.mxu0 %v18299_v26  ;;  %v18313_v26 = vld [vmem:[#allocation92_spill] sm:$0xff] }
 0xb5f   :  { %6864 = vmatprep.subr.bf16.mxu0 %v18300_v10  ;;  %v6763_v10 = vpack.c.bf16 %v16084_v40, %v16084_v40  ;;  %v18323_v40 = vld [vmem:[#allocation106_spill] sm:$0xff] }
 0xb62   :  { %6865 = vmatpush1.bf16.msra.mxu0 %v18301_v8  ;;  %v18314_v8 = vld [vmem:[#allocation93_spill] sm:$0xff] }
 0xb63   :  { %6866 = vmatprep.subr.bf16.mxu0 %v18302_v18  ;;  %v18315_v18 = vld [vmem:[#allocation94_spill] sm:$0xff] }
 0xb66   :  { %6867 = vmatpush1.bf16.msra.mxu0 %v18303_v12  ;;  %v18316_v12 = vld [vmem:[#allocation95_spill] sm:$0xff] }
 0xb67   :  { %6868 = vmatprep.subr.bf16.mxu0 %v18304_v6  ;;  %v18317_v6 = vld [vmem:[#allocation96_spill] sm:$0xff] }
 0xb6a   :  { %6869 = vmatpush1.bf16.msra.mxu0 %v18305_v0  ;;  %v18318_v0 = vld [vmem:[#allocation97_spill] sm:$0xff] }
 0xb6b   :  { %6870 = vmatprep.subr.bf16.mxu0 %v18306_v38  ;;  %v18319_v38 = vld [vmem:[#allocation102_spill] sm:$0xff] }
 0xb6e   :  { %6871 = vmatpush1.bf16.msra.mxu0 %v18307_v62  ;;  %v18321_v62 = vld [vmem:[#allocation104_spill] sm:$0xff] }
 0xb6f   :  { %6872 = vmatprep.subr.bf16.mxu0 %v18308_v50  ;;  %v18322_v50 = vld [vmem:[#allocation105_spill] sm:$0xff] }
 0xb72   :  { %6873 = vmatpush1.bf16.msra.mxu0 %v18309_v32  ;;  %v18324_v32 = vld [vmem:[#allocation107_spill] sm:$0xff] }
 0xb73   :  { %6874 = vmatprep.subr.bf16.mxu0 %v18310_v3  ;;  %v18325_v3 = vld [vmem:[#allocation108_spill] sm:$0xff] }
 0xb76   :  { %6875 = vmatpush1.bf16.msra.mxu0 %v18311_v56  ;;  %v18326_v56 = vld [vmem:[#allocation109_spill] sm:$0xff] }
 0xb77   :  { %6876 = vmatprep.subr.bf16.mxu0 %v18312_v55  ;;  %v18327_v55 = vld [vmem:[#allocation110_spill] sm:$0xff] }
 0xb7a   :  { %6877 = vmatpush1.bf16.msra.mxu0 %v18313_v26  ;;  %v18329_v26 = vld [vmem:[#allocation112_spill] sm:$0xff] }
 0xb7b   :  { %6887 = vmatprep.subr.bf16.mxu0 %v18314_v8  ;;  %v18331_v8 = vld [vmem:[#allocation114_spill] sm:$0xff] }
 0xb7d   :  { %6879 = vmatmul.mubr.bf16.vlgmr.msra.gmra.mrb[112].mxu0 %v6719_v31  ;;  %v18328_v31 = vld [vmem:[#allocation111_spill] sm:$0xff] }
 0xb7e   :  { %6888 = vmatpush1.bf16.msra.mxu0 %v18315_v18  ;;  %6919 = vmatprep.mubr.bf16.mxu0 %v6763_v10  ;;  %v18330_v10 = vld [vmem:[#allocation113_spill] sm:$0xff]  ;;  %v18332_v18 = vld [vmem:[#allocation115_spill] sm:$0xff] }
 0xb7f   :  { %6889 = vmatprep.subr.bf16.mxu0 %v18316_v12  ;;  %v18333_v12 = vld [vmem:[#allocation116_spill] sm:$0xff] }
 0xb82   :  { %6890 = vmatpush1.bf16.msra.mxu0 %v18317_v6  ;;  %v18334_v6 = vld [vmem:[#allocation117_spill] sm:$0xff] }
 0xb83   :  { %6891 = vmatprep.subr.bf16.mxu0 %v18318_v0  ;;  %v18335_v0 = vld [vmem:[#allocation118_spill] sm:$0xff] }
 0xb86   :  { %6892 = vmatpush1.bf16.msra.mxu0 %v18319_v38  ;;  %v18336_v38 = vld [vmem:[#allocation119_spill] sm:$0xff] }
 0xb87   :  { %6893 = vmatprep.subr.bf16.mxu0 %v18320_v46  ;;  %v18337_v46 = vld [vmem:[#allocation120_spill] sm:$0xff] }
 0xb8a   :  { %6894 = vmatpush1.bf16.msra.mxu0 %v18321_v62  ;;  %v18338_v62 = vld [vmem:[#allocation121_spill] sm:$0xff] }
 0xb8b   :  { %6895 = vmatprep.subr.bf16.mxu0 %v18322_v50  ;;  %v18339_v50 = vld [vmem:[#allocation122_spill] sm:$0xff] }
 0xb8e   :  { %6896 = vmatpush1.bf16.msra.mxu0 %v18323_v40  ;;  %v18340_v40 = vld [vmem:[#allocation123_spill] sm:$0xff] }
 0xb8f   :  { %6897 = vmatprep.subr.bf16.mxu0 %v18324_v32  ;;  %v18341_v32 = vld [vmem:[#allocation124_spill] sm:$0xff] }
 0xb92   :  { %6898 = vmatpush1.bf16.msra.mxu0 %v18325_v3  ;;  %v18342_v3 = vld [vmem:[#allocation125_spill] sm:$0xff] }
 0xb93   :  { %6899 = vmatprep.subr.bf16.mxu0 %v18326_v56  ;;  %v18343_v56 = vld [vmem:[#allocation126_spill] sm:$0xff] }
 0xb96   :  { %6900 = vmatpush1.bf16.msra.mxu0 %v18327_v55  ;;  %v18344_v55 = vld [vmem:[#allocation127_spill] sm:$0xff] }
 0xb97   :  { %6901 = vmatprep.subr.bf16.mxu0 %v18328_v31  ;;  %v18345_v31 = vld [vmem:[#allocation128_spill] sm:$0xff] }
 0xb9a   :  { %6902 = vmatpush1.bf16.msra.mxu0 %v18329_v26  ;;  %v6762_v26 = vpack.c.bf16 %v16082_v63, %v16082_v63  ;;  %v16304_v63 = vld [vmem:[#allocation18 + $0x124] ss:$8 sps:$4 sm:$0xff]  }
 0xb9b   :  { %6903 = vmatprep.subr.bf16.mxu0 %v18330_v10 }
 0xb9e   :  { %6904 = vmatpush1.bf16.msra.mxu0 %v18331_v8 }
 0xb9f   :  { %6905 = vmatprep.subr.bf16.mxu0 %v18332_v18 }
 0xba2   :  { %6906 = vmatpush1.bf16.msra.mxu0 %v18333_v12 }
 0xba3   :  { %6907 = vmatprep.subr.bf16.mxu0 %v18334_v6  ;;  %v16296_v6 = vld [vmem:[#allocation18 + $0x100] ss:$8 sps:$4 sm:$0xff]  }
 0xba6   :  { %6908 = vmatpush1.bf16.msra.mxu0 %v18335_v0 }
 0xba7   :  { %6909 = vmatprep.subr.bf16.mxu0 %v18336_v38  ;;  %v16298_v38 = vld [vmem:[#allocation18 + $0x114] ss:$8 sps:$4 sm:$0xff]  }
 0xbaa   :  { %6910 = vmatpush1.bf16.msra.mxu0 %v18337_v46 }
 0xbab   :  { %6911 = vmatprep.subr.bf16.mxu0 %v18338_v62  ;;  %v16301_v62 = vld [vmem:[#allocation18 + $0x110] ss:$8 sps:$4 sm:$0xff]  }
 0xbae   :  { %6912 = vmatpush1.bf16.msra.mxu0 %v18339_v50 }
 0xbaf   :  { %6913 = vmatprep.subr.bf16.mxu0 %v18340_v40 }
 0xbb2   :  { %6914 = vmatpush1.bf16.msra.mxu0 %v18341_v32  ;;  %v16309_v32 = vld [vmem:[#allocation18 + $0x120] ss:$8 sps:$4 sm:$0xff]  }
 0xbb3   :  { %6915 = vmatprep.subr.bf16.mxu0 %v18342_v3 }
 0xbb6   :  { %6916 = vmatpush1.bf16.msra.mxu0 %v18343_v56 }
 0xbb7   :  { %6917 = vmatprep.subr.bf16.mxu0 %v18344_v55  ;;  %v16312_v55 = vld [vmem:[#allocation18 + $0x134] ss:$8 sps:$4 sm:$0xff]  }
 0xbb8   :  { %18346 = vst [vmem:[#allocation98_spill] sm:$0xff] %v16312_v55 }
 0xbba   :  { %6918 = vmatpush1.bf16.msra.mxu0 %v18345_v31 }
 0xbbd   :  { %6920 = vmatmul.mubr.bf16.vlgmr.msra.gmra.mrb[112].mxu0 %v6762_v26  ;;  %v16315_v26 = vld [vmem:[#allocation18 + $0x130] ss:$8 sps:$4 sm:$0xff]  }
 0xbbe   :  { %8159 = vmatprep.mubr.bf16.mxu0 %v17942_v24  ;;  %18347 = vst [vmem:[#allocation99_spill] sm:$0xff] %v16315_v26 }
 0xbd0   :  { %v7121_v10 = vpop.f32.mrb[140].mxu1 }
 0xbd1   :  { %v7128_v8 = vpack.c.bf16 %v7121_v10, %v7121_v10  ;;  %v7123_v18 = vpop.f32.mrb[141].mxu1  ;;  %v16318_v10 = vld [vmem:[#allocation18 + $0x144] ss:$8 sps:$4 sm:$0xff]  }
 0xbd2   :  { %v7129_v12 = vpack.c.bf16 %v7123_v18, %v7123_v18  ;;  %v7125_v0 = vpop.f32.mrb[142].mxu1  ;;  %18348 = vst [vmem:[#allocation100_spill] sm:$0xff] %v16318_v10  ;;  %v16324_v18 = vld [vmem:[#allocation18 + $0x154] ss:$8 sps:$4 sm:$0xff]  }
 0xbd3   :  { %v7126_v46 = vpop.f32.mrb[143].mxu1  ;;  %18350 = vst [vmem:[#allocation37_spill] sm:$0xff] %v16324_v18  ;;  %v16330_v0 = vld [vmem:[#allocation18 + $0x164] ss:$8 sps:$4 sm:$0xff]  }
 0xbd4   :  { %7940 = vmatprep.mubr.bf16.mxu1 %v7129_v12  ;;  %v16327_v12 = vld [vmem:[#allocation18 + $0x150] ss:$8 sps:$4 sm:$0xff]   ;;  %18352 = vst [vmem:[#allocation39_spill] sm:$0xff] %v16330_v0 }
 0xbd5   :  { %7941 = vmatmul.mubr.bf16.vlgmr.msra.gmra.mrb[156].mxu1 %v7128_v8  ;;  %v16321_v8 = vld [vmem:[#allocation18 + $0x140] ss:$8 sps:$4 sm:$0xff]   ;;  %18351 = vst [vmem:[#allocation38_spill] sm:$0xff] %v16327_v12 }
 0xbd6   :  { %7950 = vmatpush1.bf16.msra.mxu1 %v16296_v6  ;;  %18349 = vst [vmem:[#allocation101_spill] sm:$0xff] %v16321_v8 }
 0xbd7   :  { %7951 = vmatprep.subr.bf16.mxu1 %v16298_v38 }
 0xbd8   :  { %v16306_v50 = vpop.f32.mrb[144].mxu1 }
 0xbd9   :  { %v7169_v40 = vpop.f32.mrb[145].mxu1 }
 0xbda   :  { %7952 = vmatpush1.bf16.msra.mxu1 %v16301_v62  ;;  %v7175_v3 = vpack.c.bf16 %v7169_v40, %v7169_v40  ;;  %v7171_v56 = vpop.f32.mrb[146].mxu1  ;;  %v16335_v40 = vld [vmem:[#allocation18 + $0x160] ss:$8 sps:$4 sm:$0xff]  }
 0xbdb   :  { %7953 = vmatprep.subr.bf16.mxu1 %v16304_v63  ;;  %v7172_v31 = vpop.f32.mrb[147].mxu1  ;;  %18353 = vst [vmem:[#allocation40_spill] sm:$0xff] %v16335_v40  ;;  %v16338_v56 = vld [vmem:[#allocation18 + $0x174] ss:$8 sps:$4 sm:$0xff]  }
 0xbdc   :  { %7981 = vmatprep.mubr.bf16.mxu1 %v7175_v3  ;;  %18354 = vst [vmem:[#allocation41_spill] sm:$0xff] %v16338_v56 }
 0xbde   :  { %7954 = vmatpush1.bf16.msra.mxu1 %v16309_v32 }
 0xbdf   :  { %7955 = vmatprep.subr.bf16.mxu1 %v16312_v55 }
 0xbe0   :  { %v16332_v46 = vpop.f32.mrb[148].mxu1 }
 0xbe1   :  { %v7215_v3 = vpop.f32.mrb[149].mxu1 }
 0xbe2   :  { %7956 = vmatpush1.bf16.msra.mxu1 %v16315_v26  ;;  %v7217_v31 = vpop.f32.mrb[150].mxu1  ;;  %v16350_v26 = vld [vmem:[#allocation18 + $0x194] ss:$8 sps:$4 sm:$0xff]  }
 0xbe3   :  { %7957 = vmatprep.subr.bf16.mxu1 %v16318_v10  ;;  %v7218_v10 = vpop.f32.mrb[151].mxu1  ;;  %18358 = vst [vmem:[#allocation45_spill] sm:$0xff] %v16350_v26  ;;  %v16353_v31 = vld [vmem:[#allocation18 + $0x190] ss:$8 sps:$4 sm:$0xff]  }
 0xbe4   :  { %18359 = vst [vmem:[#allocation46_spill] sm:$0xff] %v16353_v31  ;;  %v16356_v10 = vld [vmem:[#allocation18 + $0x1a4] ss:$8 sps:$4 sm:$0xff]  }
 0xbe5   :  { %18360 = vst [vmem:[#allocation47_spill] sm:$0xff] %v16356_v10 }
 0xbe6   :  { %7958 = vmatpush1.bf16.msra.mxu1 %v16321_v8  ;;  %v16341_v8 = vld [vmem:[#allocation18 + $0x170] ss:$8 sps:$4 sm:$0xff]  }
 0xbe7   :  { %7959 = vmatprep.subr.bf16.mxu1 %v16324_v18  ;;  %18355 = vst [vmem:[#allocation42_spill] sm:$0xff] %v16341_v8  ;;  %v16344_v18 = vld [vmem:[#allocation18 + $0x184] ss:$8 sps:$4 sm:$0xff]  }
 0xbe8   :  { %18356 = vst [vmem:[#allocation43_spill] sm:$0xff] %v16344_v18 }
 0xbea   :  { %7960 = vmatpush1.bf16.msra.mxu1 %v16327_v12  ;;  %v16347_v12 = vld [vmem:[#allocation18 + $0x180] ss:$8 sps:$4 sm:$0xff]  }
 0xbeb   :  { %7961 = vmatprep.subr.bf16.mxu1 %v16330_v0  ;;  %18357 = vst [vmem:[#allocation44_spill] sm:$0xff] %v16347_v12  ;;  %v16450_v0 = vld [vmem:[#allocation18 + $0x294] ss:$8 sps:$4 sm:$0xff]  }
 0xbec   :  { %18390 = vst [vmem:[#allocation77_spill] sm:$0xff] %v16450_v0 }
 0xbee   :  { %7962 = vmatpush1.bf16.msra.mxu1 %v16335_v40  ;;  %v7221_v40 = vpack.c.bf16 %v7215_v3, %v7215_v3  ;;  %v16412_v3 = vld [vmem:[#allocation18 + $0x234] ss:$8 sps:$4 sm:$0xff]  }
 0xbef   :  { %7963 = vmatprep.subr.bf16.mxu1 %v16338_v56  ;;  %v16359_v56 = vld [vmem:[#allocation18 + $0x1a0] ss:$8 sps:$4 sm:$0xff]   ;;  %18378 = vst [vmem:[#allocation65_spill] sm:$0xff] %v16412_v3 }
 0xbf0   :  { %18361 = vst [vmem:[#allocation48_spill] sm:$0xff] %v16359_v56 }
 0xbf2   :  { %7964 = vmatpush1.bf16.msra.mxu1 %v16341_v8  ;;  %v16362_v8 = vld [vmem:[#allocation18 + $0x1b4] ss:$8 sps:$4 sm:$0xff]  }
 0xbf3   :  { %7965 = vmatprep.subr.bf16.mxu1 %v16344_v18  ;;  %18362 = vst [vmem:[#allocation49_spill] sm:$0xff] %v16362_v8  ;;  %v16365_v18 = vld [vmem:[#allocation18 + $0x1b0] ss:$8 sps:$4 sm:$0xff]  }
 0xbf4   :  { %18363 = vst [vmem:[#allocation50_spill] sm:$0xff] %v16365_v18 }
 0xbf6   :  { %7966 = vmatpush1.bf16.msra.mxu1 %v16347_v12  ;;  %v16368_v12 = vld [vmem:[#allocation18 + $0x1c4] ss:$8 sps:$4 sm:$0xff]  }
 0xbf7   :  { %7967 = vmatprep.subr.bf16.mxu1 %v16350_v26  ;;  %18364 = vst [vmem:[#allocation51_spill] sm:$0xff] %v16368_v12  ;;  %v16371_v26 = vld [vmem:[#allocation18 + $0x1c0] ss:$8 sps:$4 sm:$0xff]  }
 0xbf8   :  { %18365 = vst [vmem:[#allocation52_spill] sm:$0xff] %v16371_v26 }
 0xbfa   :  { %7968 = vmatpush1.bf16.msra.mxu1 %v16353_v31  ;;  %v16374_v31 = vld [vmem:[#allocation18 + $0x1d4] ss:$8 sps:$4 sm:$0xff]  }
 0xbfb   :  { %7969 = vmatprep.subr.bf16.mxu1 %v16356_v10  ;;  %18366 = vst [vmem:[#allocation53_spill] sm:$0xff] %v16374_v31  ;;  %v16377_v10 = vld [vmem:[#allocation18 + $0x1d0] ss:$8 sps:$4 sm:$0xff]  }
 0xbfc   :  { %18367 = vst [vmem:[#allocation54_spill] sm:$0xff] %v16377_v10 }
 0xbfe   :  { %7970 = vmatpush1.bf16.msra.mxu1 %v16359_v56  ;;  %v16380_v56 = vld [vmem:[#allocation18 + $0x1e4] ss:$8 sps:$4 sm:$0xff]  }
 0xbff   :  { %7971 = vmatprep.subr.bf16.mxu1 %v16362_v8  ;;  %18368 = vst [vmem:[#allocation55_spill] sm:$0xff] %v16380_v56  ;;  %v16383_v8 = vld [vmem:[#allocation18 + $0x1e0] ss:$8 sps:$4 sm:$0xff]  }
 0xc00   :  { %18369 = vst [vmem:[#allocation56_spill] sm:$0xff] %v16383_v8 }
 0xc02   :  { %7972 = vmatpush1.bf16.msra.mxu1 %v16365_v18  ;;  %v16386_v18 = vld [vmem:[#allocation18 + $0x1f4] ss:$8 sps:$4 sm:$0xff]  }
 0xc03   :  { %7973 = vmatprep.subr.bf16.mxu1 %v16368_v12  ;;  %18370 = vst [vmem:[#allocation57_spill] sm:$0xff] %v16386_v18  ;;  %v16389_v12 = vld [vmem:[#allocation18 + $0x1f0] ss:$8 sps:$4 sm:$0xff]  }
 0xc04   :  { %18371 = vst [vmem:[#allocation58_spill] sm:$0xff] %v16389_v12 }
 0xc06   :  { %7974 = vmatpush1.bf16.msra.mxu1 %v16371_v26  ;;  %v16392_v26 = vld [vmem:[#allocation18 + $0x204] ss:$8 sps:$4 sm:$0xff]  }
 0xc07   :  { %7975 = vmatprep.subr.bf16.mxu1 %v16374_v31  ;;  %18372 = vst [vmem:[#allocation59_spill] sm:$0xff] %v16392_v26  ;;  %v7174_v31 = vpack.c.bf16 %v16306_v50, %v16306_v50  ;;  %v16409_v50 = vld [vmem:[#allocation18 + $0x220] ss:$8 sps:$4 sm:$0xff]  }
 0xc08   :  { %18377 = vst [vmem:[#allocation64_spill] sm:$0xff] %v16409_v50 }
 0xc0a   :  { %7976 = vmatpush1.bf16.msra.mxu1 %v16377_v10  ;;  %v16397_v10 = vld [vmem:[#allocation18 + $0x200] ss:$8 sps:$4 sm:$0xff]  }
 0xc0b   :  { %7977 = vmatprep.subr.bf16.mxu1 %v16380_v56  ;;  %18373 = vst [vmem:[#allocation60_spill] sm:$0xff] %v16397_v10  ;;  %v16400_v56 = vld [vmem:[#allocation18 + $0x214] ss:$8 sps:$4 sm:$0xff]  }
 0xc0c   :  { %18374 = vst [vmem:[#allocation61_spill] sm:$0xff] %v16400_v56 }
 0xc0e   :  { %7978 = vmatpush1.bf16.msra.mxu1 %v16383_v8  ;;  %v16403_v8 = vld [vmem:[#allocation18 + $0x210] ss:$8 sps:$4 sm:$0xff]  }
 0xc0f   :  { %7979 = vmatprep.subr.bf16.mxu1 %v16386_v18  ;;  %18375 = vst [vmem:[#allocation62_spill] sm:$0xff] %v16403_v8  ;;  %v16406_v18 = vld [vmem:[#allocation18 + $0x224] ss:$8 sps:$4 sm:$0xff]  }
 0xc10   :  { %18376 = vst [vmem:[#allocation63_spill] sm:$0xff] %v16406_v18 }
 0xc12   :  { %7980 = vmatpush1.bf16.msra.mxu1 %v16389_v12 }
 0xc13   :  { %7990 = vmatprep.subr.bf16.mxu1 %v16392_v26 }
 0xc15   :  { %7982 = vmatmul.mubr.bf16.vlgmr.msra.gmra.mrb[156].mxu1 %v7174_v31  ;;  %v16415_v31 = vld [vmem:[#allocation18 + $0x230] ss:$8 sps:$4 sm:$0xff]  }
 0xc16   :  { %7991 = vmatpush1.bf16.msra.mxu1 %v16397_v10  ;;  %8022 = vmatprep.mubr.bf16.mxu1 %v7221_v40  ;;  %18379 = vst [vmem:[#allocation66_spill] sm:$0xff] %v16415_v31  ;;  %v16418_v10 = vld [vmem:[#allocation18 + $0x244] ss:$8 sps:$4 sm:$0xff]   ;;  %v16421_v40 = vld [vmem:[#allocation18 + $0x240] ss:$8 sps:$4 sm:$0xff]  }
 0xc17   :  { %7992 = vmatprep.subr.bf16.mxu1 %v16400_v56  ;;  %18380 = vst [vmem:[#allocation67_spill] sm:$0xff] %v16418_v10  ;;  %18381 = vst [vmem:[#allocation68_spill] sm:$0xff] %v16421_v40  ;;  %v16432_v56 = vpop.f32.mrb[152].mxu1 }
 0xc1a   :  { %7993 = vmatpush1.bf16.msra.mxu1 %v16403_v8  ;;  %v16424_v8 = vld [vmem:[#allocation18 + $0x254] ss:$8 sps:$4 sm:$0xff]  }
 0xc1b   :  { %7994 = vmatprep.subr.bf16.mxu1 %v16406_v18  ;;  %18382 = vst [vmem:[#allocation69_spill] sm:$0xff] %v16424_v8  ;;  %v16427_v18 = vld [vmem:[#allocation18 + $0x250] ss:$8 sps:$4 sm:$0xff]  }
 0xc1c   :  { %18383 = vst [vmem:[#allocation70_spill] sm:$0xff] %v16427_v18 }
 0xc1e   :  { %7995 = vmatpush1.bf16.msra.mxu1 %v16409_v50  ;;  %v16430_v50 = vld [vmem:[#allocation18 + $0x264] ss:$8 sps:$4 sm:$0xff]  }
 0xc1f   :  { %7996 = vmatprep.subr.bf16.mxu1 %v16412_v3  ;;  %18384 = vst [vmem:[#allocation71_spill] sm:$0xff] %v16430_v50  ;;  %v16435_v3 = vld [vmem:[#allocation18 + $0x260] ss:$8 sps:$4 sm:$0xff]  }
 0xc20   :  { %18385 = vst [vmem:[#allocation72_spill] sm:$0xff] %v16435_v3 }
 0xc22   :  { %7997 = vmatpush1.bf16.msra.mxu1 %v16415_v31  ;;  %v7261_v31 = vpop.f32.mrb[153].mxu1 }
 0xc23   :  { %7998 = vmatprep.subr.bf16.mxu1 %v16418_v10  ;;  %v16438_v10 = vld [vmem:[#allocation18 + $0x274] ss:$8 sps:$4 sm:$0xff]   ;;  %v7263_v26 = vpop.f32.mrb[154].mxu1 }
 0xc24   :  { %18386 = vst [vmem:[#allocation73_spill] sm:$0xff] %v16438_v10  ;;  %v7264_v12 = vpop.f32.mrb[155].mxu1  ;;  %v16453_v26 = vld [vmem:[#allocation18 + $0x290] ss:$8 sps:$4 sm:$0xff]  }
 0xc25   :  { %18391 = vst [vmem:[#allocation78_spill] sm:$0xff] %v16453_v26  ;;  %v16456_v12 = vld [vmem:[#allocation18 + $0x2a4] ss:$8 sps:$4 sm:$0xff]  }
 0xc26   :  { %7999 = vmatpush1.bf16.msra.mxu1 %v16421_v40  ;;  %v16441_v40 = vld [vmem:[#allocation18 + $0x270] ss:$8 sps:$4 sm:$0xff]   ;;  %18392 = vst [vmem:[#allocation79_spill] sm:$0xff] %v16456_v12 }
 0xc27   :  { %8000 = vmatprep.subr.bf16.mxu1 %v16424_v8  ;;  %18387 = vst [vmem:[#allocation74_spill] sm:$0xff] %v16441_v40  ;;  %v16444_v8 = vld [vmem:[#allocation18 + $0x284] ss:$8 sps:$4 sm:$0xff]  }
 0xc28   :  { %18388 = vst [vmem:[#allocation75_spill] sm:$0xff] %v16444_v8 }
 0xc2a   :  { %8001 = vmatpush1.bf16.msra.mxu1 %v16427_v18  ;;  %v16447_v18 = vld [vmem:[#allocation18 + $0x280] ss:$8 sps:$4 sm:$0xff]  }
 0xc2b   :  { %8002 = vmatprep.subr.bf16.mxu1 %v16430_v50  ;;  %18389 = vst [vmem:[#allocation76_spill] sm:$0xff] %v16447_v18  ;;  %v16597_v50 = vld [vmem:[#allocation22] ss:$8 sps:$4 sm:$0xff]  }
 0xc2e   :  { %8003 = vmatpush1.bf16.msra.mxu1 %v16435_v3  ;;  %v7267_v3 = vpack.c.bf16 %v7261_v31, %v7261_v31  ;;  %v16512_v31 = vld [vmem:[#allocation18 + $0x334] ss:$8 sps:$4 sm:$0xff]  }
 0xc2f   :  { %8004 = vmatprep.subr.bf16.mxu1 %v16438_v10  ;;  %v16459_v10 = vld [vmem:[#allocation18 + $0x2a0] ss:$8 sps:$4 sm:$0xff]   ;;  %18410 = vst [vmem:[#allocation97_spill] sm:$0xff] %v16512_v31 }
 0xc30   :  { %18393 = vst [vmem:[#allocation80_spill] sm:$0xff] %v16459_v10 }
 0xc32   :  { %8005 = vmatpush1.bf16.msra.mxu1 %v16441_v40  ;;  %v16462_v40 = vld [vmem:[#allocation18 + $0x2b4] ss:$8 sps:$4 sm:$0xff]  }
 0xc33   :  { %8006 = vmatprep.subr.bf16.mxu1 %v16444_v8  ;;  %18394 = vst [vmem:[#allocation81_spill] sm:$0xff] %v16462_v40  ;;  %v16465_v8 = vld [vmem:[#allocation18 + $0x2b0] ss:$8 sps:$4 sm:$0xff]  }
 0xc34   :  { %18395 = vst [vmem:[#allocation82_spill] sm:$0xff] %v16465_v8 }
 0xc36   :  { %8007 = vmatpush1.bf16.msra.mxu1 %v16447_v18  ;;  %v16468_v18 = vld [vmem:[#allocation18 + $0x2c4] ss:$8 sps:$4 sm:$0xff]  }
 0xc37   :  { %8008 = vmatprep.subr.bf16.mxu1 %v16450_v0  ;;  %18396 = vst [vmem:[#allocation83_spill] sm:$0xff] %v16468_v18  ;;  %v16471_v0 = vld [vmem:[#allocation18 + $0x2c0] ss:$8 sps:$4 sm:$0xff]  }
 0xc38   :  { %18397 = vst [vmem:[#allocation84_spill] sm:$0xff] %v16471_v0 }
 0xc3a   :  { %8009 = vmatpush1.bf16.msra.mxu1 %v16453_v26  ;;  %v16474_v26 = vld [vmem:[#allocation18 + $0x2d4] ss:$8 sps:$4 sm:$0xff]  }
 0xc3b   :  { %8010 = vmatprep.subr.bf16.mxu1 %v16456_v12  ;;  %18398 = vst [vmem:[#allocation85_spill] sm:$0xff] %v16474_v26  ;;  %v16477_v12 = vld [vmem:[#allocation18 + $0x2d0] ss:$8 sps:$4 sm:$0xff]  }
 0xc3c   :  { %18399 = vst [vmem:[#allocation86_spill] sm:$0xff] %v16477_v12 }
 0xc3e   :  { %8011 = vmatpush1.bf16.msra.mxu1 %v16459_v10  ;;  %v16480_v10 = vld [vmem:[#allocation18 + $0x2e4] ss:$8 sps:$4 sm:$0xff]  }
 0xc3f   :  { %8012 = vmatprep.subr.bf16.mxu1 %v16462_v40  ;;  %18400 = vst [vmem:[#allocation87_spill] sm:$0xff] %v16480_v10  ;;  %v16483_v40 = vld [vmem:[#allocation18 + $0x2e0] ss:$8 sps:$4 sm:$0xff]  }
 0xc40   :  { %18401 = vst [vmem:[#allocation88_spill] sm:$0xff] %v16483_v40 }
 0xc42   :  { %8013 = vmatpush1.bf16.msra.mxu1 %v16465_v8  ;;  %v16486_v8 = vld [vmem:[#allocation18 + $0x2f4] ss:$8 sps:$4 sm:$0xff]  }
 0xc43   :  { %8014 = vmatprep.subr.bf16.mxu1 %v16468_v18  ;;  %18402 = vst [vmem:[#allocation89_spill] sm:$0xff] %v16486_v8  ;;  %v16489_v18 = vld [vmem:[#allocation18 + $0x2f0] ss:$8 sps:$4 sm:$0xff]  }
 0xc44   :  { %18403 = vst [vmem:[#allocation90_spill] sm:$0xff] %v16489_v18 }
 0xc46   :  { %8015 = vmatpush1.bf16.msra.mxu1 %v16471_v0  ;;  %v16492_v0 = vld [vmem:[#allocation18 + $0x304] ss:$8 sps:$4 sm:$0xff]  }
 0xc47   :  { %8016 = vmatprep.subr.bf16.mxu1 %v16474_v26  ;;  %18404 = vst [vmem:[#allocation91_spill] sm:$0xff] %v16492_v0  ;;  %v7220_v26 = vpack.c.bf16 %v16332_v46, %v16332_v46  ;;  %v16509_v46 = vld [vmem:[#allocation18 + $0x320] ss:$8 sps:$4 sm:$0xff]  }
 0xc48   :  { %18409 = vst [vmem:[#allocation96_spill] sm:$0xff] %v16509_v46 }
 0xc4a   :  { %8017 = vmatpush1.bf16.msra.mxu1 %v16477_v12  ;;  %v16497_v12 = vld [vmem:[#allocation18 + $0x300] ss:$8 sps:$4 sm:$0xff]  }
 0xc4b   :  { %8018 = vmatprep.subr.bf16.mxu1 %v16480_v10  ;;  %18405 = vst [vmem:[#allocation92_spill] sm:$0xff] %v16497_v12  ;;  %v16500_v10 = vld [vmem:[#allocation18 + $0x314] ss:$8 sps:$4 sm:$0xff]  }
 0xc4c   :  { %18406 = vst [vmem:[#allocation93_spill] sm:$0xff] %v16500_v10 }
 0xc4e   :  { %8019 = vmatpush1.bf16.msra.mxu1 %v16483_v40  ;;  %v16503_v40 = vld [vmem:[#allocation18 + $0x310] ss:$8 sps:$4 sm:$0xff]  }
 0xc4f   :  { %8020 = vmatprep.subr.bf16.mxu1 %v16486_v8  ;;  %18407 = vst [vmem:[#allocation94_spill] sm:$0xff] %v16503_v40  ;;  %v16506_v8 = vld [vmem:[#allocation18 + $0x324] ss:$8 sps:$4 sm:$0xff]  }
 0xc50   :  { %18408 = vst [vmem:[#allocation95_spill] sm:$0xff] %v16506_v8 }
 0xc52   :  { %8021 = vmatpush1.bf16.msra.mxu1 %v16489_v18 }
 0xc53   :  { %8031 = vmatprep.subr.bf16.mxu1 %v16492_v0 }
 0xc55   :  { %8023 = vmatmul.mubr.bf16.vlgmr.msra.gmra.mrb[156].mxu1 %v7220_v26  ;;  %v16515_v26 = vld [vmem:[#allocation18 + $0x330] ss:$8 sps:$4 sm:$0xff]  }
 0xc56   :  { %8032 = vmatpush1.bf16.msra.mxu1 %v16497_v12  ;;  %8063 = vmatprep.mubr.bf16.mxu1 %v7267_v3  ;;  %18411 = vst [vmem:[#allocation102_spill] sm:$0xff] %v16515_v26  ;;  %v16518_v12 = vld [vmem:[#allocation18 + $0x344] ss:$8 sps:$4 sm:$0xff]   ;;  %v16521_v3 = vld [vmem:[#allocation18 + $0x340] ss:$8 sps:$4 sm:$0xff]  }
 0xc57   :  { %8033 = vmatprep.subr.bf16.mxu1 %v16500_v10  ;;  %18412 = vst [vmem:[#allocation103_spill] sm:$0xff] %v16518_v12  ;;  %18413 = vst [vmem:[#allocation104_spill] sm:$0xff] %v16521_v3 }
 0xc5a   :  { %8034 = vmatpush1.bf16.msra.mxu1 %v16503_v40  ;;  %v16524_v40 = vld [vmem:[#allocation18 + $0x354] ss:$8 sps:$4 sm:$0xff]  }
 0xc5b   :  { %8035 = vmatprep.subr.bf16.mxu1 %v16506_v8  ;;  %18414 = vst [vmem:[#allocation105_spill] sm:$0xff] %v16524_v40  ;;  %v16527_v8 = vld [vmem:[#allocation18 + $0x350] ss:$8 sps:$4 sm:$0xff]  }
 0xc5c   :  { %18415 = vst [vmem:[#allocation106_spill] sm:$0xff] %v16527_v8 }
 0xc5e   :  { %8036 = vmatpush1.bf16.msra.mxu1 %v16509_v46  ;;  %v16530_v46 = vld [vmem:[#allocation18 + $0x364] ss:$8 sps:$4 sm:$0xff]  }
 0xc5f   :  { %8037 = vmatprep.subr.bf16.mxu1 %v16512_v31  ;;  %18416 = vst [vmem:[#allocation107_spill] sm:$0xff] %v16530_v46  ;;  %v16533_v31 = vld [vmem:[#allocation18 + $0x360] ss:$8 sps:$4 sm:$0xff]  }
 0xc60   :  { %18417 = vst [vmem:[#allocation108_spill] sm:$0xff] %v16533_v31 }
 0xc62   :  { %8038 = vmatpush1.bf16.msra.mxu1 %v16515_v26  ;;  %v16536_v26 = vld [vmem:[#allocation18 + $0x374] ss:$8 sps:$4 sm:$0xff]  }
 0xc63   :  { %8039 = vmatprep.subr.bf16.mxu1 %v16518_v12  ;;  %18418 = vst [vmem:[#allocation109_spill] sm:$0xff] %v16536_v26  ;;  %v16539_v12 = vld [vmem:[#allocation18 + $0x370] ss:$8 sps:$4 sm:$0xff]  }
 0xc64   :  { %18419 = vst [vmem:[#allocation110_spill] sm:$0xff] %v16539_v12 }
 0xc66   :  { %8040 = vmatpush1.bf16.msra.mxu1 %v16521_v3  ;;  %v16542_v3 = vld [vmem:[#allocation18 + $0x384] ss:$8 sps:$4 sm:$0xff]  }
 0xc67   :  { %8041 = vmatprep.subr.bf16.mxu1 %v16524_v40  ;;  %18420 = vst [vmem:[#allocation111_spill] sm:$0xff] %v16542_v3  ;;  %v16545_v40 = vld [vmem:[#allocation18 + $0x380] ss:$8 sps:$4 sm:$0xff]  }
 0xc68   :  { %18421 = vst [vmem:[#allocation112_spill] sm:$0xff] %v16545_v40 }
 0xc6a   :  { %8042 = vmatpush1.bf16.msra.mxu1 %v16527_v8  ;;  %v16548_v8 = vld [vmem:[#allocation18 + $0x394] ss:$8 sps:$4 sm:$0xff]  }
 0xc6b   :  { %8043 = vmatprep.subr.bf16.mxu1 %v16530_v46  ;;  %18422 = vst [vmem:[#allocation113_spill] sm:$0xff] %v16548_v8  ;;  %v16551_v46 = vld [vmem:[#allocation18 + $0x390] ss:$8 sps:$4 sm:$0xff]  }
 0xc6c   :  { %18423 = vst [vmem:[#allocation114_spill] sm:$0xff] %v16551_v46 }
 0xc6e   :  { %8044 = vmatpush1.bf16.msra.mxu1 %v16533_v31  ;;  %v16554_v31 = vld [vmem:[#allocation18 + $0x3a4] ss:$8 sps:$4 sm:$0xff]  }
 0xc6f   :  { %8045 = vmatprep.subr.bf16.mxu1 %v16536_v26  ;;  %18424 = vst [vmem:[#allocation115_spill] sm:$0xff] %v16554_v31  ;;  %v16557_v26 = vld [vmem:[#allocation18 + $0x3a0] ss:$8 sps:$4 sm:$0xff]  }
 0xc70   :  { %18425 = vst [vmem:[#allocation116_spill] sm:$0xff] %v16557_v26 }
 0xc72   :  { %8046 = vmatpush1.bf16.msra.mxu1 %v16539_v12  ;;  %v16560_v12 = vld [vmem:[#allocation18 + $0x3b4] ss:$8 sps:$4 sm:$0xff]  }
 0xc73   :  { %8047 = vmatprep.subr.bf16.mxu1 %v16542_v3  ;;  %18426 = vst [vmem:[#allocation117_spill] sm:$0xff] %v16560_v12  ;;  %v16563_v3 = vld [vmem:[#allocation18 + $0x3b0] ss:$8 sps:$4 sm:$0xff]  }
 0xc74   :  { %18427 = vst [vmem:[#allocation118_spill] sm:$0xff] %v16563_v3 }
 0xc76   :  { %8048 = vmatpush1.bf16.msra.mxu1 %v16545_v40  ;;  %v16566_v40 = vld [vmem:[#allocation18 + $0x3c4] ss:$8 sps:$4 sm:$0xff]  }
 0xc77   :  { %8049 = vmatprep.subr.bf16.mxu1 %v16548_v8  ;;  %18428 = vst [vmem:[#allocation119_spill] sm:$0xff] %v16566_v40  ;;  %v16569_v8 = vld [vmem:[#allocation18 + $0x3c0] ss:$8 sps:$4 sm:$0xff]  }
 0xc78   :  { %18429 = vst [vmem:[#allocation120_spill] sm:$0xff] %v16569_v8 }
 0xc7a   :  { %8050 = vmatpush1.bf16.msra.mxu1 %v16551_v46  ;;  %v16572_v46 = vld [vmem:[#allocation18 + $0x3d4] ss:$8 sps:$4 sm:$0xff]  }
 0xc7b   :  { %8051 = vmatprep.subr.bf16.mxu1 %v16554_v31  ;;  %18430 = vst [vmem:[#allocation121_spill] sm:$0xff] %v16572_v46  ;;  %v16575_v31 = vld [vmem:[#allocation18 + $0x3d0] ss:$8 sps:$4 sm:$0xff]  }
 0xc7c   :  { %18431 = vst [vmem:[#allocation122_spill] sm:$0xff] %v16575_v31 }
 0xc7e   :  { %8052 = vmatpush1.bf16.msra.mxu1 %v16557_v26  ;;  %v16578_v26 = vld [vmem:[#allocation18 + $0x3e4] ss:$8 sps:$4 sm:$0xff]  }
 0xc7f   :  { %8053 = vmatprep.subr.bf16.mxu1 %v16560_v12  ;;  %18432 = vst [vmem:[#allocation123_spill] sm:$0xff] %v16578_v26  ;;  %v16581_v12 = vld [vmem:[#allocation18 + $0x3e0] ss:$8 sps:$4 sm:$0xff]  }
 0xc80   :  { %18433 = vst [vmem:[#allocation124_spill] sm:$0xff] %v16581_v12 }
 0xc82   :  { %8054 = vmatpush1.bf16.msra.mxu1 %v16563_v3  ;;  %v16584_v3 = vld [vmem:[#allocation18 + $0x3f4] ss:$8 sps:$4 sm:$0xff]  }
 0xc83   :  { %8055 = vmatprep.subr.bf16.mxu1 %v16566_v40  ;;  %18434 = vst [vmem:[#allocation125_spill] sm:$0xff] %v16584_v3  ;;  %v16587_v40 = vld [vmem:[#allocation18 + $0x3f0] ss:$8 sps:$4 sm:$0xff]  }
 0xc86   :  { %8056 = vmatpush1.bf16.msra.mxu1 %v16569_v8  ;;  %v16590_v8 = vld [vmem:[#allocation22 + $0x4] ss:$8 sps:$4 sm:$0xff]  }
 0xc87   :  { %8057 = vmatprep.subr.bf16.mxu1 %v16572_v46  ;;  %18435 = vst [vmem:[#allocation126_spill] sm:$0xff] %v16590_v8 }
 0xc8a   :  { %8058 = vmatpush1.bf16.msra.mxu1 %v16575_v31  ;;  %v7266_v31 = vpack.c.bf16 %v16432_v56, %v16432_v56 }
 0xc8b   :  { %8059 = vmatprep.subr.bf16.mxu1 %v16578_v26 }
 0xc8e   :  { %8060 = vmatpush1.bf16.msra.mxu1 %v16581_v12 }
 0xc8f   :  { %8061 = vmatprep.subr.bf16.mxu1 %v16584_v3  ;;  %v16601_v3 = vld [vmem:[#allocation22 + $0x14] ss:$8 sps:$4 sm:$0xff]  }
 0xc90   :  { %v6921_v10 = vpop.f32.mrb[112].mxu0 }
 0xc91   :  { %v6928_v46 = vmul.f32 %v6921_v10, %v16030_v54  ;;  %v6923_v0 = vpop.f32.mrb[113].mxu0 }
 0xc92   :  { %v6929_v18 = vmul.f32 %v6923_v0, %v16033_v28  ;;  %v6925_v26 = vpop.f32.mrb[114].mxu0  ;;  %8062 = vmatpush1.bf16.msra.mxu1 %v16587_v40  ;;  %v16605_v28 = vld [vmem:[#allocation22 + $0x10] ss:$8 sps:$4 sm:$0xff]  }
 0xc93   :  { %v6930_v12 = vadd.f32 %v6928_v46, %v16036_v51  ;;  %v6926_v55 = vpop.f32.mrb[115].mxu0  ;;  %9283 = vmatprep.subr.bf16.mxu1 %v16590_v8  ;;  %v16608_v51 = vld [vmem:[#allocation22 + $0x24] ss:$8 sps:$4 sm:$0xff]  }
 0xc94   :  { %v6931_v54 = vadd.f32 %v6929_v18, %v16039_v17  ;;  %v16612_v17 = vld [vmem:[#allocation22 + $0x20] ss:$8 sps:$4 sm:$0xff]   ;;  %v16616_v18 = vld [vmem:[#allocation22 + $0x34] ss:$8 sps:$4 sm:$0xff]  }
 0xc95   :  { %vm6932_vm15 = vcmp.ge.f32.partialorder %v6930_v12, 0.0  ;;  %v6934_v10 = vmul.f32 0.2, %v6930_v12  ;;  %8064 = vmatmul.mubr.bf16.vlgmr.msra.gmra.mrb[156].mxu1 %v7266_v31  ;;  %v16625_v31 = vld [vmem:[#allocation22 + $0x44] ss:$8 sps:$4 sm:$0xff]  }
 0xc96   :  { %vm6933_vm1 = vcmp.ge.f32.partialorder %v6931_v54, 0.0  ;;  %v6935_v56 = vmul.f32 0.2, %v6931_v54  ;;  %9284 = vmatpush1.bf16.msra.mxu1 %v16597_v50 }
 0xc97   :  { %v6936_v0 = vsel %vm6932_vm15, %v6930_v12, %v6934_v10  ;;  %9285 = vmatprep.subr.bf16.mxu1 %v16601_v3  ;;  %v16620_v12 = vld [vmem:[#allocation22 + $0x30] ss:$8 sps:$4 sm:$0xff]   ;;  %v16633_v10 = vld [vmem:[#allocation22 + $0x54] ss:$8 sps:$4 sm:$0xff]  }
 0xc98   :  { %v6937_v55 = vsel %vm6933_vm1, %v6931_v54, %v6935_v56  ;;  %v6938_v46 = vpack.c.bf16 %v6936_v0, %v6936_v0  ;;  %v16630_v54 = vld [vmem:[#allocation22 + $0x40] ss:$8 sps:$4 sm:$0xff]   ;;  %v16641_v56 = vld [vmem:[#allocation22 + $0x64] ss:$8 sps:$4 sm:$0xff]  }
 0xc99   :  { %v6939_v26 = vpack.c.bf16 %v6937_v55, %v6937_v55  ;;  %v16646_v0 = vld [vmem:[#allocation22 + $0x60] ss:$8 sps:$4 sm:$0xff]   ;;  %v16649_v55 = vld [vmem:[#allocation22 + $0x74] ss:$8 sps:$4 sm:$0xff]  }
 0xc9a   :  { %v8122_v8 = vsel %vm7080_vm13, %v6938_v46, 0  ;;  %9286 = vmatpush1.bf16.msra.mxu1 %v16605_v28 }
 0xc9b   :  { %10811 = vmatprep.subr.msk.bf16.mxu0 %vm7080_vm13, %v6939_v26  ;;  %9287 = vmatprep.subr.bf16.mxu1 %v16608_v51 }
 0xc9c   :  { %8128 = vmatpush1.bf16.msra.mxu0 %v8122_v8 }
 0xc9d   :  { %10813 = vmatprep.subr.msk.bf16.mxu0 %vm7080_vm13, %v6939_v26 }
 0xc9e   :  { %9288 = vmatpush1.bf16.msra.mxu1 %v16612_v17 }
 0xc9f   :  { %10812 = vmatmul.mubr.msk.bf16.vlgmr.msra.gmra.mrb[116].mxu0 %vm7076_vm14, %v16050_v43  ;;  %9289 = vmatprep.subr.bf16.mxu1 %v16616_v18  ;;  %v16636_v43 = vld [vmem:[#allocation22 + $0x50] ss:$8 sps:$4 sm:$0xff]  }
 0xca0   :  { %8171 = vmatpush1.bf16.msra.mxu0 %v8122_v8  ;;  %8202 = vmatprep.mubr.bf16.mxu0 %v17942_v24 }
 0xca1   :  { %10815 = vmatprep.subr.msk.bf16.mxu0 %vm7080_vm13, %v6939_v26 }
 0xca2   :  { %9290 = vmatpush1.bf16.msra.mxu1 %v16620_v12 }
 0xca3   :  { %9291 = vmatprep.subr.bf16.mxu1 %v16625_v31 }
 0xca6   :  { %9292 = vmatpush1.bf16.msra.mxu1 %v16630_v54 }
 0xca7   :  { %10814 = vmatmul.mubr.msk.bf16.vlgmr.msra.gmra.mrb[120].mxu0 %vm7076_vm14, %v16065_v49  ;;  %9293 = vmatprep.subr.bf16.mxu1 %v16633_v10  ;;  %v16652_v49 = vld [vmem:[#allocation22 + $0x70] ss:$8 sps:$4 sm:$0xff]  }
 0xca8   :  { %8214 = vmatpush1.bf16.msra.mxu0 %v8122_v8  ;;  %8245 = vmatprep.mubr.bf16.mxu0 %v17942_v24 }
 0xca9   :  { %10817 = vmatprep.subr.msk.bf16.mxu0 %vm7080_vm13, %v6939_v26 }
 0xcaa   :  { %9294 = vmatpush1.bf16.msra.mxu1 %v16636_v43 }
 0xcab   :  { %9295 = vmatprep.subr.bf16.mxu1 %v16641_v56 }
 0xcae   :  { %9296 = vmatpush1.bf16.msra.mxu1 %v16646_v0 }
 0xcaf   :  { %10816 = vmatmul.mubr.msk.bf16.vlgmr.msra.gmra.mrb[124].mxu0 %vm7076_vm14, %v16091_v52  ;;  %9297 = vmatprep.subr.bf16.mxu1 %v16649_v55  ;;  %v16693_v52 = vld [vmem:[#allocation22 + $0x80] ss:$8 sps:$4 sm:$0xff]  }
 0xcb0   :  { %8257 = vmatpush1.bf16.msra.mxu0 %v8122_v8  ;;  %8288 = vmatprep.mubr.bf16.mxu0 %v17942_v24  ;;  %v16690_v24 = vld [vmem:[#allocation22 + $0x84] ss:$8 sps:$4 sm:$0xff]  }
 0xcb1   :  { %8299 = vmatprep.subr.bf16.mxu0 %v16108_v5  ;;  %v16698_v5 = vld [vmem:[#allocation22 + $0x94] ss:$8 sps:$4 sm:$0xff]  }
 0xcb2   :  { %9298 = vmatpush1.bf16.msra.mxu1 %v16652_v49 }
 0xcb3   :  { %9299 = vmatprep.subr.bf16.mxu1 %v16690_v24 }
 0xcb6   :  { %9300 = vmatpush1.bf16.msra.mxu1 %v16693_v52 }
 0xcb7   :  { %10818 = vmatmul.mubr.msk.bf16.vlgmr.msra.gmra.mrb[128].mxu0 %vm7076_vm14, %v16116_v16  ;;  %9301 = vmatprep.subr.bf16.mxu1 %v16698_v5  ;;  %v16706_v16 = vld [vmem:[#allocation22 + $0xa4] ss:$8 sps:$4 sm:$0xff]  }
 0xcb8   :  { %8300 = vmatpush1.bf16.msra.mxu0 %v16110_v33  ;;  %v16701_v33 = vld [vmem:[#allocation22 + $0x90] ss:$8 sps:$4 sm:$0xff]  }
 0xcb9   :  { %8301 = vmatprep.subr.bf16.mxu0 %v16123_v15  ;;  %v16708_v15 = vld [vmem:[#allocation22 + $0xa0] ss:$8 sps:$4 sm:$0xff]  }
 0xcba   :  { %9302 = vmatpush1.bf16.msra.mxu1 %v16701_v33 }
 0xcbb   :  { %9303 = vmatprep.subr.bf16.mxu1 %v16706_v16 }
 0xcbc   :  { %8302 = vmatpush1.bf16.msra.mxu0 %v16125_v21  ;;  %v16712_v21 = vld [vmem:[#allocation22 + $0xb4] ss:$8 sps:$4 sm:$0xff]  }
 0xcbd   :  { %8303 = vmatprep.subr.bf16.mxu0 %v16131_v34  ;;  %v16714_v34 = vld [vmem:[#allocation22 + $0xb0] ss:$8 sps:$4 sm:$0xff]  }
 0xcbe   :  { %9304 = vmatpush1.bf16.msra.mxu1 %v16708_v15 }
 0xcbf   :  { %9305 = vmatprep.subr.bf16.mxu1 %v16712_v21 }
 0xcc0   :  { %8304 = vmatpush1.bf16.msra.mxu0 %v16133_v58  ;;  %v16718_v58 = vld [vmem:[#allocation22 + $0xc4] ss:$8 sps:$4 sm:$0xff]  }
 0xcc1   :  { %8305 = vmatprep.subr.bf16.mxu0 %v16139_v37  ;;  %v16720_v37 = vld [vmem:[#allocation22 + $0xc0] ss:$8 sps:$4 sm:$0xff]  }
 0xcc2   :  { %9306 = vmatpush1.bf16.msra.mxu1 %v16714_v34 }
 0xcc3   :  { %9307 = vmatprep.subr.bf16.mxu1 %v16718_v58 }
 0xcc4   :  { %8306 = vmatpush1.bf16.msra.mxu0 %v16141_v29  ;;  %v16724_v29 = vld [vmem:[#allocation22 + $0xd4] ss:$8 sps:$4 sm:$0xff]  }
 0xcc5   :  { %8307 = vmatprep.subr.bf16.mxu0 %v16151_v2  ;;  %v16726_v2 = vld [vmem:[#allocation22 + $0xd0] ss:$8 sps:$4 sm:$0xff]  }
 0xcc6   :  { %9308 = vmatpush1.bf16.msra.mxu1 %v16720_v37 }
 0xcc7   :  { %9309 = vmatprep.subr.bf16.mxu1 %v16724_v29 }
 0xcc8   :  { %8308 = vmatpush1.bf16.msra.mxu0 %v16153_v27  ;;  %v16730_v27 = vld [vmem:[#allocation22 + $0xe4] ss:$8 sps:$4 sm:$0xff]  }
 0xcc9   :  { %8309 = vmatprep.subr.bf16.mxu0 %v16156_v53  ;;  %v16732_v53 = vld [vmem:[#allocation22 + $0xe0] ss:$8 sps:$4 sm:$0xff]  }
 0xcca   :  { %9310 = vmatpush1.bf16.msra.mxu1 %v16726_v2 }
 0xccb   :  { %9311 = vmatprep.subr.bf16.mxu1 %v16730_v27 }
 0xccc   :  { %8310 = vmatpush1.bf16.msra.mxu0 %v16161_v30  ;;  %v16736_v30 = vld [vmem:[#allocation22 + $0xf4] ss:$8 sps:$4 sm:$0xff]  }
 0xccd   :  { %8311 = vmatprep.subr.bf16.mxu0 %v16164_v4  ;;  %v16738_v4 = vld [vmem:[#allocation22 + $0xf0] ss:$8 sps:$4 sm:$0xff]  }
 0xcce   :  { %9312 = vmatpush1.bf16.msra.mxu1 %v16732_v53 }
 0xccf   :  { %9313 = vmatprep.subr.bf16.mxu1 %v16736_v30 }
 0xcd0   :  { %8312 = vmatpush1.bf16.msra.mxu0 %v16169_v45  ;;  %v16742_v45 = vld [vmem:[#allocation22 + $0x104] ss:$8 sps:$4 sm:$0xff]  }
 0xcd1   :  { %8313 = vmatprep.subr.bf16.mxu0 %v16172_v41  ;;  %v7068_v41 = vld [vmem:[#allocation19] sm:$0xf] }
 0xcd2   :  { %9314 = vmatpush1.bf16.msra.mxu1 %v16738_v4 }
 0xcd3   :  { %9324 = vmatprep.subr.bf16.mxu1 %v16742_v45 }
 0xcd4   :  { %8314 = vmatpush1.bf16.msra.mxu0 %v16177_v25  ;;  %v8076_v25 = vrot.slane %v7068_v41, %v18254_v22 }
 0xcd5   :  { %8315 = vmatprep.subr.bf16.mxu0 %v16180_v42  ;;  %v8080_v42 = vrot.slane %v7068_v41, %v18255_v60 }
 0xcd8   :  { %8316 = vmatpush1.bf16.msra.mxu0 %v16185_v59  ;;  %v8096_v59 = vrot.slane %v7068_v41, %v18256_v44 }
 0xcd9   :  { %8317 = vmatprep.subr.bf16.mxu0 %v16188_v11  ;;  %v8100_v11 = vrot.slane %v7068_v41, %v18257_v61 }
 0xcdc   :  { %8318 = vmatpush1.bf16.msra.mxu0 %v16193_v13  ;;  %v16750_v13 = vrot.slane %v8076_v25, %v18254_v22 }
 0xcdd   :  { %8319 = vmatprep.subr.bf16.mxu0 %v16196_v19  ;;  %v16753_v19 = vrot.slane %v8080_v42, %v18254_v22  ;;  %v16852_v22 = vld [vmem:[#allocation22 + $0x174] ss:$8 sps:$4 sm:$0xff]  }
 0xce0   :  { %8320 = vmatpush1.bf16.msra.mxu0 %v16201_v14  ;;  %v16756_v14 = vrot.slane %v8096_v59, %v18256_v44 }
 0xce1   :  { %8321 = vmatprep.subr.bf16.mxu0 %v16204_v1 }
 0xce4   :  { %8322 = vmatpush1.bf16.msra.mxu0 %v16209_v48  ;;  %v16759_v48 = vrot.slane %v8100_v11, %v18256_v44  ;;  %v18449_v44 = vld [vmem:[#allocation39_spill] sm:$0xff] }
 0xce5   :  { %8323 = vmatprep.subr.bf16.mxu0 %v16212_v39 }
 0xce8   :  { %8324 = vmatpush1.bf16.msra.mxu0 %v16217_v47 }
 0xce9   :  { %8325 = vmatprep.subr.bf16.mxu0 %v16220_v20 }
 0xcec   :  { %8326 = vmatpush1.bf16.msra.mxu0 %v16225_v23 }
 0xced   :  { %8327 = vmatprep.subr.bf16.mxu0 %v16228_v57 }
 0xcf0   :  { %8328 = vmatpush1.bf16.msra.mxu0 %v16233_v36 }
 0xcf1   :  { %8329 = vmatprep.subr.bf16.mxu0 %v16236_v9 }
 0xcf4   :  { %8330 = vmatpush1.bf16.msra.mxu0 %v16241_v35 }
 0xcf5   :  { %8340 = vmatprep.subr.bf16.mxu0 %v16244_v7 }
 0xd68   :  { %v8065_v1 = vpop.f32.mrb[156].mxu1 }
 0xd69   :  { %v8091_v39 = vmul.f32 %v16750_v13, %v8065_v1  ;;  %v8067_v47 = vpop.f32.mrb[157].mxu1  ;;  %v12632_v1 = vld [vmem:[%s17529_s19 + $0xd8] sm:$0xff]  }
 0xd6a   :  { %v8092_v20 = vmul.f32 %v16753_v19, %v8067_v47  ;;  %v8069_v23 = vpop.f32.mrb[158].mxu1 }
 0xd6b   :  { %v8111_v57 = vadd.f32 %v16756_v14, %v8091_v39  ;;  %v8070_v36 = vpop.f32.mrb[159].mxu1 }
 0xd6c   :  { %v8112_v9 = vadd.f32 %v16759_v48, %v8092_v20 }
 0xd6d   :  { %vm8113_vm0 = vcmp.ge.f32.partialorder %v8111_v57, 0.0  ;;  %v8115_v35 = vmul.f32 0.2, %v8111_v57 }
 0xd6e   :  { %vm8114_vm2 = vcmp.ge.f32.partialorder %v8112_v9, 0.0  ;;  %v8116_v7 = vmul.f32 0.2, %v8112_v9 }
 0xd6f   :  { %v8117_v8 = vsel %vm8113_vm0, %v8111_v57, %v8115_v35 }
 0xd70   :  { %v16765_v46 = vpack.c.bf16 %v8117_v8, %v8117_v8  ;;  %v8118_v26 = vsel %vm8114_vm2, %v8112_v9, %v8116_v7  ;;  %v16782_v7 = vld [vmem:[#allocation22 + $0x100] ss:$8 sps:$4 sm:$0xff]  }
 0xd71   :  { %v16767_v41 = vpack.c.bf16 %v8118_v26, %v8118_v26 }
 0xd72   :  { %v8161_v25 = vpop.f32.mrb[116].mxu0  ;;  %v17836_v42 = vshrl.u32 %v16765_v46, 16 }
 0xd73   :  { %v8163_v59 = vpop.f32.mrb[117].mxu0  ;;  %v17837_v11 = vshrl.u32 %v16767_v41, 16  ;;  %v17835_v39 = vshll.u32 %v16767_v41, 16  ;;  %v8168_v57 = vpack.c.bf16 %v8161_v25, %v8161_v25  ;;  %v16790_v25 = vld [vmem:[#allocation22 + $0x114] ss:$8 sps:$4 sm:$0xff]   ;;  %v17846_v60 = vrot.slane %v16767_v41, 1 }
 0xd74   :  { %v8169_v47 = vpack.c.bf16 %v8163_v59, %v8163_v59  ;;  %v8165_v20 = vpop.f32.mrb[118].mxu0  ;;  %v8607_v23 = vrot.slane %v17836_v42, 1  ;;  %v18445_v42 = vld [vmem:[#allocation37_spill] sm:$0xff] }
 0xd75   :  { %v8166_v36 = vpop.f32.mrb[119].mxu0  ;;  %v8611_v9 = vrot.slane %v17837_v11, 1  ;;  %v8624_v35 = vrot.slane %v17835_v39, 1  ;;  %v18444_v39 = vld [vmem:[#allocation101_spill] sm:$0xff]  ;;  %v16836_v11 = vld [vmem:[#allocation22 + $0x150] ss:$8 sps:$4 sm:$0xff]  }
 0xd76   :  { %8331 = vmatprep.mubr.bf16.mxu0 %v8169_v47  ;;  %v8617_v8 = vsel %vm16771_vm5, %v8607_v23, %v16765_v46  ;;  %v16798_v47 = vld [vmem:[#allocation22 + $0x110] ss:$8 sps:$4 sm:$0xff]   ;;  %v16803_v23 = vld [vmem:[#allocation22 + $0x124] ss:$8 sps:$4 sm:$0xff]   ;;  %18451 = vst [vmem:[#allocation37_spill] sm:$0xff] %v16852_v22 }
 0xd77   :  { %8332 = vmatmul.mubr.bf16.vlgmr.msra.gmra.mrb[132].mxu0 %v8168_v57  ;;  %v8618_v26 = vsel %vm16771_vm5, %v8611_v9, %v16767_v41  ;;  %v8628_v59 = vsel %vm16771_vm5, %v16767_v41, %v8624_v35  ;;  %v16808_v9 = vld [vmem:[#allocation22 + $0x120] ss:$8 sps:$4 sm:$0xff]   ;;  %v16811_v35 = vld [vmem:[#allocation22 + $0x134] ss:$8 sps:$4 sm:$0xff]  }
 0xd78   :  { %8341 = vmatpush1.bf16.msra.mxu0 %v16296_v6  ;;  %9315 = vmatprep.mubr.bf16.mxu1 %v8618_v26 }
 0xd79   :  { %8342 = vmatprep.subr.bf16.mxu0 %v16298_v38  ;;  %9316 = vmatmul.mubr.bf16.vlgmr.msra.gmra.mrb[160].mxu1 %v8617_v8  ;;  %v18438_v8 = vld [vmem:[#allocation98_spill] sm:$0xff] }
 0xd7a   :  { %9325 = vmatpush1.bf16.msra.mxu1 %v16782_v7  ;;  %v16800_v20 = vpop.f32.mrb[120].mxu0  ;;  %9356 = vmatprep.mubr.bf16.mxu1 %v8628_v59 }
 0xd7b   :  { %9326 = vmatprep.subr.bf16.mxu1 %v16790_v25  ;;  %v8206_v57 = vpop.f32.mrb[121].mxu0 }
 0xd7c   :  { %8343 = vmatpush1.bf16.msra.mxu0 %v16301_v62  ;;  %v8212_v36 = vpack.c.bf16 %v8206_v57, %v8206_v57  ;;  %v8208_v6 = vpop.f32.mrb[122].mxu0  ;;  %v16816_v62 = vld [vmem:[#allocation22 + $0x130] ss:$8 sps:$4 sm:$0xff]  }
 0xd7d   :  { %8344 = vmatprep.subr.bf16.mxu0 %v16304_v63  ;;  %v8209_v38 = vpop.f32.mrb[123].mxu0  ;;  %v16821_v63 = vld [vmem:[#allocation22 + $0x144] ss:$8 sps:$4 sm:$0xff]   ;;  %v18440_v57 = vld [vmem:[#allocation99_spill] sm:$0xff]  ;;  %v18441_v6 = vld [vmem:[#allocation100_spill] sm:$0xff] }
 0xd7e   :  { %9327 = vmatpush1.bf16.msra.mxu1 %v16798_v47  ;;  %8372 = vmatprep.mubr.bf16.mxu0 %v8212_v36  ;;  %18439 = vst [vmem:[#allocation127_spill] sm:$0xff] %v16821_v63  ;;  %v16828_v38 = vld [vmem:[#allocation22 + $0x140] ss:$8 sps:$4 sm:$0xff]   ;;  %18446 = vst [vmem:[#allocation99_spill] sm:$0xff] %v16836_v11 }
 0xd7f   :  { %9328 = vmatprep.subr.bf16.mxu1 %v16803_v23  ;;  %18442 = vst [vmem:[#allocation128_spill] sm:$0xff] %v16828_v38 }
 0xd80   :  { %8345 = vmatpush1.bf16.msra.mxu0 %v16309_v32 }
 0xd81   :  { %8346 = vmatprep.subr.bf16.mxu0 %v18438_v8  ;;  %v16831_v8 = vld [vmem:[#allocation22 + $0x154] ss:$8 sps:$4 sm:$0xff]  }
 0xd82   :  { %9329 = vmatpush1.bf16.msra.mxu1 %v16808_v9  ;;  %v16818_v26 = vpop.f32.mrb[124].mxu0  ;;  %18443 = vst [vmem:[#allocation98_spill] sm:$0xff] %v16831_v8 }
 0xd83   :  { %9330 = vmatprep.subr.bf16.mxu1 %v16811_v35  ;;  %v16823_v59 = vpop.f32.mrb[125].mxu0 }
 0xd84   :  { %8347 = vmatpush1.bf16.msra.mxu0 %v18440_v57  ;;  %v8251_v36 = vpop.f32.mrb[126].mxu0 }
 0xd85   :  { %8348 = vmatprep.subr.bf16.mxu0 %v18441_v6  ;;  %v8252_v32 = vpop.f32.mrb[127].mxu0  ;;  %v16841_v36 = vld [vmem:[#allocation22 + $0x164] ss:$8 sps:$4 sm:$0xff]  }
 0xd86   :  { %9331 = vmatpush1.bf16.msra.mxu1 %v16816_v62  ;;  %18447 = vst [vmem:[#allocation100_spill] sm:$0xff] %v16841_v36  ;;  %v18448_v32 = vld [vmem:[#allocation38_spill] sm:$0xff] }
 0xd87   :  { %9332 = vmatprep.subr.bf16.mxu1 %v16821_v63  ;;  %v18487_v63 = vld [vmem:[#allocation57_spill] sm:$0xff] }
 0xd88   :  { %8349 = vmatpush1.bf16.msra.mxu0 %v18444_v39 }
 0xd89   :  { %8350 = vmatprep.subr.bf16.mxu0 %v18445_v42  ;;  %v16848_v42 = vld [vmem:[#allocation22 + $0x160] ss:$8 sps:$4 sm:$0xff]  }
 0xd8a   :  { %9333 = vmatpush1.bf16.msra.mxu1 %v16828_v38  ;;  %v16838_v57 = vpop.f32.mrb[128].mxu0  ;;  %18450 = vst [vmem:[#allocation101_spill] sm:$0xff] %v16848_v42  ;;  %v18452_v38 = vld [vmem:[#allocation40_spill] sm:$0xff] }
 0xd8b   :  { %9334 = vmatprep.subr.bf16.mxu1 %v16831_v8  ;;  %v16843_v6 = vpop.f32.mrb[129].mxu0  ;;  %v17847_v8 = vrot.slane %v16765_v46, 1 }
 0xd8c   :  { %8351 = vmatpush1.bf16.msra.mxu0 %v18448_v32  ;;  %v8294_v61 = vpop.f32.mrb[130].mxu0  ;;  %v18454_v32 = vld [vmem:[#allocation41_spill] sm:$0xff] }
 0xd8d   :  { %8352 = vmatprep.subr.bf16.mxu0 %v18449_v44  ;;  %v8295_v39 = vpop.f32.mrb[131].mxu0  ;;  %v18453_v61 = vshrl.u32 %v16767_v41, 16 }
 0xd8e   :  { %9335 = vmatpush1.bf16.msra.mxu1 %v16836_v11  ;;  %v18455_v39 = vshrl.u32 %v16765_v46, 16  ;;  %v16877_v11 = vld [vmem:[#allocation22 + $0x184] ss:$8 sps:$4 sm:$0xff]  }
 0xd8f   :  { %9336 = vmatprep.subr.bf16.mxu1 %v16841_v36  ;;  %v16862_v44 = vsel %vm16771_vm5, %v18453_v61, %v17846_v60  ;;  %18457 = vst [vmem:[#allocation39_spill] sm:$0xff] %v16877_v11  ;;  %v18458_v61 = vld [vmem:[#allocation42_spill] sm:$0xff]  ;;  %v18459_v60 = vld [vmem:[#allocation43_spill] sm:$0xff] }
 0xd90   :  { %8353 = vmatpush1.bf16.msra.mxu0 %v18452_v38  ;;  %v16871_v36 = vsel %vm16771_vm5, %v18455_v39, %v17847_v8  ;;  %v16874_v38 = vld [vmem:[#allocation22 + $0x170] ss:$8 sps:$4 sm:$0xff]   ;;  %v16885_v39 = vld [vmem:[#allocation22 + $0x194] ss:$8 sps:$4 sm:$0xff]  }
 0xd91   :  { %8354 = vmatprep.subr.bf16.mxu0 %v18454_v32  ;;  %18456 = vst [vmem:[#allocation38_spill] sm:$0xff] %v16874_v38  ;;  %v16882_v32 = vld [vmem:[#allocation22 + $0x180] ss:$8 sps:$4 sm:$0xff]   ;;  %18461 = vst [vmem:[#allocation41_spill] sm:$0xff] %v16885_v39 }
 0xd92   :  { %9337 = vmatpush1.bf16.msra.mxu1 %v16848_v42  ;;  %18460 = vst [vmem:[#allocation40_spill] sm:$0xff] %v16882_v32  ;;  %v18462_v8 = vld [vmem:[#allocation44_spill] sm:$0xff]  ;;  %v18463_v42 = vld [vmem:[#allocation45_spill] sm:$0xff] }
 0xd93   :  { %9338 = vmatprep.subr.bf16.mxu1 %v16852_v22  ;;  %v16890_v22 = vld [vmem:[#allocation22 + $0x190] ss:$8 sps:$4 sm:$0xff]  }
 0xd94   :  { %8355 = vmatpush1.bf16.msra.mxu0 %v18458_v61  ;;  %18464 = vst [vmem:[#allocation42_spill] sm:$0xff] %v16890_v22  ;;  %v16893_v61 = vld [vmem:[#allocation22 + $0x1a4] ss:$8 sps:$4 sm:$0xff]  }
 0xd95   :  { %8356 = vmatprep.subr.bf16.mxu0 %v18459_v60  ;;  %18465 = vst [vmem:[#allocation43_spill] sm:$0xff] %v16893_v61  ;;  %v18466_v60 = vld [vmem:[#allocation46_spill] sm:$0xff] }
 0xd96   :  { %9339 = vmatpush1.bf16.msra.mxu1 %v16874_v38  ;;  %v18467_v38 = vld [vmem:[#allocation47_spill] sm:$0xff] }
 0xd97   :  { %9340 = vmatprep.subr.bf16.mxu1 %v16877_v11  ;;  %v16898_v11 = vld [vmem:[#allocation22 + $0x1a0] ss:$8 sps:$4 sm:$0xff]  }
 0xd98   :  { %8357 = vmatpush1.bf16.msra.mxu0 %v18462_v8  ;;  %18468 = vst [vmem:[#allocation44_spill] sm:$0xff] %v16898_v11  ;;  %v16901_v8 = vld [vmem:[#allocation22 + $0x1b4] ss:$8 sps:$4 sm:$0xff]  }
 0xd99   :  { %8358 = vmatprep.subr.bf16.mxu0 %v18463_v42  ;;  %18469 = vst [vmem:[#allocation45_spill] sm:$0xff] %v16901_v8  ;;  %v18470_v42 = vld [vmem:[#allocation48_spill] sm:$0xff] }
 0xd9a   :  { %9341 = vmatpush1.bf16.msra.mxu1 %v16882_v32  ;;  %v18471_v32 = vld [vmem:[#allocation49_spill] sm:$0xff] }
 0xd9b   :  { %9342 = vmatprep.subr.bf16.mxu1 %v16885_v39  ;;  %v16906_v39 = vld [vmem:[#allocation22 + $0x1b0] ss:$8 sps:$4 sm:$0xff]  }
 0xd9c   :  { %8359 = vmatpush1.bf16.msra.mxu0 %v18466_v60  ;;  %18472 = vst [vmem:[#allocation46_spill] sm:$0xff] %v16906_v39  ;;  %v16909_v60 = vld [vmem:[#allocation22 + $0x1c4] ss:$8 sps:$4 sm:$0xff]  }
 0xd9d   :  { %8360 = vmatprep.subr.bf16.mxu0 %v18467_v38  ;;  %18473 = vst [vmem:[#allocation47_spill] sm:$0xff] %v16909_v60  ;;  %v18474_v38 = vld [vmem:[#allocation50_spill] sm:$0xff] }
 0xd9e   :  { %9343 = vmatpush1.bf16.msra.mxu1 %v16890_v22  ;;  %v18475_v22 = vld [vmem:[#allocation51_spill] sm:$0xff] }
 0xd9f   :  { %9344 = vmatprep.subr.bf16.mxu1 %v16893_v61  ;;  %v16914_v61 = vld [vmem:[#allocation22 + $0x1c0] ss:$8 sps:$4 sm:$0xff]  }
 0xda0   :  { %8361 = vmatpush1.bf16.msra.mxu0 %v18470_v42  ;;  %18476 = vst [vmem:[#allocation48_spill] sm:$0xff] %v16914_v61  ;;  %v16917_v42 = vld [vmem:[#allocation22 + $0x1d4] ss:$8 sps:$4 sm:$0xff]  }
 0xda1   :  { %8362 = vmatprep.subr.bf16.mxu0 %v18471_v32  ;;  %18477 = vst [vmem:[#allocation49_spill] sm:$0xff] %v16917_v42  ;;  %v18478_v32 = vld [vmem:[#allocation52_spill] sm:$0xff] }
 0xda2   :  { %9345 = vmatpush1.bf16.msra.mxu1 %v16898_v11  ;;  %v18479_v11 = vld [vmem:[#allocation53_spill] sm:$0xff] }
 0xda3   :  { %9346 = vmatprep.subr.bf16.mxu1 %v16901_v8  ;;  %v16922_v8 = vld [vmem:[#allocation22 + $0x1d0] ss:$8 sps:$4 sm:$0xff]  }
 0xda4   :  { %8363 = vmatpush1.bf16.msra.mxu0 %v18474_v38  ;;  %18480 = vst [vmem:[#allocation50_spill] sm:$0xff] %v16922_v8  ;;  %v16925_v38 = vld [vmem:[#allocation22 + $0x1e4] ss:$8 sps:$4 sm:$0xff]  }
 0xda5   :  { %8364 = vmatprep.subr.bf16.mxu0 %v18475_v22  ;;  %18481 = vst [vmem:[#allocation51_spill] sm:$0xff] %v16925_v38  ;;  %v18482_v22 = vld [vmem:[#allocation54_spill] sm:$0xff] }
 0xda6   :  { %9347 = vmatpush1.bf16.msra.mxu1 %v16906_v39  ;;  %v18483_v39 = vld [vmem:[#allocation55_spill] sm:$0xff] }
 0xda7   :  { %9348 = vmatprep.subr.bf16.mxu1 %v16909_v60  ;;  %v16930_v60 = vld [vmem:[#allocation22 + $0x1e0] ss:$8 sps:$4 sm:$0xff]  }
 0xda8   :  { %8365 = vmatpush1.bf16.msra.mxu0 %v18478_v32  ;;  %18484 = vst [vmem:[#allocation52_spill] sm:$0xff] %v16930_v60  ;;  %v17866_v32 = vshll.u32 %v16765_v46, 16 }
 0xda9   :  { %8366 = vmatprep.subr.bf16.mxu0 %v18479_v11  ;;  %v16934_v11 = vld [vmem:[#allocation22 + $0x1f4] ss:$8 sps:$4 sm:$0xff]  }
 0xdaa   :  { %9349 = vmatpush1.bf16.msra.mxu1 %v16914_v61  ;;  %18485 = vst [vmem:[#allocation53_spill] sm:$0xff] %v16934_v11  ;;  %v18486_v61 = vld [vmem:[#allocation56_spill] sm:$0xff] }
 0xdab   :  { %9350 = vmatprep.subr.bf16.mxu1 %v16917_v42  ;;  %v16939_v42 = vld [vmem:[#allocation22 + $0x1f0] ss:$8 sps:$4 sm:$0xff]  }
 0xdac   :  { %8367 = vmatpush1.bf16.msra.mxu0 %v18482_v22  ;;  %v8211_v22 = vpack.c.bf16 %v16800_v20, %v16800_v20  ;;  %v16959_v20 = vld [vmem:[#allocation22 + $0x214] ss:$8 sps:$4 sm:$0xff]  }
 0xdad   :  { %8368 = vmatprep.subr.bf16.mxu0 %v18483_v39  ;;  %v8621_v39 = vrot.slane %v17866_v32, 1  ;;  %18490 = vst [vmem:[#allocation54_spill] sm:$0xff] %v16959_v20 }
 0xdae   :  { %9351 = vmatpush1.bf16.msra.mxu1 %v16922_v8  ;;  %v16946_v8 = vld [vmem:[#allocation22 + $0x204] ss:$8 sps:$4 sm:$0xff]  }
 0xdaf   :  { %9352 = vmatprep.subr.bf16.mxu1 %v16925_v38  ;;  %v18488_v38 = vld [vmem:[#allocation58_spill] sm:$0xff]  ;;  %v8627_v32 = vsel %vm16771_vm5, %v16765_v46, %v8621_v39 }
 0xdb0   :  { %8369 = vmatpush1.bf16.msra.mxu0 %v18486_v61  ;;  %v8255_v61 = vpack.c.bf16 %v16823_v59, %v16823_v59  ;;  %v16964_v59 = vld [vmem:[#allocation22 + $0x210] ss:$8 sps:$4 sm:$0xff]   ;;  %v16968_v39 = vld [vmem:[#allocation22 + $0x224] ss:$8 sps:$4 sm:$0xff]  }
 0xdb1   :  { %8370 = vmatprep.subr.bf16.mxu0 %v18487_v63  ;;  %v18489_v63 = vld [vmem:[#allocation59_spill] sm:$0xff]  ;;  %18493 = vst [vmem:[#allocation55_spill] sm:$0xff] %v16964_v59  ;;  %18494 = vst [vmem:[#allocation56_spill] sm:$0xff] %v16968_v39 }
 0xdb2   :  { %9353 = vmatpush1.bf16.msra.mxu1 %v16930_v60  ;;  %v16953_v60 = vld [vmem:[#allocation22 + $0x200] ss:$8 sps:$4 sm:$0xff]  }
 0xdb3   :  { %9354 = vmatprep.subr.bf16.mxu1 %v16934_v11  ;;  %v18491_v11 = vld [vmem:[#allocation60_spill] sm:$0xff] }
 0xdb4   :  { %8371 = vmatpush1.bf16.msra.mxu0 %v18488_v38  ;;  %v18492_v38 = vld [vmem:[#allocation61_spill] sm:$0xff] }
 0xdb5   :  { %8381 = vmatprep.subr.bf16.mxu0 %v18489_v63  ;;  %v18496_v63 = vld [vmem:[#allocation63_spill] sm:$0xff] }
 0xdb6   :  { %9355 = vmatpush1.bf16.msra.mxu1 %v16939_v42 }
 0xdb7   :  { %8373 = vmatmul.mubr.bf16.vlgmr.msra.gmra.mrb[132].mxu0 %v8211_v22  ;;  %9365 = vmatprep.subr.bf16.mxu1 %v16946_v8  ;;  %v18495_v22 = vld [vmem:[#allocation62_spill] sm:$0xff] }
 0xdb8   :  { %8382 = vmatpush1.bf16.msra.mxu0 %v18491_v11  ;;  %8413 = vmatprep.mubr.bf16.mxu0 %v8255_v61  ;;  %v16973_v11 = vld [vmem:[#allocation22 + $0x220] ss:$8 sps:$4 sm:$0xff]  }
 0xdb9   :  { %8383 = vmatprep.subr.bf16.mxu0 %v18492_v38  ;;  %9357 = vmatmul.mubr.bf16.vlgmr.msra.gmra.mrb[160].mxu1 %v8627_v32  ;;  %18497 = vst [vmem:[#allocation57_spill] sm:$0xff] %v16973_v11  ;;  %v16976_v32 = vld [vmem:[#allocation22 + $0x234] ss:$8 sps:$4 sm:$0xff]   ;;  %v18500_v38 = vld [vmem:[#allocation65_spill] sm:$0xff] }
 0xdba   :  { %9366 = vmatpush1.bf16.msra.mxu1 %v16953_v60  ;;  %9397 = vmatprep.mubr.bf16.mxu1 %v16862_v44  ;;  %18498 = vst [vmem:[#allocation58_spill] sm:$0xff] %v16976_v32  ;;  %v18499_v61 = vld [vmem:[#allocation64_spill] sm:$0xff]  ;;  %v16981_v44 = vld [vmem:[#allocation22 + $0x230] ss:$8 sps:$4 sm:$0xff]  }
 0xdbb   :  { %9367 = vmatprep.subr.bf16.mxu1 %v16959_v20  ;;  %18501 = vst [vmem:[#allocation59_spill] sm:$0xff] %v16981_v44  ;;  %v18551_v20 = vld [vmem:[#allocation91_spill] sm:$0xff] }
 0xdbc   :  { %8384 = vmatpush1.bf16.msra.mxu0 %v18495_v22  ;;  %v16984_v22 = vld [vmem:[#allocation22 + $0x244] ss:$8 sps:$4 sm:$0xff]  }
 0xdbd   :  { %8385 = vmatprep.subr.bf16.mxu0 %v18496_v63  ;;  %18502 = vst [vmem:[#allocation60_spill] sm:$0xff] %v16984_v22  ;;  %v18503_v63 = vld [vmem:[#allocation66_spill] sm:$0xff] }
 0xdbe   :  { %9368 = vmatpush1.bf16.msra.mxu1 %v16964_v59  ;;  %v18504_v59 = vld [vmem:[#allocation67_spill] sm:$0xff] }
 0xdbf   :  { %9369 = vmatprep.subr.bf16.mxu1 %v16968_v39  ;;  %v16989_v39 = vld [vmem:[#allocation22 + $0x240] ss:$8 sps:$4 sm:$0xff]  }
 0xdc0   :  { %8386 = vmatpush1.bf16.msra.mxu0 %v18499_v61  ;;  %18505 = vst [vmem:[#allocation61_spill] sm:$0xff] %v16989_v39  ;;  %v16992_v61 = vld [vmem:[#allocation22 + $0x254] ss:$8 sps:$4 sm:$0xff]  }
 0xdc1   :  { %8387 = vmatprep.subr.bf16.mxu0 %v18500_v38  ;;  %18506 = vst [vmem:[#allocation62_spill] sm:$0xff] %v16992_v61  ;;  %v18507_v38 = vld [vmem:[#allocation68_spill] sm:$0xff] }
 0xdc2   :  { %9370 = vmatpush1.bf16.msra.mxu1 %v16973_v11  ;;  %v18508_v11 = vld [vmem:[#allocation69_spill] sm:$0xff] }
 0xdc3   :  { %9371 = vmatprep.subr.bf16.mxu1 %v16976_v32  ;;  %v16997_v32 = vld [vmem:[#allocation22 + $0x250] ss:$8 sps:$4 sm:$0xff]  }
 0xdc4   :  { %8388 = vmatpush1.bf16.msra.mxu0 %v18503_v63  ;;  %18509 = vst [vmem:[#allocation63_spill] sm:$0xff] %v16997_v32  ;;  %v17000_v63 = vld [vmem:[#allocation22 + $0x264] ss:$8 sps:$4 sm:$0xff]  }
 0xdc5   :  { %8389 = vmatprep.subr.bf16.mxu0 %v18504_v59  ;;  %18510 = vst [vmem:[#allocation64_spill] sm:$0xff] %v17000_v63  ;;  %v18511_v59 = vld [vmem:[#allocation70_spill] sm:$0xff] }
 0xdc6   :  { %9372 = vmatpush1.bf16.msra.mxu1 %v16981_v44  ;;  %v18512_v44 = vld [vmem:[#allocation71_spill] sm:$0xff] }
 0xdc7   :  { %9373 = vmatprep.subr.bf16.mxu1 %v16984_v22  ;;  %v17005_v22 = vld [vmem:[#allocation22 + $0x260] ss:$8 sps:$4 sm:$0xff]  }
 0xdc8   :  { %8390 = vmatpush1.bf16.msra.mxu0 %v18507_v38  ;;  %18513 = vst [vmem:[#allocation65_spill] sm:$0xff] %v17005_v22  ;;  %v17008_v38 = vld [vmem:[#allocation22 + $0x274] ss:$8 sps:$4 sm:$0xff]  }
 0xdc9   :  { %8391 = vmatprep.subr.bf16.mxu0 %v18508_v11  ;;  %18514 = vst [vmem:[#allocation66_spill] sm:$0xff] %v17008_v38  ;;  %v18515_v11 = vld [vmem:[#allocation72_spill] sm:$0xff] }
 0xdca   :  { %9374 = vmatpush1.bf16.msra.mxu1 %v16989_v39  ;;  %v18516_v39 = vld [vmem:[#allocation73_spill] sm:$0xff] }
 0xdcb   :  { %9375 = vmatprep.subr.bf16.mxu1 %v16992_v61  ;;  %v17013_v61 = vld [vmem:[#allocation22 + $0x270] ss:$8 sps:$4 sm:$0xff]  }
 0xdcc   :  { %8392 = vmatpush1.bf16.msra.mxu0 %v18511_v59  ;;  %18517 = vst [vmem:[#allocation67_spill] sm:$0xff] %v17013_v61  ;;  %v17016_v59 = vld [vmem:[#allocation22 + $0x284] ss:$8 sps:$4 sm:$0xff]  }
 0xdcd   :  { %8393 = vmatprep.subr.bf16.mxu0 %v18512_v44  ;;  %18518 = vst [vmem:[#allocation68_spill] sm:$0xff] %v17016_v59  ;;  %v18519_v44 = vld [vmem:[#allocation74_spill] sm:$0xff] }
 0xdce   :  { %9376 = vmatpush1.bf16.msra.mxu1 %v16997_v32  ;;  %v18520_v32 = vld [vmem:[#allocation75_spill] sm:$0xff] }
 0xdcf   :  { %9377 = vmatprep.subr.bf16.mxu1 %v17000_v63  ;;  %v17021_v63 = vld [vmem:[#allocation22 + $0x280] ss:$8 sps:$4 sm:$0xff]  }
 0xdd0   :  { %8394 = vmatpush1.bf16.msra.mxu0 %v18515_v11  ;;  %18521 = vst [vmem:[#allocation69_spill] sm:$0xff] %v17021_v63  ;;  %v17024_v11 = vld [vmem:[#allocation22 + $0x294] ss:$8 sps:$4 sm:$0xff]  }
 0xdd1   :  { %8395 = vmatprep.subr.bf16.mxu0 %v18516_v39  ;;  %18522 = vst [vmem:[#allocation70_spill] sm:$0xff] %v17024_v11  ;;  %v18523_v39 = vld [vmem:[#allocation76_spill] sm:$0xff] }
 0xdd2   :  { %9378 = vmatpush1.bf16.msra.mxu1 %v17005_v22  ;;  %v18524_v22 = vld [vmem:[#allocation77_spill] sm:$0xff] }
 0xdd3   :  { %9379 = vmatprep.subr.bf16.mxu1 %v17008_v38  ;;  %v17029_v38 = vld [vmem:[#allocation22 + $0x290] ss:$8 sps:$4 sm:$0xff]  }
 0xdd4   :  { %8396 = vmatpush1.bf16.msra.mxu0 %v18519_v44  ;;  %18525 = vst [vmem:[#allocation71_spill] sm:$0xff] %v17029_v38  ;;  %v17032_v44 = vld [vmem:[#allocation22 + $0x2a4] ss:$8 sps:$4 sm:$0xff]  }
 0xdd5   :  { %8397 = vmatprep.subr.bf16.mxu0 %v18520_v32  ;;  %18526 = vst [vmem:[#allocation72_spill] sm:$0xff] %v17032_v44  ;;  %v18527_v32 = vld [vmem:[#allocation78_spill] sm:$0xff] }
 0xdd6   :  { %9380 = vmatpush1.bf16.msra.mxu1 %v17013_v61  ;;  %v18528_v61 = vld [vmem:[#allocation79_spill] sm:$0xff] }
 0xdd7   :  { %9381 = vmatprep.subr.bf16.mxu1 %v17016_v59  ;;  %v17037_v59 = vld [vmem:[#allocation22 + $0x2a0] ss:$8 sps:$4 sm:$0xff]  }
 0xdd8   :  { %8398 = vmatpush1.bf16.msra.mxu0 %v18523_v39  ;;  %18529 = vst [vmem:[#allocation73_spill] sm:$0xff] %v17037_v59  ;;  %v17040_v39 = vld [vmem:[#allocation22 + $0x2b4] ss:$8 sps:$4 sm:$0xff]  }
 0xdd9   :  { %8399 = vmatprep.subr.bf16.mxu0 %v18524_v22  ;;  %18530 = vst [vmem:[#allocation74_spill] sm:$0xff] %v17040_v39  ;;  %v18531_v22 = vld [vmem:[#allocation80_spill] sm:$0xff] }
 0xdda   :  { %9382 = vmatpush1.bf16.msra.mxu1 %v17021_v63  ;;  %v18532_v63 = vld [vmem:[#allocation81_spill] sm:$0xff] }
 0xddb   :  { %9383 = vmatprep.subr.bf16.mxu1 %v17024_v11  ;;  %v17045_v11 = vld [vmem:[#allocation22 + $0x2b0] ss:$8 sps:$4 sm:$0xff]  }
 0xddc   :  { %8400 = vmatpush1.bf16.msra.mxu0 %v18527_v32  ;;  %18533 = vst [vmem:[#allocation75_spill] sm:$0xff] %v17045_v11  ;;  %v17048_v32 = vld [vmem:[#allocation22 + $0x2c4] ss:$8 sps:$4 sm:$0xff]  }
 0xddd   :  { %8401 = vmatprep.subr.bf16.mxu0 %v18528_v61  ;;  %18534 = vst [vmem:[#allocation76_spill] sm:$0xff] %v17048_v32  ;;  %v18535_v61 = vld [vmem:[#allocation82_spill] sm:$0xff] }
 0xdde   :  { %9384 = vmatpush1.bf16.msra.mxu1 %v17029_v38  ;;  %v18536_v38 = vld [vmem:[#allocation83_spill] sm:$0xff] }
 0xddf   :  { %9385 = vmatprep.subr.bf16.mxu1 %v17032_v44  ;;  %v17053_v44 = vld [vmem:[#allocation22 + $0x2c0] ss:$8 sps:$4 sm:$0xff]  }
 0xde0   :  { %8402 = vmatpush1.bf16.msra.mxu0 %v18531_v22  ;;  %18537 = vst [vmem:[#allocation77_spill] sm:$0xff] %v17053_v44  ;;  %v17056_v22 = vld [vmem:[#allocation22 + $0x2d4] ss:$8 sps:$4 sm:$0xff]  }
 0xde1   :  { %8403 = vmatprep.subr.bf16.mxu0 %v18532_v63  ;;  %18538 = vst [vmem:[#allocation78_spill] sm:$0xff] %v17056_v22  ;;  %v18539_v63 = vld [vmem:[#allocation84_spill] sm:$0xff] }
 0xde2   :  { %9386 = vmatpush1.bf16.msra.mxu1 %v17037_v59  ;;  %v18540_v59 = vld [vmem:[#allocation85_spill] sm:$0xff] }
 0xde3   :  { %9387 = vmatprep.subr.bf16.mxu1 %v17040_v39  ;;  %v17061_v39 = vld [vmem:[#allocation22 + $0x2d0] ss:$8 sps:$4 sm:$0xff]  }
 0xde4   :  { %8404 = vmatpush1.bf16.msra.mxu0 %v18535_v61  ;;  %18541 = vst [vmem:[#allocation79_spill] sm:$0xff] %v17061_v39  ;;  %v17064_v61 = vld [vmem:[#allocation22 + $0x2e4] ss:$8 sps:$4 sm:$0xff]  }
 0xde5   :  { %8405 = vmatprep.subr.bf16.mxu0 %v18536_v38  ;;  %18542 = vst [vmem:[#allocation80_spill] sm:$0xff] %v17064_v61  ;;  %v18543_v38 = vld [vmem:[#allocation86_spill] sm:$0xff] }
 0xde6   :  { %9388 = vmatpush1.bf16.msra.mxu1 %v17045_v11  ;;  %v18544_v11 = vld [vmem:[#allocation87_spill] sm:$0xff] }
 0xde7   :  { %9389 = vmatprep.subr.bf16.mxu1 %v17048_v32  ;;  %v17069_v32 = vld [vmem:[#allocation22 + $0x2e0] ss:$8 sps:$4 sm:$0xff]  }
 0xde8   :  { %8406 = vmatpush1.bf16.msra.mxu0 %v18539_v63  ;;  %18545 = vst [vmem:[#allocation81_spill] sm:$0xff] %v17069_v32  ;;  %v17072_v63 = vld [vmem:[#allocation22 + $0x2f4] ss:$8 sps:$4 sm:$0xff]  }
 0xde9   :  { %8407 = vmatprep.subr.bf16.mxu0 %v18540_v59  ;;  %18546 = vst [vmem:[#allocation82_spill] sm:$0xff] %v17072_v63  ;;  %v18547_v59 = vld [vmem:[#allocation88_spill] sm:$0xff] }
 0xdea   :  { %9390 = vmatpush1.bf16.msra.mxu1 %v17053_v44  ;;  %v18548_v44 = vld [vmem:[#allocation89_spill] sm:$0xff] }
 0xdeb   :  { %9391 = vmatprep.subr.bf16.mxu1 %v17056_v22  ;;  %v17077_v22 = vld [vmem:[#allocation22 + $0x2f0] ss:$8 sps:$4 sm:$0xff]  }
 0xdec   :  { %8408 = vmatpush1.bf16.msra.mxu0 %v18543_v38  ;;  %v8254_v38 = vpack.c.bf16 %v16818_v26, %v16818_v26  ;;  %v18552_v26 = vshll.u32 %v16767_v41, 16 }
 0xded   :  { %8409 = vmatprep.subr.bf16.mxu0 %v18544_v11  ;;  %v17082_v11 = vld [vmem:[#allocation22 + $0x304] ss:$8 sps:$4 sm:$0xff]  }
 0xdee   :  { %9392 = vmatpush1.bf16.msra.mxu1 %v17061_v39  ;;  %18549 = vst [vmem:[#allocation83_spill] sm:$0xff] %v17082_v11  ;;  %v18550_v39 = vld [vmem:[#allocation90_spill] sm:$0xff] }
 0xdef   :  { %9393 = vmatprep.subr.bf16.mxu1 %v17064_v61  ;;  %v8298_v61 = vpack.c.bf16 %v16843_v6, %v16843_v6  ;;  %v18555_v6 = vld [vmem:[#allocation93_spill] sm:$0xff] }
 0xdf0   :  { %8410 = vmatpush1.bf16.msra.mxu0 %v18547_v59  ;;  %v17092_v59 = vld [vmem:[#allocation22 + $0x314] ss:$8 sps:$4 sm:$0xff]  }
 0xdf1   :  { %8411 = vmatprep.subr.bf16.mxu0 %v18548_v44  ;;  %v17089_v44 = vld [vmem:[#allocation22 + $0x300] ss:$8 sps:$4 sm:$0xff]  }
 0xdf2   :  { %9394 = vmatpush1.bf16.msra.mxu1 %v17069_v32  ;;  %v18554_v32 = vld [vmem:[#allocation92_spill] sm:$0xff] }
 0xdf3   :  { %9395 = vmatprep.subr.bf16.mxu1 %v17072_v63  ;;  %v18553_v63 = vrot.slane %v16767_v41, 1  ;;  %v18556_v41 = vld [vmem:[#allocation94_spill] sm:$0xff] }
 0xdf4   :  { %8412 = vmatpush1.bf16.msra.mxu0 %v18550_v39 }
 0xdf5   :  { %8422 = vmatprep.subr.bf16.mxu0 %v18551_v20  ;;  %v8642_v39 = vsel %vm16771_vm5, %v18553_v63, %v18552_v26  ;;  %v17104_v20 = vld [vmem:[#allocation22 + $0x310] ss:$8 sps:$4 sm:$0xff]   ;;  %v18561_v63 = vld [vmem:[#allocation97_spill] sm:$0xff] }
 0xdf6   :  { %9396 = vmatpush1.bf16.msra.mxu1 %v17077_v22  ;;  %v17120_v26 = vld [vmem:[#allocation22 + $0x330] ss:$8 sps:$4 sm:$0xff]  }
 0xdf7   :  { %8414 = vmatmul.mubr.bf16.vlgmr.msra.gmra.mrb[132].mxu0 %v8254_v38  ;;  %9406 = vmatprep.subr.bf16.mxu1 %v17082_v11  ;;  %v17107_v38 = vld [vmem:[#allocation22 + $0x324] ss:$8 sps:$4 sm:$0xff]   ;;  %v18557_v11 = vld [vmem:[#allocation95_spill] sm:$0xff]  ;;  %18562 = vst [vmem:[#allocation86_spill] sm:$0xff] %v17120_v26 }
 0xdf8   :  { %8423 = vmatpush1.bf16.msra.mxu0 %v18554_v32  ;;  %8454 = vmatprep.mubr.bf16.mxu0 %v8298_v61  ;;  %v17112_v32 = vld [vmem:[#allocation22 + $0x320] ss:$8 sps:$4 sm:$0xff]  }
 0xdf9   :  { %8424 = vmatprep.subr.bf16.mxu0 %v18555_v6  ;;  %9398 = vmatmul.mubr.bf16.vlgmr.msra.gmra.mrb[160].mxu1 %v16871_v36  ;;  %18558 = vst [vmem:[#allocation84_spill] sm:$0xff] %v17112_v32  ;;  %v17115_v36 = vld [vmem:[#allocation22 + $0x334] ss:$8 sps:$4 sm:$0xff]  }
 0xdfa   :  { %9407 = vmatpush1.bf16.msra.mxu1 %v17089_v44  ;;  %9438 = vmatprep.mubr.bf16.mxu1 %v8642_v39  ;;  %18559 = vst [vmem:[#allocation85_spill] sm:$0xff] %v17115_v36  ;;  %v18560_v61 = vld [vmem:[#allocation96_spill] sm:$0xff]  ;;  %v17123_v39 = vld [vmem:[#allocation22 + $0x344] ss:$8 sps:$4 sm:$0xff]   ;;  %v18565_v6 = vld [vmem:[#allocation103_spill] sm:$0xff] }
 0xdfb   :  { %9408 = vmatprep.subr.bf16.mxu1 %v17092_v59  ;;  %18563 = vst [vmem:[#allocation87_spill] sm:$0xff] %v17123_v39 }
 0xdfc   :  { %8425 = vmatpush1.bf16.msra.mxu0 %v18556_v41  ;;  %v17128_v41 = vld [vmem:[#allocation22 + $0x340] ss:$8 sps:$4 sm:$0xff]  }
 0xdfd   :  { %8426 = vmatprep.subr.bf16.mxu0 %v18557_v11  ;;  %v18564_v11 = vld [vmem:[#allocation102_spill] sm:$0xff]  ;;  %18566 = vst [vmem:[#allocation88_spill] sm:$0xff] %v17128_v41 }
 0xdfe   :  { %9409 = vmatpush1.bf16.msra.mxu1 %v17104_v20 }
 0xdff   :  { %9410 = vmatprep.subr.bf16.mxu1 %v17107_v38 }
 0xe00   :  { %8427 = vmatpush1.bf16.msra.mxu0 %v18560_v61  ;;  %v17131_v61 = vld [vmem:[#allocation22 + $0x354] ss:$8 sps:$4 sm:$0xff]  }
 0xe01   :  { %8428 = vmatprep.subr.bf16.mxu0 %v18561_v63  ;;  %18567 = vst [vmem:[#allocation89_spill] sm:$0xff] %v17131_v61  ;;  %v18568_v63 = vld [vmem:[#allocation104_spill] sm:$0xff] }
 0xe02   :  { %9411 = vmatpush1.bf16.msra.mxu1 %v17112_v32  ;;  %v18569_v32 = vld [vmem:[#allocation105_spill] sm:$0xff] }
 0xe03   :  { %9412 = vmatprep.subr.bf16.mxu1 %v17115_v36  ;;  %v17136_v36 = vld [vmem:[#allocation22 + $0x350] ss:$8 sps:$4 sm:$0xff]  }
 0xe04   :  { %8429 = vmatpush1.bf16.msra.mxu0 %v18564_v11  ;;  %18570 = vst [vmem:[#allocation90_spill] sm:$0xff] %v17136_v36  ;;  %v17139_v11 = vld [vmem:[#allocation22 + $0x364] ss:$8 sps:$4 sm:$0xff]  }
 0xe05   :  { %8430 = vmatprep.subr.bf16.mxu0 %v18565_v6  ;;  %18571 = vst [vmem:[#allocation91_spill] sm:$0xff] %v17139_v11  ;;  %v18572_v6 = vld [vmem:[#allocation106_spill] sm:$0xff] }
 0xe06   :  { %9413 = vmatpush1.bf16.msra.mxu1 %v17120_v26  ;;  %v18573_v26 = vld [vmem:[#allocation107_spill] sm:$0xff] }
 0xe07   :  { %9414 = vmatprep.subr.bf16.mxu1 %v17123_v39  ;;  %v17144_v39 = vld [vmem:[#allocation22 + $0x360] ss:$8 sps:$4 sm:$0xff]  }
 0xe08   :  { %8431 = vmatpush1.bf16.msra.mxu0 %v18568_v63  ;;  %18574 = vst [vmem:[#allocation92_spill] sm:$0xff] %v17144_v39  ;;  %v17147_v63 = vld [vmem:[#allocation22 + $0x374] ss:$8 sps:$4 sm:$0xff]  }
 0xe09   :  { %8432 = vmatprep.subr.bf16.mxu0 %v18569_v32  ;;  %18575 = vst [vmem:[#allocation93_spill] sm:$0xff] %v17147_v63  ;;  %v18576_v32 = vld [vmem:[#allocation108_spill] sm:$0xff] }
 0xe0a   :  { %9415 = vmatpush1.bf16.msra.mxu1 %v17128_v41  ;;  %v18577_v41 = vld [vmem:[#allocation109_spill] sm:$0xff] }
 0xe0b   :  { %9416 = vmatprep.subr.bf16.mxu1 %v17131_v61  ;;  %v17152_v61 = vld [vmem:[#allocation22 + $0x370] ss:$8 sps:$4 sm:$0xff]  }
 0xe0c   :  { %8433 = vmatpush1.bf16.msra.mxu0 %v18572_v6  ;;  %18578 = vst [vmem:[#allocation94_spill] sm:$0xff] %v17152_v61  ;;  %v17155_v6 = vld [vmem:[#allocation22 + $0x384] ss:$8 sps:$4 sm:$0xff]  }
 0xe0d   :  { %8434 = vmatprep.subr.bf16.mxu0 %v18573_v26  ;;  %18579 = vst [vmem:[#allocation95_spill] sm:$0xff] %v17155_v6  ;;  %v18580_v26 = vld [vmem:[#allocation110_spill] sm:$0xff] }
 0xe0e   :  { %9417 = vmatpush1.bf16.msra.mxu1 %v17136_v36  ;;  %v18581_v36 = vld [vmem:[#allocation111_spill] sm:$0xff] }
 0xe0f   :  { %9418 = vmatprep.subr.bf16.mxu1 %v17139_v11  ;;  %v17160_v11 = vld [vmem:[#allocation22 + $0x380] ss:$8 sps:$4 sm:$0xff]  }
 0xe10   :  { %8435 = vmatpush1.bf16.msra.mxu0 %v18576_v32  ;;  %18582 = vst [vmem:[#allocation96_spill] sm:$0xff] %v17160_v11  ;;  %v17163_v32 = vld [vmem:[#allocation22 + $0x394] ss:$8 sps:$4 sm:$0xff]  }
 0xe11   :  { %8436 = vmatprep.subr.bf16.mxu0 %v18577_v41  ;;  %18583 = vst [vmem:[#allocation97_spill] sm:$0xff] %v17163_v32  ;;  %v18584_v41 = vld [vmem:[#allocation112_spill] sm:$0xff] }
 0xe12   :  { %9419 = vmatpush1.bf16.msra.mxu1 %v17144_v39  ;;  %v18585_v39 = vld [vmem:[#allocation113_spill] sm:$0xff] }
 0xe13   :  { %9420 = vmatprep.subr.bf16.mxu1 %v17147_v63  ;;  %v17168_v63 = vld [vmem:[#allocation22 + $0x390] ss:$8 sps:$4 sm:$0xff]  }
 0xe14   :  { %8437 = vmatpush1.bf16.msra.mxu0 %v18580_v26  ;;  %18586 = vst [vmem:[#allocation102_spill] sm:$0xff] %v17168_v63  ;;  %v17171_v26 = vld [vmem:[#allocation22 + $0x3a4] ss:$8 sps:$4 sm:$0xff]  }
 0xe15   :  { %8438 = vmatprep.subr.bf16.mxu0 %v18581_v36  ;;  %18587 = vst [vmem:[#allocation103_spill] sm:$0xff] %v17171_v26  ;;  %v18588_v36 = vld [vmem:[#allocation114_spill] sm:$0xff] }
 0xe16   :  { %9421 = vmatpush1.bf16.msra.mxu1 %v17152_v61  ;;  %v18589_v61 = vld [vmem:[#allocation115_spill] sm:$0xff] }
 0xe17   :  { %9422 = vmatprep.subr.bf16.mxu1 %v17155_v6  ;;  %v17176_v6 = vld [vmem:[#allocation22 + $0x3a0] ss:$8 sps:$4 sm:$0xff]  }
 0xe18   :  { %8439 = vmatpush1.bf16.msra.mxu0 %v18584_v41  ;;  %18590 = vst [vmem:[#allocation104_spill] sm:$0xff] %v17176_v6  ;;  %v17179_v41 = vld [vmem:[#allocation22 + $0x3b4] ss:$8 sps:$4 sm:$0xff]  }
 0xe19   :  { %8440 = vmatprep.subr.bf16.mxu0 %v18585_v39  ;;  %18591 = vst [vmem:[#allocation105_spill] sm:$0xff] %v17179_v41  ;;  %v18592_v39 = vld [vmem:[#allocation116_spill] sm:$0xff] }
 0xe1a   :  { %9423 = vmatpush1.bf16.msra.mxu1 %v17160_v11  ;;  %v18593_v11 = vld [vmem:[#allocation117_spill] sm:$0xff] }
 0xe1b   :  { %9424 = vmatprep.subr.bf16.mxu1 %v17163_v32  ;;  %v17184_v32 = vld [vmem:[#allocation22 + $0x3b0] ss:$8 sps:$4 sm:$0xff]  }
 0xe1c   :  { %8441 = vmatpush1.bf16.msra.mxu0 %v18588_v36  ;;  %18594 = vst [vmem:[#allocation106_spill] sm:$0xff] %v17184_v32  ;;  %v17187_v36 = vld [vmem:[#allocation22 + $0x3c4] ss:$8 sps:$4 sm:$0xff]  }
 0xe1d   :  { %8442 = vmatprep.subr.bf16.mxu0 %v18589_v61  ;;  %18595 = vst [vmem:[#allocation107_spill] sm:$0xff] %v17187_v36  ;;  %v18596_v61 = vld [vmem:[#allocation118_spill] sm:$0xff] }
 0xe1e   :  { %9425 = vmatpush1.bf16.msra.mxu1 %v17168_v63  ;;  %v18597_v63 = vld [vmem:[#allocation119_spill] sm:$0xff] }
 0xe1f   :  { %9426 = vmatprep.subr.bf16.mxu1 %v17171_v26  ;;  %v17192_v26 = vld [vmem:[#allocation22 + $0x3c0] ss:$8 sps:$4 sm:$0xff]  }
 0xe20   :  { %8443 = vmatpush1.bf16.msra.mxu0 %v18592_v39  ;;  %18598 = vst [vmem:[#allocation108_spill] sm:$0xff] %v17192_v26  ;;  %v17195_v39 = vld [vmem:[#allocation22 + $0x3d4] ss:$8 sps:$4 sm:$0xff]  }
 0xe21   :  { %8444 = vmatprep.subr.bf16.mxu0 %v18593_v11  ;;  %18599 = vst [vmem:[#allocation109_spill] sm:$0xff] %v17195_v39  ;;  %v18600_v11 = vld [vmem:[#allocation120_spill] sm:$0xff] }
 0xe22   :  { %9427 = vmatpush1.bf16.msra.mxu1 %v17176_v6  ;;  %v18601_v6 = vld [vmem:[#allocation121_spill] sm:$0xff] }
 0xe23   :  { %9428 = vmatprep.subr.bf16.mxu1 %v17179_v41  ;;  %v17200_v41 = vld [vmem:[#allocation22 + $0x3d0] ss:$8 sps:$4 sm:$0xff]  }
 0xe24   :  { %8445 = vmatpush1.bf16.msra.mxu0 %v18596_v61  ;;  %v17203_v61 = vld [vmem:[#allocation22 + $0x3e4] ss:$8 sps:$4 sm:$0xff]  }
 0xe25   :  { %8446 = vmatprep.subr.bf16.mxu0 %v18597_v63  ;;  %18602 = vst [vmem:[#allocation110_spill] sm:$0xff] %v17203_v61  ;;  %v18603_v63 = vld [vmem:[#allocation122_spill] sm:$0xff] }
 0xe26   :  { %9429 = vmatpush1.bf16.msra.mxu1 %v17184_v32  ;;  %v18604_v32 = vld [vmem:[#allocation123_spill] sm:$0xff] }
 0xe27   :  { %9430 = vmatprep.subr.bf16.mxu1 %v17187_v36  ;;  %v17208_v36 = vld [vmem:[#allocation22 + $0x3e0] ss:$8 sps:$4 sm:$0xff]  }
 0xe28   :  { %8447 = vmatpush1.bf16.msra.mxu0 %v18600_v11  ;;  %v17211_v11 = vld [vmem:[#allocation22 + $0x3f4] ss:$8 sps:$4 sm:$0xff]  }
 0xe29   :  { %8448 = vmatprep.subr.bf16.mxu0 %v18601_v6  ;;  %v18605_v6 = vld [vmem:[#allocation124_spill] sm:$0xff] }
 0xe2a   :  { %9431 = vmatpush1.bf16.msra.mxu1 %v17192_v26  ;;  %v18606_v26 = vld [vmem:[#allocation125_spill] sm:$0xff] }
 0xe2b   :  { %9432 = vmatprep.subr.bf16.mxu1 %v17195_v39  ;;  %v17216_v39 = vld [vmem:[#allocation22 + $0x3f0] ss:$8 sps:$4 sm:$0xff]  }
 0xe2c   :  { %8449 = vmatpush1.bf16.msra.mxu0 %v18603_v63  ;;  %v18607_v63 = vld [vmem:[#allocation126_spill] sm:$0xff] }
 0xe2d   :  { %8450 = vmatprep.subr.bf16.mxu0 %v18604_v32  ;;  %v8297_v32 = vpack.c.bf16 %v16838_v57, %v16838_v57  ;;  %v18621_v57 = vld [vmem:[#allocation42_spill] sm:$0xff] }
 0xe2e   :  { %9433 = vmatpush1.bf16.msra.mxu1 %v17200_v41 }
 0xe2f   :  { %9434 = vmatprep.subr.bf16.mxu1 %v17203_v61  ;;  %v18608_v61 = vshll.u32 %v16765_v46, 16 }
 0xe30   :  { %8451 = vmatpush1.bf16.msra.mxu0 %v18605_v6  ;;  %v18609_v6 = vrot.slane %v16765_v46, 1  ;;  %v18613_v46 = vld [vmem:[#allocation99_spill] sm:$0xff] }
 0xe31   :  { %8452 = vmatprep.subr.bf16.mxu0 %v18606_v26 }
 0xe32   :  { %9435 = vmatpush1.bf16.msra.mxu1 %v17208_v36  ;;  %v8641_v26 = vsel %vm16771_vm5, %v18609_v6, %v18608_v61  ;;  %v18622_v61 = vld [vmem:[#allocation43_spill] sm:$0xff]  ;;  %v18625_v6 = vld [vmem:[#allocation46_spill] sm:$0xff] }
 0xe33   :  { %9436 = vmatprep.subr.bf16.mxu1 %v17211_v11 }
 0xe34   :  { %8453 = vmatpush1.bf16.msra.mxu0 %v16587_v40 }
 0xe35   :  { %9532 = vmatprep.subr.bf16.mxu0 %v18607_v63  ;;  %v18624_v63 = vld [vmem:[#allocation45_spill] sm:$0xff] }
 0xe36   :  { %9437 = vmatpush1.bf16.msra.mxu1 %v17216_v39 }
 0xe37   :  { %8455 = vmatmul.mubr.bf16.vlgmr.msra.gmra.mrb[132].mxu0 %v8297_v32  ;;  %v18623_v32 = vld [vmem:[#allocation44_spill] sm:$0xff] }
 0xe38   :  { %9533 = vmatpush1.bf16.msra.mxu0 %v16597_v50 }
 0xe39   :  { %9439 = vmatmul.mubr.bf16.vlgmr.msra.gmra.mrb[160].mxu1 %v8641_v26  ;;  %9534 = vmatprep.subr.bf16.mxu0 %v16601_v3  ;;  %v18626_v26 = vld [vmem:[#allocation47_spill] sm:$0xff] }
 0xe3c   :  { %9535 = vmatpush1.bf16.msra.mxu0 %v16605_v28 }
 0xe3d   :  { %9536 = vmatprep.subr.bf16.mxu0 %v16608_v51 }
 0xe40   :  { %9537 = vmatpush1.bf16.msra.mxu0 %v16612_v17 }
 0xe41   :  { %9538 = vmatprep.subr.bf16.mxu0 %v16616_v18 }
 0xe44   :  { %9539 = vmatpush1.bf16.msra.mxu0 %v16620_v12 }
 0xe45   :  { %9540 = vmatprep.subr.bf16.mxu0 %v16625_v31 }
 0xe48   :  { %9541 = vmatpush1.bf16.msra.mxu0 %v16630_v54 }
 0xe49   :  { %9542 = vmatprep.subr.bf16.mxu0 %v16633_v10 }
 0xe4c   :  { %9543 = vmatpush1.bf16.msra.mxu0 %v16636_v43 }
 0xe4d   :  { %9544 = vmatprep.subr.bf16.mxu0 %v16641_v56 }
 0xe50   :  { %9545 = vmatpush1.bf16.msra.mxu0 %v16646_v0 }
 0xe51   :  { %9546 = vmatprep.subr.bf16.mxu0 %v16649_v55 }
 0xe54   :  { %9547 = vmatpush1.bf16.msra.mxu0 %v16652_v49 }
 0xe55   :  { %9548 = vmatprep.subr.bf16.mxu0 %v16690_v24 }
 0xe58   :  { %9549 = vmatpush1.bf16.msra.mxu0 %v16693_v52 }
 0xe59   :  { %9550 = vmatprep.subr.bf16.mxu0 %v16698_v5 }
 0xe5c   :  { %9551 = vmatpush1.bf16.msra.mxu0 %v16701_v33 }
 0xe5d   :  { %9552 = vmatprep.subr.bf16.mxu0 %v16706_v16 }
 0xe60   :  { %9553 = vmatpush1.bf16.msra.mxu0 %v16708_v15 }
 0xe61   :  { %9554 = vmatprep.subr.bf16.mxu0 %v16712_v21 }
 0xe64   :  { %9555 = vmatpush1.bf16.msra.mxu0 %v16714_v34 }
 0xe65   :  { %9556 = vmatprep.subr.bf16.mxu0 %v16718_v58 }
 0xe68   :  { %9557 = vmatpush1.bf16.msra.mxu0 %v16720_v37 }
 0xe69   :  { %9558 = vmatprep.subr.bf16.mxu0 %v16724_v29 }
 0xe6c   :  { %9559 = vmatpush1.bf16.msra.mxu0 %v16726_v2 }
 0xe6d   :  { %9560 = vmatprep.subr.bf16.mxu0 %v16730_v27 }
 0xe70   :  { %9561 = vmatpush1.bf16.msra.mxu0 %v16732_v53 }
 0xe71   :  { %9562 = vmatprep.subr.bf16.mxu0 %v16736_v30 }
 0xe74   :  { %9563 = vmatpush1.bf16.msra.mxu0 %v16738_v4 }
 0xe75   :  { %9573 = vmatprep.subr.bf16.mxu0 %v16742_v45 }
 0xf0a   :  { %v8456_v50 = vpop.f32.mrb[132].mxu0 }
 0xf0b   :  { %v8463_v40 = vmul.f32 %v8456_v50, %v16750_v13  ;;  %v8458_v3 = vpop.f32.mrb[133].mxu0  ;;  %v18627_v50 = vld [vmem:[#allocation48_spill] sm:$0xff] }
 0xf0c   :  { %v8464_v28 = vmul.f32 %v8458_v3, %v16753_v19  ;;  %v8460_v51 = vpop.f32.mrb[134].mxu0  ;;  %v17264_v17 = vpop.f32.mrb[160].mxu1  ;;  %v18610_v19 = vld [vmem:[#allocation127_spill] sm:$0xff]  ;;  %v18629_v3 = vld [vmem:[#allocation50_spill] sm:$0xff] }
 0xf0d   :  { %v8465_v18 = vadd.f32 %v8463_v40, %v16756_v14  ;;  %v8461_v12 = vpop.f32.mrb[135].mxu0  ;;  %v17267_v31 = vpop.f32.mrb[161].mxu1  ;;  %v18611_v14 = vld [vmem:[#allocation128_spill] sm:$0xff]  ;;  %v18628_v40 = vld [vmem:[#allocation49_spill] sm:$0xff] }
 0xf0e   :  { %v8466_v54 = vadd.f32 %v8464_v28, %v16759_v48  ;;  %v9444_v10 = vpop.f32.mrb[162].mxu1  ;;  %v18612_v48 = vld [vmem:[#allocation98_spill] sm:$0xff]  ;;  %v18630_v28 = vld [vmem:[#allocation51_spill] sm:$0xff]  ;;  %v18631_v51 = vld [vmem:[#allocation52_spill] sm:$0xff] }
 0xf0f   :  { %vm8467_vm6 = vcmp.ge.f32.partialorder %v8465_v18, 0.0  ;;  %v8469_v43 = vmul.f32 0.2, %v8465_v18  ;;  %v9445_v56 = vpop.f32.mrb[163].mxu1  ;;  %v12610_v10 = vld [vmem:[%s17529_s19 + $0x40] sm:$0xff]  }
 0xf10   :  { %vm8468_vm7 = vcmp.ge.f32.partialorder %v8466_v54, 0.0  ;;  %v8470_v0 = vmul.f32 0.2, %v8466_v54  ;;  %v12612_v56 = vld [vmem:[%s17529_s19 + $0x48] sm:$0xff]   ;;  %11076 = vmatprep.subr.bf16.mxu1 %v12610_v10 }
 0xf11   :  { %v8471_v55 = vsel %vm8467_vm6, %v8465_v18, %v8469_v43  ;;  %v18632_v18 = vld [vmem:[#allocation53_spill] sm:$0xff]  ;;  %v12611_v43 = vld [vmem:[%s17529_s19] sm:$0xff]  }
 0xf12   :  { %v8473_v49 = vpack.c.bf16 %v8471_v55, %v8471_v55  ;;  %v8472_v24 = vsel %vm8468_vm7, %v8466_v54, %v8470_v0  ;;  %11077 = vmatpush3.bf16.msra.mxu1 %v12611_v43  ;;  %v12614_v0 = vld [vmem:[%s17529_s19 + $0x50] sm:$0xff]   ;;  %v18634_v55 = vld [vmem:[#allocation55_spill] sm:$0xff]  ;;  %v18679_v10 = vld [vmem:[#allocation104_spill] sm:$0xff] }
 0xf13   :  { %v8474_v52 = vpack.c.bf16 %v8472_v24, %v8472_v24  ;;  %11078 = vmatprep.subr.bf16.mxu1 %v12612_v56  ;;  %v12616_v24 = vld [vmem:[%s17529_s19 + $0x58] sm:$0xff]   ;;  %v18680_v43 = vld [vmem:[#allocation105_spill] sm:$0xff] }
 0xf14   :  { %v9497_v5 = vshrl.u32 %v8473_v49, 16  ;;  %v9508_v33 = vshll.u32 %v8473_v49, 16  ;;  %v9522_v16 = vrot.slane %v8473_v49, 1  ;;  %v18681_v56 = vld [vmem:[#allocation106_spill] sm:$0xff] }
 0xf15   :  { %v9501_v15 = vshrl.u32 %v8474_v52, 16  ;;  %v9511_v21 = vshll.u32 %v8474_v52, 16  ;;  %v9523_v34 = vrot.slane %v8474_v52, 1 }
 0xf16   :  { %v9499_v58 = vrot.slane %v9497_v5, 1  ;;  %v17272_v37 = vsel %vm16771_vm5, %v9497_v5, %v9522_v16  ;;  %v17276_v29 = vsel %vm16771_vm5, %v9522_v16, %v9508_v33  ;;  %v9510_v12 = vrot.slane %v9508_v33, 1  ;;  %v18637_v5 = vld [vmem:[#allocation58_spill] sm:$0xff]  ;;  %v12618_v16 = vld [vmem:[%s17529_s19 + $0x60] sm:$0xff]  }
 0xf17   :  { %v9503_v2 = vrot.slane %v9501_v15, 1  ;;  %v9513_v27 = vrot.slane %v9511_v21, 1  ;;  %v9527_v53 = vsel %vm16771_vm5, %v9501_v15, %v9523_v34  ;;  %v17282_v30 = vsel %vm16771_vm5, %v9523_v34, %v9511_v21  ;;  %v12617_v33 = vld [vmem:[%s17529_s19 + $0x18] sm:$0xff]   ;;  %v18639_v21 = vld [vmem:[#allocation60_spill] sm:$0xff] }
 0xf18   :  { %v9506_v45 = vsel %vm16771_vm5, %v9499_v58, %v8473_v49  ;;  %v9516_v54 = vsel %vm16771_vm5, %v8473_v49, %v9510_v12  ;;  %v18635_v49 = vld [vmem:[#allocation56_spill] sm:$0xff]  ;;  %v18638_v15 = vld [vmem:[#allocation59_spill] sm:$0xff]  ;;  %v18640_v58 = vld [vmem:[#allocation61_spill] sm:$0xff] }
 0xf19   :  { %v9507_v4 = vsel %vm16771_vm5, %v9503_v2, %v8474_v52  ;;  %v9517_v13 = vsel %vm16771_vm5, %v8474_v52, %v9513_v27  ;;  %v18636_v52 = vld [vmem:[#allocation57_spill] sm:$0xff]  ;;  %v12619_v34 = vld [vmem:[%s17529_s19 + $0x20] sm:$0xff]   ;;  %v18641_v2 = vld [vmem:[#allocation62_spill] sm:$0xff] }
 0xf1a   :  { %9564 = vmatprep.mubr.bf16.mxu0 %v9507_v4  ;;  %v18642_v27 = vld [vmem:[#allocation63_spill] sm:$0xff]  ;;  %v18644_v4 = vld [vmem:[#allocation65_spill] sm:$0xff]  ;;  %v18677_v12 = vld [vmem:[#allocation102_spill] sm:$0xff] }
 0xf1b   :  { %9565 = vmatmul.mubr.bf16.vlgmr.msra.gmra.mrb[136].mxu0 %v9506_v45  ;;  %v18645_v45 = vld [vmem:[#allocation66_spill] sm:$0xff] }
 0xf1c   :  { %9574 = vmatpush1.bf16.msra.mxu0 %v16782_v7  ;;  %9605 = vmatprep.mubr.bf16.mxu0 %v9517_v13  ;;  %v18614_v7 = vld [vmem:[#allocation100_spill] sm:$0xff]  ;;  %v18646_v13 = vld [vmem:[#allocation67_spill] sm:$0xff] }
 0xf1d   :  { %9575 = vmatprep.subr.bf16.mxu0 %v16790_v25  ;;  %v18615_v25 = vld [vmem:[#allocation101_spill] sm:$0xff] }
 0xf20   :  { %9576 = vmatpush1.bf16.msra.mxu0 %v16798_v47  ;;  %v18616_v47 = vld [vmem:[#allocation37_spill] sm:$0xff] }
 0xf21   :  { %9577 = vmatprep.subr.bf16.mxu0 %v16803_v23  ;;  %v18617_v23 = vld [vmem:[#allocation38_spill] sm:$0xff] }
 0xf24   :  { %9578 = vmatpush1.bf16.msra.mxu0 %v16808_v9  ;;  %v18618_v9 = vld [vmem:[#allocation39_spill] sm:$0xff] }
 0xf25   :  { %9579 = vmatprep.subr.bf16.mxu0 %v16811_v35  ;;  %v18619_v35 = vld [vmem:[#allocation40_spill] sm:$0xff] }
 0xf28   :  { %9580 = vmatpush1.bf16.msra.mxu0 %v16816_v62  ;;  %v18620_v62 = vld [vmem:[#allocation41_spill] sm:$0xff] }
 0xf29   :  { %9581 = vmatprep.subr.bf16.mxu0 %v18610_v19  ;;  %v18647_v19 = vld [vmem:[#allocation68_spill] sm:$0xff] }
 0xf2c   :  { %9582 = vmatpush1.bf16.msra.mxu0 %v18611_v14  ;;  %v18648_v14 = vld [vmem:[#allocation69_spill] sm:$0xff] }
 0xf2d   :  { %9583 = vmatprep.subr.bf16.mxu0 %v18612_v48  ;;  %v18649_v48 = vld [vmem:[#allocation70_spill] sm:$0xff] }
 0xf30   :  { %9584 = vmatpush1.bf16.msra.mxu0 %v18613_v46  ;;  %v18650_v46 = vld [vmem:[#allocation71_spill] sm:$0xff] }
 0xf31   :  { %9585 = vmatprep.subr.bf16.mxu0 %v18614_v7  ;;  %v18651_v7 = vld [vmem:[#allocation72_spill] sm:$0xff] }
 0xf34   :  { %9586 = vmatpush1.bf16.msra.mxu0 %v18615_v25  ;;  %v18652_v25 = vld [vmem:[#allocation73_spill] sm:$0xff] }
 0xf35   :  { %9587 = vmatprep.subr.bf16.mxu0 %v18616_v47  ;;  %v18653_v47 = vld [vmem:[#allocation74_spill] sm:$0xff] }
 0xf38   :  { %9588 = vmatpush1.bf16.msra.mxu0 %v18617_v23  ;;  %v18654_v23 = vld [vmem:[#allocation75_spill] sm:$0xff] }
 0xf39   :  { %9589 = vmatprep.subr.bf16.mxu0 %v18618_v9  ;;  %v18655_v9 = vld [vmem:[#allocation76_spill] sm:$0xff] }
 0xf3c   :  { %9590 = vmatpush1.bf16.msra.mxu0 %v18619_v35  ;;  %v18656_v35 = vld [vmem:[#allocation77_spill] sm:$0xff] }
 0xf3d   :  { %9591 = vmatprep.subr.bf16.mxu0 %v18620_v62  ;;  %v18657_v62 = vld [vmem:[#allocation78_spill] sm:$0xff] }
 0xf40   :  { %9592 = vmatpush1.bf16.msra.mxu0 %v18621_v57  ;;  %v18658_v57 = vld [vmem:[#allocation79_spill] sm:$0xff] }
 0xf41   :  { %9593 = vmatprep.subr.bf16.mxu0 %v18622_v61  ;;  %v18659_v61 = vld [vmem:[#allocation80_spill] sm:$0xff] }
 0xf44   :  { %9594 = vmatpush1.bf16.msra.mxu0 %v18623_v32  ;;  %v18660_v32 = vld [vmem:[#allocation81_spill] sm:$0xff] }
 0xf45   :  { %9595 = vmatprep.subr.bf16.mxu0 %v18624_v63  ;;  %v18661_v63 = vld [vmem:[#allocation82_spill] sm:$0xff] }
 0xf48   :  { %9596 = vmatpush1.bf16.msra.mxu0 %v18625_v6  ;;  %v18662_v6 = vld [vmem:[#allocation83_spill] sm:$0xff] }
 0xf49   :  { %9597 = vmatprep.subr.bf16.mxu0 %v18626_v26  ;;  %v18663_v26 = vld [vmem:[#allocation84_spill] sm:$0xff] }
 0xf4c   :  { %9598 = vmatpush1.bf16.msra.mxu0 %v18627_v50  ;;  %v18664_v50 = vld [vmem:[#allocation85_spill] sm:$0xff] }
 0xf4d   :  { %9599 = vmatprep.subr.bf16.mxu0 %v18628_v40  ;;  %v18665_v40 = vld [vmem:[#allocation86_spill] sm:$0xff] }
 0xf50   :  { %9600 = vmatpush1.bf16.msra.mxu0 %v18629_v3  ;;  %v18667_v3 = vld [vmem:[#allocation88_spill] sm:$0xff] }
 0xf51   :  { %9601 = vmatprep.subr.bf16.mxu0 %v18630_v28  ;;  %v18674_v28 = vld [vmem:[#allocation95_spill] sm:$0xff] }
 0xf54   :  { %9602 = vmatpush1.bf16.msra.mxu0 %v18631_v51  ;;  %v18675_v51 = vld [vmem:[#allocation96_spill] sm:$0xff] }
 0xf55   :  { %9603 = vmatprep.subr.bf16.mxu0 %v18632_v18  ;;  %v18676_v18 = vld [vmem:[#allocation97_spill] sm:$0xff] }
 0xf58   :  { %9604 = vmatpush1.bf16.msra.mxu0 %v16939_v42  ;;  %v12613_v42 = vld [vmem:[%s17529_s19 + $0x8] sm:$0xff]  }
 0xf59   :  { %9614 = vmatprep.subr.bf16.mxu0 %v16946_v8  ;;  %v18633_v8 = vld [vmem:[#allocation54_spill] sm:$0xff]  ;;  %11079 = vmatpush3.bf16.msra.mxu1 %v12613_v42  ;;  %v18683_v42 = vld [vmem:[#allocation108_spill] sm:$0xff] }
 0xf5a   :  { %11080 = vmatprep.subr.bf16.mxu1 %v12614_v0  ;;  %v18684_v0 = vld [vmem:[#allocation109_spill] sm:$0xff] }
 0xf5b   :  { %9606 = vmatmul.mubr.bf16.vlgmr.msra.gmra.mrb[136].mxu0 %v9516_v54  ;;  %v18678_v54 = vld [vmem:[#allocation103_spill] sm:$0xff] }
 0xf5c   :  { %9615 = vmatpush1.bf16.msra.mxu0 %v16953_v60  ;;  %9646 = vmatprep.mubr.bf16.mxu0 %v9527_v53  ;;  %v12615_v60 = vld [vmem:[%s17529_s19 + $0x10] sm:$0xff]   ;;  %v18643_v53 = vld [vmem:[#allocation64_spill] sm:$0xff] }
 0xf5d   :  { %9616 = vmatprep.subr.bf16.mxu0 %v18633_v8  ;;  %11081 = vmatpush3.bf16.msra.mxu1 %v12615_v60  ;;  %v18682_v8 = vld [vmem:[#allocation107_spill] sm:$0xff]  ;;  %v12621_v60 = vld [vmem:[%s17529_s19 + $0x28] sm:$0xff]  }
 0xf5e   :  { %11082 = vmatprep.subr.bf16.mxu1 %v12616_v24  ;;  %v8603_v24 = vld [vmem:[#allocation24] sm:$0xf] }
 0xf60   :  { %9617 = vmatpush1.bf16.msra.mxu0 %v18634_v55  ;;  %v18685_v55 = vld [vmem:[#allocation110_spill] sm:$0xff] }
 0xf61   :  { %9618 = vmatprep.subr.bf16.mxu0 %v18635_v49  ;;  %11083 = vmatpush3.bf16.msra.mxu1 %v12617_v33  ;;  %v12620_v49 = vld [vmem:[%s17529_s19 + $0x68] sm:$0xff]   ;;  %v18687_v33 = vld [vmem:[#allocation34_spill] sm:$0xff] }
 0xf62   :  { %11084 = vmatprep.subr.bf16.mxu1 %v12618_v16  ;;  %v9455_v16 = vrot.slane %v8603_v24, %v18687_v33 }
 0xf64   :  { %9619 = vmatpush1.bf16.msra.mxu0 %v18636_v52  ;;  %v18686_v52 = vld [vmem:[#allocation33_spill] sm:$0xff] }
 0xf65   :  { %9620 = vmatprep.subr.bf16.mxu0 %v18637_v5  ;;  %11085 = vmatpush3.bf16.msra.mxu1 %v12619_v34  ;;  %v9451_v5 = vrot.slane %v8603_v24, %v18686_v52 }
 0xf66   :  { %11086 = vmatprep.subr.bf16.mxu1 %v12620_v49  ;;  %v12635_v49 = vld [vmem:[%s17529_s19 + $0xa0] sm:$0xff]  }
 0xf68   :  { %9621 = vmatpush1.bf16.msra.mxu0 %v18638_v15  ;;  %v9461_v15 = vrot.slane %v9451_v5, %v18686_v52 }
 0xf69   :  { %9622 = vmatprep.subr.bf16.mxu0 %v18639_v21  ;;  %11087 = vmatpush3.bf16.msra.mxu1 %v12621_v60  ;;  %v18688_v21 = vld [vmem:[#allocation35_spill] sm:$0xff]  ;;  %v12636_v60 = vld [vmem:[%s17529_s19 + $0xe8] sm:$0xff]  }
 0xf6a   :  { %v9471_v34 = vrot.slane %v8603_v24, %v18688_v21 }
 0xf6c   :  { %9623 = vmatpush1.bf16.msra.mxu0 %v18640_v58  ;;  %v9465_v58 = vrot.slane %v9455_v16, %v18686_v52 }
 0xf6d   :  { %9624 = vmatprep.subr.bf16.mxu0 %v18641_v2  ;;  %v18689_v2 = vld [vmem:[#allocation36_spill] sm:$0xff] }
 0xf70   :  { %9625 = vmatpush1.bf16.msra.mxu0 %v18642_v27  ;;  %v9475_v27 = vrot.slane %v8603_v24, %v18689_v2 }
 0xf71   :  { %9626 = vmatprep.subr.bf16.mxu0 %v18643_v53  ;;  %v9466_v53 = vmul.f32 %v9461_v15, %v17264_v17 }
 0xf74   :  { %9627 = vmatpush1.bf16.msra.mxu0 %v18644_v4  ;;  %v9481_v4 = vrot.slane %v9471_v34, %v18688_v21 }
 0xf75   :  { %9628 = vmatprep.subr.bf16.mxu0 %v18645_v45  ;;  %v9467_v45 = vmul.f32 %v9465_v58, %v17267_v31 }
 0xf78   :  { %9629 = vmatpush1.bf16.msra.mxu0 %v18646_v13  ;;  %v9485_v13 = vrot.slane %v9475_v27, %v18688_v21 }
 0xf79   :  { %9630 = vmatprep.subr.bf16.mxu0 %v18647_v19  ;;  %v9486_v19 = vadd.f32 %v9481_v4, %v9466_v53 }
 0xf7b   :  { %vm9488_vm8 = vcmp.ge.f32.partialorder %v9486_v19, 0.0 }
 0xf7c   :  { %9631 = vmatpush1.bf16.msra.mxu0 %v18648_v14  ;;  %v9487_v14 = vadd.f32 %v9485_v13, %v9467_v45 }
 0xf7d   :  { %9632 = vmatprep.subr.bf16.mxu0 %v18649_v48 }
 0xf7e   :  { %vm9489_vm9 = vcmp.ge.f32.partialorder %v9487_v14, 0.0 }
 0xf80   :  { %9633 = vmatpush1.bf16.msra.mxu0 %v18650_v46  ;;  %v9490_v46 = vmul.f32 0.2, %v9486_v19 }
 0xf81   :  { %9634 = vmatprep.subr.bf16.mxu0 %v18651_v7 }
 0xf84   :  { %9635 = vmatpush1.bf16.msra.mxu0 %v18652_v25 }
 0xf85   :  { %9636 = vmatprep.subr.bf16.mxu0 %v18653_v47  ;;  %v9491_v47 = vmul.f32 0.2, %v9487_v14 }
 0xf88   :  { %9637 = vmatpush1.bf16.msra.mxu0 %v18654_v23 }
 0xf89   :  { %9638 = vmatprep.subr.bf16.mxu0 %v18655_v9 }
 0xf8c   :  { %9639 = vmatpush1.bf16.msra.mxu0 %v18656_v35 }
 0xf8d   :  { %9640 = vmatprep.subr.bf16.mxu0 %v18657_v62 }
 0xf90   :  { %9641 = vmatpush1.bf16.msra.mxu0 %v18658_v57  ;;  %v9492_v57 = vsel %vm9488_vm8, %v9486_v19, %v9490_v46 }
 0xf91   :  { %9642 = vmatprep.subr.bf16.mxu0 %v18659_v61 }
 0xf94   :  { %9643 = vmatpush1.bf16.msra.mxu0 %v18660_v32  ;;  %v9493_v32 = vsel %vm9489_vm9, %v9487_v14, %v9491_v47 }
 0xf95   :  { %9644 = vmatprep.subr.bf16.mxu0 %v18661_v63 }
 0xf98   :  { %9645 = vmatpush1.bf16.msra.mxu0 %v17077_v22  ;;  %v18666_v22 = vld [vmem:[#allocation87_spill] sm:$0xff] }
 0xf99   :  { %9655 = vmatprep.subr.bf16.mxu0 %v18662_v6  ;;  %v9494_v6 = vpack.c.bf16 %v9492_v57, %v9492_v57 }
 0xf9b   :  { %9647 = vmatmul.mubr.bf16.vlgmr.msra.gmra.mrb[136].mxu0 %v17272_v37  ;;  %v18668_v37 = vld [vmem:[#allocation89_spill] sm:$0xff] }
 0xf9c   :  { %9656 = vmatpush1.bf16.msra.mxu0 %v17089_v44  ;;  %9687 = vmatprep.mubr.bf16.mxu0 %v17282_v30  ;;  %v18669_v44 = vld [vmem:[#allocation90_spill] sm:$0xff]  ;;  %v18670_v30 = vld [vmem:[#allocation91_spill] sm:$0xff] }
 0xf9d   :  { %9657 = vmatprep.subr.bf16.mxu0 %v17092_v59  ;;  %v18671_v59 = vld [vmem:[#allocation92_spill] sm:$0xff] }
 0xfa0   :  { %9658 = vmatpush1.bf16.msra.mxu0 %v17104_v20  ;;  %v18672_v20 = vld [vmem:[#allocation93_spill] sm:$0xff] }
 0xfa1   :  { %9659 = vmatprep.subr.bf16.mxu0 %v17107_v38  ;;  %v18673_v38 = vld [vmem:[#allocation94_spill] sm:$0xff] }
 0xfa4   :  { %9660 = vmatpush1.bf16.msra.mxu0 %v18663_v26 }
 0xfa5   :  { %9661 = vmatprep.subr.bf16.mxu0 %v18664_v50 }
 0xfa8   :  { %9662 = vmatpush1.bf16.msra.mxu0 %v18665_v40 }
 0xfa9   :  { %9663 = vmatprep.subr.bf16.mxu0 %v18666_v22  ;;  %v9495_v22 = vpack.c.bf16 %v9493_v32, %v9493_v32 }
 0xfac   :  { %9664 = vmatpush1.bf16.msra.mxu0 %v18667_v3 }
 0xfad   :  { %9665 = vmatprep.subr.bf16.mxu0 %v18668_v37 }
 0xfb0   :  { %9666 = vmatpush1.bf16.msra.mxu0 %v18669_v44 }
 0xfb1   :  { %9667 = vmatprep.subr.bf16.mxu0 %v18670_v30 }
 0xfb4   :  { %9668 = vmatpush1.bf16.msra.mxu0 %v18671_v59 }
 0xfb5   :  { %9669 = vmatprep.subr.bf16.mxu0 %v18672_v20  ;;  %v12627_v20 = vld [vmem:[%s17529_s19 + $0x80] sm:$0xff]  }
 0xfb8   :  { %9670 = vmatpush1.bf16.msra.mxu0 %v18673_v38  ;;  %v9709_v38 = vshrl.u32 %v9494_v6, 16 }
 0xfb9   :  { %9671 = vmatprep.subr.bf16.mxu0 %v18674_v28 }
 0xfbc   :  { %9672 = vmatpush1.bf16.msra.mxu0 %v18675_v51 }
 0xfbd   :  { %9673 = vmatprep.subr.bf16.mxu0 %v18676_v18  ;;  %v9712_v18 = vshrl.u32 %v9495_v22, 16 }
 0xfc0   :  { %9674 = vmatpush1.bf16.msra.mxu0 %v18677_v12 }
 0xfc1   :  { %9675 = vmatprep.subr.bf16.mxu0 %v18678_v54  ;;  %v12628_v54 = vld [vmem:[%s17529_s19 + $0xc8] sm:$0xff]  }
 0xfc4   :  { %9676 = vmatpush1.bf16.msra.mxu0 %v18679_v10 }
 0xfc5   :  { %9677 = vmatprep.subr.bf16.mxu0 %v18680_v43 }
 0xfc8   :  { %9678 = vmatpush1.bf16.msra.mxu0 %v18681_v56  ;;  %v12629_v56 = vld [vmem:[%s17529_s19 + $0x88] sm:$0xff]  }
 0xfc9   :  { %9679 = vmatprep.subr.bf16.mxu0 %v18682_v8  ;;  %v12630_v8 = vld [vmem:[%s17529_s19 + $0xd0] sm:$0xff]  }
 0xfcc   :  { %9680 = vmatpush1.bf16.msra.mxu0 %v18683_v42  ;;  %v12631_v42 = vld [vmem:[%s17529_s19 + $0x90] sm:$0xff]  }
 0xfcd   :  { %9681 = vmatprep.subr.bf16.mxu0 %v18684_v0  ;;  %v12633_v0 = vld [vmem:[%s17529_s19 + $0x98] sm:$0xff]  }
 0xfd0   :  { %9682 = vmatpush1.bf16.msra.mxu0 %v17200_v41  ;;  %v12622_v41 = vld [vmem:[%s17529_s19 + $0x70] sm:$0xff]  }
 0xfd1   :  { %9683 = vmatprep.subr.bf16.mxu0 %v18685_v55  ;;  %11088 = vmatprep.subr.bf16.mxu1 %v12622_v41  ;;  %v12634_v55 = vld [vmem:[%s17529_s19 + $0xe0] sm:$0xff]   ;;  %v12637_v41 = vld [vmem:[%s17529_s19 + $0xa8] sm:$0xff]  }
 0xfd4   :  { %9684 = vmatpush1.bf16.msra.mxu0 %v17208_v36  ;;  %v12623_v36 = vld [vmem:[%s17529_s19 + $0x30] sm:$0xff]  }
 0xfd5   :  { %9685 = vmatprep.subr.bf16.mxu0 %v17211_v11  ;;  %11089 = vmatpush3.bf16.msra.mxu1 %v12623_v36  ;;  %v12625_v11 = vld [vmem:[%s17529_s19 + $0x38] sm:$0xff]   ;;  %v12638_v36 = vld [vmem:[%s17529_s19 + $0xf0] sm:$0xff]  }
 0xfd8   :  { %9686 = vmatpush1.bf16.msra.mxu0 %v17216_v39  ;;  %v12624_v39 = vld [vmem:[%s17529_s19 + $0x78] sm:$0xff]  }
 0xfd9   :  { %11090 = vmatprep.subr.bf16.mxu1 %v12624_v39  ;;  %v12639_v39 = vld [vmem:[%s17529_s19 + $0xb0] sm:$0xff]  }
 0xfda   :  { %11091 = vmatpush3.bf16.msra.mxu1 %v12625_v11  ;;  %v12640_v11 = vld [vmem:[%s17529_s19 + $0xf8] sm:$0xff]  }
 0xfdb   :  { %9688 = vmatmul.mubr.bf16.vlgmr.msra.gmra.mrb[136].mxu0 %v17276_v29  ;;  %v12626_v29 = vld [vmem:[%s17529_s19 + $0xc0] sm:$0xff]  }
 0xfdc   :  { %11098 = vmatprep.subr.bf16.mxu1 %v12626_v29  ;;  %v12641_v29 = vld [vmem:[%s17529_s19 + $0xb8] sm:$0xff]  }
0x10ae   :  { %v9689_v48 = vpop.f32.mrb[136].mxu0 }
0x10af   :  { %v9696_v7 = vmul.f32 %v9689_v48, %v9461_v15  ;;  %v9691_v25 = vpop.f32.mrb[137].mxu0  ;;  %v10947_v15 = vld [vmem:[%s17530_s20] ss:$0 sm:$0xff] }
0x10b0   :  { %v9697_v23 = vmul.f32 %v9691_v25, %v9465_v58  ;;  %v9693_v9 = vpop.f32.mrb[138].mxu0 }
0x10b1   :  { %v9698_v35 = vadd.f32 %v9696_v7, %v9481_v4  ;;  %v9694_v62 = vpop.f32.mrb[139].mxu0 }
0x10b2   :  { %v9699_v17 = vadd.f32 %v9697_v23, %v9485_v13 }
0x10b3   :  { %vm9700_vm10 = vcmp.ge.f32.partialorder %v9698_v35, 0.0  ;;  %v9702_v61 = vmul.f32 0.2, %v9698_v35 }
0x10b4   :  { %vm9701_vm11 = vcmp.ge.f32.partialorder %v9699_v17, 0.0  ;;  %v9703_v31 = vmul.f32 0.2, %v9699_v17 }
0x10b5   :  { %v9704_v63 = vsel %vm9700_vm10, %v9698_v35, %v9702_v61 }
0x10b6   :  { %v9706_v26 = vpack.c.bf16 %v9704_v63, %v9704_v63  ;;  %v9705_v50 = vsel %vm9701_vm11, %v9699_v17, %v9703_v31 }
0x10b7   :  { %v9707_v40 = vpack.c.bf16 %v9705_v50, %v9705_v50 }
0x10b8   :  { %v9722_v3 = vshll.u32 %v9706_v26, 16  ;;  %v9717_v37 = vshrl.u32 %v9706_v26, 16 }
0x10b9   :  { %v9724_v44 = vshll.u32 %v9707_v40, 16  ;;  %v9720_v30 = vshrl.u32 %v9707_v40, 16 }
0x10ba   :  { %v9736_v59 = vsel %vm16771_vm5, %v9494_v6, %v9722_v3  ;;  %v9727_v28 = vshll.u32 %v9717_v37, 16 }
0x10bb   :  { %v9737_v51 = vsel %vm16771_vm5, %v9495_v22, %v9724_v44  ;;  %v9730_v12 = vshll.u32 %v9720_v30, 16 }
0x10bc   :  { %10035 = vmatprep.mubr.bf16.mxu1 %v9737_v51  ;;  %v9738_v10 = vsel %vm16771_vm5, %v9709_v38, %v9727_v28 }
0x10bd   :  { %10036 = vmatmul.mubr.bf16.vlgmr.msra.gmra.mrb[164].mxu1 %v9736_v59  ;;  %v9739_v43 = vsel %vm16771_vm5, %v9712_v18, %v9730_v12 }
0x10be   :  { %11099 = vmatpush3.bf16.msra.mxu1 %v12627_v20  ;;  %10075 = vmatprep.mubr.bf16.mxu1 %v9739_v43 }
0x10bf   :  { %11100 = vmatprep.subr.bf16.mxu1 %v12628_v54 }
0x10c2   :  { %11101 = vmatpush3.bf16.msra.mxu1 %v12629_v56 }
0x10c3   :  { %11102 = vmatprep.subr.bf16.mxu1 %v12630_v8 }
0x10c6   :  { %11103 = vmatpush3.bf16.msra.mxu1 %v12631_v42 }
0x10c7   :  { %11104 = vmatprep.subr.bf16.mxu1 %v12632_v1 }
0x10ca   :  { %11105 = vmatpush3.bf16.msra.mxu1 %v12633_v0 }
0x10cb   :  { %11106 = vmatprep.subr.bf16.mxu1 %v12634_v55 }
0x10ce   :  { %11107 = vmatpush3.bf16.msra.mxu1 %v12635_v49 }
0x10cf   :  { %11108 = vmatprep.subr.bf16.mxu1 %v12636_v60 }
0x10d2   :  { %11109 = vmatpush3.bf16.msra.mxu1 %v12637_v41 }
0x10d3   :  { %11110 = vmatprep.subr.bf16.mxu1 %v12638_v36 }
0x10d6   :  { %11111 = vmatpush3.bf16.msra.mxu1 %v12639_v39 }
0x10d7   :  { %11112 = vmatprep.subr.bf16.mxu1 %v12640_v11 }
0x10da   :  { %11113 = vmatpush3.bf16.msra.mxu1 %v12641_v29 }
0x10dd   :  { %10076 = vmatmul.mubr.bf16.vlgmr.msra.gmra.mrb[168].mxu1 %v9738_v10 }
0x1190   :  { %v11092_v24 = vpop.f32.mrb[164].mxu1 }
0x1191   :  { %v11093_v52 = vpop.f32.mrb[165].mxu1 }
0x1192   :  { %v11094_v5 = vadd.f32 %v11093_v52, %v11092_v24  ;;  %v11095_v33 = vpop.f32.mrb[166].mxu1 }
0x1193   :  { %v11096_v16 = vpop.f32.mrb[167].mxu1 }
0x1194   :  { %v10038_v58 = vadd.f32 %v11094_v5, %v10947_v15 }
0x11b0   :  { %v11114_v21 = vpop.f32.mrb[168].mxu1 }
0x11b1   :  { %v11115_v34 = vpop.f32.mrb[169].mxu1 }
0x11b2   :  { %v11116_v2 = vadd.f32 %v11115_v34, %v11114_v21  ;;  %v11117_v27 = vpop.f32.mrb[170].mxu1 }
0x11b3   :  { %v11118_v53 = vpop.f32.mrb[171].mxu1 }
0x11b4   :  { %v10078_v4 = vadd.f32 %v11116_v2, %v10038_v58 }
0x11b6   :  { %10083 = vst [vmem:[%s17531_s21] sm:$0x3] %v10078_v4 }
0x11b7   :  { %10088 = vsyncpa [#allocation3], 1 }
0x11b8   :  { %10089 = vsyncpa [#allocation5], 1 }
0x11b9   :  { %10090 = vsyncpa [#allocation8], 1 }
0x11ba   :  { %10091 = vsyncpa [#allocation11], 1 }
0x11bb   :  { %10092 = vsyncpa [#allocation14], 1 }
0x11bc   :  { %10093 = vsyncpa [#allocation17], 1 }
0x11bd   :  { %10094 = vsyncpa [#allocation20], 1 }
0x11be   :  { %10095 = vsyncpa [#allocation23], 1 }

</bundles_post_ra>
